<compile_context>
chip_gen: v7x
topology: tpu7x:2x2x1
jax: 0.10.0
libtpu: 0.0.40
codegen_flags: <defaults>
</compile_context>

<pallas_src>
import functools

import jax
import jax.numpy as jnp
from jax import lax
from jax.experimental import pallas as pl
from jax.experimental.pallas import tpu as pltpu

LANES = 128  # lane width of all packed slabs / output block


def _r8(v):
    return ((v + 7) // 8) * 8


def _graph_layout(npg, gpb):
    """Row offsets of the packed per-step graph slab [steps, g_rows, LW]."""
    lw = gpb * npg
    GL = dict(lw=lw, gpb=gpb, npg=npg)
    GL["r_mask"] = 0                 # [lw, lw] additive softmax mask (-1e30 off-edge)
    GL["r_eattr"] = lw               # [lw, lw] dense edge attributes (with self loops)
    GL["r_x"] = 2 * lw               # [lw, in_ch] node features (lanes 0:in_ch)
    GL["r_pool"] = 3 * lw            # [gpb, lw] mean-pool weights (1/count per graph)
    GL["r_scal"] = 3 * lw + gpb      # [gpb, lw] lane0=theta, lane1=log_h
    GL["g_rows"] = _r8(3 * lw + 2 * gpb)
    return GL


def _weight_layout(in_ch, hidden, heads, out_ch):
    """Row offsets of the single merged 128-lane weight slab [w_rows, 128]."""
    hc = heads * hidden
    ic8, hc8, a8, h8, hd8 = _r8(in_ch), _r8(hc), _r8(2 * heads), _r8(heads), _r8(hidden)
    WL = dict(hc=hc)
    WL["r_w1"] = 0                        # [in_ch, hc]   GATConv1 lin
    WL["r_w2"] = ic8                      # [hc, hc]      GATConv2 lin
    WL["r_a1"] = ic8 + hc8                # [2*heads, hc] asrc1 | adst1
    WL["r_a2"] = WL["r_a1"] + a8          # [2*heads, hc] asrc2 | adst2
    WL["r_bias"] = WL["r_a2"] + a8        # row0=b1, row1=b2            (lanes 0:hc)
    WL["r_hmask"] = WL["r_bias"] + 8      # [heads, hc]   per-head lane masks
    WL["r_c"] = WL["r_hmask"] + h8        # [2*heads,128] c1|c2 lane-broadcast
    WL["r_fc1"] = WL["r_c"] + a8          # [hc, hidden]  fc1 weight (pooled part)
    WL["r_fcx"] = WL["r_fc1"] + hc8       # row0=w_theta, row1=w_logh, row2=bfc1
    WL["r_wfc2"] = WL["r_fcx"] + 8        # [hidden, 128] fc2 weight padded to 128 lanes
    WL["r_bfc2"] = WL["r_wfc2"] + hd8     # [1, 128]      fc2 bias padded
    WL["w_rows"] = WL["r_bfc2"] + 8
    return WL


def _leaky_relu(x, slope=0.2):
    return jnp.where(x > 0, x, slope * x)


def _elu(x):
    # exp argument clamped so the untaken lane stays finite
    return jnp.where(x > 0, x, jnp.exp(jnp.minimum(x, 0.0)) - 1.0)


def _gat_layer(hb, eattr, mask_bias, asrc, adst, c_bc, bias, hmask, heads, lw):
    """Dense multi-head GAT attention on lin-transformed features hb [lw, HC] (bf16).

    eattr/mask_bias are block-diagonal across the GPB packed graphs, so the one
    [H*lw, lw] @ [lw, HC] aggregation matmul cannot mix graphs.
    """
    f32 = jnp.float32
    # All heads' attention coefficients in 2 MXU ops (no per-head M=1 dots).
    a_src = lax.dot_general(asrc, hb, (((1,), (1,)), ((), ())),
                            preferred_element_type=f32)          # [H, lw]
    a_dst = lax.dot_general(hb, adst, (((1,), (1,)), ((), ())),
                            preferred_element_type=f32)          # [lw, H]
    # Per-head logits via cheap row/column broadcasts; stacked ONCE, then a
    # single vectorized softmax over all heads (one max/exp/sum/reciprocal).
    slabs = []
    for hd in range(heads):
        slabs.append(
            _leaky_relu(a_dst[:, hd:hd + 1] + a_src[hd:hd + 1, :]
                        + eattr * c_bc[hd:hd + 1, :]) + mask_bias)
    logits = jnp.concatenate(slabs, axis=0)                      # [H*lw, lw]
    m = jnp.max(logits, axis=-1, keepdims=True)
    p = jnp.exp(logits - m)                   # masked entries underflow to 0
    attn = p * pl.reciprocal(jnp.sum(p, axis=-1, keepdims=True), approx=True)
    # Single block-structured aggregation matmul (heads stacked on sublanes).
    agg = jnp.dot(attn.astype(hb.dtype), hb,
                  preferred_element_type=f32)                    # [H*lw, HC]
    # Masked per-head recombine (VPU filler under the MXU bottleneck).
    out = agg[0:lw, :] * hmask[0:1, :]
    for hd in range(1, heads):
        out = out + agg[hd * lw:(hd + 1) * lw, :] * hmask[hd:hd + 1, :]
    return out + bias


def gat_model_kernel(g_ref, w_ref, out_ref, *, heads, hidden, in_ch, out_ch,
                     gpb, GL, WL):
    f32, bf16 = jnp.float32, jnp.bfloat16
    hc = heads * hidden
    lw = GL["lw"]

    # --- per-step packed graph blocks (GPB graphs per grid step, 128 lanes) ---
    mask_bias = g_ref[GL["r_mask"]:GL["r_mask"] + lw, :]
    eattr = g_ref[GL["r_eattr"]:GL["r_eattr"] + lw, :]
    x = g_ref[GL["r_x"]:GL["r_x"] + lw, 0:in_ch]
    pool_w = g_ref[GL["r_pool"]:GL["r_pool"] + gpb, :]
    theta_col = g_ref[GL["r_scal"]:GL["r_scal"] + gpb, 0:1]
    logh_col = g_ref[GL["r_scal"]:GL["r_scal"] + gpb, 1:2]

    # --- shared weights (constant block index -> fetched once, stays resident) ---
    w1 = w_ref[WL["r_w1"]:WL["r_w1"] + in_ch, 0:hc].astype(bf16)
    w2 = w_ref[WL["r_w2"]:WL["r_w2"] + hc, 0:hc].astype(bf16)
    asrc1 = w_ref[WL["r_a1"]:WL["r_a1"] + heads, 0:hc].astype(bf16)
    adst1 = w_ref[WL["r_a1"] + heads:WL["r_a1"] + 2 * heads, 0:hc].astype(bf16)
    asrc2 = w_ref[WL["r_a2"]:WL["r_a2"] + heads, 0:hc].astype(bf16)
    adst2 = w_ref[WL["r_a2"] + heads:WL["r_a2"] + 2 * heads, 0:hc].astype(bf16)
    b1 = w_ref[WL["r_bias"]:WL["r_bias"] + 1, 0:hc]
    b2 = w_ref[WL["r_bias"] + 1:WL["r_bias"] + 2, 0:hc]
    hmask = w_ref[WL["r_hmask"]:WL["r_hmask"] + heads, 0:hc]
    c1 = w_ref[WL["r_c"]:WL["r_c"] + heads, :]                   # lane-broadcast rows
    c2 = w_ref[WL["r_c"] + heads:WL["r_c"] + 2 * heads, :]
    wfc1 = w_ref[WL["r_fc1"]:WL["r_fc1"] + hc, 0:hidden].astype(bf16)
    w_theta = w_ref[WL["r_fcx"]:WL["r_fcx"] + 1, 0:hidden]
    w_logh = w_ref[WL["r_fcx"] + 1:WL["r_fcx"] + 2, 0:hidden]
    bfc1 = w_ref[WL["r_fcx"] + 2:WL["r_fcx"] + 3, 0:hidden]
    wfc2 = w_ref[WL["r_wfc2"]:WL["r_wfc2"] + hidden, :].astype(bf16)   # 128-lane padded
    bfc2 = w_ref[WL["r_bfc2"]:WL["r_bfc2"] + 1, :]

    # --- GATConv1 + ELU (dropout is identity at inference) ---
    h1 = jnp.dot(x.astype(bf16), w1, preferred_element_type=f32)        # [lw, hc]
    x1 = _elu(_gat_layer(h1.astype(bf16), eattr, mask_bias,
                         asrc1, adst1, c1, b1, hmask, heads, lw))
    # --- GATConv2 + ELU ---
    h2 = jnp.dot(x1.astype(bf16), w2, preferred_element_type=f32)
    x2 = _elu(_gat_layer(h2.astype(bf16), eattr, mask_bias,
                         asrc2, adst2, c2, b2, hmask, heads, lw))

    # --- batched global mean pool: all GPB graphs in one M=GPB matmul ---
    pooled = jnp.dot(pool_w.astype(bf16), x2.astype(bf16),
                     preferred_element_type=f32)                        # [gpb, hc]

    # --- fc2(relu(fc1(cat([pooled, theta, log_h])))) — batched, lane-dense out ---
    hfc = jnp.dot(pooled.astype(bf16), wfc1, preferred_element_type=f32)
    hfc = hfc + theta_col * w_theta + logh_col * w_logh + bfc1
    hfc = jnp.maximum(hfc, 0.0)                                         # ReLU
    y = jnp.dot(hfc.astype(bf16), wfc2, preferred_element_type=f32) + bfc2
    out_ref[...] = y                                                    # [gpb, 128]


def gat_model_forward(gslab, wslab, *, heads, hidden, in_ch, out_ch, gpb, GL, WL):
    steps, g_rows, lw = gslab.shape
    w_rows = wslab.shape[0]
    kernel = functools.partial(gat_model_kernel, heads=heads, hidden=hidden,
                               in_ch=in_ch, out_ch=out_ch, gpb=gpb, GL=GL, WL=WL)
    out = pl.pallas_call(
        kernel,
        out_shape=jax.ShapeDtypeStruct((steps, gpb, LANES), jnp.float32),
        grid=(steps,),
        in_specs=[
            # per-step graph slab: GPB graphs per grid step, 128-lane blocks
            pl.BlockSpec((None, g_rows, lw), lambda s: (s, 0, 0)),
            # merged 128-lane weight slab: constant block index -> DMA'd once
            # TODO(synk): pipeline_mode=pl.Buffered(1) would single-buffer this
            # constant slab; left default-buffered (tiny) for compile safety.
            pl.BlockSpec((w_rows, LANES), lambda s: (0, 0)),
        ],
        # lane-dense output: full (gpb, 128) unmasked store per step
        out_specs=pl.BlockSpec((None, gpb, LANES), lambda s: (s, 0, 0)),
        compiler_params=pltpu.CompilerParams(
            dimension_semantics=("parallel",)),      # graphs/steps are independent
    )(gslab, wslab)
    y = out[:, :, 0:out_ch].reshape(steps * gpb, out_ch)
    return y[:, 0] if out_ch == 1 else y


def pack_graph_inputs(x, src, dst, edge_attr, batch, theta, log_h,
                      *, num_graphs, npg, gpb, GL):
    """Densify the batched graph and pack GPB graphs per step into one slab."""
    f32 = jnp.float32
    N, in_ch = x.shape
    lw = GL["lw"]
    steps = num_graphs // gpb
    # adj[i, j] = 1 iff edge j -> i. PyG GATConv removes pre-existing self loops
    # then adds fill_value='mean' (mean of incoming edge attrs) self loops.
    keep = (src != dst).astype(f32)
    adj = jnp.zeros((N, N), f32).at[dst, src].max(keep)
    ea = jnp.zeros((N, N), f32).at[dst, src].set(edge_attr[:, 0] * keep)
    deg = adj.sum(axis=1)
    mean_in = jnp.where(deg > 0, ea.sum(axis=1) / jnp.maximum(deg, 1.0), 0.0)
    ii = jnp.arange(N)
    adj = adj.at[ii, ii].set(1.0)
    ea = ea.at[ii, ii].set(mean_in)
    mask_bias = jnp.where(adj > 0, 0.0, -1e30).astype(f32)
    counts = jnp.zeros((num_graphs,), f32).at[batch].add(1.0)
    inv_counts = jnp.where(counts > 0, 1.0 / jnp.maximum(counts, 1.0), 0.0)

    # per-step [lw, lw] diagonal blocks (nodes ordered by graph, equal sizes);
    # cross-graph entries are naturally masked (-1e30) since adj is 0 there.
    # TODO(synk): variable-size / non-contiguous graphs need per-graph padding.
    def step_blocks(a):
        return jnp.stack([a[s * lw:(s + 1) * lw, s * lw:(s + 1) * lw]
                          for s in range(steps)])

    lane_graph = jnp.arange(lw) // npg
    row_sel = (lane_graph[None, :] == jnp.arange(gpb)[:, None]).astype(f32)  # [gpb, lw]

    gslab = jnp.zeros((steps, GL["g_rows"], lw), f32)
    gslab = gslab.at[:, GL["r_mask"]:GL["r_mask"] + lw, :].set(step_blocks(mask_bias))
    gslab = gslab.at[:, GL["r_eattr"]:GL["r_eattr"] + lw, :].set(step_blocks(ea))
    gslab = gslab.at[:, GL["r_x"]:GL["r_x"] + lw, 0:in_ch].set(
        x.reshape(steps, lw, in_ch))
    pool = row_sel[None, :, :] * inv_counts.reshape(steps, gpb)[:, :, None]
    gslab = gslab.at[:, GL["r_pool"]:GL["r_pool"] + gpb, :].set(pool)
    gslab = gslab.at[:, GL["r_scal"]:GL["r_scal"] + gpb, 0].set(
        theta.reshape(steps, gpb).astype(f32))
    gslab = gslab.at[:, GL["r_scal"]:GL["r_scal"] + gpb, 1].set(
        log_h.reshape(steps, gpb).astype(f32))
    return gslab


def pack_params(params, *, heads, hidden, out_ch, WL):
    f32 = jnp.float32
    hc = heads * hidden
    in_ch = params["w1"].shape[0]

    w = jnp.zeros((WL["w_rows"], LANES), f32)
    w = w.at[WL["r_w1"]:WL["r_w1"] + in_ch, 0:hc].set(params["w1"])
    w = w.at[WL["r_w2"]:WL["r_w2"] + hc, 0:hc].set(params["w2"])
    w = w.at[WL["r_a1"]:WL["r_a1"] + heads, 0:hc].set(params["asrc1"])
    w = w.at[WL["r_a1"] + heads:WL["r_a1"] + 2 * heads, 0:hc].set(params["adst1"])
    w = w.at[WL["r_a2"]:WL["r_a2"] + heads, 0:hc].set(params["asrc2"])
    w = w.at[WL["r_a2"] + heads:WL["r_a2"] + 2 * heads, 0:hc].set(params["adst2"])
    w = w.at[WL["r_bias"], 0:hc].set(params["b1"])
    w = w.at[WL["r_bias"] + 1, 0:hc].set(params["b2"])
    head_masks = (jnp.arange(hc) // hidden
                  == jnp.arange(heads)[:, None]).astype(f32)
    w = w.at[WL["r_hmask"]:WL["r_hmask"] + heads, 0:hc].set(head_masks)
    # per-head edge coefficients, broadcast across all 128 lanes at pack time
    w = w.at[WL["r_c"]:WL["r_c"] + heads, :].set(
        jnp.broadcast_to(params["c1"][:, None], (heads, LANES)))
    w = w.at[WL["r_c"] + heads:WL["r_c"] + 2 * heads, :].set(
        jnp.broadcast_to(params["c2"][:, None], (heads, LANES)))
    w = w.at[WL["r_fc1"]:WL["r_fc1"] + hc, 0:hidden].set(params["wfc1a"])
    w = w.at[WL["r_fcx"], 0:hidden].set(params["wfc1b"][0])
    w = w.at[WL["r_fcx"] + 1, 0:hidden].set(params["wfc1b"][1])
    w = w.at[WL["r_fcx"] + 2, 0:hidden].set(params["bfc1"])
    w = w.at[WL["r_wfc2"]:WL["r_wfc2"] + hidden, 0:out_ch].set(params["wfc2"])
    w = w.at[WL["r_bfc2"], 0:out_ch].set(params["bfc2"])
    return w


def _pad_per_head(att):
    """[H, C] attention vectors -> [H, H*C] with each head's vector in its slot."""
    H, C = att.shape
    eye = jnp.eye(H, dtype=att.dtype)
    return (eye[:, :, None] * att[:, None, :]).reshape(H, H * C)


if __name__ == "__main__":
    key = jax.random.PRNGKey(0)
    in_channels, hidden, out_channels, heads = 8, 16, 1, 4
    HC = heads * hidden
    npg, G = 16, 16                    # 16 graphs of 16 nodes -> 2 grid steps
    GPB = max(1, LANES // npg)         # graphs packed per grid step (8)
    assert LANES % npg == 0 and G % GPB == 0
    N = G * npg
    GL = _graph_layout(npg, GPB)
    WL = _weight_layout(in_channels, hidden, heads, out_channels)

    # --- synthetic batched graph: bidirectional ring per graph ---
    src_list, dst_list = [], []
    for g in range(G):
        base = g * npg
        for i in range(npg):
            j = (i + 1) % npg
            src_list += [base + i, base + j]
            dst_list += [base + j, base + i]
    src = jnp.array(src_list, dtype=jnp.int32)
    dst = jnp.array(dst_list, dtype=jnp.int32)
    E = int(src.shape[0])
    batch = jnp.repeat(jnp.arange(G, dtype=jnp.int32), npg)

    keys = jax.random.split(key, 20)
    x = jax.random.normal(keys[0], (N, in_channels), jnp.float32)
    edge_attr = jax.random.normal(keys[1], (E, 1), jnp.float32)
    theta = jax.random.normal(keys[2], (G,), jnp.float32)
    log_h = jax.random.normal(keys[3], (G,), jnp.float32)

    def init(k, shape, scale=0.1):
        return scale * jax.random.normal(k, shape, jnp.float32)

    # --- deterministic parameters (shapes follow the torch module) ---
    att_src1, att_dst1 = init(keys[5], (heads, hidden)), init(keys[6], (heads, hidden))
    att_src2, att_dst2 = init(keys[9], (heads, hidden)), init(keys[10], (heads, hidden))
    w_edge1, att_edge1 = init(keys[16], (heads, hidden)), init(keys[17], (heads, hidden))
    w_edge2, att_edge2 = init(keys[18], (heads, hidden)), init(keys[19], (heads, hidden))
    wfc1 = init(keys[12], (HC + 2, hidden))                    # torch fc1.weight.T

    params = dict(
        w1=init(keys[4], (in_channels, HC)),                   # GATConv1 lin (x @ W)
        asrc1=_pad_per_head(att_src1), adst1=_pad_per_head(att_dst1),
        b1=init(keys[7], (HC,)),
        w2=init(keys[8], (HC, HC)),                            # GATConv2 lin
        asrc2=_pad_per_head(att_src2), adst2=_pad_per_head(att_dst2),
        b2=init(keys[11], (HC,)),
        wfc1a=wfc1[:HC, :], wfc1b=wfc1[HC:, :],
        bfc1=init(keys[13], (hidden,)),
        wfc2=init(keys[14], (hidden, out_channels)),           # torch fc2.weight.T
        bfc2=init(keys[15], (out_channels,)),
        # edge_dim=1 => alpha_edge[e, h] = edge_attr[e] * c[h]
        c1=(w_edge1 * att_edge1).sum(-1),
        c2=(w_edge2 * att_edge2).sum(-1),
    )

    gslab = pack_graph_inputs(x, src, dst, edge_attr, batch, theta, log_h,
                              num_graphs=G, npg=npg, gpb=GPB, GL=GL)
    wslab = pack_params(params, heads=heads, hidden=hidden,
                        out_ch=out_channels, WL=WL)

    out = gat_model_forward(gslab, wslab, heads=heads, hidden=hidden,
                            in_ch=in_channels, out_ch=out_channels,
                            gpb=GPB, GL=GL, WL=WL)
    jax.block_until_ready(out)
    assert out.shape == (G,)
    assert bool(jnp.all(jnp.isfinite(out)))
    print("KERNEL_OK")
</pallas_src>

<mosaic_0001>
module attributes {stable_mosaic.version = 11 : i64} {
  func.func @gat_model_kernel(%arg0: i32, %arg1: memref<1x400x128xf32, #tpu.memory_space<vmem>>, %arg2: memref<208x128xf32, #tpu.memory_space<vmem>>, %arg3: memref<1x8x128xf32, #tpu.memory_space<vmem>>) attributes {dimension_semantics = [#tpu.dimension_semantics<parallel>], iteration_bounds = array<i64: 2>, scalar_prefetch = 0 : i64, scratch_operands = 0 : i64, tpu.core_type = #tpu.core_type<tc>, window_params = [{transform_indices = @transform_0, window_bounds = array<i64: 1, 400, 128>}, {pipeline_mode = #tpu.pipeline_mode<synchronous>, transform_indices = @transform_1, window_bounds = array<i64: 208, 128>}, {transform_indices = @transform_2, window_bounds = array<i64: 1, 8, 128>}]} {
    %c0 = arith.constant 0 : index
    %c0_0 = arith.constant 0 : index
    %c0_1 = arith.constant 0 : index
    %0 = vector.load %arg1[%c0, %c0_0, %c0_1] : memref<1x400x128xf32, #tpu.memory_space<vmem>>, vector<1x128x128xf32>
    %1 = vector.shape_cast %0 : vector<1x128x128xf32> to vector<128x128xf32>
    %c0_2 = arith.constant 0 : index
    %c128 = arith.constant 128 : index
    %c0_3 = arith.constant 0 : index
    %2 = vector.load %arg1[%c0_2, %c128, %c0_3] : memref<1x400x128xf32, #tpu.memory_space<vmem>>, vector<1x128x128xf32>
    %3 = vector.shape_cast %2 : vector<1x128x128xf32> to vector<128x128xf32>
    %c0_4 = arith.constant 0 : index
    %c256 = arith.constant 256 : index
    %c0_5 = arith.constant 0 : index
    %4 = vector.load %arg1[%c0_4, %c256, %c0_5] : memref<1x400x128xf32, #tpu.memory_space<vmem>>, vector<1x128x8xf32>
    %5 = vector.shape_cast %4 : vector<1x128x8xf32> to vector<128x8xf32>
    %c0_6 = arith.constant 0 : index
    %c384 = arith.constant 384 : index
    %c0_7 = arith.constant 0 : index
    %6 = vector.load %arg1[%c0_6, %c384, %c0_7] : memref<1x400x128xf32, #tpu.memory_space<vmem>>, vector<1x8x128xf32>
    %7 = vector.shape_cast %6 : vector<1x8x128xf32> to vector<8x128xf32>
    %c0_8 = arith.constant 0 : index
    %c392 = arith.constant 392 : index
    %c0_9 = arith.constant 0 : index
    %8 = vector.load %arg1[%c0_8, %c392, %c0_9] : memref<1x400x128xf32, #tpu.memory_space<vmem>>, vector<1x8x1xf32>
    %9 = vector.shape_cast %8 : vector<1x8x1xf32> to vector<8x1xf32>
    %c0_10 = arith.constant 0 : index
    %c392_11 = arith.constant 392 : index
    %c1 = arith.constant 1 : index
    %10 = vector.load %arg1[%c0_10, %c392_11, %c1] : memref<1x400x128xf32, #tpu.memory_space<vmem>>, vector<1x8x1xf32>
    %11 = vector.shape_cast %10 : vector<1x8x1xf32> to vector<8x1xf32>
    %c0_12 = arith.constant 0 : index
    %c0_13 = arith.constant 0 : index
    %12 = vector.load %arg2[%c0_12, %c0_13] : memref<208x128xf32, #tpu.memory_space<vmem>>, vector<8x64xf32>
    %13 = arith.truncf %12 : vector<8x64xf32> to vector<8x64xbf16>
    %c8 = arith.constant 8 : index
    %c0_14 = arith.constant 0 : index
    %14 = vector.load %arg2[%c8, %c0_14] : memref<208x128xf32, #tpu.memory_space<vmem>>, vector<64x64xf32>
    %15 = arith.truncf %14 : vector<64x64xf32> to vector<64x64xbf16>
    %c72 = arith.constant 72 : index
    %c0_15 = arith.constant 0 : index
    %16 = vector.load %arg2[%c72, %c0_15] : memref<208x128xf32, #tpu.memory_space<vmem>>, vector<4x64xf32>
    %17 = arith.truncf %16 : vector<4x64xf32> to vector<4x64xbf16>
    %c76 = arith.constant 76 : index
    %c0_16 = arith.constant 0 : index
    %18 = vector.load %arg2[%c76, %c0_16] : memref<208x128xf32, #tpu.memory_space<vmem>>, vector<4x64xf32>
    %19 = arith.truncf %18 : vector<4x64xf32> to vector<4x64xbf16>
    %c80 = arith.constant 80 : index
    %c0_17 = arith.constant 0 : index
    %20 = vector.load %arg2[%c80, %c0_17] : memref<208x128xf32, #tpu.memory_space<vmem>>, vector<4x64xf32>
    %21 = arith.truncf %20 : vector<4x64xf32> to vector<4x64xbf16>
    %c84 = arith.constant 84 : index
    %c0_18 = arith.constant 0 : index
    %22 = vector.load %arg2[%c84, %c0_18] : memref<208x128xf32, #tpu.memory_space<vmem>>, vector<4x64xf32>
    %23 = arith.truncf %22 : vector<4x64xf32> to vector<4x64xbf16>
    %c88 = arith.constant 88 : index
    %c0_19 = arith.constant 0 : index
    %24 = vector.load %arg2[%c88, %c0_19] : memref<208x128xf32, #tpu.memory_space<vmem>>, vector<1x64xf32>
    %c89 = arith.constant 89 : index
    %c0_20 = arith.constant 0 : index
    %25 = vector.load %arg2[%c89, %c0_20] : memref<208x128xf32, #tpu.memory_space<vmem>>, vector<1x64xf32>
    %c96 = arith.constant 96 : index
    %c0_21 = arith.constant 0 : index
    %26 = vector.load %arg2[%c96, %c0_21] : memref<208x128xf32, #tpu.memory_space<vmem>>, vector<4x64xf32>
    %c104 = arith.constant 104 : index
    %c0_22 = arith.constant 0 : index
    %27 = vector.load %arg2[%c104, %c0_22] : memref<208x128xf32, #tpu.memory_space<vmem>>, vector<4x128xf32>
    %c108 = arith.constant 108 : index
    %c0_23 = arith.constant 0 : index
    %28 = vector.load %arg2[%c108, %c0_23] : memref<208x128xf32, #tpu.memory_space<vmem>>, vector<4x128xf32>
    %c112 = arith.constant 112 : index
    %c0_24 = arith.constant 0 : index
    %29 = vector.load %arg2[%c112, %c0_24] : memref<208x128xf32, #tpu.memory_space<vmem>>, vector<64x16xf32>
    %30 = arith.truncf %29 : vector<64x16xf32> to vector<64x16xbf16>
    %c176 = arith.constant 176 : index
    %c0_25 = arith.constant 0 : index
    %31 = vector.load %arg2[%c176, %c0_25] : memref<208x128xf32, #tpu.memory_space<vmem>>, vector<1x16xf32>
    %c177 = arith.constant 177 : index
    %c0_26 = arith.constant 0 : index
    %32 = vector.load %arg2[%c177, %c0_26] : memref<208x128xf32, #tpu.memory_space<vmem>>, vector<1x16xf32>
    %c178 = arith.constant 178 : index
    %c0_27 = arith.constant 0 : index
    %33 = vector.load %arg2[%c178, %c0_27] : memref<208x128xf32, #tpu.memory_space<vmem>>, vector<1x16xf32>
    %c184 = arith.constant 184 : index
    %c0_28 = arith.constant 0 : index
    %34 = vector.load %arg2[%c184, %c0_28] : memref<208x128xf32, #tpu.memory_space<vmem>>, vector<16x128xf32>
    %35 = arith.truncf %34 : vector<16x128xf32> to vector<16x128xbf16>
    %c200 = arith.constant 200 : index
    %c0_29 = arith.constant 0 : index
    %36 = vector.load %arg2[%c200, %c0_29] : memref<208x128xf32, #tpu.memory_space<vmem>>, vector<1x128xf32>
    %37 = arith.truncf %5 : vector<128x8xf32> to vector<128x8xbf16>
    %cst = arith.constant dense<0.000000e+00> : vector<128x64xf32>
    %38 = tpu.matmul %37, %13, %cst {dimension_numbers = #tpu.dot_dimension_numbers<[1], [0], [0], [1], [0, 0, 1, 1], [], []>} : vector<128x8xbf16>, vector<8x64xbf16>, vector<128x64xf32> -> vector<128x64xf32>
    %39 = arith.truncf %38 : vector<128x64xf32> to vector<128x64xbf16>
    %cst_30 = arith.constant dense<0.000000e+00> : vector<4x128xf32>
    %40 = tpu.matmul %17, %39, %cst_30 {dimension_numbers = #tpu.dot_dimension_numbers<[1], [1], [0], [0], [0, 0, 1, 0], [], []>} : vector<4x64xbf16>, vector<128x64xbf16>, vector<4x128xf32> -> vector<4x128xf32>
    %cst_31 = arith.constant dense<0.000000e+00> : vector<128x4xf32>
    %41 = tpu.matmul %39, %19, %cst_31 {dimension_numbers = #tpu.dot_dimension_numbers<[1], [1], [0], [0], [0, 0, 1, 0], [], []>} : vector<128x64xbf16>, vector<4x64xbf16>, vector<128x4xf32> -> vector<128x4xf32>
    %42 = vector.extract_strided_slice %41 {offsets = [0, 0], sizes = [128, 1], strides = [1, 1]} : vector<128x4xf32> to vector<128x1xf32>
    %43 = vector.extract_strided_slice %40 {offsets = [0, 0], sizes = [1, 128], strides = [1, 1]} : vector<4x128xf32> to vector<1x128xf32>
    %44 = vector.broadcast %42 : vector<128x1xf32> to vector<128x128xf32>
    %45 = vector.broadcast %43 : vector<1x128xf32> to vector<128x128xf32>
    %46 = arith.addf %44, %45 : vector<128x128xf32>
    %47 = vector.extract_strided_slice %27 {offsets = [0, 0], sizes = [1, 128], strides = [1, 1]} : vector<4x128xf32> to vector<1x128xf32>
    %48 = vector.broadcast %47 : vector<1x128xf32> to vector<128x128xf32>
    %49 = arith.mulf %3, %48 : vector<128x128xf32>
    %50 = arith.addf %46, %49 : vector<128x128xf32>
    %cst_32 = arith.constant 0.000000e+00 : f32
    %51 = vector.broadcast %cst_32 : f32 to vector<128x128xf32>
    %52 = arith.cmpf ogt, %50, %51 : vector<128x128xf32>
    %cst_33 = arith.constant 2.000000e-01 : f32
    %53 = vector.broadcast %cst_33 : f32 to vector<128x128xf32>
    %54 = arith.mulf %53, %50 : vector<128x128xf32>
    %55 = arith.select %52, %50, %54 : vector<128x128xi1>, vector<128x128xf32>
    %56 = arith.addf %55, %1 : vector<128x128xf32>
    %57 = vector.extract_strided_slice %41 {offsets = [0, 1], sizes = [128, 1], strides = [1, 1]} : vector<128x4xf32> to vector<128x1xf32>
    %58 = vector.extract_strided_slice %40 {offsets = [1, 0], sizes = [1, 128], strides = [1, 1]} : vector<4x128xf32> to vector<1x128xf32>
    %59 = vector.broadcast %57 : vector<128x1xf32> to vector<128x128xf32>
    %60 = vector.broadcast %58 : vector<1x128xf32> to vector<128x128xf32>
    %61 = arith.addf %59, %60 : vector<128x128xf32>
    %62 = vector.extract_strided_slice %27 {offsets = [1, 0], sizes = [1, 128], strides = [1, 1]} : vector<4x128xf32> to vector<1x128xf32>
    %63 = vector.broadcast %62 : vector<1x128xf32> to vector<128x128xf32>
    %64 = arith.mulf %3, %63 : vector<128x128xf32>
    %65 = arith.addf %61, %64 : vector<128x128xf32>
    %cst_34 = arith.constant 0.000000e+00 : f32
    %66 = vector.broadcast %cst_34 : f32 to vector<128x128xf32>
    %67 = arith.cmpf ogt, %65, %66 : vector<128x128xf32>
    %cst_35 = arith.constant 2.000000e-01 : f32
    %68 = vector.broadcast %cst_35 : f32 to vector<128x128xf32>
    %69 = arith.mulf %68, %65 : vector<128x128xf32>
    %70 = arith.select %67, %65, %69 : vector<128x128xi1>, vector<128x128xf32>
    %71 = arith.addf %70, %1 : vector<128x128xf32>
    %72 = vector.extract_strided_slice %41 {offsets = [0, 2], sizes = [128, 1], strides = [1, 1]} : vector<128x4xf32> to vector<128x1xf32>
    %73 = vector.extract_strided_slice %40 {offsets = [2, 0], sizes = [1, 128], strides = [1, 1]} : vector<4x128xf32> to vector<1x128xf32>
    %74 = vector.broadcast %72 : vector<128x1xf32> to vector<128x128xf32>
    %75 = vector.broadcast %73 : vector<1x128xf32> to vector<128x128xf32>
    %76 = arith.addf %74, %75 : vector<128x128xf32>
    %77 = vector.extract_strided_slice %27 {offsets = [2, 0], sizes = [1, 128], strides = [1, 1]} : vector<4x128xf32> to vector<1x128xf32>
    %78 = vector.broadcast %77 : vector<1x128xf32> to vector<128x128xf32>
    %79 = arith.mulf %3, %78 : vector<128x128xf32>
    %80 = arith.addf %76, %79 : vector<128x128xf32>
    %cst_36 = arith.constant 0.000000e+00 : f32
    %81 = vector.broadcast %cst_36 : f32 to vector<128x128xf32>
    %82 = arith.cmpf ogt, %80, %81 : vector<128x128xf32>
    %cst_37 = arith.constant 2.000000e-01 : f32
    %83 = vector.broadcast %cst_37 : f32 to vector<128x128xf32>
    %84 = arith.mulf %83, %80 : vector<128x128xf32>
    %85 = arith.select %82, %80, %84 : vector<128x128xi1>, vector<128x128xf32>
    %86 = arith.addf %85, %1 : vector<128x128xf32>
    %87 = vector.extract_strided_slice %41 {offsets = [0, 3], sizes = [128, 1], strides = [1, 1]} : vector<128x4xf32> to vector<128x1xf32>
    %88 = vector.extract_strided_slice %40 {offsets = [3, 0], sizes = [1, 128], strides = [1, 1]} : vector<4x128xf32> to vector<1x128xf32>
    %89 = vector.broadcast %87 : vector<128x1xf32> to vector<128x128xf32>
    %90 = vector.broadcast %88 : vector<1x128xf32> to vector<128x128xf32>
    %91 = arith.addf %89, %90 : vector<128x128xf32>
    %92 = vector.extract_strided_slice %27 {offsets = [3, 0], sizes = [1, 128], strides = [1, 1]} : vector<4x128xf32> to vector<1x128xf32>
    %93 = vector.broadcast %92 : vector<1x128xf32> to vector<128x128xf32>
    %94 = arith.mulf %3, %93 : vector<128x128xf32>
    %95 = arith.addf %91, %94 : vector<128x128xf32>
    %cst_38 = arith.constant 0.000000e+00 : f32
    %96 = vector.broadcast %cst_38 : f32 to vector<128x128xf32>
    %97 = arith.cmpf ogt, %95, %96 : vector<128x128xf32>
    %cst_39 = arith.constant 2.000000e-01 : f32
    %98 = vector.broadcast %cst_39 : f32 to vector<128x128xf32>
    %99 = arith.mulf %98, %95 : vector<128x128xf32>
    %100 = arith.select %97, %95, %99 : vector<128x128xi1>, vector<128x128xf32>
    %101 = arith.addf %100, %1 : vector<128x128xf32>
    %102 = tpu.concatenate %56, %71, %86, %101 in 0 : vector<128x128xf32>, vector<128x128xf32>, vector<128x128xf32>, vector<128x128xf32> -> vector<512x128xf32>
    %cst_40 = arith.constant dense<0xFF800000> : vector<512xf32>
    %103 = vector.multi_reduction <maximumf>, %102, %cst_40 [1] : vector<512x128xf32> to vector<512xf32>
    %104 = vector.shape_cast %103 : vector<512xf32> to vector<512x1xf32>
    %105 = vector.broadcast %104 : vector<512x1xf32> to vector<512x128xf32>
    %106 = arith.subf %102, %105 : vector<512x128xf32>
    %107 = math.exp %106 : vector<512x128xf32>
    %cst_41 = arith.constant dense<0.000000e+00> : vector<512xf32>
    %108 = vector.multi_reduction <add>, %107, %cst_41 [1] : vector<512x128xf32> to vector<512xf32>
    %109 = vector.shape_cast %108 : vector<512xf32> to vector<512x1xf32>
    %110 = tpu.reciprocal %109 {approx = true} : vector<512x1xf32> -> vector<512x1xf32>
    %111 = vector.broadcast %110 : vector<512x1xf32> to vector<512x128xf32>
    %112 = arith.mulf %107, %111 : vector<512x128xf32>
    %113 = arith.truncf %112 : vector<512x128xf32> to vector<512x128xbf16>
    %cst_42 = arith.constant dense<0.000000e+00> : vector<512x64xf32>
    %114 = tpu.matmul %113, %39, %cst_42 {dimension_numbers = #tpu.dot_dimension_numbers<[1], [0], [0], [1], [0, 0, 1, 1], [], []>} : vector<512x128xbf16>, vector<128x64xbf16>, vector<512x64xf32> -> vector<512x64xf32>
    %115 = vector.extract_strided_slice %114 {offsets = [0, 0], sizes = [128, 64], strides = [1, 1]} : vector<512x64xf32> to vector<128x64xf32>
    %116 = vector.extract_strided_slice %26 {offsets = [0, 0], sizes = [1, 64], strides = [1, 1]} : vector<4x64xf32> to vector<1x64xf32>
    %117 = vector.broadcast %116 : vector<1x64xf32> to vector<128x64xf32>
    %118 = arith.mulf %115, %117 : vector<128x64xf32>
    %119 = vector.extract_strided_slice %114 {offsets = [128, 0], sizes = [128, 64], strides = [1, 1]} : vector<512x64xf32> to vector<128x64xf32>
    %120 = vector.extract_strided_slice %26 {offsets = [1, 0], sizes = [1, 64], strides = [1, 1]} : vector<4x64xf32> to vector<1x64xf32>
    %121 = vector.broadcast %120 : vector<1x64xf32> to vector<128x64xf32>
    %122 = arith.mulf %119, %121 : vector<128x64xf32>
    %123 = arith.addf %118, %122 : vector<128x64xf32>
    %124 = vector.extract_strided_slice %114 {offsets = [256, 0], sizes = [128, 64], strides = [1, 1]} : vector<512x64xf32> to vector<128x64xf32>
    %125 = vector.extract_strided_slice %26 {offsets = [2, 0], sizes = [1, 64], strides = [1, 1]} : vector<4x64xf32> to vector<1x64xf32>
    %126 = vector.broadcast %125 : vector<1x64xf32> to vector<128x64xf32>
    %127 = arith.mulf %124, %126 : vector<128x64xf32>
    %128 = arith.addf %123, %127 : vector<128x64xf32>
    %129 = vector.extract_strided_slice %114 {offsets = [384, 0], sizes = [128, 64], strides = [1, 1]} : vector<512x64xf32> to vector<128x64xf32>
    %130 = vector.extract_strided_slice %26 {offsets = [3, 0], sizes = [1, 64], strides = [1, 1]} : vector<4x64xf32> to vector<1x64xf32>
    %131 = vector.broadcast %130 : vector<1x64xf32> to vector<128x64xf32>
    %132 = arith.mulf %129, %131 : vector<128x64xf32>
    %133 = arith.addf %128, %132 : vector<128x64xf32>
    %134 = vector.broadcast %24 : vector<1x64xf32> to vector<128x64xf32>
    %135 = arith.addf %133, %134 : vector<128x64xf32>
    %cst_43 = arith.constant 0.000000e+00 : f32
    %136 = vector.broadcast %cst_43 : f32 to vector<128x64xf32>
    %137 = arith.cmpf ogt, %135, %136 : vector<128x64xf32>
    %cst_44 = arith.constant 0.000000e+00 : f32
    %138 = vector.broadcast %cst_44 : f32 to vector<128x64xf32>
    %139 = arith.minimumf %135, %138 : vector<128x64xf32>
    %140 = math.exp %139 : vector<128x64xf32>
    %cst_45 = arith.constant 1.000000e+00 : f32
    %141 = vector.broadcast %cst_45 : f32 to vector<128x64xf32>
    %142 = arith.subf %140, %141 : vector<128x64xf32>
    %143 = arith.select %137, %135, %142 : vector<128x64xi1>, vector<128x64xf32>
    %144 = arith.truncf %143 : vector<128x64xf32> to vector<128x64xbf16>
    %cst_46 = arith.constant dense<0.000000e+00> : vector<128x64xf32>
    %145 = tpu.matmul %144, %15, %cst_46 {dimension_numbers = #tpu.dot_dimension_numbers<[1], [0], [0], [1], [0, 0, 1, 1], [], []>} : vector<128x64xbf16>, vector<64x64xbf16>, vector<128x64xf32> -> vector<128x64xf32>
    %146 = arith.truncf %145 : vector<128x64xf32> to vector<128x64xbf16>
    %cst_47 = arith.constant dense<0.000000e+00> : vector<4x128xf32>
    %147 = tpu.matmul %21, %146, %cst_47 {dimension_numbers = #tpu.dot_dimension_numbers<[1], [1], [0], [0], [0, 0, 1, 0], [], []>} : vector<4x64xbf16>, vector<128x64xbf16>, vector<4x128xf32> -> vector<4x128xf32>
    %cst_48 = arith.constant dense<0.000000e+00> : vector<128x4xf32>
    %148 = tpu.matmul %146, %23, %cst_48 {dimension_numbers = #tpu.dot_dimension_numbers<[1], [1], [0], [0], [0, 0, 1, 0], [], []>} : vector<128x64xbf16>, vector<4x64xbf16>, vector<128x4xf32> -> vector<128x4xf32>
    %149 = vector.extract_strided_slice %148 {offsets = [0, 0], sizes = [128, 1], strides = [1, 1]} : vector<128x4xf32> to vector<128x1xf32>
    %150 = vector.extract_strided_slice %147 {offsets = [0, 0], sizes = [1, 128], strides = [1, 1]} : vector<4x128xf32> to vector<1x128xf32>
    %151 = vector.broadcast %149 : vector<128x1xf32> to vector<128x128xf32>
    %152 = vector.broadcast %150 : vector<1x128xf32> to vector<128x128xf32>
    %153 = arith.addf %151, %152 : vector<128x128xf32>
    %154 = vector.extract_strided_slice %28 {offsets = [0, 0], sizes = [1, 128], strides = [1, 1]} : vector<4x128xf32> to vector<1x128xf32>
    %155 = vector.broadcast %154 : vector<1x128xf32> to vector<128x128xf32>
    %156 = arith.mulf %3, %155 : vector<128x128xf32>
    %157 = arith.addf %153, %156 : vector<128x128xf32>
    %cst_49 = arith.constant 0.000000e+00 : f32
    %158 = vector.broadcast %cst_49 : f32 to vector<128x128xf32>
    %159 = arith.cmpf ogt, %157, %158 : vector<128x128xf32>
    %cst_50 = arith.constant 2.000000e-01 : f32
    %160 = vector.broadcast %cst_50 : f32 to vector<128x128xf32>
    %161 = arith.mulf %160, %157 : vector<128x128xf32>
    %162 = arith.select %159, %157, %161 : vector<128x128xi1>, vector<128x128xf32>
    %163 = arith.addf %162, %1 : vector<128x128xf32>
    %164 = vector.extract_strided_slice %148 {offsets = [0, 1], sizes = [128, 1], strides = [1, 1]} : vector<128x4xf32> to vector<128x1xf32>
    %165 = vector.extract_strided_slice %147 {offsets = [1, 0], sizes = [1, 128], strides = [1, 1]} : vector<4x128xf32> to vector<1x128xf32>
    %166 = vector.broadcast %164 : vector<128x1xf32> to vector<128x128xf32>
    %167 = vector.broadcast %165 : vector<1x128xf32> to vector<128x128xf32>
    %168 = arith.addf %166, %167 : vector<128x128xf32>
    %169 = vector.extract_strided_slice %28 {offsets = [1, 0], sizes = [1, 128], strides = [1, 1]} : vector<4x128xf32> to vector<1x128xf32>
    %170 = vector.broadcast %169 : vector<1x128xf32> to vector<128x128xf32>
    %171 = arith.mulf %3, %170 : vector<128x128xf32>
    %172 = arith.addf %168, %171 : vector<128x128xf32>
    %cst_51 = arith.constant 0.000000e+00 : f32
    %173 = vector.broadcast %cst_51 : f32 to vector<128x128xf32>
    %174 = arith.cmpf ogt, %172, %173 : vector<128x128xf32>
    %cst_52 = arith.constant 2.000000e-01 : f32
    %175 = vector.broadcast %cst_52 : f32 to vector<128x128xf32>
    %176 = arith.mulf %175, %172 : vector<128x128xf32>
    %177 = arith.select %174, %172, %176 : vector<128x128xi1>, vector<128x128xf32>
    %178 = arith.addf %177, %1 : vector<128x128xf32>
    %179 = vector.extract_strided_slice %148 {offsets = [0, 2], sizes = [128, 1], strides = [1, 1]} : vector<128x4xf32> to vector<128x1xf32>
    %180 = vector.extract_strided_slice %147 {offsets = [2, 0], sizes = [1, 128], strides = [1, 1]} : vector<4x128xf32> to vector<1x128xf32>
    %181 = vector.broadcast %179 : vector<128x1xf32> to vector<128x128xf32>
    %182 = vector.broadcast %180 : vector<1x128xf32> to vector<128x128xf32>
    %183 = arith.addf %181, %182 : vector<128x128xf32>
    %184 = vector.extract_strided_slice %28 {offsets = [2, 0], sizes = [1, 128], strides = [1, 1]} : vector<4x128xf32> to vector<1x128xf32>
    %185 = vector.broadcast %184 : vector<1x128xf32> to vector<128x128xf32>
    %186 = arith.mulf %3, %185 : vector<128x128xf32>
    %187 = arith.addf %183, %186 : vector<128x128xf32>
    %cst_53 = arith.constant 0.000000e+00 : f32
    %188 = vector.broadcast %cst_53 : f32 to vector<128x128xf32>
    %189 = arith.cmpf ogt, %187, %188 : vector<128x128xf32>
    %cst_54 = arith.constant 2.000000e-01 : f32
    %190 = vector.broadcast %cst_54 : f32 to vector<128x128xf32>
    %191 = arith.mulf %190, %187 : vector<128x128xf32>
    %192 = arith.select %189, %187, %191 : vector<128x128xi1>, vector<128x128xf32>
    %193 = arith.addf %192, %1 : vector<128x128xf32>
    %194 = vector.extract_strided_slice %148 {offsets = [0, 3], sizes = [128, 1], strides = [1, 1]} : vector<128x4xf32> to vector<128x1xf32>
    %195 = vector.extract_strided_slice %147 {offsets = [3, 0], sizes = [1, 128], strides = [1, 1]} : vector<4x128xf32> to vector<1x128xf32>
    %196 = vector.broadcast %194 : vector<128x1xf32> to vector<128x128xf32>
    %197 = vector.broadcast %195 : vector<1x128xf32> to vector<128x128xf32>
    %198 = arith.addf %196, %197 : vector<128x128xf32>
    %199 = vector.extract_strided_slice %28 {offsets = [3, 0], sizes = [1, 128], strides = [1, 1]} : vector<4x128xf32> to vector<1x128xf32>
    %200 = vector.broadcast %199 : vector<1x128xf32> to vector<128x128xf32>
    %201 = arith.mulf %3, %200 : vector<128x128xf32>
    %202 = arith.addf %198, %201 : vector<128x128xf32>
    %cst_55 = arith.constant 0.000000e+00 : f32
    %203 = vector.broadcast %cst_55 : f32 to vector<128x128xf32>
    %204 = arith.cmpf ogt, %202, %203 : vector<128x128xf32>
    %cst_56 = arith.constant 2.000000e-01 : f32
    %205 = vector.broadcast %cst_56 : f32 to vector<128x128xf32>
    %206 = arith.mulf %205, %202 : vector<128x128xf32>
    %207 = arith.select %204, %202, %206 : vector<128x128xi1>, vector<128x128xf32>
    %208 = arith.addf %207, %1 : vector<128x128xf32>
    %209 = tpu.concatenate %163, %178, %193, %208 in 0 : vector<128x128xf32>, vector<128x128xf32>, vector<128x128xf32>, vector<128x128xf32> -> vector<512x128xf32>
    %cst_57 = arith.constant dense<0xFF800000> : vector<512xf32>
    %210 = vector.multi_reduction <maximumf>, %209, %cst_57 [1] : vector<512x128xf32> to vector<512xf32>
    %211 = vector.shape_cast %210 : vector<512xf32> to vector<512x1xf32>
    %212 = vector.broadcast %211 : vector<512x1xf32> to vector<512x128xf32>
    %213 = arith.subf %209, %212 : vector<512x128xf32>
    %214 = math.exp %213 : vector<512x128xf32>
    %cst_58 = arith.constant dense<0.000000e+00> : vector<512xf32>
    %215 = vector.multi_reduction <add>, %214, %cst_58 [1] : vector<512x128xf32> to vector<512xf32>
    %216 = vector.shape_cast %215 : vector<512xf32> to vector<512x1xf32>
    %217 = tpu.reciprocal %216 {approx = true} : vector<512x1xf32> -> vector<512x1xf32>
    %218 = vector.broadcast %217 : vector<512x1xf32> to vector<512x128xf32>
    %219 = arith.mulf %214, %218 : vector<512x128xf32>
    %220 = arith.truncf %219 : vector<512x128xf32> to vector<512x128xbf16>
    %cst_59 = arith.constant dense<0.000000e+00> : vector<512x64xf32>
    %221 = tpu.matmul %220, %146, %cst_59 {dimension_numbers = #tpu.dot_dimension_numbers<[1], [0], [0], [1], [0, 0, 1, 1], [], []>} : vector<512x128xbf16>, vector<128x64xbf16>, vector<512x64xf32> -> vector<512x64xf32>
    %222 = vector.extract_strided_slice %221 {offsets = [0, 0], sizes = [128, 64], strides = [1, 1]} : vector<512x64xf32> to vector<128x64xf32>
    %223 = vector.extract_strided_slice %26 {offsets = [0, 0], sizes = [1, 64], strides = [1, 1]} : vector<4x64xf32> to vector<1x64xf32>
    %224 = vector.broadcast %223 : vector<1x64xf32> to vector<128x64xf32>
    %225 = arith.mulf %222, %224 : vector<128x64xf32>
    %226 = vector.extract_strided_slice %221 {offsets = [128, 0], sizes = [128, 64], strides = [1, 1]} : vector<512x64xf32> to vector<128x64xf32>
    %227 = vector.extract_strided_slice %26 {offsets = [1, 0], sizes = [1, 64], strides = [1, 1]} : vector<4x64xf32> to vector<1x64xf32>
    %228 = vector.broadcast %227 : vector<1x64xf32> to vector<128x64xf32>
    %229 = arith.mulf %226, %228 : vector<128x64xf32>
    %230 = arith.addf %225, %229 : vector<128x64xf32>
    %231 = vector.extract_strided_slice %221 {offsets = [256, 0], sizes = [128, 64], strides = [1, 1]} : vector<512x64xf32> to vector<128x64xf32>
    %232 = vector.extract_strided_slice %26 {offsets = [2, 0], sizes = [1, 64], strides = [1, 1]} : vector<4x64xf32> to vector<1x64xf32>
    %233 = vector.broadcast %232 : vector<1x64xf32> to vector<128x64xf32>
    %234 = arith.mulf %231, %233 : vector<128x64xf32>
    %235 = arith.addf %230, %234 : vector<128x64xf32>
    %236 = vector.extract_strided_slice %221 {offsets = [384, 0], sizes = [128, 64], strides = [1, 1]} : vector<512x64xf32> to vector<128x64xf32>
    %237 = vector.extract_strided_slice %26 {offsets = [3, 0], sizes = [1, 64], strides = [1, 1]} : vector<4x64xf32> to vector<1x64xf32>
    %238 = vector.broadcast %237 : vector<1x64xf32> to vector<128x64xf32>
    %239 = arith.mulf %236, %238 : vector<128x64xf32>
    %240 = arith.addf %235, %239 : vector<128x64xf32>
    %241 = vector.broadcast %25 : vector<1x64xf32> to vector<128x64xf32>
    %242 = arith.addf %240, %241 : vector<128x64xf32>
    %cst_60 = arith.constant 0.000000e+00 : f32
    %243 = vector.broadcast %cst_60 : f32 to vector<128x64xf32>
    %244 = arith.cmpf ogt, %242, %243 : vector<128x64xf32>
    %cst_61 = arith.constant 0.000000e+00 : f32
    %245 = vector.broadcast %cst_61 : f32 to vector<128x64xf32>
    %246 = arith.minimumf %242, %245 : vector<128x64xf32>
    %247 = math.exp %246 : vector<128x64xf32>
    %cst_62 = arith.constant 1.000000e+00 : f32
    %248 = vector.broadcast %cst_62 : f32 to vector<128x64xf32>
    %249 = arith.subf %247, %248 : vector<128x64xf32>
    %250 = arith.select %244, %242, %249 : vector<128x64xi1>, vector<128x64xf32>
    %251 = arith.truncf %7 : vector<8x128xf32> to vector<8x128xbf16>
    %252 = arith.truncf %250 : vector<128x64xf32> to vector<128x64xbf16>
    %cst_63 = arith.constant dense<0.000000e+00> : vector<8x64xf32>
    %253 = tpu.matmul %251, %252, %cst_63 {dimension_numbers = #tpu.dot_dimension_numbers<[1], [0], [0], [1], [0, 0, 1, 1], [], []>} : vector<8x128xbf16>, vector<128x64xbf16>, vector<8x64xf32> -> vector<8x64xf32>
    %254 = arith.truncf %253 : vector<8x64xf32> to vector<8x64xbf16>
    %cst_64 = arith.constant dense<0.000000e+00> : vector<8x16xf32>
    %255 = tpu.matmul %254, %30, %cst_64 {dimension_numbers = #tpu.dot_dimension_numbers<[1], [0], [0], [1], [0, 0, 1, 1], [], []>} : vector<8x64xbf16>, vector<64x16xbf16>, vector<8x16xf32> -> vector<8x16xf32>
    %256 = vector.broadcast %9 : vector<8x1xf32> to vector<8x16xf32>
    %257 = vector.broadcast %31 : vector<1x16xf32> to vector<8x16xf32>
    %258 = arith.mulf %256, %257 : vector<8x16xf32>
    %259 = arith.addf %255, %258 : vector<8x16xf32>
    %260 = vector.broadcast %11 : vector<8x1xf32> to vector<8x16xf32>
    %261 = vector.broadcast %32 : vector<1x16xf32> to vector<8x16xf32>
    %262 = arith.mulf %260, %261 : vector<8x16xf32>
    %263 = arith.addf %259, %262 : vector<8x16xf32>
    %264 = vector.broadcast %33 : vector<1x16xf32> to vector<8x16xf32>
    %265 = arith.addf %263, %264 : vector<8x16xf32>
    %cst_65 = arith.constant 0.000000e+00 : f32
    %266 = vector.broadcast %cst_65 : f32 to vector<8x16xf32>
    %267 = arith.maximumf %265, %266 : vector<8x16xf32>
    %268 = arith.truncf %267 : vector<8x16xf32> to vector<8x16xbf16>
    %cst_66 = arith.constant dense<0.000000e+00> : vector<8x128xf32>
    %269 = tpu.matmul %268, %35, %cst_66 {dimension_numbers = #tpu.dot_dimension_numbers<[1], [0], [0], [1], [0, 0, 1, 1], [], []>} : vector<8x16xbf16>, vector<16x128xbf16>, vector<8x128xf32> -> vector<8x128xf32>
    %270 = vector.broadcast %36 : vector<1x128xf32> to vector<8x128xf32>
    %271 = arith.addf %269, %270 : vector<8x128xf32>
    %c0_67 = arith.constant 0 : index
    %c0_68 = arith.constant 0 : index
    %c0_69 = arith.constant 0 : index
    %272 = vector.load %arg3[%c0_67, %c0_68, %c0_69] : memref<1x8x128xf32, #tpu.memory_space<vmem>>, vector<1x8x128xf32>
    %273 = vector.shape_cast %272 : vector<1x8x128xf32> to vector<8x128xf32>
    %274 = vector.shape_cast %271 : vector<8x128xf32> to vector<1x8x128xf32>
    tpu.vector_store %arg3[%c0_67, %c0_68, %c0_69], %274 {strides = array<i32>} : memref<1x8x128xf32, #tpu.memory_space<vmem>>, vector<1x8x128xf32>,
    return
  }
  func.func @transform_0(%arg0: i32) -> (i32, i32, i32) {
    %c0_i32 = arith.constant 0 : i32
    %c0_i32_0 = arith.constant 0 : i32
    %c0_i32_1 = arith.constant 0 : i32
    return %arg0, %c0_i32, %c0_i32_0 : i32, i32, i32
  }
  func.func @transform_1(%arg0: i32) -> (i32, i32) {
    %c0_i32 = arith.constant 0 : i32
    %c0_i32_0 = arith.constant 0 : i32
    %c0_i32_1 = arith.constant 0 : i32
    return %c0_i32, %c0_i32_0 : i32, i32
  }
  func.func @transform_2(%arg0: i32) -> (i32, i32, i32) {
    %c0_i32 = arith.constant 0 : i32
    %c0_i32_0 = arith.constant 0 : i32
    %c0_i32_1 = arith.constant 0 : i32
    return %arg0, %c0_i32, %c0_i32_0 : i32, i32, i32
  }
}

</mosaic_0001>

<bundles_post_ra>
// kernel: tpu_custom_call.1
= control target key start
LH: loop header
LB: loop body
LE: loop exit
PB: predicated region body
PF: predicated region fallthrough
CT: control target
= control target key end

     0   :  { %7 = vsyncpa [#allocation3], 0  ;;  %s9627_s0 = inlined_call_operand.hbm [shape: f32[2,400,128], index: 0, kind: input, shape index: {}]   ;;  %s9628_s1 = inlined_call_operand.hbm [shape: f32[208,128], index: 1, kind: input, shape index: {}]   ;;  %s9629_s2 = inlined_call_operand.hbm [shape: f32[2,8,128], index: 2, kind: output, shape index: {}]  }
   0x1   :  { %9 = vsyncpa [#allocation3 + $0x1], 0 }
   0x2   :  { %10 = vsyncpa [#allocation6], 0 }
   0x3   :  { %11 = vsyncpa [#allocation4], 0 }
   0x4   :  { %13 = vsyncpa [#allocation4 + $0x1], 0  ;;  %s6435_s9 = smov 0   ;;  %s6437_s10 = smov 0  }
   0x5   :  { %s6439_s11 = smov 0   ;;  %s6441_s12 = smov 0  }
   0x6 LB: > { %s6456_s13 = sadd.s32 4294967295, %s6407_s12   ;;  %s4921_s14 = sadd.s32 4294967294, %s6407_s12   ;;  %s6407_s12 = sphi %s6441_s12, %s10145_s12   ;;  %s6403_s11 = sphi %s6439_s11, %s10144_s11   ;;  %s6399_s10 = sphi %s6437_s10, %s10143_s10   ;;  %s6395_s9 = sphi %s6435_s9, %s10142_s9  }
   0x7   : > { %p39_p0 = scmp.ne.s32.totalorder %s6399_s10, %s6395_s9  ;;  %p9630_p1 = scmp.eq.s32.totalorder %s6456_s13, 0 }
   0x8   : > { %p90_p3 = scmp.eq.s32.totalorder %s4921_s14, 1  ;;  %p4922_p5 = scmp.ge.s32.totalorder %s6407_s12, 1 }
   0x9   : > { %p6465_p4 = por %p9630_p1, %p39_p0  ;;  %p97_p7 = scmp.lt.s32.totalorder %s6407_s12, 3 }
   0xa   : > { %p6470_p6 = por %p90_p3, %p39_p0  ;;  %s6409_s18 = smov [#allocation5]  }
   0xb   : > { %s9797_s15 = scalar_select %p6465_p4, 1, 0 }
   0xc   : > { %s9798_s16 = scalar_select %p6470_p6, 1, 0 }
   0xd   : > { %p6475_p8 = pnand %p4922_p5, %p97_p7  ;;  %s109_s19 = sshll.u32 %s6409_s18, 4  ;;  %s6479_s19 = int_to_ptr.vmem [resolvable:$true] %s109_s19 }
   0xe   : > { %s6491_s21 = sadd.s32 1, %s6407_s12   ;;  %s26_s22 = sadd.s32 1, %s6403_s11 }
   0xf   : > { %s9799_s17 = scalar_select %p6475_p8, 1, 0 }
  0x10   : > { %p5490_p9 = pneg %p6475_p8  ;;  %s23_s23 = ssub.s32 %s6407_s12, %s6491_s21 }
  0x11   : > { %s6279_s26 = scalar_lea.hbm %s9628_s1, 3328 }
  0x12   : > { %p6486_p11 = pnand %p5490_p9, %p9630_p1  ;;  %p6280_p12 = scmp.ne.s32.totalorder %s9628_s1, %s6279_s26 }
  0x13   : > { %p6286_p5 = scmp.lt.u32.totalorder %s6279_s26, %s9628_s1 }
  0x14   : > { %p6281_p13 = pneg %p6486_p11 }
  0x16   : > { %p6282_p0 = pnand %p6281_p13, %p6280_p12 }
  0x18   : > { %p6283_p3 = pneg %p6282_p0 }
  0x1a   : > { %p6288_p7 = pnand %p6286_p5, %p6283_p3 }
  0x1c   : > { %6291 = shalt.err (!%p6288_p7)
}
  0x1d   : > { %s6292_s3 = scalar_lea.vmem %s6479_s19, 3328  ;;  %p6300_p2 = scmp.lt.s32.totalorder %s6479_s19, %s6479_s19 }
  0x1e   : > { %p6293_p9 = scmp.ne.s32.totalorder %s6479_s19, %s6292_s3  ;;  %p6301_p6 = scmp.lt.s32.totalorder %s6292_s3, %s6292_s3 }
  0x20   : > { %p6295_p10 = pnand %p6293_p9, %p6281_p13  ;;  %p6302_p4 = por %p6301_p6, %p6300_p2 }
  0x22   : > { %p6296_p1 = pneg %p6295_p10 }
  0x24   : > { %p6303_p8 = pnand %p6302_p4, %p6296_p1 }
  0x26   : > { %6306 = shalt.err (!%p6303_p8)
}
  0x27   : > { %s6410_s4 = smov 128   ;;  %s6411_s5 = smov 8  }
  0x28   : > { %5493 = dma.hbm_to_vmem [thread:$0]  (!%p6486_p11), %s9628_s1, 3328, %s6479_s19, [#allocation6], %s6410_s4, %s6410_s4, %s6411_s5  }
  0x29   : > { %p24_p1 = scmp.eq.s32.totalorder %s23_s23, 0  ;;  %p33_p2 = scmp.ne.s32.totalorder %s6403_s11, %s6399_s10 }
  0x2a   : > { %p34_p4 = scmp.eq.s32.totalorder %s6407_s12, 0  ;;  %p5503_p6 = scmp.lt.s32.totalorder %s6407_s12, 2 }
  0x2b   : > { %s6525_s8 = scalar_select %p24_p1, %s6403_s11, %s26_s22  }
  0x2c   : > { %p35_p8 = por %p34_p4, %p33_p2  ;;  %p9801_p10 = scmp.eq.s32.totalorder %s6456_s13, 1 }
  0x2d   : > { %s123_s18 = sand.u32 1, %s6403_s11   ;;  %s5480_s20 = smul.u32 6400, %s6407_s12 }
  0x2e   : > { %p6529_p12 = por %p9801_p10, %p33_p2  ;;  %s5479_s24 = smul.u32 400, %s123_s18 }
  0x2f   : > { %p6535_p13 = pnand %p5503_p6, %p35_p8  ;;  %s6542_s22 = scalar_lea.hbm %s9627_s0, %s5480_s20 }
  0x30   : > { %s127_s26 = scalar_lea.vmem [#allocation2], %s5479_s24  ;;  %s6546_s28 = scalar_lea.sflag [#allocation3], %s123_s18 }
  0x31   : > { %s134_s27 = sshll.u32 %s127_s26, 4  ;;  %s6307_s29 = scalar_lea.hbm %s6542_s22, 6400  ;;  %s6544_s27 = int_to_ptr.vmem [resolvable:$true] %s134_s27 }
  0x32   : > { %p6308_p11 = scmp.ne.s32.totalorder %s6542_s22, %s6307_s29  ;;  %p6309_p0 = pneg %p6535_p13 }
  0x33   : > { %s6312_s6 = scalar_lea.hbm %s9627_s0, 12800  ;;  %p6313_p7 = scmp.lt.u32.totalorder %s6542_s22, %s9627_s0 }
  0x34   : > { %p6310_p3 = pnand %p6309_p0, %p6308_p11  ;;  %p6314_p9 = scmp.lt.u32.totalorder %s6312_s6, %s6307_s29 }
  0x35   : > { %p6316_p2 = scmp.lt.u32.totalorder %s6307_s29, %s6542_s22 }
  0x36   : > { %p6311_p5 = pneg %p6310_p3  ;;  %p6315_p1 = por %p6314_p9, %p6313_p7 }
  0x38   : > { %p6317_p4 = por %p6316_p2, %p6315_p1 }
  0x3a   : > { %p6318_p6 = pnand %p6317_p4, %p6311_p5 }
  0x3c   : > { %6321 = shalt.err (!%p6318_p6)
}
  0x3d   : > { %s6322_s18 = scalar_lea.vmem %s6544_s27, 6400  ;;  %s6412_s24 = smov [#allocation2]  }
  0x3e   : > { %p6323_p8 = scmp.ne.s32.totalorder %s6544_s27, %s6322_s18  ;;  %s6327_s19 = sshll.u32 %s6412_s24, 4  ;;  %s6328_s19 = int_to_ptr.vmem [resolvable:$false] %s6327_s19 }
  0x3f   : > { %s6329_s23 = scalar_lea.vmem %s6328_s19, 12800  ;;  %p6330_p3 = scmp.lt.s32.totalorder %s6544_s27, %s6328_s19 }
  0x40   : > { %p6325_p10 = pnand %p6323_p8, %p6309_p0  ;;  %p6331_p7 = scmp.lt.s32.totalorder %s6329_s23, %s6322_s18 }
  0x42   : > { %p6326_p11 = pneg %p6325_p10  ;;  %p6332_p9 = por %p6331_p7, %p6330_p3 }
  0x44   : > { %p6333_p1 = pnand %p6332_p9, %p6326_p11 }
  0x46   : > { %6336 = shalt.err (!%p6333_p1)
}
  0x47   : > { %5497 = dma.hbm_to_vmem [thread:$0]  (!%p6535_p13), %s6542_s22, 6400, %s6544_s27, %s6546_s28, %s6410_s4, %s6410_s4, %s6411_s5  }
  0x48   : > { %p9804_p0 = scmp.ne.s32.totalorder %s9799_s17, 0 }
  0x4a   : > { %146 = sbr.rel (%p9804_p0) target bundleno = 3819 (0xeeb), region = 28 }
  0x51   : > { %s6580_s26 = sand.u32 1, %s6399_s10   ;;  %p9805_p5 = scmp.ne.s32.totalorder %s9797_s15, 0 }
  0x52   : > { %s5481_s29 = smul.u32 400, %s6580_s26  ;;  %s149_s30 = scalar_lea.sflag [#allocation3], %s6580_s26 }
  0x54   : > { %s6584_s3 = scalar_lea.vmem [#allocation2], %s5481_s29 }
  0x55   : > { %6382 = dma.done.wait (%p9805_p5), %s149_s30, 6400  }
  0x56   : > { %6384 = vsyncadd (%p9805_p5), %s149_s30, 4294960896  ;;  %p9806_p13 = scmp.eq.s32.totalorder %s6456_s13, 0 }
  0x58   : > { %6386 = dma.done.wait (%p9806_p13), [#allocation6], 3328   ;;  %p9807_p2 = pmov %p9806_p13 }
  0x59   : > { %v228_v0 = vld [vmem:[#allocation5] sm:$0xff]  ;;  %vm307_vm0 = vcmask 1043456   ;;  %v211_v2 = vld [vmem:[%s6584_s3 + $0x108] sm:$0xff]  ;;  %vm282_vm1 = vcmask 64512   ;;  %v213_v6 = vld [vmem:[%s6584_s3 + $0x118] sm:$0xff]  ;;  %v9639_v27 = vmov 0.0  }
  0x5a   : > { %6388 = vsyncadd (%p9807_p2), [#allocation6], 4294963968  ;;  %v210_v1 = vld [vmem:[%s6584_s3 + $0x100] sm:$0xff]  ;;  %v229_v3 = vpack.c.bf16 %v228_v0, %v228_v0  ;;  %v212_v5 = vld [vmem:[%s6584_s3 + $0x110] sm:$0xff]  ;;  %vm6414_vm2 = vmmov 0   ;;  %vm416_vm3 = vcmask 523264  }
  0x5b   : > { %v274_v4 = vpack.c.bf16 %v211_v2, %v210_v1  ;;  %v214_v7 = vld [vmem:[%s6584_s3 + $0x120] sm:$0xff]  ;;  %v215_v8 = vld [vmem:[%s6584_s3 + $0x128] sm:$0xff]  ;;  %v275_v10 = vpack.c.bf16 %v213_v6, %v212_v5  ;;  %v216_v12 = vld [vmem:[%s6584_s3 + $0x130] sm:$0xff]  ;;  %v9643_v1 = vmov 0   ;;  %s4928_s15 = sshll.u32 %s6580_s26, 3  ;;  %s5004_s17 = sshll.u32 %s6456_s13, 7 }
  0x5c   : > { %5476 = vmatprep.subr.msk.bf16.mxu0 %vm307_vm0, %v229_v3  ;;  %v309_v9 = vsel %vm307_vm0, %v229_v3, 0  ;;  %v276_v11 = vpack.c.bf16 %v215_v8, %v214_v7  ;;  %v217_v13 = vld [vmem:[%s6584_s3 + $0x138] sm:$0xff]  ;;  %v218_v14 = vld [vmem:[%s6584_s3 + $0x140] sm:$0xff]  ;;  %v219_v15 = vld [vmem:[%s6584_s3 + $0x148] sm:$0xff]  ;;  %5547 = vset.pattern.permute.xlu1 %v9643_v1  ;;  %s176_s4 = scalar_lea.vmem [#allocation7], %s4928_s15  ;;  %s9583_s27 = scalar_lea.hbm %s9629_s2, %s5004_s17 }
  0x5d   : > { %5162 = vmatprep.mubr.msk.bf16.mxu0 %vm282_vm1, %v274_v4  ;;  %5161 = vmatpush3.bf16.msra.mxu0 %v309_v9  ;;  %v277_v16 = vpack.c.bf16 %v217_v13, %v216_v12  ;;  %v278_v17 = vpack.c.bf16 %v219_v15, %v218_v14  ;;  %v220_v18 = vld [vmem:[%s6584_s3 + $0x150] sm:$0xff]  ;;  %v221_v19 = vld [vmem:[%s6584_s3 + $0x158] sm:$0xff]  ;;  %v222_v20 = vld [vmem:[%s6584_s3 + $0x160] sm:$0xff]  ;;  %v9633_v13 = vmov 2   ;;  %s4841_s5 = sshll.u32 %s176_s4, 4  ;;  %s4828_s28 = scalar_lea.sflag [#allocation4], %s6580_s26  ;;  %s9585_s5 = int_to_ptr.vmem [resolvable:$true] %s4841_s5 }
  0x5e   : > { %v223_v21 = vld [vmem:[%s6584_s3 + $0x168] sm:$0xff]  ;;  %v279_v22 = vpack.c.bf16 %v221_v19, %v220_v18  ;;  %v224_v24 = vld [vmem:[%s6584_s3 + $0x170] sm:$0xff]  ;;  %v225_v25 = vld [vmem:[%s6584_s3 + $0x178] sm:$0xff]  ;;  %5178 = vmatprep.subr.bf16.mxu0 %v9639_v27  ;;  %5551 = vset.pattern.permute.xlu0 %v9643_v1  ;;  %s6337_s13 = scalar_lea.vmem %s9585_s5, 128  ;;  %s6419_s6 = smov [#allocation7]  }
  0x5f   : > { %v280_v23 = vpack.c.bf16 %v223_v21, %v222_v20  ;;  %v281_v26 = vpack.c.bf16 %v225_v25, %v224_v24  ;;  %v244_v59 = vld [vmem:[#allocation5 + $0x4c] sm:$0xf]  ;;  %v242_v62 = vld [vmem:[#allocation5 + $0x48] sm:$0xf]  ;;  %v664_v25 = vlaneseq  ;;  %p6338_p4 = scmp.ne.s32.totalorder %s9585_s5, %s6337_s13  ;;  %s6341_s7 = sshll.u32 %s6419_s6, 4  ;;  %s6342_s7 = int_to_ptr.vmem [resolvable:$false] %s6341_s7 }
  0x60   : > { %5163 = vmatmul.mubr.msk.bf16.vlgmr.msra.gmra.mrb[0].mxu0 %vm282_vm1, %v275_v10  ;;  %v245_v60 = vpack.c.bf16 %v244_v59, %v244_v59  ;;  %v243_v63 = vpack.c.bf16 %v242_v62, %v242_v62  ;;  %v9637_v10 = vmov 1   ;;  %v6809_v59 = vld [vmem:[%s6584_s3 + $0x98] sm:$0xff]  ;;  %s6343_s20 = scalar_lea.vmem %s6342_s7, 256  ;;  %p6344_p10 = scmp.lt.s32.totalorder %s9585_s5, %s6342_s7 }
  0x61   : > { %5166 = vmatprep.mubr.msk.bf16.mxu0 %vm282_vm1, %v276_v11  ;;  %p6339_p6 = pnand %p6338_p4, %p6529_p12  ;;  %p6345_p11 = scmp.lt.s32.totalorder %s6343_s20, %s6337_s13 }
  0x62   : > { %v485_v0 = vsel %vm416_vm3, %v245_v60, 0 }
  0x63   : > { %p6340_p8 = pneg %p6339_p6  ;;  %p6346_p3 = por %p6345_p11, %p6344_p10 }
  0x65   : > { %p6347_p7 = pnand %p6346_p3, %p6340_p8 }
  0x68   : > { %5167 = vmatmul.mubr.msk.bf16.gmra.mrb[4].mxu0 %vm282_vm1, %v277_v16  ;;  %v9635_v16 = vmov 3  }
  0x69   : > { %5170 = vmatprep.mubr.msk.bf16.mxu0 %vm282_vm1, %v278_v17 }
  0x70   : > { %5171 = vmatmul.mubr.msk.bf16.gmra.mrb[8].mxu0 %vm282_vm1, %v279_v22 }
  0x71   : > { %5174 = vmatprep.mubr.msk.bf16.mxu0 %vm282_vm1, %v280_v23 }
  0x78   : > { %5175 = vmatmul.mubr.msk.bf16.gmra.mrb[12].mxu0 %vm282_vm1, %v281_v26  ;;  %v6738_v26 = vshrl.u32 %v664_v25, 7 }
  0x79   : > { %5194 = vmatprep.mubr.msk.bf16.mxu0 %vm6414_vm2, %v9639_v27 }
 0x133   : > { %v5164_v28 = vpop.f32.mrb[0].mxu0 }
 0x134   : > { %v345_v29 = vpop.f32.mrb[1].mxu0 }
 0x135   : > { %v5165_v30 = vpop.f32.mrb[2].mxu0 }
 0x136   : > { %v409_v31 = vpack.c.bf16 %v5165_v30, %v5164_v28  ;;  %v348_v32 = vpop.f32.mrb[3].mxu0  ;;  %v6742_v28 = vld [vmem:[#allocation5 + $0x68] sm:$0xf] }
 0x137   : > { %v408_v33 = vpack.c.bf16 %v348_v32, %v345_v29  ;;  %v6745_v29 = vsub.s32 0, %v6738_v26 }
 0x138   : > { %v424_v41 = vsel %vm416_vm3, %v409_v31, 0 }
 0x139   : > { %v421_v34 = vsel %vm416_vm3, %v408_v33, 0  ;;  %9808 = vst [vmem:[#allocation11_spill] sm:$0xff] %v6745_v29  ;;  %v6751_v30 = vrot.slane %v6742_v28, %v6745_v29 }
 0x13a   : > { %5179 = vmatpush3.bf16.xpose.msra.mxu0 %v421_v34 }
 0x13b   : > { %v5168_v35 = vpop.f32.mrb[4].mxu0  ;;  %5180 = vmatprep.subr.bf16.mxu0 %v9639_v27 }
 0x13c   : > { %v361_v36 = vpop.f32.mrb[5].mxu0 }
 0x13d   : > { %v5169_v37 = vpop.f32.mrb[6].mxu0 }
 0x13e   : > { %v411_v38 = vpack.c.bf16 %v5169_v37, %v5168_v35  ;;  %v364_v39 = vpop.f32.mrb[7].mxu0  ;;  %v6766_v37 = vld [vmem:[%s6584_s3 + $0x80] sm:$0xff] }
 0x13f   : > { %v410_v40 = vpack.c.bf16 %v364_v39, %v361_v36 }
 0x140   : > { %v430_v55 = vsel %vm416_vm3, %v411_v38, 0 }
 0x141   : > { %v427_v48 = vsel %vm416_vm3, %v410_v40, 0 }
 0x142   : > { %5181 = vmatpush3.bf16.xpose.msra.mxu0 %v424_v41  ;;  %v688_v41 = vmul.f32 %v6751_v30, %v6766_v37 }
 0x143   : > { %5182 = vmatprep.subr.bf16.mxu0 %v9639_v27  ;;  %v5172_v42 = vpop.f32.mrb[8].mxu0 }
 0x144   : > { %v377_v43 = vpop.f32.mrb[9].mxu0 }
 0x145   : > { %v5173_v44 = vpop.f32.mrb[10].mxu0 }
 0x146   : > { %v413_v45 = vpack.c.bf16 %v5173_v44, %v5172_v42  ;;  %v380_v46 = vpop.f32.mrb[11].mxu0 }
 0x147   : > { %v412_v47 = vpack.c.bf16 %v380_v46, %v377_v43 }
 0x148   : > { %v436_v57 = vsel %vm416_vm3, %v413_v45, 0 }
 0x149   : > { %v433_v56 = vsel %vm416_vm3, %v412_v47, 0 }
 0x14a   : > { %5183 = vmatpush3.bf16.xpose.msra.mxu0 %v427_v48 }
 0x14b   : > { %5184 = vmatprep.subr.bf16.mxu0 %v9639_v27  ;;  %v5176_v49 = vpop.f32.mrb[12].mxu0 }
 0x14c   : > { %v393_v50 = vpop.f32.mrb[13].mxu0 }
 0x14d   : > { %v5177_v51 = vpop.f32.mrb[14].mxu0 }
 0x14e   : > { %v415_v52 = vpack.c.bf16 %v5177_v51, %v5176_v49  ;;  %v396_v53 = vpop.f32.mrb[15].mxu0 }
 0x14f   : > { %v414_v54 = vpack.c.bf16 %v396_v53, %v393_v50  ;;  %v6794_v53 = vld [vmem:[%s6584_s3] sm:$0xff] }
 0x150   : > { %v442_v61 = vsel %vm416_vm3, %v415_v52, 0 }
 0x151   : > { %v439_v58 = vsel %vm416_vm3, %v414_v54, 0 }
 0x152   : > { %5185 = vmatpush3.bf16.xpose.msra.mxu0 %v430_v55 }
 0x153   : > { %5186 = vmatprep.subr.bf16.mxu0 %v9639_v27 }
 0x15a   : > { %5187 = vmatpush3.bf16.xpose.msra.mxu0 %v433_v56 }
 0x15b   : > { %5188 = vmatprep.subr.bf16.mxu0 %v9639_v27 }
 0x162   : > { %5189 = vmatpush3.bf16.xpose.msra.mxu0 %v436_v57  ;;  %v6800_v57 = vsub.s32 1, %v6738_v26 }
 0x163   : > { %5190 = vmatprep.subr.bf16.mxu0 %v9639_v27 }
 0x164   : > { %9810 = vst [vmem:[#allocation13_spill] sm:$0xff] %v6800_v57 }
 0x16a   : > { %5191 = vmatpush3.bf16.xpose.msra.mxu0 %v439_v58 }
 0x16b   : > { %5192 = vmatprep.subr.bf16.mxu0 %v9639_v27 }
 0x172   : > { %5193 = vmatpush3.bf16.xpose.msra.mxu0 %v442_v61  ;;  %v6817_v61 = vrot.slane %v6742_v28, %v6800_v57 }
 0x173   : > { %5477 = vmatprep.subr.msk.bf16.mxu0 %vm416_vm3, %v245_v60 }
 0x179   : > { %5195 = vmatmul.mubr.msk.bf16.vlgmr.msra.gmra.mrb[16].mxu0 %vm416_vm3, %v243_v63 }
 0x17a   : > { %5199 = vmatpush3.bf16.xpose.msra.mxu0 %v485_v0  ;;  %5200 = vmatprep.mubr.msk.bf16.mxu0 %vm416_vm3, %v408_v33 }
 0x17b   : > { %5216 = vmatprep.subr.bf16.mxu0 %v408_v33 }
 0x181   : > { %5201 = vmatmul.mubr.msk.bf16.vlgmr.msra.gmra.mrb[20].mxu0 %vm416_vm3, %v409_v31 }
 0x182   : > { %5204 = vmatprep.mubr.msk.bf16.mxu0 %vm416_vm3, %v410_v40  ;;  %5217 = vmatpush3.bf16.msra.mxu0 %v408_v33 }
 0x183   : > { %5218 = vmatprep.subr.bf16.mxu0 %v409_v31 }
 0x186   : > { %5219 = vmatpush3.bf16.msra.mxu0 %v409_v31  ;;  %v6754_v31 = vld [vmem:[%s6584_s3 + $0x90] sm:$0xff] }
 0x187   : > { %5220 = vmatprep.subr.bf16.mxu0 %v410_v40  ;;  %v690_v36 = vmul.f32 %v6751_v30, %v6754_v31 }
 0x189   : > { %5205 = vmatmul.mubr.msk.bf16.gmra.mrb[24].mxu0 %vm416_vm3, %v411_v38 }
 0x18a   : > { %5208 = vmatprep.mubr.msk.bf16.mxu0 %vm416_vm3, %v412_v47  ;;  %5221 = vmatpush3.bf16.msra.mxu0 %v410_v40 }
 0x18b   : > { %5222 = vmatprep.subr.bf16.mxu0 %v411_v38 }
 0x18e   : > { %5223 = vmatpush3.bf16.msra.mxu0 %v411_v38 }
 0x18f   : > { %5224 = vmatprep.subr.bf16.mxu0 %v412_v47 }
 0x191   : > { %5209 = vmatmul.mubr.msk.bf16.gmra.mrb[28].mxu0 %vm416_vm3, %v413_v45 }
 0x192   : > { %5212 = vmatprep.mubr.msk.bf16.mxu0 %vm416_vm3, %v414_v54  ;;  %5225 = vmatpush3.bf16.msra.mxu0 %v412_v47  ;;  %v6782_v47 = vld [vmem:[%s6584_s3 + $0x10] sm:$0xff] }
 0x193   : > { %5226 = vmatprep.subr.bf16.mxu0 %v413_v45 }
 0x196   : > { %5227 = vmatpush3.bf16.msra.mxu0 %v413_v45 }
 0x197   : > { %5228 = vmatprep.subr.bf16.mxu0 %v414_v54 }
 0x199   : > { %5213 = vmatmul.mubr.msk.bf16.gmra.mrb[32].mxu0 %vm416_vm3, %v415_v52 }
 0x19a   : > { %5229 = vmatpush3.bf16.msra.mxu0 %v414_v54 }
 0x19b   : > { %5230 = vmatprep.subr.bf16.mxu0 %v415_v52 }
 0x19e   : > { %5231 = vmatpush3.bf16.msra.mxu0 %v415_v52 }
 0x19f   : > { %5458 = vmatprep.subr.bf16.mxu0 %v9639_v27 }
 0x24c   : > { %v6650_v2 = vpop.f32.mrb[16].mxu0 }
 0x24d   : > { %v5196_v3 = vpop.f32.mrb[17].mxu0  ;;  %v6758_v32 = vrot.slane %v6650_v2, %v6745_v29  ;;  %v6813_v60 = vrot.slane %v6650_v2, %v6800_v57 }
 0x24e   : > { %v481_v4 = vpop.f32.mrb[18].mxu0  ;;  %v875_v3 = vmul.f32 %v6817_v61, %v6809_v59 }
 0x24f   : > { %v5197_v5 = vpop.f32.mrb[19].mxu0  ;;  %v6829_v4 = vsub.s32 2, %v6738_v26 }
 0x250   : > { %v691_v5 = vmul.f32 %v6751_v30, %v6809_v59 }
 0x251   : > { %9812 = vst [vmem:[#allocation15_spill] sm:$0xff] %v6829_v4 }
 0x254   : > { %v5202_v6 = vpop.f32.mrb[20].mxu0 }
 0x255   : > { %596 = vperm.xlu1 %5547, %v5202_v6   ;;  %v521_v7 = vpop.f32.mrb[21].mxu0 }
 0x256   : > { %586 = vperm.xlu0 %5551, %v521_v7   ;;  %v5203_v8 = vpop.f32.mrb[22].mxu0 }
 0x257   : > { %v524_v9 = vpop.f32.mrb[23].mxu0 }
 0x259   : > { %5548 = vset.pattern.permute.xlu1 %v9637_v10 }
 0x25a   : > { %793 = vperm.xlu1 %5548, %v5202_v6   ;;  %5552 = vset.pattern.permute.xlu0 %v9637_v10 }
 0x25b   : > { %785 = vperm.xlu0 %5552, %v521_v7  }
 0x25c   : > { %v5206_v11 = vpop.f32.mrb[24].mxu0 }
 0x25d   : > { %v537_v12 = vpop.f32.mrb[25].mxu0 }
 0x25e   : > { %5549 = vset.pattern.permute.xlu1 %v9633_v13  ;;  %v6655_v14 = vpop.f32.mrb[26].mxu0 }
 0x25f   : > { %977 = vperm.xlu1 %5549, %v5202_v6   ;;  %797 = vperm.xlu0 %5552, %v5203_v8   ;;  %v6657_v15 = vpop.f32.mrb[27].mxu0 }
 0x263   : > { %5550 = vset.pattern.permute.xlu1 %v9635_v16  ;;  %5558 = vset.pattern.permute.xlu0 %v9643_v1 }
 0x264   : > { %1161 = vperm.xlu1 %5550, %v5202_v6   ;;  %591 = vperm.xlu0 %5558, %v524_v9   ;;  %v6661_v17 = vpop.f32.mrb[28].mxu0 }
 0x265   : > { %v6663_v18 = vpop.f32.mrb[29].mxu0 }
 0x266   : > { %v6665_v19 = vpop.f32.mrb[30].mxu0 }
 0x267   : > { %v6667_v20 = vpop.f32.mrb[31].mxu0 }
 0x268   : > { %5553 = vset.pattern.permute.xlu1 %v9633_v13  ;;  %5560 = vset.pattern.permute.xlu0 %v9633_v13 }
 0x269   : > { %969 = vperm.xlu1 %5553, %v521_v7   ;;  %973 = vperm.xlu0 %5560, %v524_v9  }
 0x26c   : > { %v6671_v21 = vpop.f32.mrb[32].mxu0 }
 0x26d   : > { %5554 = vset.pattern.permute.xlu1 %v9635_v16  ;;  %5561 = vset.pattern.permute.xlu0 %v9635_v16  ;;  %v6675_v22 = vpop.f32.mrb[33].mxu0 }
 0x26e   : > { %1153 = vperm.xlu1 %5554, %v521_v7   ;;  %1157 = vperm.xlu0 %5561, %v524_v9   ;;  %v6677_v23 = vpop.f32.mrb[34].mxu0 }
 0x26f   : > { %v6679_v24 = vpop.f32.mrb[35].mxu0 }
 0x272   : > { %5555 = vset.pattern.permute.xlu1 %v9643_v1  ;;  %5562 = vset.pattern.permute.xlu0 %v9643_v1 }
 0x273   : > { %601 = vperm.xlu1 %5555, %v5203_v8   ;;  %616 = vperm.xlu0 %5562, %v5206_v11  }
 0x277   : > { %5556 = vset.pattern.permute.xlu1 %v9633_v13  ;;  %5563 = vset.pattern.permute.xlu0 %v9633_v13 }
 0x278   : > { %981 = vperm.xlu1 %5556, %v5203_v8   ;;  %993 = vperm.xlu0 %5563, %v5206_v11  }
 0x27c   : > { %5557 = vset.pattern.permute.xlu1 %v9635_v16  ;;  %5565 = vset.pattern.permute.xlu0 %v9643_v1 }
 0x27d   : > { %1165 = vperm.xlu1 %5557, %v5203_v8   ;;  %606 = vperm.xlu0 %5565, %v537_v12  }
 0x281   : > { %5559 = vset.pattern.permute.xlu1 %v9637_v10  ;;  %5567 = vset.pattern.permute.xlu0 %v9633_v13 }
 0x282   : > { %789 = vperm.xlu1 %5559, %v524_v9   ;;  %985 = vperm.xlu0 %5567, %v537_v12  }
 0x286   : > { %809 = vperm.xlu1 %5559, %v5206_v11   ;;  %5570 = vset.pattern.permute.xlu0 %v9637_v10 }
 0x287   : > { %813 = vperm.xlu0 %5570, %v6655_v14  }
 0x28a   : > { %5564 = vset.pattern.permute.xlu1 %v9635_v16 }
 0x28b   : > { %1177 = vperm.xlu1 %5564, %v5206_v11   ;;  %805 = vperm.xlu0 %5570, %v6657_v15   ;;  %v6837_v11 = vrot.slane %v6742_v28, %v6829_v4 }
 0x28f   : > { %5566 = vset.pattern.permute.xlu1 %v9637_v10  ;;  %5575 = vset.pattern.permute.xlu0 %v9635_v16 }
 0x290   : > { %801 = vperm.xlu1 %5566, %v537_v12   ;;  %1173 = vperm.xlu0 %5575, %v6657_v15  }
 0x294   : > { %5568 = vset.pattern.permute.xlu1 %v9635_v16  ;;  %5576 = vset.pattern.permute.xlu0 %v9643_v1 }
 0x295   : > { %1169 = vperm.xlu1 %5568, %v537_v12   ;;  %636 = vperm.xlu0 %5576, %v6661_v17   ;;  %v6842_v12 = vrot.slane %v6650_v2, %v6829_v4 }
 0x299   : > { %5569 = vset.pattern.permute.xlu1 %v9643_v1  ;;  %626 = vperm.xlu0 %5576, %v6663_v18  }
 0x29a   : > { %621 = vperm.xlu1 %5569, %v6655_v14  }
 0x29d   : > { %5584 = vset.pattern.permute.xlu0 %v9637_v10 }
 0x29e   : > { %5571 = vset.pattern.permute.xlu1 %v9633_v13  ;;  %829 = vperm.xlu0 %5584, %v6665_v19  }
 0x29f   : > { %997 = vperm.xlu1 %5571, %v6655_v14  }
 0x2a2   : > { %821 = vperm.xlu0 %5584, %v6667_v20  }
 0x2a3   : > { %5572 = vset.pattern.permute.xlu1 %v9635_v16 }
 0x2a4   : > { %1181 = vperm.xlu1 %5572, %v6655_v14   ;;  %v6845_v14 = vld [vmem:[%s6584_s3 + $0x88] sm:$0xff] }
 0x2a6   : > { %5588 = vset.pattern.permute.xlu0 %v9633_v13 }
 0x2a7   : > { %1005 = vperm.xlu0 %5588, %v6667_v20  }
 0x2a8   : > { %5573 = vset.pattern.permute.xlu1 %v9643_v1 }
 0x2a9   : > { %611 = vperm.xlu1 %5573, %v6657_v15  }
 0x2ab   : > { %5589 = vset.pattern.permute.xlu0 %v9635_v16 }
 0x2ac   : > { %1189 = vperm.xlu0 %5589, %v6667_v20  }
 0x2ad   : > { %5574 = vset.pattern.permute.xlu1 %v9633_v13 }
 0x2ae   : > { %989 = vperm.xlu1 %5574, %v6657_v15  }
 0x2b0   : > { %5590 = vset.pattern.permute.xlu0 %v9643_v1 }
 0x2b1   : > { %656 = vperm.xlu0 %5590, %v6671_v21  }
 0x2b2   : > { %5577 = vset.pattern.permute.xlu1 %v9637_v10 }
 0x2b3   : > { %825 = vperm.xlu1 %5577, %v6661_v17  }
 0x2b5   : > { %646 = vperm.xlu0 %5590, %v6675_v22  }
 0x2b7   : > { %5578 = vset.pattern.permute.xlu1 %v9633_v13 }
 0x2b8   : > { %1009 = vperm.xlu1 %5578, %v6661_v17  }
 0x2b9   : > { %5597 = vset.pattern.permute.xlu0 %v9637_v10 }
 0x2ba   : > { %845 = vperm.xlu0 %5597, %v6677_v23  }
 0x2bc   : > { %5579 = vset.pattern.permute.xlu1 %v9635_v16 }
 0x2bd   : > { %1193 = vperm.xlu1 %5579, %v6661_v17   ;;  %v1057_v17 = vmul.f32 %v6837_v11, %v6845_v14 }
 0x2be   : > { %837 = vperm.xlu0 %5597, %v6679_v24  }
 0x2c1   : > { %5580 = vset.pattern.permute.xlu1 %v9637_v10 }
 0x2c2   : > { %817 = vperm.xlu1 %5580, %v6663_v18   ;;  %5601 = vset.pattern.permute.xlu0 %v9633_v13 }
 0x2c3   : > { %1021 = vperm.xlu0 %5601, %v6679_v24  }
 0x2c6   : > { %5581 = vset.pattern.permute.xlu1 %v9633_v13 }
 0x2c7   : > { %1001 = vperm.xlu1 %5581, %v6663_v18   ;;  %5602 = vset.pattern.permute.xlu0 %v9635_v16 }
 0x2c8   : > { %1205 = vperm.xlu0 %5602, %v6679_v24  }
 0x2cb   : > { %5582 = vset.pattern.permute.xlu1 %v9635_v16 }
 0x2cc   : > { %1185 = vperm.xlu1 %5582, %v6663_v18   ;;  %5609 = vset.pattern.permute.xlu0 %v9633_v13  ;;  %v1059_v18 = vmul.f32 %v6837_v11, %v6809_v59 }
 0x2d0   : > { %5583 = vset.pattern.permute.xlu1 %v9643_v1 }
 0x2d1   : > { %641 = vperm.xlu1 %5583, %v6665_v19  }
 0x2d4   : > { %v597_v33 = vpop.permute.xlu1 %596 }
 0x2d5   : > { %v587_v34 = vpop.permute.xlu0 %586  ;;  %5585 = vset.pattern.permute.xlu1 %v9633_v13  ;;  %v670_v35 = vadd.f32 %v6758_v32, %v597_v33 }
 0x2d6   : > { %1013 = vperm.xlu1 %5585, %v6665_v19   ;;  %v668_v40 = vadd.f32 %v6758_v32, %v587_v34 }
 0x2d7   : > { %v706_v39 = vadd.f32 %v690_v36, %v670_v35  ;;  %v6855_v35 = vld [vmem:[%s6584_s3 + $0xb0] sm:$0xff] }
 0x2d8   : > { %v704_v43 = vadd.f32 %v688_v41, %v668_v40 }
 0x2d9   : > { %v6768_v38 = vpop.permute.xlu1 %793  ;;  %v738_v46 = vmul.f32 0.2, %v706_v39  ;;  %vm722_vm4 = vcmp.gt.f32.partialorder %v706_v39, 0.0 }
 0x2da   : > { %v6773_v42 = vpop.permute.xlu0 %785  ;;  %5586 = vset.pattern.permute.xlu1 %v9635_v16  ;;  %v736_v49 = vmul.f32 0.2, %v704_v43  ;;  %vm720_vm5 = vcmp.gt.f32.partialorder %v704_v43, 0.0 }
 0x2db   : > { %1197 = vperm.xlu1 %5586, %v6665_v19   ;;  %v754_v48 = vsel %vm722_vm4, %v706_v39, %v738_v46  ;;  %v6861_v39 = vld [vmem:[%s6584_s3 + $0x18] sm:$0xff] }
 0x2dc   : > { %v6791_v52 = vadd.f32 %v754_v48, %v6782_v47  ;;  %v752_v54 = vsel %vm720_vm5, %v704_v43, %v736_v49  ;;  %9813 = vst [vmem:[#allocation16_spill] sm:$0xff] %v6861_v39  ;;  %v694_v48 = vmul.f32 %v6751_v30, %v6855_v35 }
 0x2dd   : > { %v6804_v58 = vadd.f32 %v752_v54, %v6794_v53 }
 0x2de   : > { %v6777_v44 = vpop.permute.xlu1 %977  ;;  %v798_v45 = vpop.permute.xlu0 %797  ;;  %9809 = vst [vmem:[#allocation12_spill] sm:$0xff] %v6791_v52 }
 0x2df   : > { %5587 = vset.pattern.permute.xlu1 %v9643_v1  ;;  %9811 = vst [vmem:[#allocation14_spill] sm:$0xff] %v6804_v58  ;;  %v855_v0 = vadd.f32 %v6813_v60, %v798_v45 }
 0x2e0   : > { %631 = vperm.xlu1 %5587, %v6667_v20  }
 0x2e1   : > { %v891_v8 = vadd.f32 %v875_v3, %v855_v0 }
 0x2e3   : > { %v6784_v50 = vpop.permute.xlu1 %1161  ;;  %v6786_v51 = vpop.permute.xlu0 %591  ;;  %v923_v34 = vmul.f32 0.2, %v891_v8  ;;  %vm907_vm7 = vcmp.gt.f32.partialorder %v891_v8, 0.0 }
 0x2e4   : > { %5591 = vset.pattern.permute.xlu1 %v9637_v10 }
 0x2e5   : > { %841 = vperm.xlu1 %5591, %v6671_v21   ;;  %v939_v49 = vsel %vm907_vm7, %v891_v8, %v923_v34 }
 0x2e6   : > { %v6875_v0 = vadd.f32 %v939_v49, %v6861_v39 }
 0x2e7   : > { %1340 = vmax.xlane.f32.xlu0 %v6791_v52 }
 0x2e8   : > { %v6797_v55 = vpop.permute.xlu1 %969  ;;  %v974_v56 = vpop.permute.xlu0 %973  ;;  %9815 = vst [vmem:[#allocation18_spill] sm:$0xff] %v6875_v0 }
 0x2e9   : > { %5592 = vset.pattern.permute.xlu1 %v9633_v13  ;;  %v1037_v19 = vadd.f32 %v6842_v12, %v974_v56 }
 0x2ea   : > { %1025 = vperm.xlu1 %5592, %v6671_v21  }
 0x2eb   : > { %1336 = vmax.xlane.f32.xlu0 %v6804_v58  ;;  %v1073_v45 = vadd.f32 %v1057_v17, %v1037_v19 }
 0x2ed   : > { %v6819_v62 = vpop.permute.xlu1 %1153  ;;  %v6821_v63 = vpop.permute.xlu0 %1157  ;;  %vm1089_vm9 = vcmp.gt.f32.partialorder %v1073_v45, 0.0 }
 0x2ee   : > { %5593 = vset.pattern.permute.xlu1 %v9637_v10 }
 0x2ef   : > { %833 = vperm.xlu1 %5593, %v6675_v22  }
 0x2f2   : > { %v602_v6 = vpop.permute.xlu1 %601  ;;  %v617_v7 = vpop.permute.xlu0 %616 }
 0x2f3   : > { %v671_v9 = vadd.f32 %v6758_v32, %v602_v6  ;;  %5594 = vset.pattern.permute.xlu1 %v9633_v13  ;;  %v674_v46 = vadd.f32 %v6758_v32, %v617_v7  ;;  %v1105_v6 = vmul.f32 0.2, %v1073_v45  ;;  %v6878_v7 = vld [vmem:[%s6584_s3 + $0xa0] sm:$0xff] }
 0x2f4   : > { %1017 = vperm.xlu1 %5594, %v6675_v22  }
 0x2f5   : > { %v707_v15 = vadd.f32 %v691_v5, %v671_v9  ;;  %v710_v3 = vadd.f32 %v694_v48, %v674_v46  ;;  %v1121_v19 = vsel %vm1089_vm9, %v1073_v45, %v1105_v6  ;;  %v6903_v45 = vld [vmem:[%s6584_s3 + $0x30] sm:$0xff] }
 0x2f7   : > { %v982_v20 = vpop.permute.xlu1 %981  ;;  %v6852_v25 = vpop.permute.xlu0 %993  ;;  %vm723_vm6 = vcmp.gt.f32.partialorder %v707_v15, 0.0  ;;  %v739_v33 = vmul.f32 0.2, %v707_v15  ;;  %vm726_vm10 = vcmp.gt.f32.partialorder %v710_v3, 0.0 }
 0x2f8   : > { %v1039_v36 = vadd.f32 %v6842_v12, %v982_v20  ;;  %5595 = vset.pattern.permute.xlu1 %v9635_v16  ;;  %v742_v20 = vmul.f32 0.2, %v710_v3 }
 0x2f9   : > { %1201 = vperm.xlu1 %5595, %v6675_v22   ;;  %v755_v40 = vsel %vm723_vm6, %v707_v15, %v739_v33  ;;  %v878_v33 = vmul.f32 %v6817_v61, %v6855_v35 }
 0x2fa   : > { %v1075_v41 = vadd.f32 %v1059_v18, %v1039_v36  ;;  %v6864_v43 = vadd.f32 %v755_v40, %v6861_v39  ;;  %v692_v18 = vmul.f32 %v6751_v30, %v6878_v7  ;;  %v6895_v36 = vld [vmem:[%s6584_s3 + $0x8] sm:$0xff]  ;;  %v758_v49 = vsel %vm726_vm10, %v710_v3, %v742_v20 }
 0x2fb   : > { %9817 = vst [vmem:[#allocation20_spill] sm:$0xff] %v6895_v36  ;;  %v6899_v46 = vadd.f32 %v1121_v19, %v6895_v36  ;;  %v6912_v6 = vadd.f32 %v758_v49, %v6903_v45  ;;  %v1060_v3 = vmul.f32 %v6837_v11, %v6878_v7 }
 0x2fc   : > { %9814 = vst [vmem:[#allocation17_spill] sm:$0xff] %v6864_v43  ;;  %v6869_v54 = vpop.permute.xlu1 %1165  ;;  %v607_v56 = vpop.permute.xlu0 %606  ;;  %1342 = vmax.xlane.f32.xlu0 %v6864_v43  ;;  %vm1091_vm8 = vcmp.gt.f32.partialorder %v1075_v41, 0.0  ;;  %v1107_v22 = vmul.f32 0.2, %v1075_v41 }
 0x2fd   : > { %5596 = vset.pattern.permute.xlu1 %v9643_v1  ;;  %v672_v17 = vadd.f32 %v6758_v32, %v607_v56  ;;  %9818 = vst [vmem:[#allocation21_spill] sm:$0xff] %v6899_v46  ;;  %9819 = vst [vmem:[#allocation22_spill] sm:$0xff] %v6912_v6 }
 0x2fe   : > { %661 = vperm.xlu1 %5596, %v6677_v23   ;;  %v1123_v5 = vsel %vm1091_vm8, %v1075_v41, %v1107_v22 }
 0x2ff   : > { %v6885_v15 = vadd.f32 %v1123_v5, %v6861_v39  ;;  %v708_v48 = vadd.f32 %v692_v18, %v672_v17 }
 0x300   : > { %1374 = vmax.xlane.f32.xlu0 %v6875_v0 }
 0x301   : > { %v6881_v8 = vpop.permute.xlu1 %789  ;;  %v986_v9 = vpop.permute.xlu0 %985  ;;  %9816 = vst [vmem:[#allocation19_spill] sm:$0xff] %v6885_v15  ;;  %v740_v18 = vmul.f32 0.2, %v708_v48  ;;  %vm724_vm12 = vcmp.gt.f32.partialorder %v708_v48, 0.0 }
 0x302   : > { %5598 = vset.pattern.permute.xlu1 %v9633_v13  ;;  %v1040_v19 = vadd.f32 %v6842_v12, %v986_v9 }
 0x303   : > { %1029 = vperm.xlu1 %5598, %v6677_v23   ;;  %v756_v49 = vsel %vm724_vm12, %v708_v48, %v740_v18 }
 0x304   : > { %1406 = vmax.xlane.f32.xlu0 %v6885_v15  ;;  %v1076_v13 = vadd.f32 %v1060_v3, %v1040_v19 }
 0x305   : > { %v810_v34 = vpop.permute.xlu1 %809 }
 0x306   : > { %v858_v40 = vadd.f32 %v6813_v60, %v810_v34  ;;  %v814_v41 = vpop.permute.xlu0 %813  ;;  %v1108_v18 = vmul.f32 0.2, %v1076_v13  ;;  %vm1092_vm14 = vcmp.gt.f32.partialorder %v1076_v13, 0.0 }
 0x307   : > { %5599 = vset.pattern.permute.xlu1 %v9643_v1  ;;  %v859_v19 = vadd.f32 %v6813_v60, %v814_v41 }
 0x308   : > { %v894_v56 = vadd.f32 %v878_v33, %v858_v40  ;;  %651 = vperm.xlu1 %5599, %v6679_v24   ;;  %1402 = vmax.xlane.f32.xlu0 %v6899_v46  ;;  %v876_v33 = vmul.f32 %v6817_v61, %v6878_v7  ;;  %v6928_v40 = vld [vmem:[%s6584_s3 + $0x20] sm:$0xff]  ;;  %v1124_v10 = vsel %vm1092_vm14, %v1076_v13, %v1108_v18 }
 0x309   : > { %9822 = vst [vmem:[#allocation25_spill] sm:$0xff] %v6928_v40  ;;  %v6963_v57 = vadd.f32 %v1124_v10, %v6928_v40 }
 0x30a   : > { %v6907_v22 = vpop.permute.xlu1 %1177  ;;  %v6909_v5 = vpop.permute.xlu0 %805  ;;  %vm910_vm11 = vcmp.gt.f32.partialorder %v894_v56, 0.0  ;;  %v926_v17 = vmul.f32 0.2, %v894_v56 }
 0x30b   : > { %9825 = vst [vmem:[#allocation28_spill] sm:$0xff] %v6963_v57 }
 0x30c   : > { %5600 = vset.pattern.permute.xlu1 %v9635_v16  ;;  %1348 = vmax.xlane.f32.xlu0 %v6912_v6  ;;  %v942_v24 = vsel %vm910_vm11, %v894_v56, %v926_v17  ;;  %v6937_v17 = vadd.f32 %v756_v49, %v6928_v40 }
 0x30d   : > { %1209 = vperm.xlu1 %5600, %v6671_v21   ;;  %v6921_v20 = vadd.f32 %v942_v24, %v6903_v45  ;;  %v6934_v21 = vld [vmem:[%s6584_s3 + $0xb8] sm:$0xff] }
 0x30e   : > { %9823 = vst [vmem:[#allocation26_spill] sm:$0xff] %v6937_v17  ;;  %v879_v3 = vmul.f32 %v6817_v61, %v6934_v21  ;;  %v695_v49 = vmul.f32 %v6751_v30, %v6934_v21 }
 0x30f   : > { %9820 = vst [vmem:[#allocation23_spill] sm:$0xff] %v6921_v20  ;;  %v802_v34 = vpop.permute.xlu1 %801  ;;  %v6925_v9 = vpop.permute.xlu0 %1173 }
 0x310   : > { %9821 = vst [vmem:[#allocation24_spill] sm:$0xff] %v6925_v9  ;;  %v856_v16 = vadd.f32 %v6813_v60, %v802_v34  ;;  %1380 = vmax.xlane.f32.xlu0 %v6921_v20  ;;  %v895_v27 = vadd.f32 %v879_v3, %v859_v19 }
 0x311   : > { %1213 = vperm.xlu1 %5600, %v6677_v23  }
 0x312   : > { %v892_v56 = vadd.f32 %v876_v33, %v856_v16  ;;  %v6947_v33 = vld [vmem:[%s6584_s3 + $0xd0] sm:$0xff]  ;;  %v927_v18 = vmul.f32 0.2, %v895_v27  ;;  %vm911_vm0 = vcmp.gt.f32.partialorder %v895_v27, 0.0 }
 0x314   : > { %v6939_v24 = vpop.permute.xlu1 %1169  ;;  %1344 = vmax.xlane.f32.xlu0 %v6937_v17  ;;  %vm908_vm13 = vcmp.gt.f32.partialorder %v892_v56, 0.0  ;;  %v924_v48 = vmul.f32 0.2, %v892_v56  ;;  %v637_v23 = vpop.permute.xlu0 %636  ;;  %v943_v46 = vsel %vm911_vm0, %v895_v27, %v927_v18  ;;  %v1038_v18 = vadd.f32 %v6842_v12, %v6777_v44 }
 0x315   : > { %5603 = vset.pattern.permute.xlu1 %v9643_v1  ;;  %v678_v41 = vadd.f32 %v6758_v32, %v637_v23  ;;  %v698_v1 = vmul.f32 %v6751_v30, %v6947_v33 }
 0x316   : > { %v940_v16 = vsel %vm908_vm13, %v892_v56, %v924_v48  ;;  %v6959_v56 = vld [vmem:[%s6584_s3 + $0xc0] sm:$0xff] }
 0x317   : > { %v6950_v34 = vadd.f32 %v940_v16, %v6928_v40  ;;  %v696_v13 = vmul.f32 %v6751_v30, %v6959_v56  ;;  %v714_v19 = vadd.f32 %v698_v1, %v678_v41  ;;  %v854_v1 = vadd.f32 %v6813_v60, %v6768_v38 }
 0x318   : > { %v627_v16 = vpop.permute.xlu0 %626  ;;  %v874_v41 = vmul.f32 %v6817_v61, %v6754_v31  ;;  %v1058_v38 = vmul.f32 %v6837_v11, %v6754_v31 }
 0x319   : > { %9824 = vst [vmem:[#allocation27_spill] sm:$0xff] %v6950_v34  ;;  %v622_v4 = vpop.permute.xlu1 %621  ;;  %1376 = vmax.xlane.f32.xlu0 %v6950_v34  ;;  %v676_v3 = vadd.f32 %v6758_v32, %v627_v16  ;;  %v746_v20 = vmul.f32 0.2, %v714_v19  ;;  %vm730_vm1 = vcmp.gt.f32.partialorder %v714_v19, 0.0  ;;  %v669_v34 = vadd.f32 %v6758_v32, %v6786_v51 }
 0x31a   : > { %v675_v48 = vadd.f32 %v6758_v32, %v622_v4  ;;  %v6972_v4 = vld [vmem:[%s6584_s3 + $0x38] sm:$0xff] }
 0x31b   : > { %v762_v16 = vsel %vm730_vm1, %v714_v19, %v746_v20  ;;  %v852_v20 = vadd.f32 %v6813_v60, %v6773_v42  ;;  %v872_v19 = vmul.f32 %v6817_v61, %v6766_v37  ;;  %v1036_v42 = vadd.f32 %v6842_v12, %v6797_v55 }
 0x31c   : > { %v711_v29 = vadd.f32 %v695_v49, %v675_v48  ;;  %v712_v48 = vadd.f32 %v696_v13, %v676_v3  ;;  %v890_v13 = vadd.f32 %v874_v41, %v854_v1  ;;  %v1074_v1 = vadd.f32 %v1058_v38, %v1038_v18 }
 0x31d   : > { %1408 = vmax.xlane.f32.xlu0 %v6963_v57  ;;  %v689_v38 = vmul.f32 %v6751_v30, %v6845_v14  ;;  %v873_v55 = vmul.f32 %v6817_v61, %v6845_v14 }
 0x31e   : > { %v6969_v23 = vpop.permute.xlu1 %997  ;;  %vm727_vm15 = vcmp.gt.f32.partialorder %v711_v29, 0.0  ;;  %v743_v15 = vmul.f32 0.2, %v711_v29  ;;  %v744_v27 = vmul.f32 0.2, %v712_v48  ;;  %vm728_vm4 = vcmp.gt.f32.partialorder %v712_v48, 0.0 }
 0x31f   : > { %v922_v44 = vmul.f32 0.2, %v890_v13  ;;  %vm906_vm5 = vcmp.gt.f32.partialorder %v890_v13, 0.0  ;;  %vm1090_vm6 = vcmp.gt.f32.partialorder %v1074_v1, 0.0 }
 0x320   : > { %v759_v10 = vsel %vm727_vm15, %v711_v29, %v743_v15  ;;  %v6985_v29 = vadd.f32 %v943_v46, %v6972_v4  ;;  %v6988_v15 = vld [vmem:[%s6584_s3 + $0x50] sm:$0xff]  ;;  %v6999_v46 = vld [vmem:[%s6584_s3 + $0x40] sm:$0xff] }
 0x321   : > { %v6975_v49 = vadd.f32 %v759_v10, %v6972_v4  ;;  %v6996_v10 = vadd.f32 %v762_v16, %v6988_v15  ;;  %v1056_v16 = vmul.f32 %v6837_v11, %v6766_v37 }
 0x322   : > { %9828 = vst [vmem:[#allocation31_spill] sm:$0xff] %v6985_v29 }
 0x323   : > { %9826 = vst [vmem:[#allocation29_spill] sm:$0xff] %v6975_v49  ;;  %v6977_v57 = vpop.permute.xlu1 %1181  ;;  %1350 = vmax.xlane.f32.xlu0 %v6975_v49  ;;  %9829 = vst [vmem:[#allocation32_spill] sm:$0xff] %v6996_v10  ;;  %v760_v49 = vsel %vm728_vm4, %v712_v48, %v744_v27  ;;  %v888_v48 = vadd.f32 %v872_v19, %v852_v20  ;;  %v938_v27 = vsel %vm906_vm5, %v890_v13, %v922_v44 }
 0x324   : > { %9827 = vst [vmem:[#allocation30_spill] sm:$0xff] %v6977_v57  ;;  %v1072_v17 = vadd.f32 %v1056_v16, %v1036_v42  ;;  %v705_v44 = vadd.f32 %v689_v38, %v669_v34  ;;  %v830_v38 = vpop.permute.xlu0 %829 }
 0x325   : > { %v920_v20 = vmul.f32 0.2, %v888_v48  ;;  %vm904_vm7 = vcmp.gt.f32.partialorder %v888_v48, 0.0 }
 0x326   : > { %v1104_v51 = vmul.f32 0.2, %v1072_v17  ;;  %vm1088_vm8 = vcmp.gt.f32.partialorder %v1072_v17, 0.0  ;;  %vm721_vm9 = vcmp.gt.f32.partialorder %v705_v44, 0.0 }
 0x327   : > { %1382 = vmax.xlane.f32.xlu0 %v6985_v29  ;;  %v7009_v29 = vadd.f32 %v760_v49, %v6999_v46  ;;  %v7019_v49 = vadd.f32 %v938_v27, %v6782_v47  ;;  %v853_v27 = vadd.f32 %v6813_v60, %v6881_v8  ;;  %v936_v6 = vsel %vm904_vm7, %v888_v48, %v920_v20 }
 0x328   : > { %v612_v3 = vpop.permute.xlu1 %611  ;;  %v7040_v16 = vadd.f32 %v936_v6, %v6794_v53  ;;  %v737_v8 = vmul.f32 0.2, %v705_v44  ;;  %v857_v6 = vadd.f32 %v6813_v60, %v6909_v5 }
 0x329   : > { %9830 = vst [vmem:[#allocation33_spill] sm:$0xff] %v7009_v29  ;;  %9831 = vst [vmem:[#allocation34_spill] sm:$0xff] %v7019_v49  ;;  %v889_v42 = vadd.f32 %v873_v55, %v853_v27 }
 0x32a   : > { %9833 = vst [vmem:[#allocation36_spill] sm:$0xff] %v7040_v16  ;;  %v753_v27 = vsel %vm721_vm9, %v705_v44, %v737_v8 }
 0x32b   : > { %1356 = vmax.xlane.f32.xlu0 %v6996_v10  ;;  %v1106_v10 = vmul.f32 0.2, %v1074_v1  ;;  %vm905_vm10 = vcmp.gt.f32.partialorder %v889_v42, 0.0 }
 0x32d   : > { %v7006_v41 = vpop.permute.xlu1 %989 }
 0x32f   : > { %1352 = vmax.xlane.f32.xlu0 %v7009_v29  ;;  %v1122_v29 = vsel %vm1090_vm6, %v1074_v1, %v1106_v10  ;;  %v7035_v10 = vld [vmem:[%s6584_s3 + $0xa8] sm:$0xff] }
 0x330   : > { %v7029_v19 = vadd.f32 %v1122_v29, %v6782_v47  ;;  %v693_v1 = vmul.f32 %v6751_v30, %v7035_v10  ;;  %v673_v47 = vadd.f32 %v6758_v32, %v612_v3  ;;  %v1120_v29 = vsel %vm1088_vm8, %v1072_v17, %v1104_v51 }
 0x331   : > { %v877_v48 = vmul.f32 %v6817_v61, %v7035_v10  ;;  %v7049_v20 = vadd.f32 %v1120_v29, %v6794_v53  ;;  %v921_v3 = vmul.f32 0.2, %v889_v42  ;;  %v882_v17 = vmul.f32 %v6817_v61, %v6947_v33 }
 0x332   : > { %v826_v18 = vpop.permute.xlu1 %825  ;;  %9832 = vst [vmem:[#allocation35_spill] sm:$0xff] %v7029_v19  ;;  %v709_v55 = vadd.f32 %v693_v1, %v673_v47  ;;  %v7057_v51 = vadd.f32 %v753_v27, %v6895_v36  ;;  %v822_v1 = vpop.permute.xlu0 %821  ;;  %v880_v47 = vmul.f32 %v6817_v61, %v6959_v56 }
 0x333   : > { %9835 = vst [vmem:[#allocation38_spill] sm:$0xff] %v7049_v20  ;;  %v862_v29 = vadd.f32 %v6813_v60, %v826_v18 }
 0x334   : > { %9836 = vst [vmem:[#allocation39_spill] sm:$0xff] %v7057_v51  ;;  %v741_v5 = vmul.f32 0.2, %v709_v55  ;;  %vm725_vm11 = vcmp.gt.f32.partialorder %v709_v55, 0.0 }
 0x335   : > { %1372 = vmax.xlane.f32.xlu1 %v7019_v49  ;;  %v898_v27 = vadd.f32 %v882_v17, %v862_v29 }
 0x336   : > { %v757_v18 = vsel %vm725_vm11, %v709_v55, %v741_v5  ;;  %v7087_v5 = vld [vmem:[%s6584_s3 + $0xc8] sm:$0xff] }
 0x337   : > { %v7026_v13 = vpop.permute.xlu1 %1009  ;;  %v930_v49 = vmul.f32 0.2, %v898_v27  ;;  %vm914_vm13 = vcmp.gt.f32.partialorder %v898_v27, 0.0 }
 0x339   : > { %1404 = vmax.xlane.f32.xlu1 %v7029_v19 }
 0x33c   : > { %v7043_v34 = vpop.permute.xlu1 %1193 }
 0x33d   : > { %9834 = vst [vmem:[#allocation37_spill] sm:$0xff] %v7043_v34  ;;  %1368 = vmax.xlane.f32.xlu1 %v7040_v16  ;;  %v893_v34 = vadd.f32 %v877_v48, %v857_v6  ;;  %v937_v16 = vsel %vm905_vm10, %v889_v42, %v921_v3  ;;  %v7071_v42 = vld [vmem:[%s6584_s3 + $0xd8] sm:$0xff]  ;;  %v7074_v3 = vld [vmem:[%s6584_s3 + $0x28] sm:$0xff] }
 0x33e   : > { %v7066_v8 = vadd.f32 %v937_v16, %v6895_v36  ;;  %v7081_v16 = vadd.f32 %v757_v18, %v7074_v3  ;;  %v883_v55 = vmul.f32 %v6817_v61, %v7071_v42 }
 0x33f   : > { %v925_v6 = vmul.f32 0.2, %v893_v34  ;;  %vm909_vm12 = vcmp.gt.f32.partialorder %v893_v34, 0.0 }
 0x340   : > { %9837 = vst [vmem:[#allocation40_spill] sm:$0xff] %v7066_v8  ;;  %9839 = vst [vmem:[#allocation42_spill] sm:$0xff] %v7081_v16 }
 0x341   : > { %v818_v19 = vpop.permute.xlu1 %817  ;;  %1400 = vmax.xlane.f32.xlu1 %v7049_v20  ;;  %v7076_v20 = vpop.permute.xlu0 %1005  ;;  %v941_v29 = vsel %vm909_vm12, %v893_v34, %v925_v6  ;;  %v881_v34 = vmul.f32 %v6817_v61, %v7087_v5  ;;  %v861_v6 = vadd.f32 %v6813_v60, %v822_v1 }
 0x342   : > { %v860_v48 = vadd.f32 %v6813_v60, %v818_v19  ;;  %v863_v19 = vadd.f32 %v6813_v60, %v830_v38 }
 0x343   : > { %v897_v43 = vadd.f32 %v881_v34, %v861_v6  ;;  %v7118_v34 = vld [vmem:[%s6584_s3 + $0xf0] sm:$0xff] }
 0x344   : > { %v896_v17 = vadd.f32 %v880_v47, %v860_v48  ;;  %v946_v48 = vsel %vm914_vm13, %v898_v27, %v930_v49  ;;  %v899_v18 = vadd.f32 %v883_v55, %v863_v19  ;;  %9846 = vst [vmem:[#allocation49_spill] sm:$0xff] %v7118_v34  ;;  %v702_v6 = vmul.f32 %v6751_v30, %v7118_v34 }
 0x345   : > { %1338 = vmax.xlane.f32.xlu1 %v7057_v51  ;;  %v7098_v58 = vpop.permute.xlu0 %1189  ;;  %v7103_v0 = vadd.f32 %v946_v48, %v6988_v15  ;;  %v929_v48 = vmul.f32 0.2, %v897_v43  ;;  %vm913_vm1 = vcmp.gt.f32.partialorder %v897_v43, 0.0 }
 0x346   : > { %v7061_v44 = vpop.permute.xlu1 %1001  ;;  %v928_v38 = vmul.f32 0.2, %v896_v17  ;;  %9841 = vst [vmem:[#allocation44_spill] sm:$0xff] %v7098_v58  ;;  %vm912_vm14 = vcmp.gt.f32.partialorder %v896_v17, 0.0  ;;  %v931_v27 = vmul.f32 0.2, %v899_v18 }
 0x347   : > { %9842 = vst [vmem:[#allocation45_spill] sm:$0xff] %v7103_v0  ;;  %vm915_vm0 = vcmp.gt.f32.partialorder %v899_v18, 0.0  ;;  %v7134_v58 = vld [vmem:[%s6584_s3 + $0x48] sm:$0xff] }
 0x348   : > { %v944_v39 = vsel %vm912_vm14, %v896_v17, %v928_v38 }
 0x349   : > { %1370 = vmax.xlane.f32.xlu1 %v7066_v8  ;;  %v699_v8 = vmul.f32 %v6751_v30, %v7071_v42  ;;  %v657_v19 = vpop.permute.xlu0 %656  ;;  %v7109_v55 = vadd.f32 %v944_v39, %v6999_v46 }
 0x34a   : > { %v682_v39 = vadd.f32 %v6758_v32, %v657_v19 }
 0x34b   : > { %v7078_v51 = vpop.permute.xlu1 %1185  ;;  %9843 = vst [vmem:[#allocation46_spill] sm:$0xff] %v7109_v55 }
 0x34c   : > { %9838 = vst [vmem:[#allocation41_spill] sm:$0xff] %v7078_v51  ;;  %v7093_v51 = vadd.f32 %v941_v29, %v7074_v3 }
 0x34d   : > { %1346 = vmax.xlane.f32.xlu1 %v7081_v16 }
 0x34e   : > { %9840 = vst [vmem:[#allocation43_spill] sm:$0xff] %v7093_v51 }
 0x350   : > { %v642_v47 = vpop.permute.xlu1 %641 }
 0x351   : > { %v679_v16 = vadd.f32 %v6758_v32, %v642_v47  ;;  %1378 = vmax.xlane.f32.xlu1 %v7093_v51  ;;  %v947_v47 = vsel %vm915_vm0, %v899_v18, %v931_v27  ;;  %v945_v18 = vsel %vm913_vm1, %v897_v43, %v929_v48  ;;  %v697_v27 = vmul.f32 %v6751_v30, %v7087_v5 }
 0x352   : > { %v886_v43 = vmul.f32 %v6817_v61, %v7118_v34 }
 0x353   : > { %v715_v29 = vadd.f32 %v699_v8, %v679_v16  ;;  %v7112_v8 = vld [vmem:[%s6584_s3 + $0x58] sm:$0xff] }
 0x354   : > { %9844 = vst [vmem:[#allocation47_spill] sm:$0xff] %v7112_v8 }
 0x355   : > { %v7105_v49 = vpop.permute.xlu1 %1013  ;;  %1388 = vmax.xlane.f32.xlu1 %v7103_v0  ;;  %vm731_vm15 = vcmp.gt.f32.partialorder %v715_v29, 0.0  ;;  %v747_v1 = vmul.f32 0.2, %v715_v29  ;;  %v718_v0 = vadd.f32 %v702_v6, %v682_v39 }
 0x357   : > { %v763_v16 = vsel %vm731_vm15, %v715_v29, %v747_v1  ;;  %v7128_v29 = vld [vmem:[%s6584_s3 + $0xe0] sm:$0xff]  ;;  %v7131_v1 = vadd.f32 %v947_v47, %v7112_v8  ;;  %v7144_v47 = vadd.f32 %v945_v18, %v7134_v58  ;;  %v750_v48 = vmul.f32 0.2, %v718_v0 }
 0x358   : > { %v7115_v17 = vadd.f32 %v763_v16, %v7112_v8  ;;  %9848 = vst [vmem:[#allocation51_spill] sm:$0xff] %v7128_v29  ;;  %v647_v16 = vpop.permute.xlu0 %646  ;;  %v700_v19 = vmul.f32 %v6751_v30, %v7128_v29  ;;  %vm734_vm5 = vcmp.gt.f32.partialorder %v718_v0, 0.0 }
 0x359   : > { %1384 = vmax.xlane.f32.xlu1 %v7109_v55  ;;  %9849 = vst [vmem:[#allocation52_spill] sm:$0xff] %v7131_v1  ;;  %v680_v55 = vadd.f32 %v6758_v32, %v647_v16  ;;  %9850 = vst [vmem:[#allocation53_spill] sm:$0xff] %v7144_v47  ;;  %v766_v57 = vsel %vm734_vm5, %v718_v0, %v750_v48  ;;  %v7172_v0 = vld [vmem:[%s6584_s3 + $0x60] sm:$0xff] }
 0x35a   : > { %9845 = vst [vmem:[#allocation48_spill] sm:$0xff] %v7115_v17  ;;  %v7121_v38 = vpop.permute.xlu1 %1197  ;;  %1358 = vmax.xlane.f32.xlu0 %v7115_v17 }
 0x35b   : > { %9847 = vst [vmem:[#allocation50_spill] sm:$0xff] %v7121_v38 }
 0x35c   : > { %v846_v18 = vpop.permute.xlu0 %845 }
 0x35e   : > { %1390 = vmax.xlane.f32.xlu0 %v7131_v1  ;;  %v716_v1 = vadd.f32 %v700_v19, %v680_v55 }
 0x35f   : > { %v632_v38 = vpop.permute.xlu1 %631 }
 0x360   : > { %v677_v17 = vadd.f32 %v6758_v32, %v632_v38  ;;  %vm732_vm7 = vcmp.gt.f32.partialorder %v716_v1, 0.0  ;;  %v7186_v9 = vpop.permute.xlu0 %837 }
 0x362   : > { %v713_v51 = vadd.f32 %v697_v27, %v677_v17  ;;  %1386 = vmax.xlane.f32.xlu0 %v7144_v47  ;;  %v748_v17 = vmul.f32 0.2, %v716_v1  ;;  %v7154_v27 = vld [vmem:[%s6584_s3 + $0xf8] sm:$0xff]  ;;  %v7157_v47 = vld [vmem:[%s6584_s3 + $0x70] sm:$0xff] }
 0x363   : > { %v7166_v19 = vadd.f32 %v766_v57, %v7157_v47 }
 0x364   : > { %v745_v40 = vmul.f32 0.2, %v713_v51  ;;  %v842_v36 = vpop.permute.xlu1 %841  ;;  %vm729_vm4 = vcmp.gt.f32.partialorder %v713_v51, 0.0  ;;  %v764_v48 = vsel %vm732_vm7, %v716_v1, %v748_v17 }
 0x365   : > { %v866_v39 = vadd.f32 %v6813_v60, %v842_v36  ;;  %9852 = vst [vmem:[#allocation55_spill] sm:$0xff] %v7166_v19 }
 0x366   : > { %v761_v38 = vsel %vm729_vm4, %v713_v51, %v745_v40  ;;  %v867_v40 = vadd.f32 %v6813_v60, %v846_v18  ;;  %v887_v51 = vmul.f32 %v6817_v61, %v7154_v27 }
 0x367   : > { %v902_v6 = vadd.f32 %v886_v43, %v866_v39  ;;  %v7151_v16 = vadd.f32 %v761_v38, %v7134_v58  ;;  %v884_v38 = vmul.f32 %v6817_v61, %v7128_v29 }
 0x369   : > { %9851 = vst [vmem:[#allocation54_spill] sm:$0xff] %v7151_v16  ;;  %v7159_v55 = vpop.permute.xlu1 %1025  ;;  %1354 = vmax.xlane.f32.xlu1 %v7151_v16  ;;  %vm918_vm6 = vcmp.gt.f32.partialorder %v902_v6, 0.0  ;;  %v934_v36 = vmul.f32 0.2, %v902_v6  ;;  %v903_v16 = vadd.f32 %v887_v51, %v867_v40  ;;  %v7189_v40 = vld [vmem:[%s6584_s3 + $0x78] sm:$0xff] }
 0x36b   : > { %v950_v43 = vsel %vm918_vm6, %v902_v6, %v934_v36  ;;  %v7180_v6 = vadd.f32 %v764_v48, %v7172_v0  ;;  %v935_v17 = vmul.f32 0.2, %v903_v16  ;;  %vm919_vm9 = vcmp.gt.f32.partialorder %v903_v16, 0.0 }
 0x36c   : > { %v7169_v39 = vadd.f32 %v950_v43, %v7157_v47  ;;  %v1041_v48 = vadd.f32 %v6842_v12, %v7006_v41  ;;  %v1064_v41 = vmul.f32 %v6837_v11, %v6959_v56  ;;  %v1062_v56 = vmul.f32 %v6837_v11, %v6855_v35 }
 0x36d   : > { %1364 = vmax.xlane.f32.xlu1 %v7166_v19  ;;  %9854 = vst [vmem:[#allocation57_spill] sm:$0xff] %v7180_v6  ;;  %v951_v51 = vsel %vm919_vm9, %v903_v16, %v935_v17  ;;  %v1044_v17 = vadd.f32 %v6842_v12, %v7061_v44  ;;  %v1042_v44 = vadd.f32 %v6842_v12, %v6852_v25 }
 0x36e   : > { %9853 = vst [vmem:[#allocation56_spill] sm:$0xff] %v7169_v39  ;;  %v834_v18 = vpop.permute.xlu1 %833  ;;  %1396 = vmax.xlane.f32.xlu0 %v7169_v39 }
 0x36f   : > { %v864_v57 = vadd.f32 %v6813_v60, %v834_v18 }
 0x371   : > { %v900_v36 = vadd.f32 %v884_v38, %v864_v57  ;;  %1360 = vmax.xlane.f32.xlu1 %v7180_v6  ;;  %v1061_v38 = vmul.f32 %v6837_v11, %v7035_v10  ;;  %v7199_v57 = vadd.f32 %v951_v51, %v7189_v40  ;;  %v1080_v6 = vadd.f32 %v1064_v41, %v1044_v17 }
 0x373   : > { %v1018_v43 = vpop.permute.xlu1 %1017  ;;  %vm916_vm8 = vcmp.gt.f32.partialorder %v900_v36, 0.0  ;;  %v932_v1 = vmul.f32 0.2, %v900_v36  ;;  %9857 = vst [vmem:[#allocation60_spill] sm:$0xff] %v7199_v57  ;;  %v1112_v25 = vmul.f32 0.2, %v1080_v6 }
 0x374   : > { %v1048_v41 = vadd.f32 %v6842_v12, %v1018_v43  ;;  %vm1096_vm12 = vcmp.gt.f32.partialorder %v1080_v6, 0.0 }
 0x375   : > { %v948_v19 = vsel %vm916_vm8, %v900_v36, %v932_v1  ;;  %v7204_v36 = vpop.permute.xlu0 %1021  ;;  %v1077_v1 = vadd.f32 %v1061_v38, %v1041_v48 }
 0x376   : > { %v7184_v52 = vadd.f32 %v948_v19, %v7172_v0  ;;  %v703_v19 = vmul.f32 %v6751_v30, %v7154_v27  ;;  %9858 = vst [vmem:[#allocation61_spill] sm:$0xff] %v7204_v36 }
 0x377   : > { %vm1093_vm11 = vcmp.gt.f32.partialorder %v1077_v1, 0.0 }
 0x378   : > { %9855 = vst [vmem:[#allocation58_spill] sm:$0xff] %v7184_v52  ;;  %v7191_v18 = vpop.permute.xlu1 %1201  ;;  %1392 = vmax.xlane.f32.xlu0 %v7184_v52  ;;  %v1109_v52 = vmul.f32 0.2, %v1077_v1 }
 0x379   : > { %9856 = vst [vmem:[#allocation59_spill] sm:$0xff] %v7191_v18  ;;  %v1066_v18 = vmul.f32 %v6837_v11, %v6947_v33  ;;  %v7221_v38 = vpop.permute.xlu0 %1205 }
 0x37a   : > { %9859 = vst [vmem:[#allocation62_spill] sm:$0xff] %v7221_v38  ;;  %v1125_v8 = vsel %vm1093_vm11, %v1077_v1, %v1109_v52  ;;  %v1070_v52 = vmul.f32 %v6837_v11, %v7118_v34  ;;  %v1045_v34 = vadd.f32 %v6842_v12, %v7076_v20 }
 0x37b   : > { %v7252_v1 = vadd.f32 %v1125_v8, %v7074_v3 }
 0x37c   : > { %1398 = vmax.xlane.f32.xlu0 %v7199_v57  ;;  %v1046_v57 = vadd.f32 %v6842_v12, %v7026_v13  ;;  %v7224_v13 = vsub.s32 3, %v6738_v26 }
 0x37d   : > { %v662_v16 = vpop.permute.xlu1 %661 }
 0x37e   : > { %v683_v39 = vadd.f32 %v6758_v32, %v662_v16  ;;  %9860 = vst [vmem:[#allocation63_spill] sm:$0xff] %v7224_v13  ;;  %v1082_v33 = vadd.f32 %v1066_v18, %v1046_v57  ;;  %v1068_v16 = vmul.f32 %v6837_v11, %v7128_v29  ;;  %v1043_v18 = vadd.f32 %v6842_v12, %v6969_v23 }
 0x37f   : > { %v1063_v57 = vmul.f32 %v6837_v11, %v6934_v21  ;;  %v7247_v43 = vrot.slane %v6650_v2, %v7224_v13  ;;  %v1128_v29 = vsel %vm1096_vm12, %v1080_v6, %v1112_v25  ;;  %v1065_v2 = vmul.f32 %v6837_v11, %v7087_v5 }
 0x380   : > { %v719_v51 = vadd.f32 %v703_v19, %v683_v39  ;;  %v7227_v19 = vld [vmem:[%s6584_s3 + $0xe8] sm:$0xff]  ;;  %v1084_v23 = vadd.f32 %v1068_v16, %v1048_v41  ;;  %vm1098_vm13 = vcmp.gt.f32.partialorder %v1082_v33, 0.0  ;;  %v7272_v16 = vadd.f32 %v1128_v29, %v6999_v46 }
 0x381   : > { %v701_v38 = vmul.f32 %v6751_v30, %v7227_v19  ;;  %v1114_v30 = vmul.f32 0.2, %v1082_v33  ;;  %v1079_v8 = vadd.f32 %v1063_v57, %v1043_v18  ;;  %v1220_v6 = vadd.f32 %v7247_v43, %v6819_v62  ;;  %v7275_v18 = vld [vmem:[%s6584_s3 + $0x68] sm:$0xff] }
 0x382   : > { %v751_v36 = vmul.f32 0.2, %v719_v51  ;;  %v7215_v48 = vpop.permute.xlu1 %1029  ;;  %vm735_vm10 = vcmp.gt.f32.partialorder %v719_v51, 0.0  ;;  %v1116_v41 = vmul.f32 0.2, %v1084_v23  ;;  %vm1100_vm0 = vcmp.gt.f32.partialorder %v1084_v23, 0.0 }
 0x383   : > { %v1130_v20 = vsel %vm1098_vm13, %v1082_v33, %v1114_v30  ;;  %v1047_v46 = vadd.f32 %v6842_v12, %v7105_v49  ;;  %vm1095_vm1 = vcmp.gt.f32.partialorder %v1079_v8, 0.0  ;;  %v1222_v33 = vadd.f32 %v7247_v43, %v6784_v50 }
 0x384   : > { %v767_v39 = vsel %vm735_vm10, %v719_v51, %v751_v36  ;;  %v1078_v36 = vadd.f32 %v1062_v56, %v1042_v44  ;;  %v7237_v51 = vpop.xlane.xlu0 %1340  ;;  %v1050_v44 = vadd.f32 %v6842_v12, %v7159_v55  ;;  %v1071_v49 = vmul.f32 %v6837_v11, %v7154_v27 }
 0x385   : > { %v7232_v17 = vadd.f32 %v767_v39, %v7189_v40  ;;  %v885_v50 = vmul.f32 %v6817_v61, %v7227_v19 }
 0x386   : > { %vm1094_vm15 = vcmp.gt.f32.partialorder %v1078_v36, 0.0  ;;  %v1086_v25 = vadd.f32 %v1070_v52, %v1050_v44  ;;  %v1111_v52 = vmul.f32 0.2, %v1079_v8 }
 0x387   : > { %v652_v26 = vpop.permute.xlu1 %651  ;;  %1366 = vmax.xlane.f32.xlu1 %v7232_v17 }
 0x388   : > { %v681_v39 = vadd.f32 %v6758_v32, %v652_v26  ;;  %v7258_v32 = vrot.slane %v6742_v28, %v7224_v13  ;;  %v1110_v26 = vmul.f32 0.2, %v1078_v36  ;;  %v1118_v30 = vmul.f32 0.2, %v1086_v25 }
 0x389   : > { %vm1102_vm4 = vcmp.gt.f32.partialorder %v1086_v25, 0.0 }
 0x38a   : > { %v717_v56 = vadd.f32 %v701_v38, %v681_v39  ;;  %v1240_v28 = vmul.f32 %v7258_v32, %v6766_v37  ;;  %v7269_v38 = vpop.xlane.xlu0 %1336  ;;  %v1067_v39 = vmul.f32 %v6837_v11, %v7071_v42  ;;  %v1081_v37 = vadd.f32 %v1065_v2, %v1045_v34 }
 0x38b   : > { %1410 = vmax.xlane.f32.xlu1 %v7252_v1  ;;  %v1126_v29 = vsel %vm1094_vm15, %v1078_v36, %v1110_v26  ;;  %v1242_v44 = vmul.f32 %v7258_v32, %v6754_v31  ;;  %v7291_v42 = vadd.f32 %v1130_v20, %v6988_v15  ;;  %v1132_v2 = vsel %vm1100_vm0, %v1084_v23, %v1116_v41 }
 0x38c   : > { %vm733_vm14 = vcmp.gt.f32.partialorder %v717_v56, 0.0  ;;  %v749_v55 = vmul.f32 0.2, %v717_v56  ;;  %v1256_v34 = vadd.f32 %v1240_v28, %v1220_v6  ;;  %v7299_v31 = vadd.f32 %v1126_v29, %v6903_v45 }
 0x38d   : > { %v1113_v36 = vmul.f32 0.2, %v1081_v37  ;;  %v1083_v26 = vadd.f32 %v1067_v39, %v1047_v46  ;;  %v1051_v15 = vadd.f32 %v6842_v12, %v7215_v48  ;;  %v7307_v23 = vadd.f32 %v1132_v2, %v7172_v0 }
 0x38e   : > { %v765_v57 = vsel %vm733_vm14, %v717_v56, %v749_v55  ;;  %v7287_v56 = vpop.xlane.xlu0 %1342  ;;  %v1127_v55 = vsel %vm1095_vm1, %v1079_v8, %v1111_v52  ;;  %vm1097_vm5 = vcmp.gt.f32.partialorder %v1081_v37, 0.0  ;;  %v1258_v27 = vadd.f32 %v1242_v44, %v1222_v33 }
 0x38f   : > { %1416 = vmax.xlane.f32.xlu1 %v7272_v16  ;;  %v7281_v62 = vadd.f32 %v765_v57, %v7275_v18  ;;  %v1288_v6 = vmul.f32 0.2, %v1256_v34  ;;  %v865_v28 = vadd.f32 %v6813_v60, %v7186_v9  ;;  %v1134_v41 = vsel %vm1102_vm4, %v1086_v25, %v1118_v30 }
 0x390   : > { %v1221_v57 = vadd.f32 %v7247_v43, %v6821_v63  ;;  %v1241_v48 = vmul.f32 %v7258_v32, %v6845_v14  ;;  %v7319_v61 = vadd.f32 %v1127_v55, %v6972_v4  ;;  %vm1272_vm6 = vcmp.gt.f32.partialorder %v1256_v34, 0.0 }
 0x391   : > { %1362 = vmax.xlane.f32.xlu0 %v7281_v62  ;;  %v1115_v20 = vmul.f32 0.2, %v1083_v26  ;;  %v1087_v39 = vadd.f32 %v1071_v49, %v1051_v15  ;;  %v1129_v46 = vsel %vm1097_vm5, %v1081_v37, %v1113_v36  ;;  %v1243_v60 = vmul.f32 %v7258_v32, %v6809_v59 }
 0x392   : > { %v7315_v8 = vpop.xlane.xlu0 %1374  ;;  %v1244_v63 = vmul.f32 %v7258_v32, %v6878_v7  ;;  %v7327_v14 = vadd.f32 %v1134_v41, %v7157_v47  ;;  %vm1099_vm7 = vcmp.gt.f32.partialorder %v1083_v26, 0.0  ;;  %v1290_v9 = vmul.f32 0.2, %v1258_v27 }
 0x393   : > { %1420 = vmax.xlane.f32.xlu1 %v7291_v42  ;;  %v1224_v25 = vadd.f32 %v7247_v43, %v6939_v24  ;;  %v901_v29 = vadd.f32 %v885_v50, %v865_v28  ;;  %v1304_v52 = vsel %vm1272_vm6, %v1256_v34, %v1288_v6  ;;  %v1257_v44 = vadd.f32 %v1241_v48, %v1221_v57  ;;  %v9862_v50 = vld [vmem:[#allocation24_spill] sm:$0xff] }
 0x394   : > { %v1223_v37 = vadd.f32 %v7247_v43, %v6869_v54  ;;  %v7335_v59 = vadd.f32 %v1129_v46, %v7134_v58  ;;  %vm1274_vm8 = vcmp.gt.f32.partialorder %v1258_v27, 0.0  ;;  %v1119_v7 = vmul.f32 0.2, %v1087_v39  ;;  %v9863_v6 = vld [vmem:[#allocation12_spill] sm:$0xff] }
 0x395   : > { %1412 = vmax.xlane.f32.xlu0 %v7299_v31  ;;  %v1131_v33 = vsel %vm1099_vm7, %v1083_v26, %v1115_v20  ;;  %v1246_v30 = vmul.f32 %v7258_v32, %v6855_v35  ;;  %v1245_v24 = vmul.f32 %v7258_v32, %v7035_v10  ;;  %v7345_v54 = vadd.f32 %v1304_v52, %v6794_v53  ;;  %v9861_v10 = vld [vmem:[#allocation47_spill] sm:$0xff] }
 0x396   : > { %v7341_v2 = vpop.xlane.xlu0 %1406  ;;  %vm1103_vm9 = vcmp.gt.f32.partialorder %v1087_v39, 0.0  ;;  %v1226_v34 = vadd.f32 %v7247_v43, %v6907_v22  ;;  %v1260_v49 = vadd.f32 %v1244_v63, %v1224_v25  ;;  %v933_v36 = vmul.f32 0.2, %v901_v29  ;;  %v6238_v22 = vld [vmem:[%s6584_s3 + $0x10] sm:$0xff]  ;;  %v9864_v25 = vld [vmem:[#allocation30_spill] sm:$0xff] }
 0x397   : > { %1424 = vmax.xlane.f32.xlu1 %v7307_v23  ;;  %v1306_v26 = vsel %vm1274_vm8, %v1258_v27, %v1290_v9  ;;  %v1289_v15 = vmul.f32 0.2, %v1257_v44  ;;  %v1259_v35 = vadd.f32 %v1243_v60, %v1223_v37  ;;  %v7351_v55 = vadd.f32 %v1131_v33, %v9861_v10 }
 0x398   : > { %vm917_vm10 = vcmp.gt.f32.partialorder %v901_v29, 0.0  ;;  %v1225_v53 = vadd.f32 %v7247_v43, %v9862_v50  ;;  %v1466_v28 = vsub.f32 %v9863_v6, %v7237_v51  ;;  %v1135_v41 = vsel %vm1103_vm9, %v1087_v39, %v1119_v7 }
 0x399   : > { %1414 = vmax.xlane.f32.xlu0 %v7319_v61  ;;  %vm1273_vm11 = vcmp.gt.f32.partialorder %v1257_v44, 0.0  ;;  %v7359_v27 = vadd.f32 %v6238_v22, %v1306_v26  ;;  %v1262_v57 = vadd.f32 %v1246_v30, %v1226_v34  ;;  %v1292_v48 = vmul.f32 0.2, %v1260_v49 }
 0x39a   : > { %v1247_v20 = vmul.f32 %v7258_v32, %v6934_v21  ;;  %v949_v46 = vsel %vm917_vm10, %v901_v29, %v933_v36  ;;  %v1291_v60 = vmul.f32 0.2, %v1259_v35  ;;  %v7363_v63 = vpop.xlane.xlu0 %1402  ;;  %v7367_v51 = vadd.f32 %v1135_v41, %v7189_v40  ;;  %v9865_v40 = vld [vmem:[#allocation20_spill] sm:$0xff]  ;;  %v9866_v36 = vld [vmem:[#allocation61_spill] sm:$0xff] }
 0x39b   : > { %1428 = vmax.xlane.f32.xlu1 %v7327_v14  ;;  %v1305_v39 = vsel %vm1273_vm11, %v1257_v44, %v1289_v15  ;;  %vm1276_vm12 = vcmp.gt.f32.partialorder %v1260_v49, 0.0  ;;  %v1261_v9 = vadd.f32 %v1245_v24, %v1225_v53  ;;  %v1227_v52 = vadd.f32 %v7247_v43, %v9864_v25 }
 0x39c   : > { %v1532_v37 = vmul.f32 1.442695, %v1466_v28  ;;  %vm1275_vm13 = vcmp.gt.f32.partialorder %v1259_v35, 0.0  ;;  %v7373_v21 = vadd.f32 %v949_v46, %v7275_v18  ;;  %v1294_v29 = vmul.f32 0.2, %v1262_v57 }
 0x39d   : > { %1418 = vmax.xlane.f32.xlu0 %v7335_v59  ;;  %v1308_v7 = vsel %vm1276_vm12, %v1260_v49, %v1292_v48  ;;  %v1069_v33 = vmul.f32 %v6837_v11, %v7227_v19  ;;  %v7379_v44 = vadd.f32 %v1305_v39, %v9865_v40  ;;  %v1307_v30 = vsel %vm1275_vm13, %v1259_v35, %v1291_v60  ;;  %v9867_v49 = vld [vmem:[#allocation25_spill] sm:$0xff]  ;;  %v9869_v35 = vld [vmem:[#allocation16_spill] sm:$0xff] }
 0x39e   : > { %vm1278_vm14 = vcmp.gt.f32.partialorder %v1262_v57, 0.0  ;;  %v1293_v24 = vmul.f32 0.2, %v1261_v9  ;;  %v1263_v34 = vadd.f32 %v1247_v20, %v1227_v52  ;;  %v1049_v26 = vadd.f32 %v6842_v12, %v9866_v36  ;;  %v1349_v15 = vpop.xlane.xlu0 %1348  ;;  %v9868_v11 = vld [vmem:[#allocation17_spill] sm:$0xff]  ;;  %v9870_v20 = vld [vmem:[#allocation18_spill] sm:$0xff] }
 0x39f   : > { %1432 = vmax.xlane.f32.xlu1 %v7345_v54  ;;  %5662 = vpow2.f32 %v1532_v37  ;;  %v7385_v10 = vadd.f32 %v1308_v7, %v9867_v49  ;;  %vm1277_vm15 = vcmp.gt.f32.partialorder %v1261_v9, 0.0  ;;  %v1467_v50 = vsub.f32 %v9868_v11, %v7287_v56  ;;  %v7416_v37 = vpop.permute.xlu1 %1209  ;;  %v9874_v36 = vld [vmem:[#allocation34_spill] sm:$0xff] }
 0x3a0   : > { %v1310_v53 = vsel %vm1278_vm14, %v1262_v57, %v1294_v29  ;;  %v7391_v6 = vadd.f32 %v1307_v30, %v9869_v35  ;;  %v1295_v28 = vmul.f32 0.2, %v1263_v34  ;;  %v1085_v41 = vadd.f32 %v1069_v33, %v1049_v26 }
 0x3a1   : > { %1422 = vmax.xlane.f32.xlu0 %v7351_v55  ;;  %v1309_v12 = vsel %vm1277_vm15, %v1261_v9, %v1293_v24  ;;  %v7395_v22 = vadd.f32 %v1310_v53, %v6903_v45  ;;  %vm1279_vm0 = vcmp.gt.f32.partialorder %v1263_v34, 0.0  ;;  %v1534_v48 = vmul.f32 1.442695, %v1467_v50  ;;  %v9873_v24 = vld [vmem:[#allocation14_spill] sm:$0xff] }
 0x3a2   : > { %v1483_v46 = vsub.f32 %v9870_v20, %v7315_v8  ;;  %v7399_v56 = vpop.xlane.xlu0 %1380  ;;  %v7403_v57 = vadd.f32 %v1309_v12, %v7074_v3  ;;  %v1117_v60 = vmul.f32 0.2, %v1085_v41  ;;  %v1311_v39 = vsel %vm1279_vm0, %v1263_v34, %v1295_v28  ;;  %v9875_v28 = vld [vmem:[#allocation22_spill] sm:$0xff] }
 0x3a3   : > { %1436 = vmax.xlane.f32.xlu1 %v7359_v27  ;;  %vm1101_vm1 = vcmp.gt.f32.partialorder %v1085_v41, 0.0  ;;  %5664 = vpow2.f32 %v1534_v48  ;;  %v7410_v8 = vadd.f32 %v1311_v39, %v6972_v4  ;;  %v7422_v33 = vpop.permute.xlu1 %1213  ;;  %v1464_v34 = vsub.f32 %v9873_v24, %v7269_v38  ;;  %v9876_v48 = vld [vmem:[#allocation36_spill] sm:$0xff] }
 0x3a4   : > { %v1566_v45 = vmul.f32 1.442695, %v1483_v46  ;;  %v1133_v25 = vsel %vm1101_vm1, %v1085_v41, %v1117_v60  ;;  %v1470_v41 = vsub.f32 %v9875_v28, %v1349_v15  ;;  %v9877_v60 = vld [vmem:[#allocation26_spill] sm:$0xff]  ;;  %v9881_v28 = vld [vmem:[#allocation29_spill] sm:$0xff] }
 0x3a5   : > { %1430 = vmax.xlane.f32.xlu0 %v7367_v51  ;;  %v7414_v3 = vadd.f32 %v1133_v25, %v7275_v18  ;;  %v1528_v53 = vmul.f32 1.442695, %v1464_v34  ;;  %v9879_v34 = vld [vmem:[#allocation27_spill] sm:$0xff] }
 0x3a6   : > { %v1345_v52 = vpop.xlane.xlu0 %1344  ;;  %5666 = vpow2.f32 %v1566_v45  ;;  %v1540_v45 = vmul.f32 1.442695, %v1470_v41 }
 0x3a7   : > { %1394 = vmax.xlane.f32.xlu1 %v7373_v21  ;;  %v1468_v39 = vsub.f32 %v9877_v60, %v1345_v52 }
 0x3a9   : > { %1434 = vmax.xlane.f32.xlu0 %v7379_v44  ;;  %v7406_v9 = vpop.eup %5662  ;;  %v1536_v24 = vmul.f32 1.442695, %v1468_v39 }
 0x3aa   : > { %9871 = vst [vmem:[#allocation47_spill] sm:$0xff] %v7406_v9  ;;  %v1377_v29 = vpop.xlane.xlu0 %1376 }
 0x3ab   : > { %1440 = vmax.xlane.f32.xlu1 %v7385_v10 }
 0x3ad   : > { %1438 = vmax.xlane.f32.xlu0 %v7391_v6  ;;  %v7419_v7 = vpop.eup %5664 }
 0x3ae   : > { %v7426_v40 = vpop.xlane.xlu0 %1408 }
 0x3af   : > { %1444 = vmax.xlane.f32.xlu1 %v7395_v22 }
 0x3b0   : > { %v7424_v4 = vpop.eup %5666 }
 0x3b1   : > { %1442 = vmax.xlane.f32.xlu0 %v7403_v57  ;;  %9872 = vst [vmem:[#allocation24_spill] sm:$0xff] %v7424_v4 }
 0x3b2   : > { %v1351_v49 = vpop.xlane.xlu0 %1350 }
 0x3b3   : > { %1660 = vadd.xlane.f32.xlu1 %v7406_v9  ;;  %v1471_v41 = vsub.f32 %v9881_v28, %v1351_v49 }
 0x3b5   : > { %1446 = vmax.xlane.f32.xlu0 %v7410_v8 }
 0x3b6   : > { %v7435_v12 = vpop.xlane.xlu0 %1382 }
 0x3b9   : > { %1426 = vmax.xlane.f32.xlu0 %v7414_v3 }
 0x3bd   : > { %1662 = vadd.xlane.f32.xlu0 %v7419_v7 }
 0x3c1   : > { %1694 = vadd.xlane.f32.xlu0 %v7424_v4 }
 0x3c2   : > { %v1373_v30 = vpop.xlane.xlu1 %1372 }
 0x3c3   : > { %v1482_v26 = vsub.f32 %v9874_v36, %v1373_v30  ;;  %v1357_v30 = vpop.xlane.xlu0 %1356  ;;  %v1484_v36 = vsub.f32 %v9879_v34, %v1377_v29  ;;  %v9883_v29 = vld [vmem:[#allocation40_spill] sm:$0xff] }
 0x3c5   : > { %v1564_v11 = vmul.f32 1.442695, %v1482_v26  ;;  %v9880_v26 = vld [vmem:[#allocation39_spill] sm:$0xff]  ;;  %v1568_v52 = vmul.f32 1.442695, %v1484_v36  ;;  %v9886_v36 = vld [vmem:[#allocation42_spill] sm:$0xff] }
 0x3c6   : > { %v7432_v50 = vpop.xlane.xlu1 %1404 }
 0x3c7   : > { %5668 = vpow2.f32 %v1564_v11  ;;  %v1353_v60 = vpop.xlane.xlu0 %1352 }
 0x3c8   : > { %5670 = vpow2.f32 %v1528_v53 }
 0x3ca   : > { %v1369_v35 = vpop.xlane.xlu1 %1368 }
 0x3cb   : > { %v1480_v20 = vsub.f32 %v9876_v48, %v1369_v35 }
 0x3cd   : > { %v1560_v46 = vmul.f32 1.442695, %v1480_v20  ;;  %v9882_v20 = vld [vmem:[#allocation32_spill] sm:$0xff] }
 0x3ce   : > { %v7439_v38 = vpop.xlane.xlu1 %1400 }
 0x3cf   : > { %5672 = vpow2.f32 %v1560_v46  ;;  %v1474_v46 = vsub.f32 %v9882_v20, %v1357_v30 }
 0x3d0   : > { %5674 = vpow2.f32 %v1540_v45 }
 0x3d1   : > { %v7441_v25 = vpop.eup %5668  ;;  %5676 = vpow2.f32 %v1536_v24  ;;  %v1548_v49 = vmul.f32 1.442695, %v1474_v46 }
 0x3d2   : > { %9878 = vst [vmem:[#allocation12_spill] sm:$0xff] %v7441_v25  ;;  %1692 = vadd.xlane.f32.xlu1 %v7441_v25  ;;  %v1339_v15 = vpop.xlane.xlu1 %1338  ;;  %v7446_v53 = vpop.eup %5670 }
 0x3d3   : > { %v1465_v11 = vsub.f32 %v9880_v26, %v1339_v15  ;;  %v1542_v15 = vmul.f32 1.442695, %v1471_v41  ;;  %v9885_v26 = vld [vmem:[#allocation33_spill] sm:$0xff] }
 0x3d5   : > { %v1530_v35 = vmul.f32 1.442695, %v1465_v11  ;;  %v1472_v11 = vsub.f32 %v9885_v26, %v1353_v60  ;;  %v9893_v26 = vld [vmem:[#allocation48_spill] sm:$0xff] }
 0x3d6   : > { %v1371_v48 = vpop.xlane.xlu1 %1370  ;;  %1656 = vadd.xlane.f32.xlu1 %v7446_v53 }
 0x3d7   : > { %5678 = vpow2.f32 %v1530_v35  ;;  %v1481_v39 = vsub.f32 %v9883_v29, %v1371_v48  ;;  %v1544_v30 = vmul.f32 1.442695, %v1472_v11 }
 0x3d8   : > { %5680 = vpow2.f32 %v1568_v52  ;;  %v9888_v52 = vld [vmem:[#allocation43_spill] sm:$0xff] }
 0x3d9   : > { %v7452_v34 = vpop.eup %5672  ;;  %v1562_v45 = vmul.f32 1.442695, %v1481_v39 }
 0x3da   : > { %9884 = vst [vmem:[#allocation30_spill] sm:$0xff] %v7452_v34  ;;  %v1347_v24 = vpop.xlane.xlu1 %1346  ;;  %1688 = vadd.xlane.f32.xlu1 %v7452_v34  ;;  %v7457_v13 = vpop.eup %5674  ;;  %v9901_v34 = vld [vmem:[#allocation57_spill] sm:$0xff] }
 0x3db   : > { %5682 = vpow2.f32 %v1562_v45  ;;  %v1469_v28 = vsub.f32 %v9886_v36, %v1347_v24  ;;  %9887 = vst [vmem:[#allocation20_spill] sm:$0xff] %v7457_v13  ;;  %v7461_v20 = vpop.eup %5676 }
 0x3dc   : > { %5684 = vpow2.f32 %v1542_v15  ;;  %9889 = vst [vmem:[#allocation61_spill] sm:$0xff] %v7461_v20 }
 0x3dd   : > { %5686 = vpow2.f32 %v1548_v49  ;;  %v1538_v48 = vmul.f32 1.442695, %v1469_v28 }
 0x3de   : > { %v1379_v35 = vpop.xlane.xlu1 %1378  ;;  %1668 = vadd.xlane.f32.xlu1 %v7457_v13  ;;  %5688 = vpow2.f32 %v1544_v30 }
 0x3df   : > { %v1485_v41 = vsub.f32 %v9888_v52, %v1379_v35  ;;  %5690 = vpow2.f32 %v1538_v48 }
 0x3e1   : > { %v7463_v60 = vpop.eup %5678  ;;  %v1570_v46 = vmul.f32 1.442695, %v1485_v41 }
 0x3e2   : > { %1658 = vadd.xlane.f32.xlu0 %v7463_v60  ;;  %1664 = vadd.xlane.f32.xlu1 %v7461_v20  ;;  %v7467_v29 = vpop.eup %5680  ;;  %v1389_v28 = vpop.xlane.xlu1 %1388 }
 0x3e3   : > { %9890 = vst [vmem:[#allocation25_spill] sm:$0xff] %v7467_v29  ;;  %5692 = vpow2.f32 %v1570_v46  ;;  %v9899_v46 = vld [vmem:[#allocation54_spill] sm:$0xff] }
 0x3e5   : > { %v7469_v39 = vpop.eup %5682 }
 0x3e6   : > { %9891 = vst [vmem:[#allocation17_spill] sm:$0xff] %v7469_v39  ;;  %1690 = vadd.xlane.f32.xlu0 %v7469_v39  ;;  %1696 = vadd.xlane.f32.xlu1 %v7467_v29  ;;  %v7473_v15 = vpop.eup %5684  ;;  %v1385_v48 = vpop.xlane.xlu1 %1384 }
 0x3e7   : > { %v1359_v45 = vpop.xlane.xlu0 %1358  ;;  %9892 = vst [vmem:[#allocation16_spill] sm:$0xff] %v7473_v15  ;;  %v7476_v24 = vpop.eup %5686 }
 0x3e8   : > { %v1475_v11 = vsub.f32 %v9893_v26, %v1359_v45  ;;  %9894 = vst [vmem:[#allocation18_spill] sm:$0xff] %v7476_v24  ;;  %v7480_v36 = vpop.eup %5688 }
 0x3e9   : > { %9895 = vst [vmem:[#allocation14_spill] sm:$0xff] %v7480_v36  ;;  %v7482_v30 = vpop.eup %5690 }
 0x3ea   : > { %v1550_v49 = vmul.f32 1.442695, %v1475_v11  ;;  %1670 = vadd.xlane.f32.xlu0 %v7473_v15  ;;  %1676 = vadd.xlane.f32.xlu1 %v7476_v24  ;;  %9896 = vst [vmem:[#allocation34_spill] sm:$0xff] %v7482_v30  ;;  %v9902_v24 = vld [vmem:[#allocation41_spill] sm:$0xff] }
 0x3eb   : > { %v6241_v15 = vld [vmem:[%s6584_s3 + $0x40] sm:$0xff] }
 0x3ec   : > { %5694 = vpow2.f32 %v1550_v49  ;;  %v9900_v49 = vld [vmem:[#allocation55_spill] sm:$0xff] }
 0x3ed   : > { %v7486_v35 = vpop.eup %5692 }
 0x3ee   : > { %1666 = vadd.xlane.f32.xlu0 %v7482_v30  ;;  %1672 = vadd.xlane.f32.xlu1 %v7480_v36  ;;  %9897 = vst [vmem:[#allocation22_spill] sm:$0xff] %v7486_v35  ;;  %v6239_v36 = vld [vmem:[%s6584_s3 + $0xc0] sm:$0xff] }
 0x3ef   : > { %v1248_v13 = vmul.f32 %v6239_v36, %v7258_v32 }
 0x3f2   : > { %1698 = vadd.xlane.f32.xlu0 %v7486_v35  ;;  %v1228_v35 = vadd.f32 %v7247_v43, %v9902_v24  ;;  %v9906_v24 = vld [vmem:[#allocation37_spill] sm:$0xff] }
 0x3f3   : > { %v1230_v36 = vadd.f32 %v7247_v43, %v9906_v24 }
 0x3f6   : > { %v7489_v52 = vpop.eup %5694  ;;  %v1355_v41 = vpop.xlane.xlu1 %1354 }
 0x3f7   : > { %9898 = vst [vmem:[#allocation36_spill] sm:$0xff] %v7489_v52  ;;  %v1473_v45 = vsub.f32 %v9899_v46, %v1355_v41  ;;  %1678 = vadd.xlane.f32.xlu0 %v7489_v52  ;;  %v7499_v46 = vpop.xlane.xlu0 %1390 }
 0x3f9   : > { %v1546_v26 = vmul.f32 1.442695, %v1473_v45  ;;  %v9903_v45 = vld [vmem:[#allocation23_spill] sm:$0xff] }
 0x3fa   : > { %v1365_v11 = vpop.xlane.xlu1 %1364 }
 0x3fb   : > { %5696 = vpow2.f32 %v1546_v26  ;;  %v1478_v29 = vsub.f32 %v9900_v49, %v1365_v11  ;;  %v1486_v26 = vsub.f32 %v9903_v45, %v7399_v56 }
 0x3fd   : > { %v1556_v4 = vmul.f32 1.442695, %v1478_v29  ;;  %v1264_v29 = vadd.f32 %v1248_v13, %v1228_v35  ;;  %v9907_v13 = vld [vmem:[#allocation46_spill] sm:$0xff] }
 0x3fe   : > { %v1361_v25 = vpop.xlane.xlu1 %1360  ;;  %v1488_v56 = vsub.f32 %v9907_v13, %v1385_v48 }
 0x3ff   : > { %5698 = vpow2.f32 %v1556_v4  ;;  %v1476_v39 = vsub.f32 %v9901_v34, %v1361_v25  ;;  %v1572_v4 = vmul.f32 1.442695, %v1486_v26  ;;  %v7506_v25 = vpop.xlane.xlu0 %1386  ;;  %v1296_v52 = vmul.f32 0.2, %v1264_v29 }
 0x400   : > { %vm1280_vm4 = vcmp.gt.f32.partialorder %v1264_v29, 0.0  ;;  %v1576_v30 = vmul.f32 1.442695, %v1488_v56  ;;  %v6242_v56 = vld [vmem:[%s6584_s3 + $0x50] sm:$0xff] }
 0x401   : > { %v1552_v41 = vmul.f32 1.442695, %v1476_v39  ;;  %v6240_v39 = vld [vmem:[%s6584_s3 + $0xd0] sm:$0xff]  ;;  %v1312_v26 = vsel %vm1280_vm4, %v1264_v29, %v1296_v52 }
 0x402   : > { %v1250_v49 = vmul.f32 %v6240_v39, %v7258_v32  ;;  %v7521_v39 = vadd.f32 %v6241_v15, %v1312_v26 }
 0x403   : > { %5700 = vpow2.f32 %v1552_v41  ;;  %v1397_v35 = vpop.xlane.xlu0 %1396 }
 0x404   : > { %5702 = vpow2.f32 %v1572_v4  ;;  %v1266_v45 = vadd.f32 %v1250_v49, %v1230_v36  ;;  %9910 = vst [vmem:[#allocation29_spill] sm:$0xff] %v7521_v39  ;;  %v9911_v4 = vld [vmem:[#allocation58_spill] sm:$0xff] }
 0x405   : > { %v7503_v11 = vpop.eup %5696  ;;  %5704 = vpow2.f32 %v1576_v30 }
 0x406   : > { %9904 = vst [vmem:[#allocation26_spill] sm:$0xff] %v7503_v11  ;;  %1674 = vadd.xlane.f32.xlu0 %v7503_v11  ;;  %v9909_v11 = vld [vmem:[#allocation45_spill] sm:$0xff]  ;;  %vm1282_vm5 = vcmp.gt.f32.partialorder %v1266_v45, 0.0 }
 0x407   : > { %v1490_v24 = vsub.f32 %v9909_v11, %v1389_v28  ;;  %v1393_v20 = vpop.xlane.xlu0 %1392 }
 0x408   : > { %v1492_v13 = vsub.f32 %v9911_v4, %v1393_v20  ;;  %v9915_v20 = vld [vmem:[#allocation51_spill] sm:$0xff] }
 0x409   : > { %v7508_v34 = vpop.eup %5698  ;;  %v1580_v48 = vmul.f32 1.442695, %v1490_v24  ;;  %v9914_v24 = vld [vmem:[#allocation59_spill] sm:$0xff]  ;;  %v1252_v4 = vmul.f32 %v7258_v32, %v9915_v20 }
 0x40a   : > { %9905 = vst [vmem:[#allocation27_spill] sm:$0xff] %v7508_v34  ;;  %1684 = vadd.xlane.f32.xlu1 %v7508_v34  ;;  %v1298_v34 = vmul.f32 0.2, %v1266_v45  ;;  %v1584_v15 = vmul.f32 1.442695, %v1492_v13  ;;  %v1232_v30 = vadd.f32 %v7247_v43, %v9914_v24  ;;  %v9920_v24 = vld [vmem:[#allocation44_spill] sm:$0xff] }
 0x40b   : > { %5706 = vpow2.f32 %v1580_v48  ;;  %v1229_v20 = vadd.f32 %v7247_v43, %v9920_v24 }
 0x40c   : > { %v1314_v28 = vsel %vm1282_vm5, %v1266_v45, %v1298_v34  ;;  %v7539_v34 = vpop.xlane.xlu0 %1398  ;;  %v1268_v13 = vadd.f32 %v1252_v4, %v1232_v30  ;;  %v1234_v4 = vadd.f32 %v7247_v43, %v7416_v37 }
 0x40d   : > { %v7516_v41 = vpop.eup %5700  ;;  %v7532_v26 = vadd.f32 %v6242_v56, %v1314_v28 }
 0x40e   : > { %9908 = vst [vmem:[#allocation39_spill] sm:$0xff] %v7516_v41  ;;  %1680 = vadd.xlane.f32.xlu1 %v7516_v41  ;;  %v7525_v52 = vpop.eup %5702  ;;  %v9916_v41 = vld [vmem:[#allocation56_spill] sm:$0xff]  ;;  %v1300_v30 = vmul.f32 0.2, %v1268_v13  ;;  %vm1284_vm6 = vcmp.gt.f32.partialorder %v1268_v13, 0.0 }
 0x40f   : > { %9912 = vst [vmem:[#allocation32_spill] sm:$0xff] %v7525_v52  ;;  %9913 = vst [vmem:[#allocation40_spill] sm:$0xff] %v7532_v26  ;;  %v7544_v48 = vpop.eup %5704 }
 0x410   : > { %9917 = vst [vmem:[#allocation33_spill] sm:$0xff] %v7544_v48 }
 0x412   : > { %1448 = vmax.xlane.f32.xlu1 %v7521_v39 }
 0x414   : > { %v1367_v36 = vpop.xlane.xlu1 %1366 }
 0x415   : > { %v1479_v29 = vsub.f32 %v7232_v17, %v1367_v36  ;;  %v1494_v17 = vsub.f32 %v9916_v41, %v1397_v35  ;;  %v9918_v35 = vld [vmem:[#allocation49_spill] sm:$0xff] }
 0x416   : > { %1700 = vadd.xlane.f32.xlu1 %v7525_v52  ;;  %v1254_v41 = vmul.f32 %v7258_v32, %v9918_v35 }
 0x417   : > { %v1558_v11 = vmul.f32 1.442695, %v1479_v29  ;;  %v1588_v36 = vmul.f32 1.442695, %v1494_v17 }
 0x418   : > { %v7529_v49 = vpop.xlane.xlu1 %1410 }
 0x419   : > { %5708 = vpow2.f32 %v1558_v11  ;;  %v1249_v11 = vmul.f32 %v7258_v32, %v7087_v5 }
 0x41a   : > { %1452 = vmax.xlane.f32.xlu1 %v7532_v26  ;;  %5710 = vpow2.f32 %v1584_v15  ;;  %v7554_v15 = vpop.eup %5706 }
 0x41b   : > { %9919 = vst [vmem:[#allocation42_spill] sm:$0xff] %v7554_v15  ;;  %5712 = vpow2.f32 %v1588_v36  ;;  %v1316_v36 = vsel %vm1284_vm6, %v1268_v13, %v1300_v30  ;;  %v9928_v30 = vld [vmem:[#allocation28_spill] sm:$0xff] }
 0x41c   : > { %v7542_v45 = vpop.xlane.xlu1 %1416 }
 0x41e   : > { %1704 = vadd.xlane.f32.xlu1 %v7544_v48  ;;  %v1363_v29 = vpop.xlane.xlu0 %1362  ;;  %v9923_v48 = vld [vmem:[#allocation38_spill] sm:$0xff] }
 0x41f   : > { %v1477_v28 = vsub.f32 %v7281_v62, %v1363_v29  ;;  %v9921_v62 = vld [vmem:[#allocation31_spill] sm:$0xff]  ;;  %v1496_v52 = vsub.f32 %v9923_v48, %v7439_v38  ;;  %v7580_v48 = vadd.f32 %v1316_v36, %v7172_v0  ;;  %v9929_v0 = vld [vmem:[#allocation53_spill] sm:$0xff] }
 0x420   : > { %v7552_v56 = vpop.xlane.xlu1 %1420  ;;  %v1487_v29 = vsub.f32 %v9921_v62, %v7435_v12  ;;  %v1270_v12 = vadd.f32 %v1254_v41, %v1234_v4  ;;  %v6243_v41 = vld [vmem:[%s6584_s3 + $0xd8] sm:$0xff]  ;;  %v1500_v4 = vsub.f32 %v9928_v30, %v7426_v40 }
 0x421   : > { %v1554_v17 = vmul.f32 1.442695, %v1477_v28  ;;  %v1265_v28 = vadd.f32 %v1249_v11, %v1229_v20  ;;  %v1592_v39 = vmul.f32 1.442695, %v1496_v52  ;;  %9926 = vst [vmem:[#allocation54_spill] sm:$0xff] %v7580_v48  ;;  %v1251_v13 = vmul.f32 %v6243_v41, %v7258_v32 }
 0x422   : > { %1708 = vadd.xlane.f32.xlu1 %v7554_v15  ;;  %v1413_v5 = vpop.xlane.xlu0 %1412  ;;  %v1574_v62 = vmul.f32 1.442695, %v1487_v29  ;;  %v9925_v15 = vld [vmem:[#allocation35_spill] sm:$0xff]  ;;  %v1302_v20 = vmul.f32 0.2, %v1270_v12  ;;  %vm1286_vm7 = vcmp.gt.f32.partialorder %v1270_v12, 0.0  ;;  %v1489_v52 = vsub.f32 %v9929_v0, %v7506_v25 }
 0x423   : > { %v7563_v35 = vpop.eup %5708  ;;  %5714 = vpow2.f32 %v1554_v17  ;;  %v1498_v26 = vsub.f32 %v9925_v15, %v7432_v50  ;;  %v1297_v17 = vmul.f32 0.2, %v1265_v28  ;;  %vm1281_vm8 = vcmp.gt.f32.partialorder %v1265_v28, 0.0 }
 0x424   : > { %9922 = vst [vmem:[#allocation43_spill] sm:$0xff] %v7563_v35  ;;  %v7567_v24 = vpop.xlane.xlu1 %1424  ;;  %1686 = vadd.xlane.f32.xlu0 %v7563_v35  ;;  %v7570_v37 = vpop.eup %5710  ;;  %v9927_v35 = vld [vmem:[#allocation50_spill] sm:$0xff]  ;;  %5716 = vpow2.f32 %v1574_v62  ;;  %v1318_v41 = vsel %vm1286_vm7, %v1270_v12, %v1302_v20  ;;  %v1600_v40 = vmul.f32 1.442695, %v1500_v4  ;;  %v9930_v62 = vld [vmem:[#allocation52_spill] sm:$0xff]  ;;  %v1253_v20 = vmul.f32 %v7258_v32, %v7227_v19 }
 0x425   : > { %9924 = vst [vmem:[#allocation48_spill] sm:$0xff] %v7570_v37  ;;  %v1231_v11 = vadd.f32 %v7247_v43, %v9927_v35  ;;  %v1596_v50 = vmul.f32 1.442695, %v1498_v26  ;;  %5718 = vpow2.f32 %v1592_v39  ;;  %v7591_v15 = vpop.eup %5712  ;;  %v1491_v30 = vsub.f32 %v9930_v62, %v7499_v46 }
 0x426   : > { %1712 = vadd.xlane.f32.xlu1 %v7570_v37  ;;  %v7575_v9 = vpop.xlane.xlu0 %1414  ;;  %v1313_v37 = vsel %vm1281_vm8, %v1265_v28, %v1297_v17  ;;  %v1578_v25 = vmul.f32 1.442695, %v1489_v52  ;;  %v1502_v39 = vsub.f32 %v7299_v31, %v1413_v5  ;;  %v7605_v26 = vadd.f32 %v1318_v41, %v7157_v47  ;;  %v6244_v41 = vld [vmem:[%s6584_s3 + $0x58] sm:$0xff] }
 0x427   : > { %v1267_v36 = vadd.f32 %v1251_v13, %v1231_v11  ;;  %5720 = vpow2.f32 %v1596_v50  ;;  %v7608_v12 = vadd.f32 %v1313_v37, %v7134_v58  ;;  %v1582_v17 = vmul.f32 1.442695, %v1491_v30  ;;  %v9931_v11 = vld [vmem:[#allocation62_spill] sm:$0xff]  ;;  %v9932_v50 = vld [vmem:[#allocation60_spill] sm:$0xff] }
 0x428   : > { %v7577_v38 = vpop.xlane.xlu1 %1428  ;;  %5722 = vpow2.f32 %v1600_v40  ;;  %v1504_v31 = vsub.f32 %v7272_v16, %v7542_v45  ;;  %v1604_v47 = vmul.f32 1.442695, %v1502_v39  ;;  %v1233_v13 = vadd.f32 %v7247_v43, %v9931_v11 }
 0x429   : > { %v1299_v28 = vmul.f32 0.2, %v1267_v36  ;;  %vm1283_vm9 = vcmp.gt.f32.partialorder %v1267_v36, 0.0  ;;  %5724 = vpow2.f32 %v1578_v25  ;;  %v1495_v0 = vsub.f32 %v9932_v50, %v7539_v34  ;;  %v9933_v50 = vld [vmem:[#allocation21_spill] sm:$0xff] }
 0x42a   : > { %1456 = vmax.xlane.f32.xlu1 %v7580_v48  ;;  %v7599_v48 = vpop.xlane.xlu0 %1418  ;;  %5726 = vpow2.f32 %v1582_v17  ;;  %v1608_v16 = vmul.f32 1.442695, %v1504_v31  ;;  %v1506_v45 = vsub.f32 %v7291_v42, %v7552_v56  ;;  %v1269_v19 = vadd.f32 %v1253_v20, %v1233_v13  ;;  %v6245_v13 = vld [vmem:[%s6584_s3 + $0xf8] sm:$0xff] }
 0x42b   : > { %v1315_v4 = vsel %vm1283_vm9, %v1267_v36, %v1299_v28  ;;  %5728 = vpow2.f32 %v1604_v47  ;;  %v1590_v36 = vmul.f32 1.442695, %v1495_v0  ;;  %v1508_v34 = vsub.f32 %v7307_v23, %v7567_v24 }
 0x42c   : > { %v7593_v29 = vpop.xlane.xlu1 %1432  ;;  %v7633_v40 = vadd.f32 %v6244_v41, %v1315_v4  ;;  %5730 = vpow2.f32 %v1608_v16  ;;  %v1612_v42 = vmul.f32 1.442695, %v1506_v45  ;;  %v1301_v28 = vmul.f32 0.2, %v1269_v19 }
 0x42d   : > { %v7595_v35 = vpop.eup %5714  ;;  %5732 = vpow2.f32 %v1590_v36  ;;  %v1616_v17 = vmul.f32 1.442695, %v1508_v34  ;;  %vm1285_vm10 = vcmp.gt.f32.partialorder %v1269_v19, 0.0  ;;  %v1510_v23 = vsub.f32 %v7327_v14, %v7577_v38 }
 0x42e   : > { %1716 = vadd.xlane.f32.xlu1 %v7591_v15  ;;  %1682 = vadd.xlane.f32.xlu0 %v7595_v35  ;;  %v7616_v5 = vpop.eup %5716  ;;  %v7618_v58 = vpop.xlane.xlu0 %1422  ;;  %5734 = vpow2.f32 %v1612_v42  ;;  %v1235_v11 = vadd.f32 %v7247_v43, %v7422_v33  ;;  %v1255_v20 = vmul.f32 %v6245_v13, %v7258_v32  ;;  %v1317_v4 = vsel %vm1285_vm10, %v1269_v19, %v1301_v28  ;;  %v9934_v33 = vld [vmem:[#allocation19_spill] sm:$0xff] }
 0x42f   : > { %v7620_v37 = vpop.eup %5718  ;;  %v1497_v0 = vsub.f32 %v9933_v50, %v7363_v63  ;;  %5736 = vpow2.f32 %v1616_v17  ;;  %v1620_v14 = vmul.f32 1.442695, %v1510_v23  ;;  %v1512_v38 = vsub.f32 %v7345_v54, %v7593_v29 }
 0x430   : > { %v7610_v46 = vpop.xlane.xlu1 %1436  ;;  %v7669_v16 = vadd.f32 %v1317_v4, %v7275_v18  ;;  %v1271_v32 = vadd.f32 %v1255_v20, %v1235_v11  ;;  %v1499_v45 = vsub.f32 %v9934_v33, %v7341_v2  ;;  %v1501_v2 = vsub.f32 %v7252_v1, %v7529_v49  ;;  %v6246_v11 = vld [vmem:[%s6584_s3 + $0x78] sm:$0xff] }
 0x431   : > { %v7635_v62 = vpop.eup %5720  ;;  %v1594_v63 = vmul.f32 1.442695, %v1497_v0  ;;  %v1624_v54 = vmul.f32 1.442695, %v1512_v38  ;;  %v1514_v18 = vsub.f32 %v7359_v27, %v7610_v46  ;;  %v1503_v49 = vsub.f32 %v7319_v61, %v7575_v9 }
 0x432   : > { %1460 = vmax.xlane.f32.xlu1 %v7605_v26  ;;  %1450 = vmax.xlane.f32.xlu0 %v7608_v12  ;;  %v7639_v30 = vpop.xlane.xlu0 %1430  ;;  %v7644_v25 = vpop.eup %5722  ;;  %v1303_v36 = vmul.f32 0.2, %v1271_v32  ;;  %v1598_v34 = vmul.f32 1.442695, %v1499_v45  ;;  %vm1287_vm11 = vcmp.gt.f32.partialorder %v1271_v32, 0.0  ;;  %v1505_v61 = vsub.f32 %v7335_v59, %v7599_v48 }
 0x433   : > { %v7646_v39 = vpop.eup %5724  ;;  %v1628_v42 = vmul.f32 1.442695, %v1514_v18  ;;  %v1602_v1 = vmul.f32 1.442695, %v1501_v2  ;;  %v1606_v4 = vmul.f32 1.442695, %v1503_v49  ;;  %v1507_v38 = vsub.f32 %v7351_v55, %v7618_v58 }
 0x434   : > { %v1395_v52 = vpop.xlane.xlu1 %1394  ;;  %v7652_v31 = vpop.eup %5726  ;;  %v1319_v23 = vsel %vm1287_vm11, %v1271_v32, %v1303_v36  ;;  %v1511_v55 = vsub.f32 %v7367_v51, %v7639_v30 }
 0x435   : > { %v1493_v56 = vsub.f32 %v7373_v21, %v1395_v52  ;;  %v7656_v47 = vpop.eup %5728  ;;  %v7702_v13 = vadd.f32 %v6246_v11, %v1319_v23  ;;  %v1614_v48 = vmul.f32 1.442695, %v1507_v38 }
 0x436   : > { %1720 = vadd.xlane.f32.xlu1 %v7620_v37  ;;  %1702 = vadd.xlane.f32.xlu0 %v7616_v5  ;;  %v7654_v21 = vpop.xlane.xlu0 %1434  ;;  %v7671_v43 = vpop.eup %5730 }
 0x437   : > { %v1586_v24 = vmul.f32 1.442695, %v1493_v56  ;;  %v7681_v29 = vpop.eup %5732  ;;  %v1513_v2 = vsub.f32 %v7379_v44, %v7654_v21 }
 0x438   : > { %v1441_v52 = vpop.xlane.xlu1 %1440  ;;  %v7683_v19 = vpop.eup %5734 }
 0x439   : > { %5738 = vpow2.f32 %v1586_v24  ;;  %v1516_v27 = vsub.f32 %v7385_v10, %v1441_v52  ;;  %v7690_v46 = vpop.eup %5736 }
 0x43a   : > { %1724 = vadd.xlane.f32.xlu1 %v7635_v62  ;;  %1454 = vmax.xlane.f32.xlu0 %v7633_v40  ;;  %v7675_v41 = vpop.xlane.xlu0 %1438  ;;  %5740 = vpow2.f32 %v1620_v14  ;;  %v1610_v14 = vmul.f32 1.442695, %v1505_v61 }
 0x43b   : > { %5742 = vpow2.f32 %v1594_v63  ;;  %v1632_v24 = vmul.f32 1.442695, %v1516_v27  ;;  %v1515_v51 = vsub.f32 %v7391_v6, %v7675_v41 }
 0x43c   : > { %5744 = vpow2.f32 %v1624_v54  ;;  %v1445_v56 = vpop.xlane.xlu1 %1444 }
 0x43d   : > { %5746 = vpow2.f32 %v1598_v34  ;;  %v1518_v10 = vsub.f32 %v7395_v22, %v1445_v56  ;;  %v1626_v56 = vmul.f32 1.442695, %v1513_v2  ;;  %v9936_v2 = vld [vmem:[#allocation47_spill] sm:$0xff] }
 0x43e   : > { %1728 = vadd.xlane.f32.xlu1 %v7644_v25  ;;  %1706 = vadd.xlane.f32.xlu0 %v7646_v39  ;;  %v7692_v28 = vpop.xlane.xlu0 %1442  ;;  %5748 = vpow2.f32 %v1628_v42 }
 0x43f   : > { %5750 = vpow2.f32 %v1602_v1  ;;  %v1636_v9 = vmul.f32 1.442695, %v1518_v10  ;;  %v1630_v1 = vmul.f32 1.442695, %v1515_v51  ;;  %v1517_v44 = vsub.f32 %v7403_v57, %v7692_v28 }
 0x440   : > { %5752 = vpow2.f32 %v1632_v24  ;;  %v1661_v52 = vpop.xlane.xlu1 %1660 }
 0x441   : > { %5754 = vpow2.f32 %v1606_v4  ;;  %v1634_v41 = vmul.f32 1.442695, %v1517_v44 }
 0x442   : > { %1710 = vadd.xlane.f32.xlu0 %v7652_v31  ;;  %1732 = vadd.xlane.f32.xlu1 %v7656_v47  ;;  %v7706_v50 = vpop.xlane.xlu0 %1446  ;;  %5756 = vpow2.f32 %v1636_v9 }
 0x443   : > { %v7694_v17 = vpop.eup %5738  ;;  %5758 = vpow2.f32 %v1610_v14  ;;  %v1519_v24 = vsub.f32 %v7410_v8, %v7706_v50 }
 0x444   : > { %v7704_v20 = vpop.eup %5740  ;;  %5760 = vpow2.f32 %v1614_v48 }
 0x445   : > { %v7712_v0 = vpop.eup %5742  ;;  %v1638_v28 = vmul.f32 1.442695, %v1519_v24 }
 0x446   : > { %1458 = vmax.xlane.f32.xlu0 %v7669_v16  ;;  %1736 = vadd.xlane.f32.xlu1 %v7671_v43  ;;  %v7714_v22 = vpop.eup %5744  ;;  %v1427_v33 = vpop.xlane.xlu0 %1426 }
 0x447   : > { %v7720_v32 = vpop.eup %5746  ;;  %v1509_v45 = vsub.f32 %v7414_v3, %v1427_v33  ;;  %v1622_v3 = vmul.f32 1.442695, %v1511_v55 }
 0x448   : > { %v7722_v59 = vpop.eup %5748 }
 0x449   : > { %v7727_v63 = vpop.eup %5750  ;;  %v1618_v58 = vmul.f32 1.442695, %v1509_v45 }
 0x44a   : > { %1718 = vadd.xlane.f32.xlu0 %v7681_v29  ;;  %1740 = vadd.xlane.f32.xlu1 %v7683_v19  ;;  %v7729_v54 = vpop.eup %5752  ;;  %v1663_v30 = vpop.xlane.xlu0 %1662 }
 0x44b   : > { %v7735_v18 = vpop.eup %5754  ;;  %5762 = vpow2.f32 %v1618_v58 }
 0x44c   : > { %v7739_v34 = vpop.eup %5756  ;;  %5764 = vpow2.f32 %v1622_v3 }
 0x44d   : > { %9935 = vst [vmem:[#allocation55_spill] sm:$0xff] %v7739_v34  ;;  %v7745_v42 = vpop.eup %5758  ;;  %5766 = vpow2.f32 %v1626_v56 }
 0x44e   : > { %1714 = vadd.xlane.f32.xlu0 %v7694_v17  ;;  %1744 = vadd.xlane.f32.xlu1 %v7690_v46  ;;  %v7750_v23 = vpop.eup %5760  ;;  %v7755_v21 = vpop.xlane.xlu0 %1694  ;;  %5768 = vpow2.f32 %v1630_v1 }
 0x44f   : > { %5770 = vrcp.f32 %v1663_v30 }
 0x452   : > { %1462 = vmax.xlane.f32.xlu0 %v7702_v13  ;;  %1748 = vadd.xlane.f32.xlu1 %v7704_v20 }
 0x455   : > { %v7759_v6 = vpop.eup %5762 }
 0x456   : > { %1722 = vadd.xlane.f32.xlu0 %v7712_v0  ;;  %1752 = vadd.xlane.f32.xlu1 %v7714_v22  ;;  %v7764_v11 = vpop.eup %5764 }
 0x457   : > { %v7769_v61 = vpop.eup %5766 }
 0x458   : > { %v7772_v9 = vpop.eup %5768 }
 0x459   : > { %v5771_v50 = vpop.eup %5770 }
 0x45a   : > { %1726 = vadd.xlane.f32.xlu0 %v7720_v32  ;;  %1756 = vadd.xlane.f32.xlu1 %v7722_v59  ;;  %v1851_v45 = vmul.f32 %v5771_v50, %v7419_v7 }
 0x45e   : > { %1730 = vadd.xlane.f32.xlu0 %v7727_v63  ;;  %1760 = vadd.xlane.f32.xlu1 %v7729_v54 }
 0x45f   : > { %v7737_v36 = vpop.xlane.xlu1 %1692 }
 0x462   : > { %1764 = vadd.xlane.f32.xlu1 %v7739_v34  ;;  %1734 = vadd.xlane.f32.xlu0 %v7735_v18 }
 0x463   : > { %v1657_v27 = vpop.xlane.xlu1 %1656 }
 0x464   : > { %5772 = vrcp.f32 %v1657_v27 }
 0x465   : > { %5774 = vrcp.f32 %v1661_v52 }
 0x466   : > { %1738 = vadd.xlane.f32.xlu0 %v7745_v42 }
 0x467   : > { %v7757_v49 = vpop.xlane.xlu1 %1688 }
 0x46a   : > { %1742 = vadd.xlane.f32.xlu0 %v7750_v23 }
 0x46b   : > { %v1669_v57 = vpop.xlane.xlu1 %1668 }
 0x46e   : > { %1746 = vadd.xlane.f32.xlu0 %v7759_v6  ;;  %v5773_v38 = vpop.eup %5772 }
 0x46f   : > { %v1659_v10 = vpop.xlane.xlu0 %1658  ;;  %v1665_v14 = vpop.xlane.xlu1 %1664  ;;  %v1848_v55 = vmul.f32 %v5773_v38, %v7446_v53  ;;  %v9941_v38 = vld [vmem:[#allocation20_spill] sm:$0xff] }
 0x470   : > { %5776 = vrcp.f32 %v1659_v10  ;;  %v5775_v33 = vpop.eup %5774 }
 0x471   : > { %5778 = vpow2.f32 %v1634_v41  ;;  %v1850_v51 = vmul.f32 %v5775_v33, %v9936_v2  ;;  %v9938_v41 = vld [vmem:[#allocation16_spill] sm:$0xff] }
 0x472   : > { %1750 = vadd.xlane.f32.xlu0 %v7764_v11  ;;  %5780 = vpow2.f32 %v1638_v28 }
 0x473   : > { %v7767_v4 = vpop.xlane.xlu0 %1690  ;;  %v1913_v27 = vpack.c.bf16 %v1851_v45, %v1850_v51  ;;  %v7785_v7 = vpop.xlane.xlu1 %1696 }
 0x476   : > { %1754 = vadd.xlane.f32.xlu0 %v7769_v61 }
 0x477   : > { %v1671_v8 = vpop.xlane.xlu0 %1670 }
 0x478   : > { %5782 = vrcp.f32 %v1671_v8  ;;  %v9940_v8 = vld [vmem:[#allocation34_spill] sm:$0xff] }
 0x479   : > { %5784 = vrcp.f32 %v1665_v14  ;;  %v1677_v14 = vpop.xlane.xlu1 %1676 }
 0x47a   : > { %1758 = vadd.xlane.f32.xlu0 %v7772_v9  ;;  %v5777_v48 = vpop.eup %5776  ;;  %5786 = vrcp.f32 %v1669_v57  ;;  %v9939_v57 = vld [vmem:[#allocation61_spill] sm:$0xff] }
 0x47b   : > { %v1667_v52 = vpop.xlane.xlu0 %1666  ;;  %v1849_v58 = vmul.f32 %v5777_v48, %v7463_v60  ;;  %v7778_v3 = vpop.eup %5778 }
 0x47c   : > { %5788 = vrcp.f32 %v1667_v52  ;;  %v7782_v56 = vpop.eup %5780 }
 0x47d   : > { %v1912_v30 = vpack.c.bf16 %v1849_v58, %v1848_v55  ;;  %9937 = vst [vmem:[#allocation57_spill] sm:$0xff] %v7782_v56  ;;  %v1673_v55 = vpop.xlane.xlu1 %1672 }
 0x47e   : > { %1762 = vadd.xlane.f32.xlu0 %v7778_v3 }
 0x47f   : > { %5232 = vmatprep.mubr.bf16.mxu0 %v1912_v30  ;;  %v7788_v10 = vpop.xlane.xlu0 %1698 }
 0x480   : > { %5233 = vmatmul.mubr.bf16.vlgmr.msra.gmra.mrb[36].mxu0 %v1913_v27 }
 0x482   : > { %1766 = vadd.xlane.f32.xlu0 %v7782_v56  ;;  %v5783_v53 = vpop.eup %5782  ;;  %v9947_v56 = vld [vmem:[#allocation40_spill] sm:$0xff] }
 0x483   : > { %v5785_v1 = vpop.eup %5784  ;;  %v1855_v24 = vmul.f32 %v5783_v53, %v9938_v41 }
 0x484   : > { %v5787_v60 = vpop.eup %5786  ;;  %v1852_v28 = vmul.f32 %v5785_v1, %v9939_v57  ;;  %v1679_v52 = vpop.xlane.xlu0 %1678  ;;  %v9943_v57 = vld [vmem:[#allocation14_spill] sm:$0xff] }
 0x485   : > { %v1854_v33 = vmul.f32 %v5787_v60, %v9941_v38  ;;  %5790 = vrcp.f32 %v1679_v52 }
 0x486   : > { %v5789_v44 = vpop.eup %5788  ;;  %5792 = vrcp.f32 %v1673_v55 }
 0x487   : > { %v1853_v50 = vmul.f32 %v5789_v44, %v9940_v8  ;;  %v1915_v45 = vpack.c.bf16 %v1855_v24, %v1854_v33  ;;  %5794 = vrcp.f32 %v1677_v14  ;;  %v9942_v44 = vld [vmem:[#allocation36_spill] sm:$0xff]  ;;  %v9946_v33 = vld [vmem:[#allocation18_spill] sm:$0xff] }
 0x489   : > { %v1914_v48 = vpack.c.bf16 %v1853_v50, %v1852_v28  ;;  %v9944_v28 = vld [vmem:[#allocation26_spill] sm:$0xff]  ;;  %v9945_v50 = vld [vmem:[#allocation29_spill] sm:$0xff] }
 0x48b   : > { %5236 = vmatprep.mubr.bf16.mxu0 %v1914_v48 }
 0x48c   : > { %5237 = vmatmul.mubr.bf16.gmra.mrb[40].mxu0 %v1915_v45 }
 0x48f   : > { %v5791_v51 = vpop.eup %5790 }
 0x490   : > { %v5793_v27 = vpop.eup %5792  ;;  %v1859_v41 = vmul.f32 %v5791_v51, %v9942_v44 }
 0x491   : > { %v5795_v53 = vpop.eup %5794  ;;  %v1856_v24 = vmul.f32 %v5793_v27, %v9943_v57 }
 0x492   : > { %v1858_v48 = vmul.f32 %v5795_v53, %v9946_v33 }
 0x493   : > { %v1675_v58 = vpop.xlane.xlu0 %1674 }
 0x494   : > { %5796 = vrcp.f32 %v1675_v58  ;;  %v1917_v52 = vpack.c.bf16 %v1859_v41, %v1858_v48 }
 0x497   : > { %v1685_v2 = vpop.xlane.xlu1 %1684 }
 0x49b   : > { %v1681_v30 = vpop.xlane.xlu1 %1680 }
 0x49e   : > { %v5797_v1 = vpop.eup %5796 }
 0x49f   : > { %v1449_v60 = vpop.xlane.xlu1 %1448  ;;  %v1857_v8 = vmul.f32 %v5797_v1, %v9944_v28 }
 0x4a0   : > { %v1520_v38 = vsub.f32 %v9945_v50, %v1449_v60 }
 0x4a1   : > { %v1916_v14 = vpack.c.bf16 %v1857_v8, %v1856_v24 }
 0x4a2   : > { %v1640_v45 = vmul.f32 1.442695, %v1520_v38 }
 0x4a3   : > { %v1701_v55 = vpop.xlane.xlu1 %1700  ;;  %5240 = vmatprep.mubr.bf16.mxu0 %v1916_v14 }
 0x4a4   : > { %5798 = vpow2.f32 %v1640_v45  ;;  %5241 = vmatmul.mubr.bf16.gmra.mrb[44].mxu0 %v1917_v52 }
 0x4a7   : > { %v1453_v58 = vpop.xlane.xlu1 %1452 }
 0x4a8   : > { %v1522_v34 = vsub.f32 %v9947_v56, %v1453_v58  ;;  %v9948_v56 = vld [vmem:[#allocation54_spill] sm:$0xff] }
 0x4aa   : > { %v1644_v51 = vmul.f32 1.442695, %v1522_v34 }
 0x4ab   : > { %v1705_v44 = vpop.xlane.xlu1 %1704 }
 0x4ac   : > { %5800 = vpow2.f32 %v1644_v51  ;;  %v9949_v51 = vld [vmem:[#allocation43_spill] sm:$0xff] }
 0x4ad   : > { %5802 = vrcp.f32 %v7757_v49 }
 0x4ae   : > { %v7799_v27 = vpop.eup %5798  ;;  %5804 = vrcp.f32 %v7767_v4 }
 0x4af   : > { %v7801_v1 = vpop.xlane.xlu1 %1708  ;;  %1768 = vadd.xlane.f32.xlu1 %v7799_v27  ;;  %5806 = vrcp.f32 %v1681_v30 }
 0x4b1   : > { %v1687_v41 = vpop.xlane.xlu0 %1686 }
 0x4b2   : > { %5808 = vrcp.f32 %v1687_v41 }
 0x4b3   : > { %v7804_v53 = vpop.xlane.xlu1 %1712 }
 0x4b6   : > { %v7806_v60 = vpop.eup %5800 }
 0x4b7   : > { %v1457_v57 = vpop.xlane.xlu1 %1456  ;;  %1772 = vadd.xlane.f32.xlu1 %v7806_v60  ;;  %v5803_v49 = vpop.eup %5802 }
 0x4b8   : > { %v1524_v34 = vsub.f32 %v9948_v56, %v1457_v57  ;;  %v5805_v14 = vpop.eup %5804 }
 0x4b9   : > { %v5807_v52 = vpop.eup %5806 }
 0x4ba   : > { %v1648_v24 = vmul.f32 1.442695, %v1524_v34 }
 0x4bb   : > { %v7812_v28 = vpop.xlane.xlu1 %1716  ;;  %v1683_v8 = vpop.xlane.xlu0 %1682 }
 0x4bc   : > { %5810 = vpow2.f32 %v1648_v24  ;;  %v9951_v24 = vld [vmem:[#allocation17_spill] sm:$0xff] }
 0x4bd   : > { %5812 = vrcp.f32 %v1685_v2  ;;  %v5809_v2 = vpop.eup %5808 }
 0x4be   : > { %5814 = vrcp.f32 %v1683_v8  ;;  %v1863_v41 = vmul.f32 %v5809_v2, %v9949_v51  ;;  %v1865_v8 = vmul.f32 %v5805_v14, %v9951_v24 }
 0x4bf   : > { %v1461_v50 = vpop.xlane.xlu1 %1460  ;;  %v1451_v38 = vpop.xlane.xlu0 %1450  ;;  %5816 = vrcp.f32 %v7755_v21 }
 0x4c0   : > { %v1526_v33 = vsub.f32 %v7605_v26, %v1461_v50  ;;  %v1521_v48 = vsub.f32 %v7608_v12, %v1451_v38  ;;  %5818 = vrcp.f32 %v7737_v36 }
 0x4c1   : > { %5820 = vrcp.f32 %v7788_v10  ;;  %v9950_v10 = vld [vmem:[#allocation39_spill] sm:$0xff] }
 0x4c2   : > { %v1652_v4 = vmul.f32 1.442695, %v1526_v33  ;;  %v1642_v30 = vmul.f32 1.442695, %v1521_v48  ;;  %v1860_v56 = vmul.f32 %v5807_v52, %v9950_v10 }
 0x4c3   : > { %v1703_v45 = vpop.xlane.xlu0 %1702  ;;  %v7825_v57 = vpop.xlane.xlu1 %1720 }
 0x4c4   : > { %5822 = vpow2.f32 %v1652_v4 }
 0x4c5   : > { %5824 = vpow2.f32 %v1642_v30  ;;  %v9953_v30 = vld [vmem:[#allocation30_spill] sm:$0xff] }
 0x4c6   : > { %v7819_v58 = vpop.eup %5810  ;;  %5826 = vrcp.f32 %v7785_v7  ;;  %v9952_v7 = vld [vmem:[#allocation27_spill] sm:$0xff] }
 0x4c7   : > { %v5813_v26 = vpop.eup %5812  ;;  %1776 = vadd.xlane.f32.xlu1 %v7819_v58  ;;  %v1455_v12 = vpop.xlane.xlu0 %1454  ;;  %5828 = vrcp.f32 %v1701_v55 }
 0x4c8   : > { %v5815_v21 = vpop.eup %5814  ;;  %v1523_v36 = vsub.f32 %v7633_v40, %v1455_v12  ;;  %v1862_v38 = vmul.f32 %v5813_v26, %v9952_v7  ;;  %5830 = vrcp.f32 %v1703_v45  ;;  %v1864_v40 = vmul.f32 %v5803_v49, %v9953_v30  ;;  %v1725_v14 = vpop.xlane.xlu1 %1724  ;;  %v9954_v49 = vld [vmem:[#allocation12_spill] sm:$0xff] }
 0x4c9   : > { %v1861_v34 = vmul.f32 %v5815_v21, %v7595_v35  ;;  %v5817_v33 = vpop.eup %5816 }
 0x4ca   : > { %v1646_v50 = vmul.f32 1.442695, %v1523_v36  ;;  %v5819_v12 = vpop.eup %5818  ;;  %v1919_v2 = vpack.c.bf16 %v1863_v41, %v1862_v38  ;;  %v1920_v52 = vpack.c.bf16 %v1865_v8, %v1864_v40  ;;  %v9955_v36 = vld [vmem:[#allocation22_spill] sm:$0xff]  ;;  %v9956_v41 = vld [vmem:[#allocation24_spill] sm:$0xff] }
 0x4cb   : > { %v1918_v48 = vpack.c.bf16 %v1861_v34, %v1860_v56  ;;  %v1707_v4 = vpop.xlane.xlu0 %1706  ;;  %v5821_v51 = vpop.eup %5820  ;;  %v1866_v21 = vmul.f32 %v5819_v12, %v9954_v49  ;;  %v1867_v10 = vmul.f32 %v5817_v33, %v9956_v41  ;;  %v9957_v34 = vld [vmem:[#allocation25_spill] sm:$0xff] }
 0x4cc   : > { %5832 = vpow2.f32 %v1646_v50  ;;  %v9959_v49 = vld [vmem:[#allocation33_spill] sm:$0xff] }
 0x4cd   : > { %5834 = vrcp.f32 %v1705_v44  ;;  %5244 = vmatprep.mubr.bf16.mxu0 %v1918_v48  ;;  %v1869_v44 = vmul.f32 %v5821_v51, %v9955_v36  ;;  %v1921_v7 = vpack.c.bf16 %v1867_v10, %v1866_v21  ;;  %v1729_v48 = vpop.xlane.xlu1 %1728 }
 0x4ce   : > { %v7832_v35 = vpop.eup %5822  ;;  %5836 = vrcp.f32 %v1707_v4  ;;  %5245 = vmatmul.mubr.bf16.gmra.mrb[48].mxu0 %v1919_v2 }
 0x4cf   : > { %v7834_v55 = vpop.eup %5824  ;;  %5248 = vmatprep.mubr.bf16.mxu0 %v1920_v52  ;;  %1780 = vadd.xlane.f32.xlu1 %v7832_v35  ;;  %v1711_v45 = vpop.xlane.xlu0 %1710 }
 0x4d0   : > { %v5827_v26 = vpop.eup %5826  ;;  %1770 = vadd.xlane.f32.xlu0 %v7834_v55  ;;  %5838 = vrcp.f32 %v1711_v45 }
 0x4d1   : > { %v1868_v24 = vmul.f32 %v5827_v26, %v9957_v34  ;;  %v5829_v8 = vpop.eup %5828  ;;  %5840 = vrcp.f32 %v7801_v1  ;;  %v9958_v1 = vld [vmem:[#allocation32_spill] sm:$0xff]  ;;  %v1733_v45 = vpop.xlane.xlu1 %1732 }
 0x4d2   : > { %v5831_v38 = vpop.eup %5830  ;;  %v1870_v52 = vmul.f32 %v5829_v8, %v9958_v1  ;;  %v9960_v8 = vld [vmem:[#allocation42_spill] sm:$0xff] }
 0x4d3   : > { %v1459_v56 = vpop.xlane.xlu0 %1458  ;;  %v1922_v4 = vpack.c.bf16 %v1869_v44, %v1868_v24  ;;  %v1871_v51 = vmul.f32 %v5831_v38, %v7616_v5 }
 0x4d4   : > { %v1525_v50 = vsub.f32 %v7669_v16, %v1459_v56 }
 0x4d5   : > { %v1923_v36 = vpack.c.bf16 %v1871_v51, %v1870_v52  ;;  %v1737_v56 = vpop.xlane.xlu1 %1736 }
 0x4d6   : > { %v7844_v30 = vpop.eup %5832  ;;  %v1650_v40 = vmul.f32 1.442695, %v1525_v50  ;;  %5249 = vmatmul.mubr.bf16.gmra.mrb[52].mxu0 %v1921_v7 }
 0x4d7   : > { %v5835_v12 = vpop.eup %5834  ;;  %5252 = vmatprep.mubr.bf16.mxu0 %v1922_v4  ;;  %1774 = vadd.xlane.f32.xlu0 %v7844_v30  ;;  %v1719_v33 = vpop.xlane.xlu0 %1718 }
 0x4d8   : > { %v5837_v2 = vpop.eup %5836  ;;  %5842 = vpow2.f32 %v1650_v40  ;;  %v1872_v21 = vmul.f32 %v5835_v12, %v9959_v49 }
 0x4d9   : > { %v1873_v16 = vmul.f32 %v5837_v2, %v7646_v39  ;;  %5844 = vrcp.f32 %v7804_v53 }
 0x4da   : > { %5846 = vrcp.f32 %v1719_v33  ;;  %v5839_v44 = vpop.eup %5838  ;;  %v9961_v33 = vld [vmem:[#allocation48_spill] sm:$0xff] }
 0x4db   : > { %v1715_v26 = vpop.xlane.xlu0 %1714  ;;  %5848 = vrcp.f32 %v7812_v28  ;;  %v1924_v41 = vpack.c.bf16 %v1873_v16, %v1872_v21  ;;  %v5841_v10 = vpop.eup %5840  ;;  %v1875_v53 = vmul.f32 %v5839_v44, %v7652_v31 }
 0x4dc   : > { %5850 = vrcp.f32 %v1715_v26  ;;  %v1874_v50 = vmul.f32 %v5841_v10, %v9960_v8  ;;  %v1741_v31 = vpop.xlane.xlu1 %1740 }
 0x4dd   : > { %5852 = vrcp.f32 %v7825_v57 }
 0x4de   : > { %5253 = vmatmul.mubr.bf16.gmra.mrb[56].mxu0 %v1923_v36  ;;  %v1925_v38 = vpack.c.bf16 %v1875_v53, %v1874_v50 }
 0x4df   : > { %5256 = vmatprep.mubr.bf16.mxu0 %v1924_v41  ;;  %v1463_v5 = vpop.xlane.xlu0 %1462 }
 0x4e0   : > { %v1527_v39 = vsub.f32 %v7702_v13, %v1463_v5  ;;  %v1745_v21 = vpop.xlane.xlu1 %1744 }
 0x4e2   : > { %v7855_v34 = vpop.eup %5842  ;;  %v1654_v24 = vmul.f32 1.442695, %v1527_v39 }
 0x4e3   : > { %1778 = vadd.xlane.f32.xlu0 %v7855_v34  ;;  %v1723_v28 = vpop.xlane.xlu0 %1722  ;;  %v5845_v7 = vpop.eup %5844 }
 0x4e4   : > { %5854 = vpow2.f32 %v1654_v24  ;;  %v5847_v4 = vpop.eup %5846  ;;  %v1876_v2 = vmul.f32 %v5845_v7, %v9961_v33  ;;  %v1749_v41 = vpop.xlane.xlu1 %1748 }
 0x4e5   : > { %v5849_v40 = vpop.eup %5848  ;;  %5856 = vrcp.f32 %v1723_v28  ;;  %v1879_v57 = vmul.f32 %v5847_v4, %v7681_v29 }
 0x4e6   : > { %5257 = vmatmul.mubr.bf16.gmra.mrb[60].mxu0 %v1925_v38  ;;  %v5851_v13 = vpop.eup %5850  ;;  %5858 = vrcp.f32 %v1725_v14  ;;  %v1878_v1 = vmul.f32 %v5849_v40, %v7591_v15 }
 0x4e7   : > { %v1727_v12 = vpop.xlane.xlu0 %1726  ;;  %v1877_v51 = vmul.f32 %v5851_v13, %v7694_v17  ;;  %v5853_v49 = vpop.eup %5852 }
 0x4e8   : > { %5860 = vrcp.f32 %v1727_v12  ;;  %v1927_v26 = vpack.c.bf16 %v1879_v57, %v1878_v1  ;;  %v1880_v44 = vmul.f32 %v5853_v49, %v7620_v37  ;;  %v1753_v28 = vpop.xlane.xlu1 %1752 }
 0x4e9   : > { %v1926_v16 = vpack.c.bf16 %v1877_v51, %v1876_v2  ;;  %5862 = vrcp.f32 %v1729_v48 }
 0x4eb   : > { %v1731_v52 = vpop.xlane.xlu0 %1730  ;;  %5260 = vmatprep.mubr.bf16.mxu0 %v1926_v16 }
 0x4ec   : > { %5864 = vrcp.f32 %v1731_v52  ;;  %v1757_v12 = vpop.xlane.xlu1 %1756 }
 0x4ed   : > { %5866 = vrcp.f32 %v1733_v45 }
 0x4ee   : > { %v7864_v14 = vpop.eup %5854  ;;  %5261 = vmatmul.mubr.bf16.gmra.mrb[64].mxu0 %v1927_v26 }
 0x4ef   : > { %1782 = vadd.xlane.f32.xlu0 %v7864_v14  ;;  %v1735_v17 = vpop.xlane.xlu0 %1734  ;;  %v5857_v36 = vpop.eup %5856 }
 0x4f0   : > { %v5859_v29 = vpop.eup %5858  ;;  %5868 = vrcp.f32 %v1735_v17  ;;  %v1881_v15 = vmul.f32 %v5857_v36, %v7712_v0  ;;  %v1761_v52 = vpop.xlane.xlu1 %1760 }
 0x4f1   : > { %5870 = vrcp.f32 %v1737_v56  ;;  %v1882_v39 = vmul.f32 %v5859_v29, %v7635_v62 }
 0x4f2   : > { %v5861_v48 = vpop.eup %5860  ;;  %v1928_v10 = vpack.c.bf16 %v1881_v15, %v1880_v44 }
 0x4f3   : > { %v1739_v5 = vpop.xlane.xlu0 %1738  ;;  %v1883_v45 = vmul.f32 %v5861_v48, %v7720_v32  ;;  %v5863_v53 = vpop.eup %5862 }
 0x4f4   : > { %5872 = vrcp.f32 %v1739_v5  ;;  %5264 = vmatprep.mubr.bf16.mxu0 %v1928_v10  ;;  %v1884_v37 = vmul.f32 %v5863_v53, %v7644_v25 }
 0x4f5   : > { %5874 = vrcp.f32 %v1741_v31  ;;  %v1929_v24 = vpack.c.bf16 %v1883_v45, %v1882_v39 }
 0x4f6   : > { %v5865_v8 = vpop.eup %5864 }
 0x4f7   : > { %v1743_v50 = vpop.xlane.xlu0 %1742  ;;  %5265 = vmatmul.mubr.bf16.gmra.mrb[68].mxu0 %v1929_v24  ;;  %v1885_v0 = vmul.f32 %v5865_v8, %v7727_v63  ;;  %v5867_v56 = vpop.eup %5866 }
 0x4f8   : > { %5876 = vrcp.f32 %v1743_v50  ;;  %v1886_v32 = vmul.f32 %v5867_v56, %v7656_v47 }
 0x4f9   : > { %5878 = vrcp.f32 %v1745_v21  ;;  %v1930_v7 = vpack.c.bf16 %v1885_v0, %v1884_v37 }
 0x4fa   : > { %v5869_v38 = vpop.eup %5868 }
 0x4fb   : > { %v1747_v62 = vpop.xlane.xlu0 %1746  ;;  %v5871_v4 = vpop.eup %5870  ;;  %5268 = vmatprep.mubr.bf16.mxu0 %v1930_v7  ;;  %v1887_v40 = vmul.f32 %v5869_v38, %v7735_v18  ;;  %v9963_v38 = vld [vmem:[#allocation57_spill] sm:$0xff] }
 0x4fc   : > { %5880 = vrcp.f32 %v1747_v62  ;;  %v1888_v63 = vmul.f32 %v5871_v4, %v7671_v43 }
 0x4fd   : > { %5882 = vrcp.f32 %v1749_v41  ;;  %v1931_v31 = vpack.c.bf16 %v1887_v40, %v1886_v32 }
 0x4fe   : > { %v5873_v13 = vpop.eup %5872 }
 0x4ff   : > { %v1751_v25 = vpop.xlane.xlu0 %1750  ;;  %v1889_v33 = vmul.f32 %v5873_v13, %v7745_v42  ;;  %v5875_v2 = vpop.eup %5874  ;;  %5269 = vmatmul.mubr.bf16.gmra.mrb[72].mxu0 %v1931_v31 }
 0x500   : > { %5884 = vrcp.f32 %v1751_v25  ;;  %v1890_v47 = vmul.f32 %v5875_v2, %v7683_v19  ;;  %v1765_v19 = vpop.xlane.xlu1 %1764 }
 0x501   : > { %v1932_v51 = vpack.c.bf16 %v1889_v33, %v1888_v63  ;;  %5886 = vrcp.f32 %v1753_v28  ;;  %v9962_v28 = vld [vmem:[#allocation55_spill] sm:$0xff] }
 0x502   : > { %v5877_v57 = vpop.eup %5876 }
 0x503   : > { %5272 = vmatprep.mubr.bf16.mxu0 %v1932_v51  ;;  %v1755_v16 = vpop.xlane.xlu0 %1754  ;;  %v1891_v18 = vmul.f32 %v5877_v57, %v7750_v23  ;;  %v5879_v1 = vpop.eup %5878 }
 0x504   : > { %5888 = vrcp.f32 %v1755_v16  ;;  %v1892_v42 = vmul.f32 %v5879_v1, %v7690_v46 }
 0x505   : > { %v1933_v26 = vpack.c.bf16 %v1891_v18, %v1890_v47  ;;  %5890 = vrcp.f32 %v1757_v12 }
 0x506   : > { %v5881_v49 = vpop.eup %5880 }
 0x507   : > { %v1759_v43 = vpop.xlane.xlu0 %1758  ;;  %v1893_v21 = vmul.f32 %v5881_v49, %v7759_v6  ;;  %v5883_v17 = vpop.eup %5882  ;;  %5273 = vmatmul.mubr.bf16.gmra.mrb[76].mxu0 %v1933_v26 }
 0x508   : > { %5892 = vrcp.f32 %v1759_v43  ;;  %v1894_v44 = vmul.f32 %v5883_v17, %v7704_v20 }
 0x509   : > { %v1934_v36 = vpack.c.bf16 %v1893_v21, %v1892_v42  ;;  %5894 = vrcp.f32 %v1761_v52 }
 0x50a   : > { %v5885_v29 = vpop.eup %5884 }
 0x50b   : > { %5276 = vmatprep.mubr.bf16.mxu0 %v1934_v36  ;;  %v1763_v23 = vpop.xlane.xlu0 %1762  ;;  %v1895_v15 = vmul.f32 %v5885_v29, %v7764_v11  ;;  %v5887_v48 = vpop.eup %5886  ;;  %v230_v29 = vld [vmem:[#allocation5 + $0x8] sm:$0xff] }
 0x50c   : > { %5896 = vrcp.f32 %v1763_v23  ;;  %v1896_v6 = vmul.f32 %v5887_v48, %v7714_v22 }
 0x50d   : > { %v1935_v41 = vpack.c.bf16 %v1895_v15, %v1894_v44  ;;  %5898 = vrcp.f32 %v1765_v19  ;;  %v231_v19 = vld [vmem:[#allocation5 + $0x10] sm:$0xff] }
 0x50e   : > { %v5889_v10 = vpop.eup %5888  ;;  %v238_v44 = vpack.c.bf16 %v231_v19, %v230_v29 }
 0x50f   : > { %v1767_v46 = vpop.xlane.xlu0 %1766  ;;  %v1897_v5 = vmul.f32 %v5889_v10, %v7769_v61  ;;  %v5891_v39 = vpop.eup %5890  ;;  %5277 = vmatmul.mubr.bf16.gmra.mrb[80].mxu0 %v1935_v41  ;;  %v232_v41 = vld [vmem:[#allocation5 + $0x18] sm:$0xff]  ;;  %v233_v10 = vld [vmem:[#allocation5 + $0x20] sm:$0xff] }
 0x510   : > { %5900 = vrcp.f32 %v1767_v46  ;;  %v1898_v20 = vmul.f32 %v5891_v39, %v7722_v59  ;;  %5296 = vmatprep.subr.bf16.mxu1 %v238_v44  ;;  %v235_v39 = vld [vmem:[#allocation5 + $0x30] sm:$0xff] }
 0x511   : > { %v1936_v45 = vpack.c.bf16 %v1897_v5, %v1896_v6  ;;  %5297 = vmatpush3.bf16.msra.mxu1 %v238_v44  ;;  %v239_v6 = vpack.c.bf16 %v233_v10, %v232_v41  ;;  %v234_v5 = vld [vmem:[#allocation5 + $0x28] sm:$0xff] }
 0x512   : > { %v5893_v53 = vpop.eup %5892 }
 0x513   : > { %5280 = vmatprep.mubr.bf16.mxu0 %v1936_v45  ;;  %v1899_v11 = vmul.f32 %v5893_v53, %v7772_v9  ;;  %v5895_v24 = vpop.eup %5894  ;;  %5298 = vmatprep.subr.bf16.mxu1 %v239_v6  ;;  %v240_v45 = vpack.c.bf16 %v235_v39, %v234_v5 }
 0x514   : > { %v1900_v37 = vmul.f32 %v5895_v24, %v7729_v54 }
 0x515   : > { %v1937_v8 = vpack.c.bf16 %v1899_v11, %v1898_v20  ;;  %5299 = vmatpush3.bf16.msra.mxu1 %v239_v6  ;;  %v236_v20 = vld [vmem:[#allocation5 + $0x38] sm:$0xff] }
 0x516   : > { %v5897_v50 = vpop.eup %5896  ;;  %5300 = vmatprep.subr.bf16.mxu1 %v240_v45 }
 0x517   : > { %v1901_v0 = vmul.f32 %v5897_v50, %v7778_v3  ;;  %v5899_v22 = vpop.eup %5898  ;;  %5281 = vmatmul.mubr.bf16.gmra.mrb[84].mxu0 %v1937_v8 }
 0x518   : > { %v1902_v7 = vmul.f32 %v5899_v22, %v9962_v28 }
 0x519   : > { %v1938_v61 = vpack.c.bf16 %v1901_v0, %v1900_v37  ;;  %5301 = vmatpush3.bf16.msra.mxu1 %v240_v45  ;;  %v9964_v37 = vmov 0.0  }
 0x51a   : > { %v5901_v56 = vpop.eup %5900 }
 0x51b   : > { %5284 = vmatprep.mubr.bf16.mxu0 %v1938_v61  ;;  %v1903_v62 = vmul.f32 %v5901_v56, %v9963_v38  ;;  %v7926_v61 = vld [vmem:[#allocation5 + $0x60] sm:$0xf] }
 0x51d   : > { %v1939_v4 = vpack.c.bf16 %v1903_v62, %v1902_v7  ;;  %v9965_v7 = vld [vmem:[#allocation11_spill] sm:$0xff] }
 0x51f   : > { %5285 = vmatmul.mubr.bf16.gmra.mrb[88].mxu0 %v1939_v4 }
 0x53c   : > { %v1769_v3 = vpop.xlane.xlu1 %1768 }
 0x53d   : > { %5902 = vrcp.f32 %v1769_v3 }
 0x544   : > { %v1773_v13 = vpop.xlane.xlu1 %1772 }
 0x547   : > { %v5903_v2 = vpop.eup %5902 }
 0x548   : > { %v1904_v57 = vmul.f32 %v5903_v2, %v7799_v27 }
 0x553   : > { %v7891_v59 = vpop.f32.mrb[36].mxu0 }
 0x554   : > { %v7893_v9 = vpop.f32.mrb[37].mxu0  ;;  %v1777_v18 = vpop.xlane.xlu1 %1776 }
 0x555   : > { %v7895_v32 = vpop.f32.mrb[38].mxu0 }
 0x556   : > { %v7897_v54 = vpop.f32.mrb[39].mxu0 }
 0x55c   : > { %v1781_v17 = vpop.xlane.xlu1 %1780 }
 0x55d   : > { %v1771_v40 = vpop.xlane.xlu0 %1770 }
 0x55e   : > { %5904 = vrcp.f32 %v1771_v40 }
 0x55f   : > { %v7899_v31 = vpop.f32.mrb[40].mxu0  ;;  %5906 = vrcp.f32 %v1773_v13 }
 0x560   : > { %v7901_v12 = vpop.f32.mrb[41].mxu0 }
 0x561   : > { %v7903_v25 = vpop.f32.mrb[42].mxu0 }
 0x562   : > { %v7905_v63 = vpop.f32.mrb[43].mxu0 }
 0x564   : > { %v1775_v33 = vpop.xlane.xlu0 %1774 }
 0x565   : > { %5908 = vrcp.f32 %v1775_v33 }
 0x566   : > { %5910 = vrcp.f32 %v1777_v18 }
 0x568   : > { %v5905_v51 = vpop.eup %5904 }
 0x569   : > { %v1905_v16 = vmul.f32 %v5905_v51, %v7834_v55  ;;  %v5907_v1 = vpop.eup %5906 }
 0x56a   : > { %v1906_v49 = vmul.f32 %v5907_v1, %v7806_v60 }
 0x56b   : > { %v1940_v47 = vpack.c.bf16 %v1905_v16, %v1904_v57 }
 0x56d   : > { %5288 = vmatprep.mubr.bf16.mxu0 %v1940_v47 }
 0x56f   : > { %v5909_v52 = vpop.eup %5908 }
 0x570   : > { %v1779_v26 = vpop.xlane.xlu0 %1778  ;;  %v1907_v43 = vmul.f32 %v5909_v52, %v7844_v30  ;;  %v5911_v55 = vpop.eup %5910 }
 0x571   : > { %5912 = vrcp.f32 %v1779_v26  ;;  %v1908_v30 = vmul.f32 %v5911_v55, %v7819_v58  ;;  %v237_v58 = vld [vmem:[#allocation5 + $0x40] sm:$0xff] }
 0x572   : > { %v1941_v42 = vpack.c.bf16 %v1907_v43, %v1906_v49  ;;  %5914 = vrcp.f32 %v1781_v17  ;;  %v241_v11 = vpack.c.bf16 %v237_v58, %v236_v20 }
 0x574   : > { %5289 = vmatmul.mubr.bf16.gmra.mrb[92].mxu0 %v1941_v42  ;;  %5302 = vmatprep.subr.bf16.mxu1 %v241_v11 }
 0x575   : > { %5303 = vmatpush3.bf16.msra.mxu1 %v241_v11 }
 0x576   : > { %5320 = vmatprep.subr.bf16.mxu1 %v9964_v37 }
 0x577   : > { %v7911_v21 = vpop.f32.mrb[44].mxu0 }
 0x578   : > { %v7913_v27 = vpop.f32.mrb[45].mxu0 }
 0x579   : > { %v7915_v36 = vpop.f32.mrb[46].mxu0 }
 0x57a   : > { %v7917_v23 = vpop.f32.mrb[47].mxu0 }
 0x57b   : > { %v5913_v15 = vpop.eup %5912 }
 0x57c   : > { %v1783_v60 = vpop.xlane.xlu0 %1782  ;;  %v1909_v48 = vmul.f32 %v5913_v15, %v7855_v34  ;;  %v5915_v53 = vpop.eup %5914 }
 0x57d   : > { %5916 = vrcp.f32 %v1783_v60  ;;  %v1910_v24 = vmul.f32 %v5915_v53, %v7832_v35  ;;  %v7930_v35 = vrot.slane %v7926_v61, %v9965_v7 }
 0x57e   : > { %v1942_v46 = vpack.c.bf16 %v1909_v48, %v1908_v30 }
 0x57f   : > { %9966 = vst [vmem:[#allocation41_spill] sm:$0xff] %v7930_v35  ;;  %v2239_v4 = vmul.f32 %v7891_v59, %v7930_v35  ;;  %v2237_v13 = vmul.f32 %v7930_v35, %v7893_v9  ;;  %v2240_v51 = vmul.f32 %v7895_v32, %v7930_v35  ;;  %v2238_v18 = vmul.f32 %v7930_v35, %v7897_v54 }
 0x580   : > { %5292 = vmatprep.mubr.bf16.mxu0 %v1942_v46  ;;  %v2243_v9 = vmul.f32 %v7899_v31, %v7930_v35  ;;  %v2241_v32 = vmul.f32 %v7930_v35, %v7901_v12  ;;  %v2244_v54 = vmul.f32 %v7903_v25, %v7930_v35  ;;  %v2242_v15 = vmul.f32 %v7930_v35, %v7905_v63 }
 0x581   : > { %v2247_v12 = vmul.f32 %v7911_v21, %v7930_v35  ;;  %v2245_v25 = vmul.f32 %v7930_v35, %v7913_v27  ;;  %v2248_v63 = vmul.f32 %v7915_v36, %v7930_v35  ;;  %v2246_v20 = vmul.f32 %v7930_v35, %v7917_v23 }
 0x587   : > { %v5917_v34 = vpop.eup %5916 }
 0x588   : > { %v1911_v8 = vmul.f32 %v5917_v34, %v7864_v14  ;;  %v9967_v14 = vld [vmem:[#allocation13_spill] sm:$0xff] }
 0x589   : > { %v7934_v38 = vrot.slane %v7926_v61, %v9967_v14 }
 0x58a   : > { %v1943_v50 = vpack.c.bf16 %v1911_v8, %v1910_v24 }
 0x58b   : > { %9968 = vst [vmem:[#allocation23_spill] sm:$0xff] %v7934_v38 }
 0x58c   : > { %5293 = vmatmul.mubr.bf16.gmra.mrb[96].mxu0 %v1943_v50 }
 0x58d   : > { %5466 = vmatprep.mubr.msk.bf16.mxu0 %vm6414_vm2, %v9964_v37 }
 0x5a1   : > { %v5246_v0 = vpop.f32.mrb[48].mxu0 }
 0x5a2   : > { %v2026_v22 = vpop.f32.mrb[49].mxu0  ;;  %v2251_v27 = vmul.f32 %v5246_v0, %v7930_v35 }
 0x5a3   : > { %v5247_v56 = vpop.f32.mrb[50].mxu0  ;;  %v2249_v36 = vmul.f32 %v7930_v35, %v2026_v22 }
 0x5a4   : > { %v2029_v28 = vpop.f32.mrb[51].mxu0 }
 0x5a9   : > { %v5250_v62 = vpop.f32.mrb[52].mxu0 }
 0x5aa   : > { %v2259_v3 = vmul.f32 %v5250_v62, %v7934_v38  ;;  %v2042_v40 = vpop.f32.mrb[53].mxu0 }
 0x5ab   : > { %v2257_v33 = vmul.f32 %v7934_v38, %v2042_v40  ;;  %v5251_v2 = vpop.f32.mrb[54].mxu0 }
 0x5ac   : > { %v2275_v57 = vadd.f32 %v2259_v3, %v2239_v4  ;;  %v2260_v16 = vmul.f32 %v5251_v2, %v7934_v38  ;;  %v2045_v47 = vpop.f32.mrb[55].mxu0  ;;  %v2252_v3 = vmul.f32 %v5247_v56, %v7930_v35 }
 0x5ad   : > { %v2273_v59 = vadd.f32 %v2257_v33, %v2237_v13  ;;  %v2258_v1 = vmul.f32 %v7934_v38, %v2045_v47  ;;  %v2250_v33 = vmul.f32 %v7930_v35, %v2029_v28  ;;  %v9969_v47 = vld [vmem:[#allocation15_spill] sm:$0xff] }
 0x5ae   : > { %v2276_v52 = vadd.f32 %v2260_v16, %v2240_v51 }
 0x5af   : > { %v2274_v26 = vadd.f32 %v2258_v1, %v2238_v18  ;;  %v7982_v18 = vrot.slane %v7926_v61, %v9969_v47 }
 0x5b1   : > { %v5254_v49 = vpop.f32.mrb[56].mxu0  ;;  %9970 = vst [vmem:[#allocation37_spill] sm:$0xff] %v7982_v18 }
 0x5b2   : > { %v2263_v43 = vmul.f32 %v5254_v49, %v7934_v38  ;;  %v2058_v42 = vpop.f32.mrb[57].mxu0 }
 0x5b3   : > { %v2261_v17 = vmul.f32 %v7934_v38, %v2058_v42  ;;  %v5255_v55 = vpop.f32.mrb[58].mxu0 }
 0x5b4   : > { %v2279_v29 = vadd.f32 %v2263_v43, %v2243_v9  ;;  %v2264_v19 = vmul.f32 %v5255_v55, %v7934_v38  ;;  %v2061_v44 = vpop.f32.mrb[59].mxu0 }
 0x5b5   : > { %v2277_v31 = vadd.f32 %v2261_v17, %v2241_v32  ;;  %v2262_v60 = vmul.f32 %v7934_v38, %v2061_v44 }
 0x5b6   : > { %v2280_v30 = vadd.f32 %v2264_v19, %v2244_v54 }
 0x5b7   : > { %v2278_v48 = vadd.f32 %v2262_v60, %v2242_v15 }
 0x5b9   : > { %v5258_v41 = vpop.f32.mrb[60].mxu0 }
 0x5ba   : > { %v2267_v10 = vmul.f32 %v5258_v41, %v7934_v38  ;;  %v2074_v46 = vpop.f32.mrb[61].mxu0 }
 0x5bb   : > { %v2265_v6 = vmul.f32 %v7934_v38, %v2074_v46  ;;  %v5259_v5 = vpop.f32.mrb[62].mxu0 }
 0x5bc   : > { %v2283_v39 = vadd.f32 %v2267_v10, %v2247_v12  ;;  %v2268_v45 = vmul.f32 %v5259_v5, %v7934_v38  ;;  %v2077_v53 = vpop.f32.mrb[63].mxu0 }
 0x5bd   : > { %v2281_v21 = vadd.f32 %v2265_v6, %v2245_v25  ;;  %v2266_v58 = vmul.f32 %v7934_v38, %v2077_v53 }
 0x5be   : > { %v2284_v11 = vadd.f32 %v2268_v45, %v2248_v63 }
 0x5bf   : > { %v2282_v34 = vadd.f32 %v2266_v58, %v2246_v20 }
 0x5c1   : > { %v5262_v24 = vpop.f32.mrb[64].mxu0 }
 0x5c2   : > { %v2271_v8 = vmul.f32 %v5262_v24, %v7934_v38  ;;  %v2090_v50 = vpop.f32.mrb[65].mxu0 }
 0x5c3   : > { %v2269_v62 = vmul.f32 %v7934_v38, %v2090_v50  ;;  %v5263_v4 = vpop.f32.mrb[66].mxu0 }
 0x5c4   : > { %v2287_v40 = vadd.f32 %v2271_v8, %v2251_v27  ;;  %v2272_v23 = vmul.f32 %v5263_v4, %v7934_v38  ;;  %v2093_v13 = vpop.f32.mrb[67].mxu0 }
 0x5c5   : > { %v2285_v2 = vadd.f32 %v2269_v62, %v2249_v36  ;;  %v2270_v51 = vmul.f32 %v7934_v38, %v2093_v13 }
 0x5c6   : > { %v2288_v0 = vadd.f32 %v2272_v23, %v2252_v3 }
 0x5c7   : > { %v2286_v16 = vadd.f32 %v2270_v51, %v2250_v33 }
 0x5ca   : > { %v5266_v22 = vpop.f32.mrb[68].mxu0 }
 0x5cb   : > { %v2295_v1 = vmul.f32 %v5266_v22, %v7982_v18  ;;  %v2106_v49 = vpop.f32.mrb[69].mxu0  ;;  %v8027_v22 = vld [vmem:[#allocation5 + $0x58] ss:$0 sm:$0xff] }
 0x5cc   : > { %v2293_v56 = vmul.f32 %v7982_v18, %v2106_v49  ;;  %v5267_v9 = vpop.f32.mrb[70].mxu0 }
 0x5cd   : > { %v2311_v43 = vadd.f32 %v2295_v1, %v2275_v57  ;;  %v2296_v42 = vmul.f32 %v5267_v9, %v7982_v18  ;;  %v2109_v28 = vpop.f32.mrb[71].mxu0 }
 0x5ce   : > { %v2309_v32 = vadd.f32 %v2293_v56, %v2273_v59  ;;  %v2294_v17 = vmul.f32 %v7982_v18, %v2109_v28 }
 0x5cf   : > { %v2312_v55 = vadd.f32 %v2296_v42, %v2276_v52 }
 0x5d0   : > { %v2310_v54 = vadd.f32 %v2294_v17, %v2274_v26 }
 0x5d2   : > { %v5270_v19 = vpop.f32.mrb[72].mxu0 }
 0x5d3   : > { %v2299_v44 = vmul.f32 %v5270_v19, %v7982_v18  ;;  %v2122_v15 = vpop.f32.mrb[73].mxu0 }
 0x5d4   : > { %v2297_v60 = vmul.f32 %v7982_v18, %v2122_v15  ;;  %v5271_v41 = vpop.f32.mrb[74].mxu0 }
 0x5d5   : > { %v2315_v12 = vadd.f32 %v2299_v44, %v2279_v29  ;;  %v2300_v10 = vmul.f32 %v5271_v41, %v7982_v18  ;;  %v2125_v46 = vpop.f32.mrb[75].mxu0 }
 0x5d6   : > { %v7991_v57 = vadd.f32 %v2297_v60, %v2277_v31  ;;  %v2298_v25 = vmul.f32 %v7982_v18, %v2125_v46 }
 0x5d7   : > { %v7994_v59 = vadd.f32 %v2300_v10, %v2280_v30 }
 0x5d8   : > { %v7996_v6 = vadd.f32 %v2298_v25, %v2278_v48 }
 0x5da   : > { %v5274_v52 = vpop.f32.mrb[76].mxu0 }
 0x5db   : > { %v2303_v26 = vmul.f32 %v5274_v52, %v7982_v18  ;;  %v2138_v5 = vpop.f32.mrb[77].mxu0 }
 0x5dc   : > { %v2301_v63 = vmul.f32 %v7982_v18, %v2138_v5  ;;  %v5275_v45 = vpop.f32.mrb[78].mxu0 }
 0x5dd   : > { %v8000_v53 = vadd.f32 %v2303_v26, %v2283_v39  ;;  %v2304_v29 = vmul.f32 %v5275_v45, %v7982_v18  ;;  %v2141_v20 = vpop.f32.mrb[79].mxu0 }
 0x5de   : > { %v8003_v31 = vadd.f32 %v2301_v63, %v2281_v21  ;;  %v2302_v58 = vmul.f32 %v7982_v18, %v2141_v20 }
 0x5df   : > { %v8006_v30 = vadd.f32 %v2304_v29, %v2284_v11 }
 0x5e0   : > { %v8008_v48 = vadd.f32 %v2302_v58, %v2282_v34  ;;  %v9971_v34 = vld [vmem:[#allocation63_spill] sm:$0xff] }
 0x5e1   : > { %v8022_v23 = vrot.slane %v7926_v61, %v9971_v34 }
 0x5e2   : > { %v5278_v24 = vpop.f32.mrb[80].mxu0 }
 0x5e3   : > { %v2307_v27 = vmul.f32 %v5278_v24, %v7982_v18  ;;  %v2154_v8 = vpop.f32.mrb[81].mxu0  ;;  %9972 = vst [vmem:[#allocation46_spill] sm:$0xff] %v8022_v23 }
 0x5e4   : > { %v2305_v50 = vmul.f32 %v7982_v18, %v2154_v8  ;;  %v5279_v36 = vpop.f32.mrb[82].mxu0 }
 0x5e5   : > { %v8012_v39 = vadd.f32 %v2307_v27, %v2287_v40  ;;  %v2308_v62 = vmul.f32 %v5279_v36, %v7982_v18  ;;  %v2157_v4 = vpop.f32.mrb[83].mxu0 }
 0x5e6   : > { %v8015_v21 = vadd.f32 %v2305_v50, %v2285_v2  ;;  %v2306_v3 = vmul.f32 %v7982_v18, %v2157_v4 }
 0x5e7   : > { %v8018_v11 = vadd.f32 %v2308_v62, %v2288_v0 }
 0x5e8   : > { %v8024_v13 = vadd.f32 %v2306_v3, %v2286_v16 }
 0x5ea   : > { %v5282_v33 = vpop.f32.mrb[84].mxu0 }
 0x5eb   : > { %v2331_v51 = vmul.f32 %v5282_v33, %v8022_v23  ;;  %v2170_v40 = vpop.f32.mrb[85].mxu0 }
 0x5ec   : > { %v2329_v1 = vmul.f32 %v8022_v23, %v2170_v40  ;;  %v5283_v2 = vpop.f32.mrb[86].mxu0 }
 0x5ed   : > { %v2347_v49 = vadd.f32 %v2331_v51, %v2311_v43  ;;  %v2332_v56 = vmul.f32 %v5283_v2, %v8022_v23  ;;  %v2173_v0 = vpop.f32.mrb[87].mxu0 }
 0x5ee   : > { %v2345_v9 = vadd.f32 %v2329_v1, %v2309_v32  ;;  %v2330_v42 = vmul.f32 %v8022_v23, %v2173_v0 }
 0x5ef   : > { %v2367_v61 = vadd.f32 %v8027_v22, %v2347_v49  ;;  %v2348_v16 = vadd.f32 %v2332_v56, %v2312_v55 }
 0x5f0   : > { %v2365_v28 = vadd.f32 %v8027_v22, %v2345_v9  ;;  %v2346_v17 = vadd.f32 %v2330_v42, %v2310_v54 }
 0x5f1   : > { %v2399_v19 = vmin.f32 %v2367_v61, 0.0  ;;  %v2368_v44 = vadd.f32 %v8027_v22, %v2348_v16  ;;  %vm2383_vm12 = vcmp.gt.f32.partialorder %v2367_v61, 0.0 }
 0x5f2   : > { %v2397_v15 = vmin.f32 %v2365_v28, 0.0  ;;  %v2366_v60 = vadd.f32 %v8027_v22, %v2346_v17  ;;  %v5286_v41 = vpop.f32.mrb[88].mxu0  ;;  %vm2381_vm14 = vcmp.gt.f32.partialorder %v2365_v28, 0.0 }
 0x5f3   : > { %v2417_v43 = vmul.f32 1.442695, %v2399_v19  ;;  %v2400_v10 = vmin.f32 %v2368_v44, 0.0  ;;  %v2335_v46 = vmul.f32 %v5286_v41, %v8022_v23  ;;  %v2186_v32 = vpop.f32.mrb[89].mxu0  ;;  %vm2384_vm13 = vcmp.gt.f32.partialorder %v2368_v44, 0.0 }
 0x5f4   : > { %v2413_v25 = vmul.f32 1.442695, %v2397_v15  ;;  %v2398_v52 = vmin.f32 %v2366_v60, 0.0  ;;  %v2333_v26 = vmul.f32 %v8022_v23, %v2186_v32  ;;  %v5287_v55 = vpop.f32.mrb[90].mxu0  ;;  %vm2382_vm15 = vcmp.gt.f32.partialorder %v2366_v60, 0.0 }
 0x5f5   : > { %5918 = vpow2.f32 %v2417_v43  ;;  %v2419_v5 = vmul.f32 1.442695, %v2400_v10  ;;  %v2351_v54 = vadd.f32 %v2335_v46, %v2315_v12  ;;  %v2336_v63 = vmul.f32 %v5287_v55, %v8022_v23  ;;  %v2189_v45 = vpop.f32.mrb[91].mxu0 }
 0x5f6   : > { %v2415_v29 = vmul.f32 1.442695, %v2398_v52  ;;  %v2349_v20 = vadd.f32 %v2333_v26, %v7991_v57  ;;  %v2334_v58 = vmul.f32 %v8022_v23, %v2189_v45  ;;  %5920 = vpow2.f32 %v2413_v25 }
 0x5f7   : > { %5922 = vpow2.f32 %v2419_v5  ;;  %v2371_v24 = vadd.f32 %v8027_v22, %v2351_v54  ;;  %v2352_v27 = vadd.f32 %v2336_v63, %v7994_v59 }
 0x5f8   : > { %v2369_v8 = vadd.f32 %v8027_v22, %v2349_v20  ;;  %v2350_v50 = vadd.f32 %v2334_v58, %v7996_v6  ;;  %5924 = vpow2.f32 %v2415_v29 }
 0x5f9   : > { %v2403_v12 = vmin.f32 %v2371_v24, 0.0  ;;  %v2372_v36 = vadd.f32 %v8027_v22, %v2352_v27  ;;  %vm2387_vm0 = vcmp.gt.f32.partialorder %v2371_v24, 0.0 }
 0x5fa   : > { %v2401_v62 = vmin.f32 %v2369_v8, 0.0  ;;  %v2370_v4 = vadd.f32 %v8027_v22, %v2350_v50  ;;  %vm2385_vm4 = vcmp.gt.f32.partialorder %v2369_v8, 0.0 }
 0x5fb   : > { %v2425_v57 = vmul.f32 1.442695, %v2403_v12  ;;  %v2404_v3 = vmin.f32 %v2372_v36, 0.0  ;;  %vm2388_vm1 = vcmp.gt.f32.partialorder %v2372_v36, 0.0 }
 0x5fc   : > { %v2421_v33 = vmul.f32 1.442695, %v2401_v62  ;;  %v2402_v51 = vmin.f32 %v2370_v4, 0.0  ;;  %vm2386_vm5 = vcmp.gt.f32.partialorder %v2370_v4, 0.0 }
 0x5fd   : > { %5926 = vpow2.f32 %v2425_v57  ;;  %v2427_v40 = vmul.f32 1.442695, %v2404_v3 }
 0x5fe   : > { %5928 = vpow2.f32 %v2421_v33  ;;  %v2423_v1 = vmul.f32 1.442695, %v2402_v51 }
 0x5ff   : > { %v5919_v59 = vpop.eup %5918  ;;  %5930 = vpow2.f32 %v2427_v40 }
 0x600   : > { %v5921_v2 = vpop.eup %5920  ;;  %v4949_v49 = vadd.f32 -1.0, %v5919_v59  ;;  %5932 = vpow2.f32 %v2423_v1 }
 0x601   : > { %v5923_v6 = vpop.eup %5922  ;;  %v4947_v56 = vadd.f32 -1.0, %v5921_v2 }
 0x602   : > { %v5925_v0 = vpop.eup %5924  ;;  %v4950_v9 = vadd.f32 -1.0, %v5923_v6  ;;  %v2463_v16 = vsel %vm2383_vm12, %v2367_v61, %v4949_v49 }
 0x603   : > { %v4948_v42 = vadd.f32 -1.0, %v5925_v0  ;;  %v2461_v19 = vsel %vm2381_vm14, %v2365_v28, %v4947_v56 }
 0x604   : > { %v2464_v17 = vsel %vm2384_vm13, %v2368_v44, %v4950_v9 }
 0x605   : > { %v2462_v15 = vsel %vm2382_vm15, %v2366_v60, %v4948_v42  ;;  %v2478_v41 = vpack.c.bf16 %v2464_v17, %v2463_v16 }
 0x606   : > { %v2477_v43 = vpack.c.bf16 %v2462_v15, %v2461_v19 }
 0x607   : > { %v5927_v10 = vpop.eup %5926 }
 0x608   : > { %v5929_v46 = vpop.eup %5928  ;;  %v4953_v32 = vadd.f32 -1.0, %v5927_v10  ;;  %5304 = vmatprep.mubr.msk.bf16.mxu1 %vm416_vm3, %v2477_v43 }
 0x609   : > { %v5931_v25 = vpop.eup %5930  ;;  %v4951_v52 = vadd.f32 -1.0, %v5929_v46  ;;  %5305 = vmatmul.mubr.msk.bf16.vlgmr.msra.gmra.mrb[0].mxu1 %vm416_vm3, %v2478_v41 }
 0x60a   : > { %v5933_v26 = vpop.eup %5932  ;;  %v4954_v55 = vadd.f32 -1.0, %v5931_v25  ;;  %v2467_v61 = vsel %vm2387_vm0, %v2371_v24, %v4953_v32 }
 0x60b   : > { %v4952_v5 = vadd.f32 -1.0, %v5933_v26  ;;  %v2465_v44 = vsel %vm2385_vm4, %v2369_v8, %v4951_v52 }
 0x60c   : > { %v2468_v28 = vsel %vm2388_vm1, %v2372_v36, %v4954_v55 }
 0x60d   : > { %v2466_v60 = vsel %vm2386_vm5, %v2370_v4, %v4952_v5  ;;  %v2480_v54 = vpack.c.bf16 %v2468_v28, %v2467_v61 }
 0x60e   : > { %v2479_v63 = vpack.c.bf16 %v2466_v60, %v2465_v44 }
 0x610   : > { %5308 = vmatprep.mubr.msk.bf16.mxu1 %vm416_vm3, %v2479_v63 }
 0x611   : > { %5309 = vmatmul.mubr.msk.bf16.gmra.mrb[4].mxu1 %vm416_vm3, %v2480_v54 }
 0x647   : > { %v5290_v45 = vpop.f32.mrb[92].mxu0 }
 0x648   : > { %v2339_v29 = vmul.f32 %v5290_v45, %v8022_v23  ;;  %v2202_v20 = vpop.f32.mrb[93].mxu0 }
 0x649   : > { %v2337_v58 = vmul.f32 %v8022_v23, %v2202_v20  ;;  %v5291_v27 = vpop.f32.mrb[94].mxu0 }
 0x64a   : > { %v2355_v50 = vadd.f32 %v2339_v29, %v8000_v53  ;;  %v2340_v24 = vmul.f32 %v5291_v27, %v8022_v23  ;;  %v2205_v12 = vpop.f32.mrb[95].mxu0 }
 0x64b   : > { %v2353_v8 = vadd.f32 %v2337_v58, %v8003_v31  ;;  %v2338_v36 = vmul.f32 %v8022_v23, %v2205_v12 }
 0x64c   : > { %v2375_v62 = vadd.f32 %v8027_v22, %v2355_v50  ;;  %v2356_v4 = vadd.f32 %v2340_v24, %v8006_v30 }
 0x64d   : > { %v2373_v57 = vadd.f32 %v8027_v22, %v2353_v8  ;;  %v2354_v3 = vadd.f32 %v2338_v36, %v8008_v48 }
 0x64e   : > { %v2407_v33 = vmin.f32 %v2375_v62, 0.0  ;;  %v2376_v51 = vadd.f32 %v8027_v22, %v2356_v4  ;;  %vm2391_vm6 = vcmp.gt.f32.partialorder %v2375_v62, 0.0 }
 0x64f   : > { %v2405_v40 = vmin.f32 %v2373_v57, 0.0  ;;  %v2374_v53 = vadd.f32 %v8027_v22, %v2354_v3  ;;  %vm2389_vm7 = vcmp.gt.f32.partialorder %v2373_v57, 0.0 }
 0x650   : > { %v2433_v1 = vmul.f32 1.442695, %v2407_v33  ;;  %v2408_v59 = vmin.f32 %v2376_v51, 0.0  ;;  %vm2392_vm8 = vcmp.gt.f32.partialorder %v2376_v51, 0.0 }
 0x651   : > { %v2429_v2 = vmul.f32 1.442695, %v2405_v40  ;;  %v2406_v31 = vmin.f32 %v2374_v53, 0.0  ;;  %vm2390_vm9 = vcmp.gt.f32.partialorder %v2374_v53, 0.0 }
 0x652   : > { %5934 = vpow2.f32 %v2433_v1  ;;  %v2435_v49 = vmul.f32 1.442695, %v2408_v59 }
 0x653   : > { %5936 = vpow2.f32 %v2429_v2  ;;  %v2431_v6 = vmul.f32 1.442695, %v2406_v31 }
 0x654   : > { %5938 = vpow2.f32 %v2435_v49 }
 0x655   : > { %5940 = vpow2.f32 %v2431_v6 }
 0x65c   : > { %v5935_v30 = vpop.eup %5934 }
 0x65d   : > { %v5937_v56 = vpop.eup %5936  ;;  %v4957_v0 = vadd.f32 -1.0, %v5935_v30 }
 0x65e   : > { %v5939_v48 = vpop.eup %5938  ;;  %v4955_v9 = vadd.f32 -1.0, %v5937_v56 }
 0x65f   : > { %v5941_v42 = vpop.eup %5940  ;;  %v4958_v16 = vadd.f32 -1.0, %v5939_v48  ;;  %v5294_v17 = vpop.f32.mrb[96].mxu0  ;;  %v2471_v32 = vsel %vm2391_vm6, %v2375_v62, %v4957_v0 }
 0x660   : > { %v4956_v19 = vadd.f32 -1.0, %v5941_v42  ;;  %v2343_v15 = vmul.f32 %v5294_v17, %v8022_v23  ;;  %v2218_v41 = vpop.f32.mrb[97].mxu0  ;;  %v2469_v46 = vsel %vm2389_vm7, %v2373_v57, %v4955_v9 }
 0x661   : > { %v2341_v43 = vmul.f32 %v8022_v23, %v2218_v41  ;;  %v5295_v10 = vpop.f32.mrb[98].mxu0  ;;  %v2472_v25 = vsel %vm2392_vm8, %v2376_v51, %v4958_v16 }
 0x662   : > { %v2359_v52 = vadd.f32 %v2343_v15, %v8012_v39  ;;  %v2344_v26 = vmul.f32 %v5295_v10, %v8022_v23  ;;  %v2221_v55 = vpop.f32.mrb[99].mxu0  ;;  %v2470_v5 = vsel %vm2390_vm9, %v2374_v53, %v4956_v19  ;;  %v2482_v61 = vpack.c.bf16 %v2472_v25, %v2471_v32 }
 0x663   : > { %v2357_v28 = vadd.f32 %v2341_v43, %v8015_v21  ;;  %v2342_v44 = vmul.f32 %v8022_v23, %v2221_v55  ;;  %v2481_v60 = vpack.c.bf16 %v2470_v5, %v2469_v46  ;;  %v8397_v23 = vld [vmem:[%s6584_s3 + $0x98] sm:$0xff] }
 0x664   : > { %v2379_v54 = vadd.f32 %v8027_v22, %v2359_v52  ;;  %v2360_v63 = vadd.f32 %v2344_v26, %v8018_v11  ;;  %9992 = vst [vmem:[#allocation60_spill] sm:$0xff] %v8397_v23 }
 0x665   : > { %v2377_v45 = vadd.f32 %v8027_v22, %v2357_v28  ;;  %v2358_v29 = vadd.f32 %v2342_v44, %v8024_v13  ;;  %5312 = vmatprep.mubr.msk.bf16.mxu1 %vm416_vm3, %v2481_v60 }
 0x666   : > { %v2411_v39 = vmin.f32 %v2379_v54, 0.0  ;;  %v2380_v20 = vadd.f32 %v8027_v22, %v2360_v63  ;;  %5313 = vmatmul.mubr.msk.bf16.gmra.mrb[8].mxu1 %vm416_vm3, %v2482_v61  ;;  %vm2395_vm10 = vcmp.gt.f32.partialorder %v2379_v54, 0.0 }
 0x667   : > { %v2409_v58 = vmin.f32 %v2377_v45, 0.0  ;;  %v2378_v21 = vadd.f32 %v8027_v22, %v2358_v29  ;;  %vm2393_vm12 = vcmp.gt.f32.partialorder %v2377_v45, 0.0 }
 0x668   : > { %v2441_v27 = vmul.f32 1.442695, %v2411_v39  ;;  %v2412_v50 = vmin.f32 %v2380_v20, 0.0  ;;  %vm2396_vm11 = vcmp.gt.f32.partialorder %v2380_v20, 0.0  ;;  %v248_v39 = vld [vmem:[#allocation5 + $0x54] sm:$0xf] }
 0x669   : > { %v2437_v24 = vmul.f32 1.442695, %v2409_v58  ;;  %v2410_v12 = vmin.f32 %v2378_v21, 0.0  ;;  %vm2394_vm13 = vcmp.gt.f32.partialorder %v2378_v21, 0.0 }
 0x66a   : > { %5942 = vpow2.f32 %v2441_v27  ;;  %v2443_v11 = vmul.f32 1.442695, %v2412_v50 }
 0x66b   : > { %5944 = vpow2.f32 %v2437_v24  ;;  %v2439_v8 = vmul.f32 1.442695, %v2410_v12 }
 0x66c   : > { %5946 = vpow2.f32 %v2443_v11 }
 0x66d   : > { %5948 = vpow2.f32 %v2439_v8 }
 0x674   : > { %v5943_v13 = vpop.eup %5942 }
 0x675   : > { %v5945_v36 = vpop.eup %5944  ;;  %v4961_v62 = vadd.f32 -1.0, %v5943_v13 }
 0x676   : > { %v5947_v4 = vpop.eup %5946  ;;  %v4959_v57 = vadd.f32 -1.0, %v5945_v36 }
 0x677   : > { %v5949_v3 = vpop.eup %5948  ;;  %v4962_v33 = vadd.f32 -1.0, %v5947_v4  ;;  %v2475_v51 = vsel %vm2395_vm10, %v2379_v54, %v4961_v62 }
 0x678   : > { %v4960_v22 = vadd.f32 -1.0, %v5949_v3  ;;  %v2473_v53 = vsel %vm2393_vm12, %v2377_v45, %v4959_v57  ;;  %v9973_v57 = vmov 1   ;;  %v9974_v3 = vmov 3  }
 0x679   : > { %v2476_v40 = vsel %vm2396_vm11, %v2380_v20, %v4962_v33  ;;  %v249_v20 = vpack.c.bf16 %v248_v39, %v248_v39 }
 0x67a   : > { %v2474_v1 = vsel %vm2394_vm13, %v2378_v21, %v4960_v22  ;;  %v2484_v59 = vpack.c.bf16 %v2476_v40, %v2475_v51  ;;  %v246_v21 = vld [vmem:[#allocation5 + $0x50] sm:$0xf]  ;;  %v9975_v51 = vmov 2  }
 0x67b   : > { %v2483_v2 = vpack.c.bf16 %v2474_v1, %v2473_v53  ;;  %v247_v27 = vpack.c.bf16 %v246_v21, %v246_v21  ;;  %v2682_v50 = vsel %vm416_vm3, %v249_v20, 0  ;;  %v9976_v1 = vmov 0  }
 0x67d   : > { %5316 = vmatprep.mubr.msk.bf16.mxu1 %vm416_vm3, %v2483_v2 }
 0x67e   : > { %5317 = vmatmul.mubr.msk.bf16.gmra.mrb[12].mxu1 %vm416_vm3, %v2484_v59 }
 0x67f   : > { %5336 = vmatprep.mubr.msk.bf16.mxu1 %vm6414_vm2, %v9964_v37 }
 0x6dc   : > { %v5306_v31 = vpop.f32.mrb[0].mxu1 }
 0x6dd   : > { %v2543_v49 = vpop.f32.mrb[1].mxu1 }
 0x6de   : > { %v5307_v6 = vpop.f32.mrb[2].mxu1 }
 0x6df   : > { %v2607_v30 = vpack.c.bf16 %v5307_v6, %v5306_v31  ;;  %v2546_v56 = vpop.f32.mrb[3].mxu1 }
 0x6e0   : > { %v2606_v0 = vpack.c.bf16 %v2546_v56, %v2543_v49 }
 0x6e1   : > { %v2621_v41 = vsel %vm416_vm3, %v2607_v30, 0 }
 0x6e2   : > { %v2618_v48 = vsel %vm416_vm3, %v2606_v0, 0 }
 0x6e3   : > { %5321 = vmatpush3.bf16.xpose.msra.mxu1 %v2618_v48 }
 0x6e4   : > { %v5310_v9 = vpop.f32.mrb[4].mxu1  ;;  %5322 = vmatprep.subr.bf16.mxu1 %v9964_v37 }
 0x6e5   : > { %v2559_v42 = vpop.f32.mrb[5].mxu1 }
 0x6e6   : > { %v5311_v16 = vpop.f32.mrb[6].mxu1 }
 0x6e7   : > { %v2609_v17 = vpack.c.bf16 %v5311_v16, %v5310_v9  ;;  %v2562_v19 = vpop.f32.mrb[7].mxu1  ;;  %v8209_v9 = vld [vmem:[#allocation5 + $0x6c] sm:$0xf] }
 0x6e8   : > { %v2608_v15 = vpack.c.bf16 %v2562_v19, %v2559_v42  ;;  %v8215_v16 = vrot.slane %v8209_v9, %v9965_v7 }
 0x6e9   : > { %v2627_v10 = vsel %vm416_vm3, %v2609_v17, 0 }
 0x6ea   : > { %v2624_v43 = vsel %vm416_vm3, %v2608_v15, 0 }
 0x6eb   : > { %5323 = vmatpush3.bf16.xpose.msra.mxu1 %v2621_v41  ;;  %v8225_v41 = vld [vmem:[%s6584_s3 + $0x90] sm:$0xff] }
 0x6ec   : > { %5324 = vmatprep.subr.bf16.mxu1 %v9964_v37 }
 0x6f3   : > { %5325 = vmatpush3.bf16.xpose.msra.mxu1 %v2624_v43  ;;  %v2887_v43 = vmul.f32 %v8225_v41, %v8215_v16 }
 0x6f4   : > { %5326 = vmatprep.subr.bf16.mxu1 %v9964_v37 }
 0x6fb   : > { %5327 = vmatpush3.bf16.xpose.msra.mxu1 %v2627_v10 }
 0x6fc   : > { %5328 = vmatprep.subr.bf16.mxu1 %v9964_v37 }
 0x739   : > { %v5314_v46 = vpop.f32.mrb[8].mxu1 }
 0x73a   : > { %v2575_v32 = vpop.f32.mrb[9].mxu1 }
 0x73b   : > { %v5315_v25 = vpop.f32.mrb[10].mxu1 }
 0x73c   : > { %v2611_v52 = vpack.c.bf16 %v5315_v25, %v5314_v46  ;;  %v2578_v26 = vpop.f32.mrb[11].mxu1  ;;  %v8232_v46 = vrot.slane %v8209_v9, %v9967_v14 }
 0x73d   : > { %v2610_v55 = vpack.c.bf16 %v2578_v26, %v2575_v32 }
 0x73e   : > { %v2633_v61 = vsel %vm416_vm3, %v2611_v52, 0  ;;  %v3071_v26 = vmul.f32 %v8225_v41, %v8232_v46 }
 0x73f   : > { %v2630_v5 = vsel %vm416_vm3, %v2610_v55, 0 }
 0x740   : > { %5329 = vmatpush3.bf16.xpose.msra.mxu1 %v2630_v5 }
 0x741   : > { %5330 = vmatprep.subr.bf16.mxu1 %v9964_v37 }
 0x748   : > { %5331 = vmatpush3.bf16.xpose.msra.mxu1 %v2633_v61 }
 0x749   : > { %5332 = vmatprep.subr.bf16.mxu1 %v9964_v37 }
 0x751   : > { %v5318_v28 = vpop.f32.mrb[12].mxu1 }
 0x752   : > { %v2591_v44 = vpop.f32.mrb[13].mxu1 }
 0x753   : > { %v5319_v60 = vpop.f32.mrb[14].mxu1 }
 0x754   : > { %v2613_v54 = vpack.c.bf16 %v5319_v60, %v5318_v28  ;;  %v2594_v63 = vpop.f32.mrb[15].mxu1 }
 0x755   : > { %v2612_v45 = vpack.c.bf16 %v2594_v63, %v2591_v44 }
 0x756   : > { %v2639_v58 = vsel %vm416_vm3, %v2613_v54, 0 }
 0x757   : > { %v2636_v29 = vsel %vm416_vm3, %v2612_v45, 0 }
 0x758   : > { %5333 = vmatpush3.bf16.xpose.msra.mxu1 %v2636_v29 }
 0x759   : > { %5334 = vmatprep.subr.bf16.mxu1 %v9964_v37 }
 0x760   : > { %5335 = vmatpush3.bf16.xpose.msra.mxu1 %v2639_v58 }
 0x761   : > { %5478 = vmatprep.subr.msk.bf16.mxu1 %vm416_vm3, %v249_v20 }
 0x767   : > { %5337 = vmatmul.mubr.msk.bf16.vlgmr.msra.gmra.mrb[16].mxu1 %vm416_vm3, %v247_v27 }
 0x768   : > { %5341 = vmatpush3.bf16.xpose.msra.mxu1 %v2682_v50  ;;  %5342 = vmatprep.mubr.msk.bf16.mxu1 %vm416_vm3, %v2606_v0  ;;  %v8271_v50 = vld [vmem:[%s6584_s3 + $0x88] sm:$0xff] }
 0x769   : > { %5358 = vmatprep.subr.bf16.mxu1 %v2606_v0  ;;  %9977 = vst [vmem:[#allocation45_spill] sm:$0xff] %v8271_v50 }
 0x76f   : > { %5343 = vmatmul.mubr.msk.bf16.vlgmr.msra.gmra.mrb[20].mxu1 %vm416_vm3, %v2607_v30 }
 0x770   : > { %5346 = vmatprep.mubr.msk.bf16.mxu1 %vm416_vm3, %v2608_v15  ;;  %5359 = vmatpush3.bf16.msra.mxu1 %v2606_v0 }
 0x771   : > { %5360 = vmatprep.subr.bf16.mxu1 %v2607_v30 }
 0x774   : > { %5361 = vmatpush3.bf16.msra.mxu1 %v2607_v30 }
 0x775   : > { %5362 = vmatprep.subr.bf16.mxu1 %v2608_v15 }
 0x777   : > { %5347 = vmatmul.mubr.msk.bf16.gmra.mrb[24].mxu1 %vm416_vm3, %v2609_v17 }
 0x778   : > { %5350 = vmatprep.mubr.msk.bf16.mxu1 %vm416_vm3, %v2610_v55  ;;  %5363 = vmatpush3.bf16.msra.mxu1 %v2608_v15 }
 0x779   : > { %5364 = vmatprep.subr.bf16.mxu1 %v2609_v17 }
 0x77c   : > { %5365 = vmatpush3.bf16.msra.mxu1 %v2609_v17 }
 0x77d   : > { %5366 = vmatprep.subr.bf16.mxu1 %v2610_v55 }
 0x77f   : > { %5351 = vmatmul.mubr.msk.bf16.gmra.mrb[28].mxu1 %vm416_vm3, %v2611_v52 }
 0x780   : > { %5354 = vmatprep.mubr.msk.bf16.mxu1 %vm416_vm3, %v2612_v45  ;;  %5367 = vmatpush3.bf16.msra.mxu1 %v2610_v55 }
 0x781   : > { %5368 = vmatprep.subr.bf16.mxu1 %v2611_v52 }
 0x784   : > { %5369 = vmatpush3.bf16.msra.mxu1 %v2611_v52 }
 0x785   : > { %5370 = vmatprep.subr.bf16.mxu1 %v2612_v45 }
 0x787   : > { %5355 = vmatmul.mubr.msk.bf16.gmra.mrb[32].mxu1 %vm416_vm3, %v2613_v54 }
 0x788   : > { %5371 = vmatpush3.bf16.msra.mxu1 %v2612_v45  ;;  %v8261_v45 = vld [vmem:[%s6584_s3 + $0x80] sm:$0xff] }
 0x789   : > { %5372 = vmatprep.subr.bf16.mxu1 %v2613_v54 }
 0x78c   : > { %5373 = vmatpush3.bf16.msra.mxu1 %v2613_v54 }
 0x78d   : > { %5438 = vmatprep.subr.bf16.mxu1 %v9964_v37 }
 0x83a   : > { %v8108_v24 = vpop.f32.mrb[16].mxu1 }
 0x83b   : > { %v5338_v12 = vpop.f32.mrb[17].mxu1  ;;  %v8219_v19 = vrot.slane %v8108_v24, %v9965_v7  ;;  %v8236_v32 = vrot.slane %v8108_v24, %v9967_v14  ;;  %v8247_v5 = vrot.slane %v8108_v24, %v9969_v47  ;;  %v8251_v14 = vrot.slane %v8209_v9, %v9969_v47 }
 0x83c   : > { %v2678_v11 = vpop.f32.mrb[18].mxu1  ;;  %v2886_v12 = vmul.f32 %v8271_v50, %v8215_v16 }
 0x83d   : > { %v5339_v8 = vpop.f32.mrb[19].mxu1  ;;  %v3255_v60 = vmul.f32 %v8225_v41, %v8251_v14  ;;  %v3253_v47 = vmul.f32 %v8261_v45, %v8251_v14  ;;  %v8276_v11 = vld [vmem:[%s6584_s3 + $0x10] sm:$0xff]  ;;  %v3256_v37 = vmul.f32 %v8397_v23, %v8251_v14 }
 0x83e   : > { %9978 = vst [vmem:[#allocation58_spill] sm:$0xff] %v8276_v11 }
 0x842   : > { %v5344_v13 = vpop.f32.mrb[20].mxu1 }
 0x843   : > { %2793 = vperm.xlu1 %5603, %v5344_v13   ;;  %v2718_v36 = vpop.f32.mrb[21].mxu1 }
 0x844   : > { %3166 = vperm.xlu0 %5609, %v2718_v36   ;;  %v5345_v62 = vpop.f32.mrb[22].mxu1 }
 0x845   : > { %v2721_v4 = vpop.f32.mrb[23].mxu1 }
 0x847   : > { %5604 = vset.pattern.permute.xlu1 %v9973_v57 }
 0x848   : > { %2990 = vperm.xlu1 %5604, %v5344_v13   ;;  %5610 = vset.pattern.permute.xlu0 %v9974_v3 }
 0x849   : > { %3350 = vperm.xlu0 %5610, %v2718_v36  }
 0x84a   : > { %v5348_v33 = vpop.f32.mrb[24].mxu1 }
 0x84b   : > { %v8112_v22 = vpop.f32.mrb[25].mxu1 }
 0x84c   : > { %5605 = vset.pattern.permute.xlu1 %v9975_v51  ;;  %v8115_v40 = vpop.f32.mrb[26].mxu1 }
 0x84d   : > { %3174 = vperm.xlu1 %5605, %v5344_v13   ;;  %5613 = vset.pattern.permute.xlu0 %v9975_v51  ;;  %v8118_v53 = vpop.f32.mrb[27].mxu1 }
 0x84e   : > { %3178 = vperm.xlu0 %5613, %v5345_v62  }
 0x851   : > { %5606 = vset.pattern.permute.xlu1 %v9974_v3 }
 0x852   : > { %3358 = vperm.xlu1 %5606, %v5344_v13   ;;  %5615 = vset.pattern.permute.xlu0 %v9976_v1  ;;  %v8122_v59 = vpop.f32.mrb[28].mxu1 }
 0x853   : > { %2788 = vperm.xlu0 %5615, %v2721_v4   ;;  %v8124_v2 = vpop.f32.mrb[29].mxu1 }
 0x854   : > { %v8126_v31 = vpop.f32.mrb[30].mxu1 }
 0x855   : > { %v8128_v49 = vpop.f32.mrb[31].mxu1 }
 0x856   : > { %5607 = vset.pattern.permute.xlu1 %v9976_v1 }
 0x857   : > { %2783 = vperm.xlu1 %5607, %v2718_v36   ;;  %5616 = vset.pattern.permute.xlu0 %v9973_v57 }
 0x858   : > { %2986 = vperm.xlu0 %5616, %v2721_v4  }
 0x85a   : > { %v8132_v6 = vpop.f32.mrb[32].mxu1 }
 0x85b   : > { %5608 = vset.pattern.permute.xlu1 %v9973_v57  ;;  %v8135_v30 = vpop.f32.mrb[33].mxu1 }
 0x85c   : > { %2982 = vperm.xlu1 %5608, %v2718_v36   ;;  %3006 = vperm.xlu0 %5616, %v5348_v33   ;;  %v8137_v56 = vpop.f32.mrb[34].mxu1 }
 0x85d   : > { %v8139_v0 = vpop.f32.mrb[35].mxu1 }
 0x860   : > { %5611 = vset.pattern.permute.xlu1 %v9976_v1  ;;  %2998 = vperm.xlu0 %5616, %v8112_v22  }
 0x861   : > { %2798 = vperm.xlu1 %5611, %v5345_v62  }
 0x864   : > { %5627 = vset.pattern.permute.xlu0 %v9975_v51 }
 0x865   : > { %5612 = vset.pattern.permute.xlu1 %v9973_v57  ;;  %3194 = vperm.xlu0 %5627, %v8115_v40  }
 0x866   : > { %2994 = vperm.xlu1 %5612, %v5345_v62  }
 0x869   : > { %3186 = vperm.xlu0 %5627, %v8118_v53  }
 0x86a   : > { %5614 = vset.pattern.permute.xlu1 %v9974_v3 }
 0x86b   : > { %3362 = vperm.xlu1 %5614, %v5345_v62  }
 0x86d   : > { %5631 = vset.pattern.permute.xlu0 %v9974_v3 }
 0x86e   : > { %3370 = vperm.xlu0 %5631, %v8118_v53  }
 0x86f   : > { %5617 = vset.pattern.permute.xlu1 %v9975_v51 }
 0x870   : > { %3170 = vperm.xlu1 %5617, %v2721_v4  }
 0x872   : > { %5633 = vset.pattern.permute.xlu0 %v9973_v57 }
 0x873   : > { %3022 = vperm.xlu0 %5633, %v8122_v59  }
 0x874   : > { %5618 = vset.pattern.permute.xlu1 %v9974_v3 }
 0x875   : > { %3354 = vperm.xlu1 %5618, %v2721_v4  }
 0x877   : > { %3014 = vperm.xlu0 %5633, %v8124_v2  }
 0x879   : > { %5619 = vset.pattern.permute.xlu1 %v9976_v1 }
 0x87a   : > { %2813 = vperm.xlu1 %5619, %v5348_v33  }
 0x87b   : > { %5637 = vset.pattern.permute.xlu0 %v9975_v51 }
 0x87c   : > { %3198 = vperm.xlu0 %5637, %v8124_v2  }
 0x87e   : > { %5620 = vset.pattern.permute.xlu1 %v9975_v51 }
 0x87f   : > { %3190 = vperm.xlu1 %5620, %v5348_v33  }
 0x880   : > { %5638 = vset.pattern.permute.xlu0 %v9974_v3 }
 0x881   : > { %3382 = vperm.xlu0 %5638, %v8124_v2  }
 0x883   : > { %5621 = vset.pattern.permute.xlu1 %v9974_v3 }
 0x884   : > { %3374 = vperm.xlu1 %5621, %v5348_v33  }
 0x885   : > { %5639 = vset.pattern.permute.xlu0 %v9976_v1 }
 0x886   : > { %2838 = vperm.xlu0 %5639, %v8126_v31  }
 0x888   : > { %5622 = vset.pattern.permute.xlu1 %v9976_v1 }
 0x889   : > { %2803 = vperm.xlu1 %5622, %v8112_v22  }
 0x88a   : > { %5641 = vset.pattern.permute.xlu0 %v9975_v51 }
 0x88b   : > { %3210 = vperm.xlu0 %5641, %v8126_v31  }
 0x88d   : > { %5623 = vset.pattern.permute.xlu1 %v9975_v51 }
 0x88e   : > { %3182 = vperm.xlu1 %5623, %v8112_v22  }
 0x88f   : > { %5642 = vset.pattern.permute.xlu0 %v9974_v3 }
 0x890   : > { %3394 = vperm.xlu0 %5642, %v8126_v31  }
 0x892   : > { %5624 = vset.pattern.permute.xlu1 %v9974_v3 }
 0x893   : > { %3366 = vperm.xlu1 %5624, %v8112_v22  }
 0x894   : > { %5643 = vset.pattern.permute.xlu0 %v9976_v1 }
 0x895   : > { %2828 = vperm.xlu0 %5643, %v8128_v49  }
 0x897   : > { %5625 = vset.pattern.permute.xlu1 %v9976_v1 }
 0x898   : > { %2818 = vperm.xlu1 %5625, %v8115_v40  }
 0x899   : > { %5647 = vset.pattern.permute.xlu0 %v9973_v57 }
 0x89a   : > { %3038 = vperm.xlu0 %5647, %v8132_v6  }
 0x89c   : > { %5626 = vset.pattern.permute.xlu1 %v9973_v57 }
 0x89d   : > { %3010 = vperm.xlu1 %5626, %v8115_v40  }
 0x89e   : > { %3030 = vperm.xlu0 %5647, %v8135_v30  }
 0x8a1   : > { %5628 = vset.pattern.permute.xlu1 %v9974_v3 }
 0x8a2   : > { %3378 = vperm.xlu1 %5628, %v8115_v40   ;;  %5651 = vset.pattern.permute.xlu0 %v9975_v51  ;;  %v3070_v40 = vmul.f32 %v8271_v50, %v8232_v46 }
 0x8a3   : > { %3214 = vperm.xlu0 %5651, %v8135_v30  }
 0x8a6   : > { %5629 = vset.pattern.permute.xlu1 %v9976_v1 }
 0x8a7   : > { %2808 = vperm.xlu1 %5629, %v8118_v53   ;;  %5652 = vset.pattern.permute.xlu0 %v9974_v3 }
 0x8a8   : > { %3398 = vperm.xlu0 %5652, %v8135_v30  }
 0x8ab   : > { %5630 = vset.pattern.permute.xlu1 %v9973_v57 }
 0x8ac   : > { %3002 = vperm.xlu1 %5630, %v8118_v53   ;;  %5653 = vset.pattern.permute.xlu0 %v9976_v1 }
 0x8ad   : > { %2858 = vperm.xlu0 %5653, %v8137_v56  }
 0x8b0   : > { %5632 = vset.pattern.permute.xlu1 %v9976_v1 }
 0x8b1   : > { %2833 = vperm.xlu1 %5632, %v8122_v59   ;;  %5655 = vset.pattern.permute.xlu0 %v9975_v51 }
 0x8b2   : > { %3226 = vperm.xlu0 %5655, %v8137_v56  }
 0x8b5   : > { %5634 = vset.pattern.permute.xlu1 %v9975_v51 }
 0x8b6   : > { %3206 = vperm.xlu1 %5634, %v8122_v59   ;;  %5656 = vset.pattern.permute.xlu0 %v9974_v3 }
 0x8b7   : > { %3410 = vperm.xlu0 %5656, %v8137_v56  }
 0x8ba   : > { %5635 = vset.pattern.permute.xlu1 %v9974_v3 }
 0x8bb   : > { %3390 = vperm.xlu1 %5635, %v8122_v59   ;;  %5657 = vset.pattern.permute.xlu0 %v9976_v1 }
 0x8bc   : > { %2848 = vperm.xlu0 %5657, %v8139_v0  }
 0x8bf   : > { %5636 = vset.pattern.permute.xlu1 %v9976_v1 }
 0x8c0   : > { %2823 = vperm.xlu1 %5636, %v8124_v2  }
 0x8c2   : > { %v2794_v48 = vpop.permute.xlu1 %2793 }
 0x8c3   : > { %v3167_v42 = vpop.permute.xlu0 %3166  ;;  %v2867_v10 = vadd.f32 %v8219_v19, %v2794_v48 }
 0x8c4   : > { %5640 = vset.pattern.permute.xlu1 %v9973_v57  ;;  %v3233_v29 = vadd.f32 %v8247_v5, %v3167_v42 }
 0x8c5   : > { %3026 = vperm.xlu1 %5640, %v8126_v31   ;;  %v2903_v52 = vadd.f32 %v2887_v43, %v2867_v10 }
 0x8c6   : > { %v3269_v13 = vadd.f32 %v3253_v47, %v3233_v29 }
 0x8c7   : > { %v2991_v17 = vpop.permute.xlu1 %2990  ;;  %v2935_v28 = vmul.f32 0.2, %v2903_v52  ;;  %vm2919_vm14 = vcmp.gt.f32.partialorder %v2903_v52, 0.0 }
 0x8c8   : > { %v8221_v15 = vpop.permute.xlu0 %3350  ;;  %v3051_v55 = vadd.f32 %v8236_v32, %v2991_v17  ;;  %v3301_v59 = vmul.f32 0.2, %v3269_v13  ;;  %vm3285_vm1 = vcmp.gt.f32.partialorder %v3269_v13, 0.0 }
 0x8c9   : > { %3018 = vperm.xlu1 %5640, %v8128_v49   ;;  %v2951_v21 = vsel %vm2919_vm14, %v2903_v52, %v2935_v28 }
 0x8ca   : > { %v3087_v44 = vadd.f32 %v3071_v26, %v3051_v55  ;;  %v8279_v8 = vadd.f32 %v8276_v11, %v2951_v21  ;;  %v8309_v55 = vld [vmem:[%s6584_s3] sm:$0xff] }
 0x8cc   : > { %v3175_v7 = vpop.permute.xlu1 %3174  ;;  %v3119_v39 = vmul.f32 0.2, %v3087_v44  ;;  %vm3103_vm15 = vcmp.gt.f32.partialorder %v3087_v44, 0.0  ;;  %9979 = vst [vmem:[#allocation59_spill] sm:$0xff] %v8279_v8 }
 0x8cd   : > { %v8238_v25 = vpop.permute.xlu0 %3178  ;;  %5644 = vset.pattern.permute.xlu1 %v9975_v51  ;;  %v3235_v54 = vadd.f32 %v8247_v5, %v3175_v7  ;;  %v3317_v7 = vsel %vm3285_vm1, %v3269_v13, %v3301_v59 }
 0x8ce   : > { %3202 = vperm.xlu1 %5644, %v8128_v49   ;;  %v3135_v4 = vsel %vm3103_vm15, %v3087_v44, %v3119_v39  ;;  %v8312_v28 = vadd.f32 %v8309_v55, %v3317_v7 }
 0x8cf   : > { %v3271_v20 = vadd.f32 %v3255_v60, %v3235_v54  ;;  %v8290_v53 = vadd.f32 %v8276_v11, %v3135_v4  ;;  %v8320_v54 = vld [vmem:[%s6584_s3 + $0x8] sm:$0xff] }
 0x8d0   : > { %9982 = vst [vmem:[#allocation49_spill] sm:$0xff] %v8312_v28  ;;  %9983 = vst [vmem:[#allocation44_spill] sm:$0xff] %v8320_v54 }
 0x8d1   : > { %v8253_v61 = vpop.permute.xlu1 %3358  ;;  %v3303_v36 = vmul.f32 0.2, %v3271_v20  ;;  %vm3287_vm0 = vcmp.gt.f32.partialorder %v3271_v20, 0.0  ;;  %9980 = vst [vmem:[#allocation51_spill] sm:$0xff] %v8290_v53 }
 0x8d2   : > { %v2789_v63 = vpop.permute.xlu0 %2788  ;;  %5645 = vset.pattern.permute.xlu1 %v9974_v3 }
 0x8d3   : > { %3386 = vperm.xlu1 %5645, %v8128_v49   ;;  %v2866_v62 = vadd.f32 %v8219_v19, %v2789_v63  ;;  %v3319_v49 = vsel %vm3287_vm0, %v3271_v20, %v3303_v36 }
 0x8d4   : > { %v8300_v17 = vadd.f32 %v8276_v11, %v3319_v49  ;;  %v8613_v11 = vld [vmem:[%s6584_s3 + $0xe8] sm:$0xff] }
 0x8d5   : > { %v2902_v2 = vadd.f32 %v2886_v12, %v2866_v62  ;;  %10016 = vst [vmem:[#allocation32_spill] sm:$0xff] %v8613_v11 }
 0x8d6   : > { %v8266_v58 = vpop.permute.xlu1 %2783  ;;  %9981 = vst [vmem:[#allocation56_spill] sm:$0xff] %v8300_v17 }
 0x8d7   : > { %v2987_v27 = vpop.permute.xlu0 %2986  ;;  %5646 = vset.pattern.permute.xlu1 %v9976_v1  ;;  %v2934_v43 = vmul.f32 0.2, %v2902_v2  ;;  %vm2918_vm4 = vcmp.gt.f32.partialorder %v2902_v2, 0.0 }
 0x8d8   : > { %2853 = vperm.xlu1 %5646, %v8132_v6   ;;  %v3050_v31 = vadd.f32 %v8236_v32, %v2987_v27 }
 0x8d9   : > { %v2950_v60 = vsel %vm2918_vm4, %v2902_v2, %v2934_v43  ;;  %v8364_v43 = vld [vmem:[%s6584_s3 + $0x30] sm:$0xff] }
 0x8da   : > { %v3086_v10 = vadd.f32 %v3070_v40, %v3050_v31  ;;  %v8323_v63 = vadd.f32 %v8320_v54, %v2950_v60 }
 0x8db   : > { %v8282_v33 = vpop.permute.xlu1 %2982  ;;  %v3007_v22 = vpop.permute.xlu0 %3006  ;;  %3537 = vmax.xlane.f32.xlu0 %v8279_v8 }
 0x8dc   : > { %5648 = vset.pattern.permute.xlu1 %v9975_v51  ;;  %v3118_v44 = vmul.f32 0.2, %v3086_v10  ;;  %vm3102_vm5 = vcmp.gt.f32.partialorder %v3086_v10, 0.0  ;;  %9984 = vst [vmem:[#allocation31_spill] sm:$0xff] %v8323_v63  ;;  %v3055_v12 = vadd.f32 %v8236_v32, %v3007_v22 }
 0x8dd   : > { %3222 = vperm.xlu1 %5648, %v8132_v6  }
 0x8de   : > { %v3134_v29 = vsel %vm3102_vm5, %v3086_v10, %v3118_v44 }
 0x8df   : > { %v8293_v48 = vpop.permute.xlu0 %2998  ;;  %3569 = vmax.xlane.f32.xlu0 %v8290_v53  ;;  %v8439_v53 = vld [vmem:[%s6584_s3 + $0xa8] sm:$0xff] }
 0x8e0   : > { %v8296_v42 = vpop.permute.xlu1 %2798 }
 0x8e1   : > { %5649 = vset.pattern.permute.xlu1 %v9974_v3 }
 0x8e2   : > { %3406 = vperm.xlu1 %5649, %v8132_v6  }
 0x8e3   : > { %3601 = vmax.xlane.f32.xlu0 %v8300_v17  ;;  %v3236_v17 = vadd.f32 %v8247_v5, %v8238_v25 }
 0x8e4   : > { %v8304_v52 = vpop.permute.xlu0 %3194 }
 0x8e5   : > { %v8306_v26 = vpop.permute.xlu1 %2994 }
 0x8e6   : > { %5650 = vset.pattern.permute.xlu1 %v9976_v1  ;;  %v3052_v35 = vadd.f32 %v8236_v32, %v8306_v26 }
 0x8e7   : > { %2843 = vperm.xlu1 %5650, %v8135_v30   ;;  %3597 = vmax.xlane.f32.xlu0 %v8312_v28  ;;  %v8333_v30 = vadd.f32 %v8320_v54, %v3134_v29  ;;  %v3272_v28 = vadd.f32 %v3256_v37, %v3236_v17  ;;  %v2890_v37 = vmul.f32 %v8439_v53, %v8215_v16  ;;  %v8444_v17 = vld [vmem:[%s6584_s3 + $0x18] sm:$0xff] }
 0x8e8   : > { %v8317_v6 = vpop.permute.xlu0 %3186  ;;  %9996 = vst [vmem:[#allocation16_spill] sm:$0xff] %v8444_v17 }
 0x8e9   : > { %9987 = vst [vmem:[#allocation50_spill] sm:$0xff] %v8333_v30  ;;  %vm3288_vm12 = vcmp.gt.f32.partialorder %v3272_v28, 0.0 }
 0x8ea   : > { %v8325_v47 = vpop.permute.xlu1 %3362 }
 0x8eb   : > { %9985 = vst [vmem:[#allocation38_spill] sm:$0xff] %v8325_v47  ;;  %5654 = vset.pattern.permute.xlu1 %v9973_v57  ;;  %3535 = vmax.xlane.f32.xlu0 %v8323_v63 }
 0x8ec   : > { %3042 = vperm.xlu1 %5654, %v8137_v56   ;;  %v8346_v56 = vld [vmem:[%s6584_s3 + $0xb0] sm:$0xff] }
 0x8ed   : > { %v8330_v1 = vpop.permute.xlu0 %3370  ;;  %v3075_v27 = vmul.f32 %v8346_v56, %v8232_v46  ;;  %v2891_v36 = vmul.f32 %v8346_v56, %v8215_v16 }
 0x8ee   : > { %9986 = vst [vmem:[#allocation35_spill] sm:$0xff] %v8330_v1 }
 0x8ef   : > { %v8335_v39 = vpop.permute.xlu1 %3170  ;;  %3567 = vmax.xlane.f32.xlu0 %v8333_v30  ;;  %v3091_v4 = vadd.f32 %v3075_v27, %v3055_v12  ;;  %v2885_v27 = vmul.f32 %v8261_v45, %v8215_v16  ;;  %v2865_v12 = vadd.f32 %v8219_v19, %v8266_v58  ;;  %v2888_v58 = vmul.f32 %v8397_v23, %v8215_v16 }
 0x8f0   : > { %3034 = vperm.xlu1 %5654, %v8139_v0   ;;  %v3234_v25 = vadd.f32 %v8247_v5, %v8335_v39 }
 0x8f1   : > { %v3123_v2 = vmul.f32 0.2, %v3091_v4  ;;  %vm3107_vm7 = vcmp.gt.f32.partialorder %v3091_v4, 0.0 }
 0x8f2   : > { %v8339_v20 = vpop.permute.xlu0 %3022 }
 0x8f4   : > { %v8341_v21 = vpop.permute.xlu1 %3354  ;;  %5658 = vset.pattern.permute.xlu1 %v9975_v51 }
 0x8f5   : > { %9988 = vst [vmem:[#allocation28_spill] sm:$0xff] %v8341_v21  ;;  %3218 = vperm.xlu1 %5658, %v8139_v0   ;;  %v8494_v21 = vld [vmem:[%s6584_s3 + $0x28] sm:$0xff] }
 0x8f6   : > { %v8351_v13 = vpop.permute.xlu0 %3014 }
 0x8f9   : > { %v2814_v62 = vpop.permute.xlu1 %2813  ;;  %5659 = vset.pattern.permute.xlu1 %v9974_v3 }
 0x8fa   : > { %v2871_v51 = vadd.f32 %v8219_v19, %v2814_v62  ;;  %3402 = vperm.xlu1 %5659, %v8139_v0   ;;  %v3139_v0 = vsel %vm3107_vm7, %v3091_v4, %v3123_v2  ;;  %v2901_v4 = vadd.f32 %v2885_v27, %v2865_v12  ;;  %v2868_v27 = vadd.f32 %v8219_v19, %v8296_v42 }
 0x8fb   : > { %v8358_v59 = vpop.permute.xlu0 %3198  ;;  %v8375_v44 = vadd.f32 %v8364_v43, %v3139_v0 }
 0x8fc   : > { %v2907_v40 = vadd.f32 %v2891_v36, %v2871_v51  ;;  %v3069_v51 = vmul.f32 %v8261_v45, %v8232_v46  ;;  %vm2917_vm8 = vcmp.gt.f32.partialorder %v2901_v4, 0.0  ;;  %v2904_v38 = vadd.f32 %v2888_v58, %v2868_v27 }
 0x8fd   : > { %9990 = vst [vmem:[#allocation52_spill] sm:$0xff] %v8375_v44 }
 0x8fe   : > { %v2939_v31 = vmul.f32 0.2, %v2907_v40  ;;  %v8360_v22 = vpop.permute.xlu1 %3190  ;;  %vm2923_vm6 = vcmp.gt.f32.partialorder %v2907_v40, 0.0  ;;  %5660 = vset.pattern.permute.xlu1 %v9973_v57  ;;  %v2936_v58 = vmul.f32 0.2, %v2904_v38  ;;  %vm2920_vm10 = vcmp.gt.f32.partialorder %v2904_v38, 0.0 }
 0x900   : > { %v2955_v49 = vsel %vm2923_vm6, %v2907_v40, %v2939_v31  ;;  %v8369_v10 = vpop.permute.xlu0 %3382  ;;  %v3049_v40 = vadd.f32 %v8236_v32, %v8282_v33  ;;  %v3072_v33 = vmul.f32 %v8397_v23, %v8232_v46 }
 0x901   : > { %v8367_v3 = vadd.f32 %v8364_v43, %v2955_v49  ;;  %v2933_v49 = vmul.f32 0.2, %v2901_v4 }
 0x902   : > { %v3085_v0 = vadd.f32 %v3069_v51, %v3049_v40  ;;  %v3088_v27 = vadd.f32 %v3072_v33, %v3052_v35 }
 0x903   : > { %9989 = vst [vmem:[#allocation53_spill] sm:$0xff] %v8367_v3  ;;  %v8371_v7 = vpop.permute.xlu1 %3374  ;;  %3545 = vmax.xlane.f32.xlu0 %v8367_v3  ;;  %v2949_v51 = vsel %vm2917_vm8, %v2901_v4, %v2933_v49  ;;  %v3254_v4 = vmul.f32 %v8271_v50, %v8251_v14 }
 0x904   : > { %v3117_v18 = vmul.f32 0.2, %v3085_v0  ;;  %vm3101_vm9 = vcmp.gt.f32.partialorder %v3085_v0, 0.0  ;;  %v8416_v42 = vadd.f32 %v8309_v55, %v2949_v51  ;;  %vm3104_vm11 = vcmp.gt.f32.partialorder %v3088_v27, 0.0 }
 0x905   : > { %v8378_v60 = vpop.permute.xlu0 %2838 }
 0x906   : > { %9993 = vst [vmem:[#allocation21_spill] sm:$0xff] %v8416_v42  ;;  %v3133_v26 = vsel %vm3101_vm9, %v3085_v0, %v3117_v18  ;;  %v2952_v18 = vsel %vm2920_vm10, %v2904_v38, %v2936_v58  ;;  %v8434_v0 = vld [vmem:[%s6584_s3 + $0xa0] sm:$0xff]  ;;  %v3270_v38 = vadd.f32 %v3254_v4, %v3234_v25 }
 0x907   : > { %3577 = vmax.xlane.f32.xlu0 %v8375_v44  ;;  %v8426_v51 = vadd.f32 %v8309_v55, %v3133_v26  ;;  %v3120_v44 = vmul.f32 0.2, %v3088_v27  ;;  %v2889_v33 = vmul.f32 %v8434_v0, %v8215_v16  ;;  %v8447_v39 = vadd.f32 %v8444_v17, %v2952_v18 }
 0x908   : > { %v2804_v29 = vpop.permute.xlu1 %2803  ;;  %v3304_v26 = vmul.f32 0.2, %v3272_v28  ;;  %v3073_v3 = vmul.f32 %v8434_v0, %v8232_v46  ;;  %vm3286_vm13 = vcmp.gt.f32.partialorder %v3270_v38, 0.0 }
 0x909   : > { %9994 = vst [vmem:[#allocation19_spill] sm:$0xff] %v8426_v51  ;;  %9997 = vst [vmem:[#allocation61_spill] sm:$0xff] %v8447_v39  ;;  %v2869_v58 = vadd.f32 %v8219_v19, %v2804_v29  ;;  %v3136_v30 = vsel %vm3104_vm11, %v3088_v27, %v3120_v44  ;;  %v3302_v29 = vmul.f32 0.2, %v3270_v38 }
 0x90a   : > { %v8386_v62 = vpop.permute.xlu0 %3210  ;;  %v8459_v4 = vadd.f32 %v8444_v17, %v3136_v30  ;;  %v3320_v25 = vsel %vm3288_vm12, %v3272_v28, %v3304_v26  ;;  %v3059_v30 = vadd.f32 %v8236_v32, %v8339_v20  ;;  %v8472_v28 = vld [vmem:[%s6584_s3 + $0xc8] sm:$0xff] }
 0x90b   : > { %v2905_v44 = vadd.f32 %v2889_v33, %v2869_v58  ;;  %v2894_v33 = vmul.f32 %v8472_v28, %v8215_v16  ;;  %v8485_v20 = vadd.f32 %v8444_v17, %v3320_v25  ;;  %v3318_v47 = vsel %vm3286_vm13, %v3270_v38, %v3302_v29 }
 0x90c   : > { %9998 = vst [vmem:[#allocation34_spill] sm:$0xff] %v8459_v4 }
 0x90d   : > { %v8384_v36 = vpop.permute.xlu1 %3182  ;;  %9999 = vst [vmem:[#allocation20_spill] sm:$0xff] %v8485_v20  ;;  %vm2921_vm15 = vcmp.gt.f32.partialorder %v2905_v44, 0.0 }
 0x90f   : > { %v8394_v31 = vpop.permute.xlu0 %3394 }
 0x910   : > { %9991 = vst [vmem:[#allocation62_spill] sm:$0xff] %v8394_v31  ;;  %v8462_v31 = vld [vmem:[%s6584_s3 + $0xd0] sm:$0xff] }
 0x912   : > { %v8392_v2 = vpop.permute.xlu1 %3366 }
 0x914   : > { %v8409_v40 = vpop.permute.xlu0 %2828 }
 0x917   : > { %v8403_v12 = vpop.permute.xlu1 %2818 }
 0x919   : > { %v8423_v49 = vpop.permute.xlu0 %3038 }
 0x91c   : > { %v8413_v57 = vpop.permute.xlu1 %3010 }
 0x91d   : > { %v8450_v63 = vpop.permute.xlu0 %3030 }
 0x91e   : > { %3533 = vmax.xlane.f32.xlu1 %v8416_v42  ;;  %v3053_v42 = vadd.f32 %v8236_v32, %v8293_v48  ;;  %v3074_v48 = vmul.f32 %v8439_v53, %v8232_v46 }
 0x921   : > { %v8430_v35 = vpop.permute.xlu1 %3378 }
 0x922   : > { %9995 = vst [vmem:[#allocation47_spill] sm:$0xff] %v8430_v35  ;;  %3565 = vmax.xlane.f32.xlu1 %v8426_v51  ;;  %v8481_v58 = vpop.permute.xlu0 %3214 }
 0x926   : > { %v2809_v51 = vpop.permute.xlu1 %2808  ;;  %3539 = vmax.xlane.f32.xlu1 %v8447_v39  ;;  %v3079_v39 = vmul.f32 %v8462_v31, %v8232_v46 }
 0x927   : > { %v2870_v18 = vadd.f32 %v8219_v19, %v2809_v51  ;;  %v3089_v51 = vadd.f32 %v3073_v3, %v3053_v42  ;;  %v2937_v42 = vmul.f32 0.2, %v2905_v44 }
 0x928   : > { %v3095_v17 = vadd.f32 %v3079_v39, %v3059_v30  ;;  %v3056_v39 = vadd.f32 %v8236_v32, %v8413_v57 }
 0x929   : > { %v2906_v27 = vadd.f32 %v2890_v37, %v2870_v18  ;;  %v8477_v37 = vld [vmem:[%s6584_s3 + $0xb8] sm:$0xff]  ;;  %v2872_v18 = vadd.f32 %v8219_v19, %v8403_v12  ;;  %v3121_v25 = vmul.f32 0.2, %v3089_v51  ;;  %v2895_v12 = vmul.f32 %v8462_v31, %v8215_v16 }
 0x92a   : > { %3571 = vmax.xlane.f32.xlu1 %v8459_v4  ;;  %v2892_v26 = vmul.f32 %v8477_v37, %v8215_v16  ;;  %v3076_v23 = vmul.f32 %v8477_v37, %v8232_v46  ;;  %vm3105_vm0 = vcmp.gt.f32.partialorder %v3089_v51, 0.0  ;;  %v2953_v30 = vsel %vm2921_vm15, %v2905_v44, %v2937_v42 }
 0x92b   : > { %v2938_v35 = vmul.f32 0.2, %v2906_v27  ;;  %v3003_v1 = vpop.permute.xlu1 %3002  ;;  %vm2922_vm14 = vcmp.gt.f32.partialorder %v2906_v27, 0.0  ;;  %v3137_v57 = vsel %vm3105_vm0, %v3089_v51, %v3121_v25  ;;  %vm3111_vm6 = vcmp.gt.f32.partialorder %v3095_v17, 0.0  ;;  %v8533_v51 = vld [vmem:[%s6584_s3 + $0x50] sm:$0xff] }
 0x92c   : > { %v3054_v3 = vadd.f32 %v8236_v32, %v3003_v1  ;;  %v3092_v42 = vadd.f32 %v3076_v23, %v3056_v39 }
 0x92d   : > { %v2954_v4 = vsel %vm2922_vm14, %v2906_v27, %v2938_v35  ;;  %v2874_v35 = vadd.f32 %v8219_v19, %v8409_v40  ;;  %v8505_v27 = vadd.f32 %v8320_v54, %v3318_v47  ;;  %v8517_v54 = vld [vmem:[%s6584_s3 + $0x20] sm:$0xff] }
 0x92e   : > { %v3090_v8 = vadd.f32 %v3074_v48, %v3054_v3  ;;  %3603 = vmax.xlane.f32.xlu1 %v8485_v20  ;;  %v8497_v1 = vadd.f32 %v8494_v21, %v2954_v4  ;;  %v2908_v4 = vadd.f32 %v2892_v26, %v2872_v18  ;;  %v8510_v3 = vpop.permute.xlu0 %3398  ;;  %v8520_v26 = vadd.f32 %v8517_v54, %v2953_v30 }
 0x92f   : > { %10001 = vst [vmem:[#allocation14_spill] sm:$0xff] %v8505_v27  ;;  %10002 = vst [vmem:[#allocation26_spill] sm:$0xff] %v8510_v3  ;;  %v2910_v47 = vadd.f32 %v2894_v33, %v2874_v35  ;;  %v3124_v35 = vmul.f32 0.2, %v3092_v42  ;;  %vm3108_vm7 = vcmp.gt.f32.partialorder %v3092_v42, 0.0 }
 0x930   : > { %10000 = vst [vmem:[#allocation36_spill] sm:$0xff] %v8497_v1  ;;  %v3122_v38 = vmul.f32 0.2, %v3090_v8  ;;  %v2834_v29 = vpop.permute.xlu1 %2833  ;;  %3543 = vmax.xlane.f32.xlu0 %v8497_v1  ;;  %vm3106_vm1 = vcmp.gt.f32.partialorder %v3090_v8, 0.0  ;;  %v3127_v1 = vmul.f32 0.2, %v3095_v17 }
 0x931   : > { %v2875_v48 = vadd.f32 %v8219_v19, %v2834_v29  ;;  %10004 = vst [vmem:[#allocation18_spill] sm:$0xff] %v8520_v26  ;;  %v2940_v44 = vmul.f32 0.2, %v2908_v4  ;;  %vm2924_vm5 = vcmp.gt.f32.partialorder %v2908_v4, 0.0  ;;  %v2942_v25 = vmul.f32 0.2, %v2910_v47 }
 0x932   : > { %3599 = vmax.xlane.f32.xlu1 %v8505_v27  ;;  %v3138_v40 = vsel %vm3106_vm1, %v3090_v8, %v3122_v38  ;;  %v8527_v33 = vpop.permute.xlu0 %2858  ;;  %v3143_v39 = vsel %vm3111_vm6, %v3095_v17, %v3127_v1  ;;  %vm2926_vm8 = vcmp.gt.f32.partialorder %v2910_v47, 0.0  ;;  %v8565_v27 = vld [vmem:[%s6584_s3 + $0xd8] sm:$0xff] }
 0x933   : > { %v2911_v20 = vadd.f32 %v2895_v12, %v2875_v48  ;;  %v8514_v50 = vadd.f32 %v8494_v21, %v3138_v40  ;;  %v8530_v12 = vadd.f32 %v8517_v54, %v3137_v57  ;;  %v2956_v38 = vsel %vm2924_vm5, %v2908_v4, %v2940_v44  ;;  %v8550_v57 = vld [vmem:[%s6584_s3 + $0x38] sm:$0xff] }
 0x934   : > { %v3057_v40 = vadd.f32 %v8236_v32, %v8351_v13  ;;  %10008 = vst [vmem:[#allocation39_spill] sm:$0xff] %v8550_v57  ;;  %v8553_v17 = vadd.f32 %v8550_v57, %v2956_v38  ;;  %v8556_v1 = vadd.f32 %v8533_v51, %v3143_v39  ;;  %v3140_v4 = vsel %vm3108_vm7, %v3092_v42, %v3124_v35  ;;  %v8576_v35 = vld [vmem:[%s6584_s3 + $0x48] sm:$0xff] }
 0x935   : > { %10003 = vst [vmem:[#allocation29_spill] sm:$0xff] %v8514_v50  ;;  %v2943_v18 = vmul.f32 0.2, %v2911_v20  ;;  %v8523_v29 = vpop.permute.xlu1 %3206  ;;  %3575 = vmax.xlane.f32.xlu0 %v8514_v50  ;;  %vm2927_vm4 = vcmp.gt.f32.partialorder %v2911_v20, 0.0  ;;  %10005 = vst [vmem:[#allocation40_spill] sm:$0xff] %v8530_v12  ;;  %v2958_v44 = vsel %vm2926_vm8, %v2910_v47, %v2942_v25  ;;  %v2896_v38 = vmul.f32 %v8565_v27, %v8215_v16  ;;  %v8584_v50 = vld [vmem:[%s6584_s3 + $0xf0] sm:$0xff] }
 0x936   : > { %3541 = vmax.xlane.f32.xlu1 %v8520_v26  ;;  %10009 = vst [vmem:[#allocation17_spill] sm:$0xff] %v8553_v17  ;;  %10010 = vst [vmem:[#allocation27_spill] sm:$0xff] %v8556_v1  ;;  %v2876_v47 = vadd.f32 %v8219_v19, %v8378_v60  ;;  %v8573_v25 = vadd.f32 %v8550_v57, %v3140_v4  ;;  %v3083_v60 = vmul.f32 %v8584_v50, %v8232_v46 }
 0x937   : > { %v2959_v8 = vsel %vm2927_vm4, %v2911_v20, %v2943_v18  ;;  %v8543_v20 = vld [vmem:[%s6584_s3 + $0xc0] sm:$0xff]  ;;  %v8558_v18 = vpop.permute.xlu0 %3226  ;;  %v3080_v4 = vmul.f32 %v8565_v27, %v8232_v46 }
 0x938   : > { %v8536_v23 = vadd.f32 %v8533_v51, %v2959_v8  ;;  %v3077_v30 = vmul.f32 %v8543_v20, %v8232_v46  ;;  %10011 = vst [vmem:[#allocation30_spill] sm:$0xff] %v8558_v18  ;;  %v2893_v13 = vmul.f32 %v8543_v20, %v8215_v16  ;;  %10012 = vst [vmem:[#allocation12_spill] sm:$0xff] %v8573_v25  ;;  %v8625_v18 = vld [vmem:[%s6584_s3 + $0x58] sm:$0xff] }
 0x93a   : > { %10006 = vst [vmem:[#allocation54_spill] sm:$0xff] %v8536_v23  ;;  %v8538_v48 = vpop.permute.xlu1 %3390  ;;  %3573 = vmax.xlane.f32.xlu1 %v8530_v12  ;;  %3553 = vmax.xlane.f32.xlu0 %v8536_v23  ;;  %v3093_v8 = vadd.f32 %v3077_v30, %v3057_v40 }
 0x93b   : > { %10007 = vst [vmem:[#allocation43_spill] sm:$0xff] %v8538_v48 }
 0x93c   : > { %v3125_v40 = vmul.f32 0.2, %v3093_v8  ;;  %vm3109_vm9 = vcmp.gt.f32.partialorder %v3093_v8, 0.0 }
 0x93e   : > { %3547 = vmax.xlane.f32.xlu1 %v8553_v17  ;;  %3585 = vmax.xlane.f32.xlu0 %v8556_v1  ;;  %v8579_v1 = vadd.f32 %v8576_v35, %v2958_v44  ;;  %v3063_v44 = vadd.f32 %v8236_v32, %v8423_v49 }
 0x93f   : > { %v2824_v39 = vpop.permute.xlu1 %2823 }
 0x940   : > { %v2873_v42 = vadd.f32 %v8219_v19, %v2824_v39  ;;  %10013 = vst [vmem:[#allocation22_spill] sm:$0xff] %v8579_v1  ;;  %v2912_v39 = vadd.f32 %v2896_v38, %v2876_v47  ;;  %v3078_v38 = vmul.f32 %v8472_v28, %v8232_v46  ;;  %v8603_v47 = vld [vmem:[%s6584_s3 + $0x40] sm:$0xff]  ;;  %v3099_v26 = vadd.f32 %v3083_v60, %v3063_v44 }
 0x942   : > { %v2909_v30 = vadd.f32 %v2893_v13, %v2873_v42  ;;  %3579 = vmax.xlane.f32.xlu1 %v8573_v25  ;;  %3551 = vmax.xlane.f32.xlu0 %v8579_v1  ;;  %v8592_v13 = vpop.permute.xlu0 %3410  ;;  %v8596_v1 = vld [vmem:[%s6584_s3 + $0xe0] sm:$0xff]  ;;  %v2944_v23 = vmul.f32 0.2, %v2912_v39  ;;  %vm2928_vm11 = vcmp.gt.f32.partialorder %v2912_v39, 0.0  ;;  %v3131_v60 = vmul.f32 0.2, %v3099_v26 }
 0x943   : > { %10014 = vst [vmem:[#allocation24_spill] sm:$0xff] %v8592_v13  ;;  %v3081_v17 = vmul.f32 %v8596_v1, %v8232_v46  ;;  %v3141_v13 = vsel %vm3109_vm9, %v3093_v8, %v3125_v40  ;;  %vm3115_vm14 = vcmp.gt.f32.partialorder %v3099_v26, 0.0 }
 0x944   : > { %v2941_v42 = vmul.f32 0.2, %v2909_v30  ;;  %v3027_v25 = vpop.permute.xlu1 %3026  ;;  %vm2925_vm10 = vcmp.gt.f32.partialorder %v2909_v30, 0.0  ;;  %v8618_v40 = vadd.f32 %v8603_v47, %v3141_v13 }
 0x945   : > { %v3060_v12 = vadd.f32 %v8236_v32, %v3027_v25  ;;  %v3061_v25 = vadd.f32 %v8236_v32, %v8450_v63 }
 0x946   : > { %v2957_v3 = vsel %vm2925_vm10, %v2909_v30, %v2941_v42  ;;  %v2849_v48 = vpop.permute.xlu0 %2848  ;;  %10017 = vst [vmem:[#allocation33_spill] sm:$0xff] %v8618_v40 }
 0x947   : > { %v8606_v49 = vadd.f32 %v8603_v47, %v2957_v3  ;;  %v3096_v30 = vadd.f32 %v3080_v4, %v3060_v12  ;;  %v2898_v3 = vmul.f32 %v8613_v11, %v8215_v16  ;;  %v3097_v63 = vadd.f32 %v3081_v17, %v3061_v25 }
 0x948   : > { %v3019_v42 = vpop.permute.xlu1 %3018  ;;  %v2960_v4 = vsel %vm2928_vm11, %v2912_v39, %v2944_v23  ;;  %v2878_v44 = vadd.f32 %v8219_v19, %v2849_v48  ;;  %v3257_v23 = vmul.f32 %v8434_v0, %v8251_v14  ;;  %v3237_v39 = vadd.f32 %v8247_v5, %v8384_v36 }
 0x949   : > { %10015 = vst [vmem:[#allocation25_spill] sm:$0xff] %v8606_v49  ;;  %v3058_v57 = vadd.f32 %v8236_v32, %v3019_v42  ;;  %3549 = vmax.xlane.f32.xlu1 %v8606_v49  ;;  %v3128_v12 = vmul.f32 0.2, %v3096_v30  ;;  %vm3112_vm13 = vcmp.gt.f32.partialorder %v3096_v30, 0.0  ;;  %vm3113_vm15 = vcmp.gt.f32.partialorder %v3097_v63, 0.0 }
 0x94a   : > { %v2914_v25 = vadd.f32 %v2898_v3, %v2878_v44  ;;  %v3273_v3 = vadd.f32 %v3257_v23, %v3237_v39  ;;  %v2899_v44 = vmul.f32 %v8584_v50, %v8215_v16 }
 0x94b   : > { %v3094_v8 = vadd.f32 %v3078_v38, %v3058_v57  ;;  %v8628_v57 = vadd.f32 %v8625_v18, %v2960_v4  ;;  %v3144_v17 = vsel %vm3112_vm13, %v3096_v30, %v3128_v12  ;;  %v3129_v38 = vmul.f32 0.2, %v3097_v63  ;;  %v8647_v12 = vld [vmem:[%s6584_s3 + $0x70] sm:$0xff] }
 0x94c   : > { %v3259_v30 = vmul.f32 %v8346_v56, %v8251_v14  ;;  %vm2930_vm0 = vcmp.gt.f32.partialorder %v2914_v25, 0.0  ;;  %v3305_v39 = vmul.f32 0.2, %v3273_v3  ;;  %vm3289_vm1 = vcmp.gt.f32.partialorder %v3273_v3, 0.0 }
 0x94d   : > { %v3126_v42 = vmul.f32 0.2, %v3094_v8  ;;  %v8621_v49 = vpop.permute.xlu1 %3202  ;;  %3581 = vmax.xlane.f32.xlu1 %v8618_v40  ;;  %vm3110_vm12 = vcmp.gt.f32.partialorder %v3094_v8, 0.0  ;;  %10018 = vst [vmem:[#allocation42_spill] sm:$0xff] %v8628_v57  ;;  %v3147_v40 = vsel %vm3115_vm14, %v3099_v26, %v3131_v60  ;;  %v3239_v26 = vadd.f32 %v8247_v5, %v8360_v22 }
 0x94e   : > { %v8650_v36 = vadd.f32 %v8647_v12, %v3147_v40  ;;  %v2946_v60 = vmul.f32 0.2, %v2914_v25  ;;  %v3145_v4 = vsel %vm3113_vm15, %v3097_v63, %v3129_v38  ;;  %v3261_v40 = vmul.f32 %v8543_v20, %v8251_v14 }
 0x94f   : > { %v3142_v13 = vsel %vm3110_vm12, %v3094_v8, %v3126_v42  ;;  %v8642_v8 = vadd.f32 %v8625_v18, %v3144_v17  ;;  %v8662_v17 = vld [vmem:[%s6584_s3 + $0x60] sm:$0xff]  ;;  %v3241_v63 = vadd.f32 %v8247_v5, %v8358_v59  ;;  %v3275_v23 = vadd.f32 %v3259_v30, %v3239_v26 }
 0x950   : > { %v8633_v48 = vadd.f32 %v8576_v35, %v3142_v13  ;;  %10022 = vst [vmem:[#allocation11_spill] sm:$0xff] %v8650_v36  ;;  %v8665_v22 = vadd.f32 %v8662_v17, %v3145_v4  ;;  %v2962_v38 = vsel %vm2930_vm0, %v2914_v25, %v2946_v60  ;;  %v3243_v25 = vadd.f32 %v8247_v5, %v8523_v29 }
 0x951   : > { %3555 = vmax.xlane.f32.xlu1 %v8628_v57  ;;  %10021 = vst [vmem:[#allocation57_spill] sm:$0xff] %v8642_v8  ;;  %v8673_v57 = vld [vmem:[%s6584_s3 + $0x68] sm:$0xff]  ;;  %v3307_v59 = vmul.f32 0.2, %v3275_v23  ;;  %v3321_v30 = vsel %vm3289_vm1, %v3273_v3, %v3305_v39  ;;  %vm3291_vm5 = vcmp.gt.f32.partialorder %v3275_v23, 0.0  ;;  %v2880_v39 = vadd.f32 %v8219_v19, %v8527_v33 }
 0x952   : > { %10019 = vst [vmem:[#allocation48_spill] sm:$0xff] %v8633_v48  ;;  %v8638_v11 = vpop.permute.xlu1 %3386  ;;  %3583 = vmax.xlane.f32.xlu0 %v8633_v48  ;;  %10023 = vst [vmem:[#allocation13_spill] sm:$0xff] %v8665_v22  ;;  %v8676_v4 = vadd.f32 %v8673_v57, %v2962_v38  ;;  %v8716_v33 = vrot.slane %v8108_v24, %v9971_v34 }
 0x953   : > { %10020 = vst [vmem:[#allocation55_spill] sm:$0xff] %v8638_v11  ;;  %v3277_v11 = vadd.f32 %v3261_v40, %v3241_v63  ;;  %v3245_v63 = vadd.f32 %v8247_v5, %v8481_v58  ;;  %v8704_v58 = vrot.slane %v8209_v9, %v9971_v34 }
 0x955   : > { %3587 = vmax.xlane.f32.xlu1 %v8642_v8  ;;  %v3263_v8 = vmul.f32 %v8462_v31, %v8251_v14  ;;  %v3309_v40 = vmul.f32 0.2, %v3277_v11  ;;  %vm3293_vm6 = vcmp.gt.f32.partialorder %v3277_v11, 0.0 }
 0x956   : > { %3593 = vmax.xlane.f32.xlu0 %v8650_v36 }
 0x957   : > { %v2854_v42 = vpop.permute.xlu1 %2853  ;;  %v3279_v29 = vadd.f32 %v3263_v8, %v3243_v25  ;;  %v3267_v8 = vmul.f32 %v8584_v50, %v8251_v14 }
 0x958   : > { %v2879_v13 = vadd.f32 %v8219_v19, %v2854_v42 }
 0x959   : > { %vm3295_vm7 = vcmp.gt.f32.partialorder %v3279_v29, 0.0 }
 0x95a   : > { %v2915_v36 = vadd.f32 %v2899_v44, %v2879_v13  ;;  %3589 = vmax.xlane.f32.xlu0 %v8665_v22  ;;  %v3265_v44 = vmul.f32 %v8596_v1, %v8251_v14  ;;  %v8687_v13 = vadd.f32 %v8517_v54, %v3321_v30  ;;  %v3311_v30 = vmul.f32 0.2, %v3279_v29 }
 0x95c   : > { %v2947_v48 = vmul.f32 0.2, %v2915_v36  ;;  %v3223_v42 = vpop.permute.xlu1 %3222  ;;  %vm2931_vm4 = vcmp.gt.f32.partialorder %v2915_v36, 0.0  ;;  %10024 = vst [vmem:[#allocation15_spill] sm:$0xff] %v8687_v13  ;;  %v3281_v25 = vadd.f32 %v3265_v44, %v3245_v63  ;;  %v3417_v44 = vadd.f32 %v8716_v33, %v8221_v15 }
 0x95d   : > { %v3327_v24 = vsel %vm3295_vm7, %v3279_v29, %v3311_v30  ;;  %v3439_v63 = vmul.f32 %v8225_v41, %v8704_v58  ;;  %v3238_v15 = vadd.f32 %v8247_v5, %v8317_v6 }
 0x95e   : > { %3559 = vmax.xlane.f32.xlu0 %v8676_v4  ;;  %v2963_v26 = vsel %vm2931_vm4, %v2915_v36, %v2947_v48  ;;  %v3323_v48 = vsel %vm3291_vm5, %v3275_v23, %v3307_v59  ;;  %v8696_v36 = vld [vmem:[%s6584_s3 + $0xf8] sm:$0xff]  ;;  %v2897_v23 = vmul.f32 %v8596_v1, %v8215_v16  ;;  %vm3297_vm8 = vcmp.gt.f32.partialorder %v3281_v25, 0.0 }
 0x95f   : > { %v8682_v60 = vadd.f32 %v8647_v12, %v2963_v26  ;;  %v2900_v3 = vmul.f32 %v8696_v36, %v8215_v16  ;;  %v8711_v59 = vadd.f32 %v8364_v43, %v3323_v48  ;;  %v3247_v26 = vadd.f32 %v8247_v5, %v3223_v42 }
 0x960   : > { %v3437_v16 = vmul.f32 %v8261_v45, %v8704_v58  ;;  %v3258_v48 = vmul.f32 %v8439_v53, %v8251_v14  ;;  %v8738_v41 = vadd.f32 %v8533_v51, %v3327_v24 }
 0x961   : > { %v8691_v38 = vpop.permute.xlu1 %3406  ;;  %3561 = vmax.xlane.f32.xlu1 %v8682_v60  ;;  %v2916_v22 = vadd.f32 %v2900_v3, %v2880_v39  ;;  %v3419_v39 = vadd.f32 %v8716_v33, %v8253_v61  ;;  %v3441_v61 = vmul.f32 %v8434_v0, %v8704_v58 }
 0x962   : > { %10025 = vst [vmem:[#allocation63_spill] sm:$0xff] %v8691_v38  ;;  %3605 = vmax.xlane.f32.xlu0 %v8687_v13  ;;  %v3325_v13 = vsel %vm3293_vm6, %v3277_v11, %v3309_v40  ;;  %v3313_v11 = vmul.f32 0.2, %v3281_v25  ;;  %v3283_v40 = vadd.f32 %v3267_v8, %v3247_v26  ;;  %v3453_v29 = vadd.f32 %v3437_v16, %v3417_v44 }
 0x963   : > { %v8725_v42 = vadd.f32 %v8603_v47, %v3325_v13  ;;  %v2948_v45 = vmul.f32 0.2, %v2916_v22  ;;  %vm2932_vm10 = vcmp.gt.f32.partialorder %v2916_v22, 0.0  ;;  %v3240_v16 = vadd.f32 %v8247_v5, %v8304_v52 }
 0x964   : > { %v3315_v8 = vmul.f32 0.2, %v3283_v40  ;;  %v3329_v30 = vsel %vm3297_vm8, %v3281_v25, %v3313_v11  ;;  %vm3299_vm11 = vcmp.gt.f32.partialorder %v3283_v40, 0.0  ;;  %v3274_v44 = vadd.f32 %v3258_v48, %v3238_v15 }
 0x965   : > { %v2964_v24 = vsel %vm2932_vm10, %v2916_v22, %v2948_v45  ;;  %v8754_v11 = vadd.f32 %v8662_v17, %v3329_v30  ;;  %v3262_v52 = vmul.f32 %v8472_v28, %v8251_v14  ;;  %v8762_v22 = vld [vmem:[%s6584_s3 + $0x78] sm:$0xff]  ;;  %vm3469_vm13 = vcmp.gt.f32.partialorder %v3453_v29, 0.0 }
 0x966   : > { %v2844_v9 = vpop.permute.xlu1 %2843  ;;  %3609 = vmax.xlane.f32.xlu0 %v8711_v59  ;;  %v8765_v0 = vadd.f32 %v8762_v22, %v2964_v24  ;;  %v3306_v15 = vmul.f32 0.2, %v3274_v44  ;;  %vm3290_vm14 = vcmp.gt.f32.partialorder %v3274_v44, 0.0  ;;  %v3264_v30 = vmul.f32 %v8565_v27, %v8251_v14 }
 0x967   : > { %v2877_v38 = vadd.f32 %v8219_v19, %v2844_v9  ;;  %v3084_v19 = vmul.f32 %v8696_v36, %v8232_v46  ;;  %v3260_v9 = vmul.f32 %v8477_v37, %v8251_v14  ;;  %v3425_v24 = vadd.f32 %v8716_v33, %v8369_v10 }
 0x968   : > { %v3447_v10 = vmul.f32 %v8462_v31, %v8704_v58  ;;  %v10033_v31 = vld [vmem:[#allocation39_spill] sm:$0xff] }
 0x969   : > { %v2913_v34 = vadd.f32 %v2897_v23, %v2877_v38  ;;  %v3276_v48 = vadd.f32 %v3260_v9, %v3240_v16  ;;  %v3322_v16 = vsel %vm3290_vm14, %v3274_v44, %v3306_v15  ;;  %v3538_v15 = vpop.xlane.xlu0 %3537 }
 0x96a   : > { %3613 = vmax.xlane.f32.xlu0 %v8725_v42  ;;  %v8797_v44 = vadd.f32 %v8494_v21, %v3322_v16 }
 0x96b   : > { %v2945_v13 = vmul.f32 0.2, %v2913_v34  ;;  %v3043_v3 = vpop.permute.xlu1 %3042  ;;  %vm2929_vm9 = vcmp.gt.f32.partialorder %v2913_v34, 0.0  ;;  %vm3292_vm0 = vcmp.gt.f32.partialorder %v3276_v48, 0.0 }
 0x96c   : > { %v3064_v38 = vadd.f32 %v8236_v32, %v3043_v3  ;;  %v3331_v3 = vsel %vm3299_vm11, %v3283_v40, %v3315_v8 }
 0x96d   : > { %v2961_v23 = vsel %vm2929_vm9, %v2913_v34, %v2945_v13  ;;  %v3485_v34 = vmul.f32 0.2, %v3453_v29  ;;  %v3421_v13 = vadd.f32 %v8716_v33, %v8392_v2  ;;  %v3443_v2 = vmul.f32 %v8346_v56, %v8704_v58 }
 0x96e   : > { %v3100_v26 = vadd.f32 %v3084_v19, %v3064_v38  ;;  %3617 = vmax.xlane.f32.xlu0 %v8738_v41  ;;  %v8744_v6 = vadd.f32 %v8662_v17, %v2961_v23  ;;  %v3455_v19 = vadd.f32 %v3439_v63, %v3419_v39  ;;  %v3242_v63 = vadd.f32 %v8247_v5, %v8621_v49 }
 0x96f   : > { %v8773_v40 = vadd.f32 %v8647_v12, %v3331_v3  ;;  %v3423_v39 = vadd.f32 %v8716_v33, %v8371_v7  ;;  %v3457_v8 = vadd.f32 %v3441_v61, %v3421_v13  ;;  %v3501_v23 = vsel %vm3469_vm13, %v3453_v29, %v3485_v34  ;;  %v10027_v13 = vld [vmem:[#allocation30_spill] sm:$0xff] }
 0x970   : > { %v3132_v25 = vmul.f32 0.2, %v3100_v26  ;;  %3557 = vmax.xlane.f32.xlu1 %v8744_v6  ;;  %vm3116_vm12 = vcmp.gt.f32.partialorder %v3100_v26, 0.0  ;;  %v3487_v38 = vmul.f32 0.2, %v3455_v19  ;;  %vm3471_vm15 = vcmp.gt.f32.partialorder %v3455_v19, 0.0 }
 0x971   : > { %v3308_v56 = vmul.f32 0.2, %v3276_v48  ;;  %v3278_v9 = vadd.f32 %v3262_v52, %v3242_v63  ;;  %v3445_v7 = vmul.f32 %v8543_v20, %v8704_v58  ;;  %v8789_v29 = vadd.f32 %v8309_v55, %v3501_v23 }
 0x972   : > { %3621 = vmax.xlane.f32.xlu0 %v8754_v11  ;;  %v3148_v45 = vsel %vm3116_vm12, %v3100_v26, %v3132_v25  ;;  %v3244_v26 = vadd.f32 %v8247_v5, %v8386_v62  ;;  %v3459_v61 = vadd.f32 %v3443_v2, %v3423_v39  ;;  %v3489_v25 = vmul.f32 0.2, %v3457_v8 }
 0x973   : > { %v8781_v49 = vadd.f32 %v8762_v22, %v3148_v45  ;;  %10026 = vst [vmem:[#allocation64_spill] sm:$0xff] %v8789_v29  ;;  %v3503_v34 = vsel %vm3471_vm15, %v3455_v19, %v3487_v38  ;;  %v3268_v62 = vmul.f32 %v8696_v36, %v8251_v14  ;;  %vm3473_vm1 = vcmp.gt.f32.partialorder %v3457_v8, 0.0  ;;  %v10028_v19 = vld [vmem:[#allocation58_spill] sm:$0xff]  ;;  %v10030_v38 = vld [vmem:[#allocation43_spill] sm:$0xff] }
 0x974   : > { %3563 = vmax.xlane.f32.xlu1 %v8765_v0  ;;  %v3280_v20 = vadd.f32 %v3264_v30, %v3244_v26  ;;  %v3248_v55 = vadd.f32 %v8247_v5, %v10027_v13  ;;  %v3310_v3 = vmul.f32 0.2, %v3278_v9  ;;  %v3324_v52 = vsel %vm3292_vm0, %v3276_v48, %v3308_v56  ;;  %v10031_v30 = vld [vmem:[#allocation45_spill] sm:$0xff]  ;;  %v10032_v48 = vld [vmem:[#allocation28_spill] sm:$0xff] }
 0x975   : > { %v8805_v63 = vadd.f32 %v10028_v19, %v3503_v34  ;;  %vm3294_vm4 = vcmp.gt.f32.partialorder %v3278_v9, 0.0  ;;  %v3461_v45 = vadd.f32 %v3445_v7, %v3425_v24  ;;  %v3491_v2 = vmul.f32 0.2, %v3459_v61  ;;  %v10034_v7 = vld [vmem:[#allocation59_spill] sm:$0xff] }
 0x976   : > { %3625 = vmax.xlane.f32.xlu0 %v8773_v40  ;;  %v3427_v39 = vadd.f32 %v8716_v33, %v10030_v38  ;;  %v3505_v23 = vsel %vm3473_vm1, %v3457_v8, %v3489_v25  ;;  %v3438_v26 = vmul.f32 %v10031_v30, %v8704_v58  ;;  %v3418_v56 = vadd.f32 %v8716_v33, %v10032_v48  ;;  %v10035_v48 = vld [vmem:[#allocation60_spill] sm:$0xff] }
 0x977   : > { %10029 = vst [vmem:[#allocation30_spill] sm:$0xff] %v8805_v63  ;;  %v8815_v16 = vadd.f32 %v10033_v31, %v3324_v52  ;;  %vm3475_vm5 = vcmp.gt.f32.partialorder %v3459_v61, 0.0  ;;  %v3312_v34 = vmul.f32 0.2, %v3280_v20  ;;  %v3284_v13 = vadd.f32 %v3268_v62, %v3248_v55  ;;  %v10036_v52 = vld [vmem:[#allocation38_spill] sm:$0xff] }
 0x978   : > { %3595 = vmax.xlane.f32.xlu1 %v8781_v49  ;;  %v3663_v24 = vsub.f32 %v10034_v7, %v3538_v15  ;;  %v3326_v19 = vsel %vm3294_vm4, %v3278_v9, %v3310_v3  ;;  %v8820_v8 = vadd.f32 %v8517_v54, %v3505_v23  ;;  %vm3296_vm6 = vcmp.gt.f32.partialorder %v3280_v20, 0.0 }
 0x979   : > { %v3493_v25 = vmul.f32 0.2, %v3461_v45  ;;  %v3463_v38 = vadd.f32 %v3447_v10, %v3427_v39  ;;  %v3507_v30 = vsel %vm3475_vm5, %v3459_v61, %v3491_v2  ;;  %v8828_v62 = vadd.f32 %v8576_v35, %v3326_v19 }
 0x97a   : > { %3629 = vmax.xlane.f32.xlu0 %v8789_v29  ;;  %v3420_v29 = vadd.f32 %v8716_v33, %v10036_v52  ;;  %vm3477_vm7 = vcmp.gt.f32.partialorder %v3461_v45, 0.0  ;;  %v3454_v9 = vadd.f32 %v3438_v26, %v3418_v56  ;;  %v3316_v55 = vmul.f32 0.2, %v3284_v13  ;;  %v10037_v26 = vld [vmem:[#allocation35_spill] sm:$0xff] }
 0x97b   : > { %v3729_v54 = vmul.f32 1.442695, %v3663_v24  ;;  %v3328_v3 = vsel %vm3296_vm6, %v3280_v20, %v3312_v34  ;;  %v8832_v61 = vadd.f32 %v8364_v43, %v3507_v30  ;;  %vm3300_vm8 = vcmp.gt.f32.partialorder %v3284_v13, 0.0  ;;  %v3035_v34 = vpop.permute.xlu1 %3034  ;;  %v10038_v24 = vld [vmem:[#allocation32_spill] sm:$0xff] }
 0x97c   : > { %3607 = vmax.xlane.f32.xlu1 %v8797_v44  ;;  %v3495_v10 = vmul.f32 0.2, %v3463_v38  ;;  %v3509_v15 = vsel %vm3477_vm7, %v3461_v45, %v3493_v25  ;;  %v3442_v39 = vmul.f32 %v8439_v53, %v8704_v58  ;;  %v8838_v23 = vadd.f32 %v8625_v18, %v3328_v3  ;;  %v10040_v30 = vld [vmem:[#allocation44_spill] sm:$0xff] }
 0x97d   : > { %vm3479_vm9 = vcmp.gt.f32.partialorder %v3463_v38, 0.0  ;;  %v3422_v20 = vadd.f32 %v8716_v33, %v10037_v26  ;;  %v3486_v56 = vmul.f32 0.2, %v3454_v9  ;;  %5950 = vpow2.f32 %v3729_v54  ;;  %v8865_v54 = vpop.xlane.xlu0 %3569  ;;  %v10043_v3 = vld [vmem:[#allocation16_spill] sm:$0xff] }
 0x97e   : > { %3633 = vmax.xlane.f32.xlu0 %v8805_v63  ;;  %v3440_v63 = vmul.f32 %v10035_v48, %v8704_v58  ;;  %v3332_v43 = vsel %vm3300_vm8, %v3284_v13, %v3316_v55  ;;  %vm3470_vm10 = vcmp.gt.f32.partialorder %v3454_v9, 0.0  ;;  %v3511_v53 = vsel %vm3479_vm9, %v3463_v38, %v3495_v10  ;;  %v10041_v55 = vld [vmem:[#allocation47_spill] sm:$0xff] }
 0x97f   : > { %v8848_v45 = vadd.f32 %v8762_v22, %v3332_v43  ;;  %v3458_v7 = vadd.f32 %v3442_v39, %v3422_v20  ;;  %v3082_v19 = vmul.f32 %v10038_v24, %v8232_v46  ;;  %v3062_v13 = vadd.f32 %v8236_v32, %v3035_v34  ;;  %v10044_v39 = vld [vmem:[#allocation55_spill] sm:$0xff]  ;;  %v10046_v34 = vld [vmem:[#allocation62_spill] sm:$0xff] }
 0x980   : > { %3611 = vmax.xlane.f32.xlu1 %v8815_v16  ;;  %v3456_v2 = vadd.f32 %v3440_v63, %v3420_v29  ;;  %v8844_v29 = vadd.f32 %v8603_v47, %v3509_v15  ;;  %v3502_v25 = vsel %vm3470_vm10, %v3454_v9, %v3486_v56  ;;  %v8855_v47 = vadd.f32 %v8533_v51, %v3511_v53 }
 0x981   : > { %v3444_v38 = vmul.f32 %v8477_v37, %v8704_v58  ;;  %v8861_v48 = vadd.f32 %v10040_v30, %v3502_v25  ;;  %v3490_v52 = vmul.f32 0.2, %v3458_v7  ;;  %v3424_v46 = vadd.f32 %v8716_v33, %v10041_v55  ;;  %v8881_v43 = vpop.xlane.xlu0 %3601  ;;  %v3219_v25 = vpop.permute.xlu1 %3218 }
 0x982   : > { %3637 = vmax.xlane.f32.xlu0 %v8820_v8  ;;  %v3488_v63 = vmul.f32 0.2, %v3456_v2  ;;  %10039 = vst [vmem:[#allocation58_spill] sm:$0xff] %v8855_v47  ;;  %vm3472_vm11 = vcmp.gt.f32.partialorder %v3456_v2, 0.0  ;;  %v3098_v32 = vadd.f32 %v3082_v19, %v3062_v13  ;;  %vm3474_vm12 = vcmp.gt.f32.partialorder %v3458_v7, 0.0 }
 0x983   : > { %v3446_v37 = vmul.f32 %v8472_v28, %v8704_v58  ;;  %v3460_v15 = vadd.f32 %v3444_v38, %v3424_v46  ;;  %v3426_v26 = vadd.f32 %v8716_v33, %v10044_v39  ;;  %v3506_v20 = vsel %vm3474_vm12, %v3458_v7, %v3490_v52 }
 0x984   : > { %3615 = vmax.xlane.f32.xlu1 %v8828_v62  ;;  %v3504_v9 = vsel %vm3472_vm11, %v3456_v2, %v3488_v63  ;;  %v3130_v2 = vmul.f32 0.2, %v3098_v32  ;;  %vm3114_vm13 = vcmp.gt.f32.partialorder %v3098_v32, 0.0  ;;  %v3448_v56 = vmul.f32 %v8565_v27, %v8704_v58 }
 0x985   : > { %v8874_v10 = vadd.f32 %v10043_v3, %v3504_v9  ;;  %v8884_v28 = vadd.f32 %v8494_v21, %v3506_v20  ;;  %v3428_v53 = vadd.f32 %v8716_v33, %v10046_v34  ;;  %v3492_v63 = vmul.f32 0.2, %v3460_v15  ;;  %v8895_v55 = vpop.xlane.xlu0 %3597  ;;  %v10050_v34 = vld [vmem:[#allocation21_spill] sm:$0xff] }
 0x986   : > { %3641 = vmax.xlane.f32.xlu0 %v8832_v61  ;;  %v3462_v19 = vadd.f32 %v3446_v37, %v3426_v26  ;;  %v3146_v13 = vsel %vm3114_vm13, %v3098_v32, %v3130_v2  ;;  %vm3476_vm14 = vcmp.gt.f32.partialorder %v3460_v15, 0.0  ;;  %v3266_v7 = vmul.f32 %v10038_v24, %v8251_v14 }
 0x987   : > { %v8868_v51 = vpop.eup %5950  ;;  %10045 = vst [vmem:[#allocation45_spill] sm:$0xff] %v8884_v28  ;;  %v8892_v27 = vadd.f32 %v8673_v57, %v3146_v13  ;;  %v3464_v38 = vadd.f32 %v3448_v56, %v3428_v53  ;;  %v3246_v21 = vadd.f32 %v8247_v5, %v3219_v25  ;;  %v3508_v52 = vsel %vm3476_vm14, %v3460_v15, %v3492_v63  ;;  %v10052_v25 = vld [vmem:[#allocation19_spill] sm:$0xff] }
 0x988   : > { %3619 = vmax.xlane.f32.xlu1 %v8838_v23  ;;  %10042 = vst [vmem:[#allocation43_spill] sm:$0xff] %v8868_v51  ;;  %v3494_v30 = vmul.f32 0.2, %v3462_v19  ;;  %vm3478_vm15 = vcmp.gt.f32.partialorder %v3462_v19, 0.0  ;;  %v8899_v46 = vadd.f32 %v10033_v31, %v3508_v52  ;;  %v8909_v31 = vpop.permute.xlu1 %3402  ;;  %v10053_v52 = vld [vmem:[#allocation31_spill] sm:$0xff] }
 0x989   : > { %v3496_v32 = vmul.f32 0.2, %v3464_v38  ;;  %v3282_v9 = vadd.f32 %v3266_v7, %v3246_v21  ;;  %vm3480_vm0 = vcmp.gt.f32.partialorder %v3464_v38, 0.0  ;;  %v3536_v14 = vpop.xlane.xlu0 %3535 }
 0x98a   : > { %3645 = vmax.xlane.f32.xlu0 %v8844_v29  ;;  %10047 = vst [vmem:[#allocation28_spill] sm:$0xff] %v8899_v46  ;;  %v3510_v37 = vsel %vm3478_vm15, %v3462_v19, %v3494_v30  ;;  %v10051_v19 = vld [vmem:[#allocation53_spill] sm:$0xff] }
 0x98b   : > { %v8903_v3 = vadd.f32 %v8576_v35, %v3510_v37  ;;  %v3314_v5 = vmul.f32 0.2, %v3282_v9  ;;  %v3512_v15 = vsel %vm3480_vm0, %v3464_v38, %v3496_v32  ;;  %vm3298_vm1 = vcmp.gt.f32.partialorder %v3282_v9, 0.0 }
 0x98c   : > { %3627 = vmax.xlane.f32.xlu1 %v8848_v45  ;;  %v8907_v39 = vadd.f32 %v8625_v18, %v3512_v15  ;;  %v3662_v32 = vsub.f32 %v10053_v52, %v3536_v14 }
 0x98d   : > { %10048 = vst [vmem:[#allocation39_spill] sm:$0xff] %v8903_v3  ;;  %v3330_v26 = vsel %vm3298_vm1, %v3282_v9, %v3314_v5  ;;  %v3568_v2 = vpop.xlane.xlu0 %3567  ;;  %v10054_v9 = vld [vmem:[#allocation61_spill] sm:$0xff] }
 0x98e   : > { %3649 = vmax.xlane.f32.xlu0 %v8855_v47  ;;  %10049 = vst [vmem:[#allocation59_spill] sm:$0xff] %v8907_v39  ;;  %v8913_v20 = vadd.f32 %v8673_v57, %v3330_v26  ;;  %v3727_v26 = vmul.f32 1.442695, %v3662_v32 }
 0x990   : > { %3631 = vmax.xlane.f32.xlu1 %v8861_v48 }
 0x991   : > { %v3546_v35 = vpop.xlane.xlu0 %3545 }
 0x992   : > { %3857 = vadd.xlane.f32.xlu0 %v8868_v51  ;;  %v3667_v13 = vsub.f32 %v10051_v19, %v3546_v35 }
 0x994   : > { %3635 = vmax.xlane.f32.xlu1 %v8874_v10  ;;  %v3737_v30 = vmul.f32 1.442695, %v3667_v13 }
 0x995   : > { %v8924_v35 = vpop.xlane.xlu0 %3577 }
 0x998   : > { %3639 = vmax.xlane.f32.xlu1 %v8884_v28 }
 0x99c   : > { %3591 = vmax.xlane.f32.xlu1 %v8892_v27 }
 0x9a0   : > { %3643 = vmax.xlane.f32.xlu1 %v8899_v46 }
 0x9a4   : > { %3647 = vmax.xlane.f32.xlu1 %v8903_v3 }
 0x9a8   : > { %3651 = vmax.xlane.f32.xlu1 %v8907_v39 }
 0x9ab   : > { %v3534_v56 = vpop.xlane.xlu1 %3533 }
 0x9ac   : > { %v3661_v53 = vsub.f32 %v10050_v34, %v3534_v56  ;;  %3623 = vmax.xlane.f32.xlu1 %v8913_v20  ;;  %v10055_v56 = vld [vmem:[#allocation50_spill] sm:$0xff] }
 0x9ad   : > { %v3678_v34 = vsub.f32 %v10055_v56, %v3568_v2 }
 0x9ae   : > { %v3725_v63 = vmul.f32 1.442695, %v3661_v53 }
 0x9af   : > { %v3566_v18 = vpop.xlane.xlu1 %3565  ;;  %v3759_v14 = vmul.f32 1.442695, %v3678_v34 }
 0x9b0   : > { %5952 = vpow2.f32 %v3725_v63  ;;  %v3677_v7 = vsub.f32 %v10052_v25, %v3566_v18 }
 0x9b2   : > { %v3757_v38 = vmul.f32 1.442695, %v3677_v7 }
 0x9b3   : > { %v3540_v21 = vpop.xlane.xlu1 %3539 }
 0x9b4   : > { %5954 = vpow2.f32 %v3757_v38  ;;  %v3664_v37 = vsub.f32 %v10054_v9, %v3540_v21 }
 0x9b5   : > { %5956 = vpow2.f32 %v3737_v30  ;;  %v10060_v30 = vld [vmem:[#allocation18_spill] sm:$0xff] }
 0x9b6   : > { %v3731_v5 = vmul.f32 1.442695, %v3664_v37 }
 0x9b7   : > { %v8921_v15 = vpop.xlane.xlu1 %3571 }
 0x9b8   : > { %5958 = vpow2.f32 %v3731_v5  ;;  %v10062_v5 = vld [vmem:[#allocation54_spill] sm:$0xff] }
 0x9b9   : > { %5960 = vpow2.f32 %v3727_v26 }
 0x9ba   : > { %v8926_v53 = vpop.eup %5952  ;;  %5962 = vpow2.f32 %v3759_v14 }
 0x9bb   : > { %10056 = vst [vmem:[#allocation60_spill] sm:$0xff] %v8926_v53  ;;  %v8928_v63 = vpop.xlane.xlu1 %3603  ;;  %3853 = vadd.xlane.f32.xlu0 %v8926_v53 }
 0x9bd   : > { %v3544_v19 = vpop.xlane.xlu0 %3543 }
 0x9be   : > { %v8931_v13 = vpop.eup %5954 }
 0x9bf   : > { %10057 = vst [vmem:[#allocation38_spill] sm:$0xff] %v8931_v13  ;;  %v8933_v18 = vpop.xlane.xlu1 %3599  ;;  %3885 = vadd.xlane.f32.xlu0 %v8931_v13  ;;  %v8936_v2 = vpop.eup %5956 }
 0x9c0   : > { %10058 = vst [vmem:[#allocation35_spill] sm:$0xff] %v8936_v2 }
 0x9c2   : > { %v8938_v25 = vpop.eup %5958  ;;  %v8940_v7 = vpop.xlane.xlu0 %3575 }
 0x9c3   : > { %10059 = vst [vmem:[#allocation32_spill] sm:$0xff] %v8938_v25  ;;  %3859 = vadd.xlane.f32.xlu1 %v8938_v25  ;;  %v3542_v38 = vpop.xlane.xlu1 %3541  ;;  %3865 = vadd.xlane.f32.xlu0 %v8936_v2  ;;  %v8945_v52 = vpop.eup %5960  ;;  %v10064_v2 = vld [vmem:[#allocation36_spill] sm:$0xff] }
 0x9c4   : > { %v3665_v21 = vsub.f32 %v10060_v30, %v3542_v38  ;;  %10061 = vst [vmem:[#allocation44_spill] sm:$0xff] %v8945_v52  ;;  %v8951_v56 = vpop.eup %5962  ;;  %v3666_v13 = vsub.f32 %v10064_v2, %v3544_v19  ;;  %v10065_v38 = vld [vmem:[#allocation17_spill] sm:$0xff] }
 0x9c5   : > { %10063 = vst [vmem:[#allocation47_spill] sm:$0xff] %v8951_v56 }
 0x9c6   : > { %v3733_v32 = vmul.f32 1.442695, %v3665_v21  ;;  %v3735_v51 = vmul.f32 1.442695, %v3666_v13 }
 0x9c7   : > { %v8947_v9 = vpop.xlane.xlu1 %3573  ;;  %3855 = vadd.xlane.f32.xlu1 %v8945_v52  ;;  %v3554_v37 = vpop.xlane.xlu0 %3553 }
 0x9c8   : > { %5964 = vpow2.f32 %v3733_v32  ;;  %v3671_v26 = vsub.f32 %v10062_v5, %v3554_v37 }
 0x9ca   : > { %v3745_v34 = vmul.f32 1.442695, %v3671_v26  ;;  %v10068_v26 = vld [vmem:[#allocation25_spill] sm:$0xff] }
 0x9cb   : > { %v3548_v14 = vpop.xlane.xlu1 %3547  ;;  %3887 = vadd.xlane.f32.xlu1 %v8951_v56  ;;  %v8961_v32 = vpop.xlane.xlu0 %3585 }
 0x9cc   : > { %v3668_v30 = vsub.f32 %v10065_v38, %v3548_v14  ;;  %5966 = vpow2.f32 %v3745_v34 }
 0x9ce   : > { %v3739_v21 = vmul.f32 1.442695, %v3668_v30  ;;  %v10071_v30 = vld [vmem:[#allocation22_spill] sm:$0xff] }
 0x9cf   : > { %v8958_v52 = vpop.xlane.xlu1 %3579  ;;  %v3552_v14 = vpop.xlane.xlu0 %3551 }
 0x9d0   : > { %5968 = vpow2.f32 %v3739_v21  ;;  %v3670_v21 = vsub.f32 %v10071_v30, %v3552_v14 }
 0x9d1   : > { %5970 = vpow2.f32 %v3735_v51 }
 0x9d2   : > { %v8956_v39 = vpop.eup %5964 }
 0x9d3   : > { %10066 = vst [vmem:[#allocation16_spill] sm:$0xff] %v8956_v39  ;;  %3861 = vadd.xlane.f32.xlu0 %v8956_v39  ;;  %v10072_v39 = vld [vmem:[#allocation42_spill] sm:$0xff] }
 0x9d6   : > { %v3550_v37 = vpop.xlane.xlu1 %3549  ;;  %v8963_v5 = vpop.eup %5966 }
 0x9d7   : > { %10067 = vst [vmem:[#allocation55_spill] sm:$0xff] %v8963_v5  ;;  %v3669_v19 = vsub.f32 %v10068_v26, %v3550_v37  ;;  %3873 = vadd.xlane.f32.xlu0 %v8963_v5  ;;  %v3743_v26 = vmul.f32 1.442695, %v3670_v21 }
 0x9d9   : > { %v3741_v2 = vmul.f32 1.442695, %v3669_v19 }
 0x9da   : > { %v8967_v34 = vpop.eup %5968  ;;  %v8969_v13 = vpop.xlane.xlu1 %3581 }
 0x9db   : > { %10069 = vst [vmem:[#allocation62_spill] sm:$0xff] %v8967_v34  ;;  %5972 = vpow2.f32 %v3741_v2  ;;  %3867 = vadd.xlane.f32.xlu1 %v8967_v34  ;;  %v8972_v38 = vpop.eup %5970 }
 0x9dc   : > { %10070 = vst [vmem:[#allocation21_spill] sm:$0xff] %v8972_v38 }
 0x9de   : > { %v3556_v51 = vpop.xlane.xlu1 %3555 }
 0x9df   : > { %v3672_v56 = vsub.f32 %v10072_v39, %v3556_v51  ;;  %3863 = vadd.xlane.f32.xlu1 %v8972_v38  ;;  %v8980_v2 = vpop.xlane.xlu0 %3583 }
 0x9e1   : > { %v3747_v37 = vmul.f32 1.442695, %v3672_v56 }
 0x9e2   : > { %v8982_v5 = vpop.xlane.xlu1 %3587 }
 0x9e3   : > { %5974 = vpow2.f32 %v3747_v37  ;;  %v8988_v14 = vpop.xlane.xlu0 %3593 }
 0x9e4   : > { %5976 = vpow2.f32 %v3743_v26 }
 0x9e5   : > { %v8977_v19 = vpop.eup %5972 }
 0x9e6   : > { %10073 = vst [vmem:[#allocation53_spill] sm:$0xff] %v8977_v19  ;;  %3869 = vadd.xlane.f32.xlu0 %v8977_v19 }
 0x9e7   : > { %v8993_v30 = vpop.xlane.xlu0 %3589 }
 0x9eb   : > { %v3560_v21 = vpop.xlane.xlu0 %3559 }
 0x9ec   : > { %v3674_v25 = vsub.f32 %v8676_v4, %v3560_v21  ;;  %v3450_v4 = vmul.f32 %v10038_v24, %v8704_v58 }
 0x9ed   : > { %v8984_v34 = vpop.eup %5974 }
 0x9ee   : > { %10074 = vst [vmem:[#allocation19_spill] sm:$0xff] %v8984_v34  ;;  %v3562_v53 = vpop.xlane.xlu1 %3561  ;;  %3875 = vadd.xlane.f32.xlu1 %v8984_v34  ;;  %v8990_v56 = vpop.eup %5976 }
 0x9ef   : > { %v3675_v39 = vsub.f32 %v8682_v60, %v3562_v53  ;;  %10075 = vst [vmem:[#allocation31_spill] sm:$0xff] %v8990_v56  ;;  %v3449_v60 = vmul.f32 %v8596_v1, %v8704_v58  ;;  %v10077_v53 = vld [vmem:[#allocation26_spill] sm:$0xff]  ;;  %v9006_v3 = vpop.xlane.xlu0 %3605  ;;  %v3751_v1 = vmul.f32 1.442695, %v3674_v25 }
 0x9f0   : > { %v3429_v34 = vadd.f32 %v8716_v33, %v10077_v53 }
 0x9f1   : > { %v3753_v51 = vmul.f32 1.442695, %v3675_v39 }
 0x9f2   : > { %3871 = vadd.xlane.f32.xlu1 %v8990_v56  ;;  %v10078_v56 = vld [vmem:[#allocation51_spill] sm:$0xff] }
 0x9f3   : > { %5978 = vpow2.f32 %v3753_v51  ;;  %v3679_v51 = vsub.f32 %v10078_v56, %v8865_v54  ;;  %v10079_v54 = vld [vmem:[#allocation63_spill] sm:$0xff] }
 0x9f4   : > { %v3431_v56 = vadd.f32 %v8716_v33, %v10079_v54 }
 0x9f5   : > { %v3761_v46 = vmul.f32 1.442695, %v3679_v51 }
 0x9fd   : > { %v8995_v37 = vpop.eup %5978  ;;  %v3558_v26 = vpop.xlane.xlu1 %3557 }
 0x9fe   : > { %10076 = vst [vmem:[#allocation61_spill] sm:$0xff] %v8995_v37  ;;  %v3673_v19 = vsub.f32 %v8744_v6, %v3558_v26  ;;  %3881 = vadd.xlane.f32.xlu0 %v8995_v37  ;;  %v3465_v26 = vadd.f32 %v3449_v60, %v3429_v34  ;;  %v9019_v34 = vpop.xlane.xlu0 %3609 }
 0xa00   : > { %v3749_v39 = vmul.f32 1.442695, %v3673_v19  ;;  %v3451_v19 = vmul.f32 %v8584_v50, %v8704_v58  ;;  %v3497_v53 = vmul.f32 0.2, %v3465_v26  ;;  %vm3481_vm4 = vcmp.gt.f32.partialorder %v3465_v26, 0.0  ;;  %v10081_v50 = vld [vmem:[#allocation40_spill] sm:$0xff] }
 0xa01   : > { %v3564_v38 = vpop.xlane.xlu1 %3563 }
 0xa02   : > { %5980 = vpow2.f32 %v3749_v39  ;;  %v3676_v6 = vsub.f32 %v8765_v0, %v3564_v38  ;;  %v3430_v0 = vadd.f32 %v8716_v33, %v8909_v31  ;;  %v10080_v38 = vld [vmem:[#allocation34_spill] sm:$0xff]  ;;  %v3467_v39 = vadd.f32 %v3451_v19, %v3431_v56 }
 0xa03   : > { %v3680_v25 = vsub.f32 %v10080_v38, %v8921_v15  ;;  %v3513_v51 = vsel %vm3481_vm4, %v3465_v26, %v3497_v53  ;;  %v9034_v38 = vpop.xlane.xlu0 %3613  ;;  %v10083_v26 = vld [vmem:[#allocation24_spill] sm:$0xff] }
 0xa04   : > { %v3755_v37 = vmul.f32 1.442695, %v3676_v6  ;;  %v3466_v24 = vadd.f32 %v3450_v4, %v3430_v0  ;;  %v9037_v47 = vadd.f32 %v8662_v17, %v3513_v51  ;;  %v3432_v19 = vadd.f32 %v8716_v33, %v10083_v26  ;;  %v10084_v4 = vld [vmem:[#allocation29_spill] sm:$0xff] }
 0xa05   : > { %v9009_v28 = vpop.xlane.xlu1 %3595  ;;  %v3763_v6 = vmul.f32 1.442695, %v3680_v25  ;;  %v3499_v53 = vmul.f32 0.2, %v3467_v39  ;;  %vm3483_vm5 = vcmp.gt.f32.partialorder %v3467_v39, 0.0 }
 0xa06   : > { %5982 = vpow2.f32 %v3755_v37  ;;  %v3681_v37 = vsub.f32 %v10081_v50, %v8947_v9  ;;  %v3498_v56 = vmul.f32 0.2, %v3466_v24  ;;  %vm3482_vm6 = vcmp.gt.f32.partialorder %v3466_v24, 0.0 }
 0xa07   : > { %5984 = vpow2.f32 %v3761_v46  ;;  %v10082_v46 = vld [vmem:[#allocation52_spill] sm:$0xff] }
 0xa08   : > { %5986 = vpow2.f32 %v3751_v1  ;;  %v3683_v15 = vsub.f32 %v10082_v46, %v8924_v35  ;;  %v3765_v54 = vmul.f32 1.442695, %v3681_v37  ;;  %v3452_v1 = vmul.f32 %v8696_v36, %v8704_v58  ;;  %v10085_v36 = vld [vmem:[#allocation33_spill] sm:$0xff]  ;;  %v9057_v37 = vpop.xlane.xlu0 %3617  ;;  %v10086_v46 = vld [vmem:[#allocation27_spill] sm:$0xff] }
 0xa09   : > { %v9023_v21 = vpop.xlane.xlu1 %3607  ;;  %5988 = vpow2.f32 %v3763_v6  ;;  %v3682_v35 = vsub.f32 %v10084_v4, %v8940_v7  ;;  %v3685_v58 = vsub.f32 %v10085_v36, %v8969_v13  ;;  %v3515_v7 = vsel %vm3483_vm5, %v3467_v39, %v3499_v53  ;;  %v10087_v13 = vld [vmem:[#allocation12_spill] sm:$0xff] }
 0xa0a   : > { %v3769_v17 = vmul.f32 1.442695, %v3683_v15  ;;  %5990 = vpow2.f32 %v3765_v54  ;;  %v3468_v50 = vadd.f32 %v3452_v1, %v3432_v19  ;;  %v3514_v51 = vsel %vm3482_vm6, %v3466_v24, %v3498_v56  ;;  %v10088_v19 = vld [vmem:[#allocation48_spill] sm:$0xff] }
 0xa0b   : > { %v3767_v6 = vmul.f32 1.442695, %v3682_v35  ;;  %v3687_v26 = vsub.f32 %v10086_v46, %v8961_v32  ;;  %v3684_v15 = vsub.f32 %v10087_v13, %v8958_v52  ;;  %v3773_v54 = vmul.f32 1.442695, %v3685_v58 }
 0xa0c   : > { %v9027_v60 = vpop.eup %5980  ;;  %5992 = vpow2.f32 %v3769_v17  ;;  %v9068_v1 = vadd.f32 %v8647_v12, %v3515_v7  ;;  %v9071_v39 = vadd.f32 %v8673_v57, %v3514_v51  ;;  %v3500_v24 = vmul.f32 0.2, %v3468_v50  ;;  %v10089_v12 = vld [vmem:[#allocation13_spill] sm:$0xff]  ;;  %v9081_v57 = vpop.xlane.xlu0 %3621 }
 0xa0d   : > { %v9029_v31 = vpop.xlane.xlu1 %3611  ;;  %3877 = vadd.xlane.f32.xlu0 %v9027_v60  ;;  %5994 = vpow2.f32 %v3767_v6  ;;  %v3777_v32 = vmul.f32 1.442695, %v3687_v26  ;;  %v3686_v53 = vsub.f32 %v10088_v19, %v8980_v2  ;;  %vm3484_vm7 = vcmp.gt.f32.partialorder %v3468_v50, 0.0  ;;  %v10090_v7 = vld [vmem:[#allocation57_spill] sm:$0xff] }
 0xa0e   : > { %v3771_v52 = vmul.f32 1.442695, %v3684_v15  ;;  %5996 = vpow2.f32 %v3773_v54  ;;  %v3689_v35 = vsub.f32 %v10089_v12, %v8993_v30  ;;  %v3516_v58 = vsel %vm3484_vm7, %v3468_v50, %v3500_v24  ;;  %v10091_v30 = vld [vmem:[#allocation11_spill] sm:$0xff]  ;;  %v10092_v24 = vld [vmem:[#allocation49_spill] sm:$0xff] }
 0xa0f   : > { %5998 = vpow2.f32 %v3777_v32  ;;  %v3775_v2 = vmul.f32 1.442695, %v3686_v53  ;;  %v3688_v51 = vsub.f32 %v10090_v7, %v8982_v5  ;;  %v3691_v46 = vsub.f32 %v10091_v30, %v8988_v14  ;;  %v10093_v53 = vld [vmem:[#allocation56_spill] sm:$0xff] }
 0xa10   : > { %v9039_v9 = vpop.eup %5982  ;;  %6000 = vpow2.f32 %v3771_v52  ;;  %v3781_v26 = vmul.f32 1.442695, %v3689_v35  ;;  %v9096_v13 = vadd.f32 %v8762_v22, %v3516_v58  ;;  %v9100_v15 = vpop.xlane.xlu0 %3625  ;;  %v3693_v32 = vsub.f32 %v10092_v24, %v8895_v55 }
 0xa11   : > { %v9047_v0 = vpop.xlane.xlu1 %3615  ;;  %3653 = vmax.xlane.f32.xlu0 %v9037_v47  ;;  %3883 = vadd.xlane.f32.xlu1 %v9039_v9  ;;  %v9053_v33 = vpop.eup %5984  ;;  %6002 = vpow2.f32 %v3775_v2  ;;  %v3779_v5 = vmul.f32 1.442695, %v3688_v51  ;;  %v3785_v14 = vmul.f32 1.442695, %v3691_v46  ;;  %v3695_v52 = vsub.f32 %v10093_v53, %v8881_v43  ;;  %v10094_v51 = vld [vmem:[#allocation15_spill] sm:$0xff] }
 0xa12   : > { %v9055_v25 = vpop.eup %5986  ;;  %6004 = vpow2.f32 %v3781_v26  ;;  %v3789_v35 = vmul.f32 1.442695, %v3693_v32  ;;  %v3697_v30 = vsub.f32 %v10094_v51, %v9006_v3  ;;  %v3692_v46 = vsub.f32 %v8781_v49, %v9009_v28  ;;  %v10095_v3 = vld [vmem:[#allocation14_spill] sm:$0xff]  ;;  %v10096_v51 = vld [vmem:[#allocation20_spill] sm:$0xff] }
 0xa13   : > { %v9083_v17 = vpop.eup %5988  ;;  %6006 = vpow2.f32 %v3779_v5  ;;  %v3793_v7 = vmul.f32 1.442695, %v3695_v52  ;;  %v3694_v53 = vsub.f32 %v10095_v3, %v8933_v18  ;;  %v3699_v49 = vsub.f32 %v8711_v59, %v9019_v34 }
 0xa14   : > { %v9085_v36 = vpop.eup %5990  ;;  %6008 = vpow2.f32 %v3785_v14  ;;  %v9118_v58 = vpop.xlane.xlu0 %3629  ;;  %v3797_v52 = vmul.f32 1.442695, %v3697_v30  ;;  %v3787_v28 = vmul.f32 1.442695, %v3692_v46  ;;  %v3701_v59 = vsub.f32 %v8725_v42, %v9034_v38 }
 0xa15   : > { %v9061_v4 = vpop.xlane.xlu1 %3619  ;;  %3889 = vadd.xlane.f32.xlu0 %v9053_v33  ;;  %3879 = vadd.xlane.f32.xlu1 %v9055_v25  ;;  %6010 = vpow2.f32 %v3789_v35  ;;  %v3801_v30 = vmul.f32 1.442695, %v3699_v49  ;;  %v3698_v3 = vsub.f32 %v8797_v44, %v9023_v21  ;;  %v3700_v44 = vsub.f32 %v8815_v16, %v9029_v31 }
 0xa16   : > { %v9098_v50 = vpop.eup %5992  ;;  %6012 = vpow2.f32 %v3793_v7  ;;  %v3696_v7 = vsub.f32 %v10096_v51, %v8928_v63  ;;  %v3703_v63 = vsub.f32 %v8738_v41, %v9057_v37  ;;  %v3702_v16 = vsub.f32 %v8828_v62, %v9047_v0 }
 0xa17   : > { %v9108_v19 = vpop.eup %5994  ;;  %v3799_v41 = vmul.f32 1.442695, %v3698_v3 }
 0xa18   : > { %v9110_v22 = vpop.eup %5996  ;;  %v9135_v32 = vpop.xlane.xlu0 %3633  ;;  %v3809_v49 = vmul.f32 1.442695, %v3703_v63  ;;  %v3704_v63 = vsub.f32 %v8838_v23, %v9061_v4 }
 0xa19   : > { %v9075_v56 = vpop.xlane.xlu1 %3627  ;;  %3657 = vmax.xlane.f32.xlu0 %v9068_v1  ;;  %3655 = vmax.xlane.f32.xlu1 %v9071_v39  ;;  %v9120_v55 = vpop.eup %5998 }
 0xa1a   : > { %v9122_v2 = vpop.eup %6000 }
 0xa1b   : > { %v9131_v5 = vpop.eup %6002 }
 0xa1c   : > { %v9133_v24 = vpop.eup %6004  ;;  %v9155_v34 = vpop.xlane.xlu0 %3637 }
 0xa1d   : > { %v9089_v6 = vpop.xlane.xlu1 %3631  ;;  %3893 = vadd.xlane.f32.xlu0 %v9085_v36  ;;  %3891 = vadd.xlane.f32.xlu1 %v9083_v17 }
 0xa21   : > { %v9102_v54 = vpop.xlane.xlu1 %3635  ;;  %3897 = vadd.xlane.f32.xlu0 %v9098_v50  ;;  %3659 = vmax.xlane.f32.xlu1 %v9096_v13 }
 0xa25   : > { %v9114_v12 = vpop.xlane.xlu1 %3639  ;;  %3901 = vadd.xlane.f32.xlu0 %v9110_v22  ;;  %3895 = vadd.xlane.f32.xlu1 %v9108_v19 }
 0xa29   : > { %v3592_v43 = vpop.xlane.xlu1 %3591  ;;  %3905 = vadd.xlane.f32.xlu0 %v9120_v55  ;;  %3899 = vadd.xlane.f32.xlu1 %v9122_v2 }
 0xa2a   : > { %v3690_v26 = vsub.f32 %v8892_v27, %v3592_v43  ;;  %v9143_v27 = vpop.eup %6006  ;;  %v3791_v43 = vmul.f32 1.442695, %v3694_v53 }
 0xa2b   : > { %v9145_v35 = vpop.eup %6008 }
 0xa2c   : > { %v3783_v14 = vmul.f32 1.442695, %v3690_v26  ;;  %v9157_v46 = vpop.eup %6010  ;;  %v3795_v26 = vmul.f32 1.442695, %v3696_v7  ;;  %v3707_v7 = vsub.f32 %v8773_v40, %v9100_v15  ;;  %v10097_v40 = vld [vmem:[#allocation64_spill] sm:$0xff] }
 0xa2d   : > { %3909 = vadd.xlane.f32.xlu0 %v9133_v24  ;;  %3903 = vadd.xlane.f32.xlu1 %v9131_v5  ;;  %v9149_v18 = vpop.xlane.xlu1 %3643  ;;  %v9164_v53 = vpop.eup %6012  ;;  %v3709_v15 = vsub.f32 %v10097_v40, %v9118_v58  ;;  %v10098_v58 = vld [vmem:[#allocation30_spill] sm:$0xff] }
 0xa2e   : > { %6014 = vpow2.f32 %v3783_v14  ;;  %v3805_v14 = vmul.f32 1.442695, %v3701_v59  ;;  %v3817_v59 = vmul.f32 1.442695, %v3707_v7 }
 0xa2f   : > { %6016 = vpow2.f32 %v3797_v52  ;;  %v3642_v52 = vpop.xlane.xlu0 %3641 }
 0xa30   : > { %6018 = vpow2.f32 %v3787_v28  ;;  %v3705_v28 = vsub.f32 %v8754_v11, %v9081_v57  ;;  %v3803_v11 = vmul.f32 1.442695, %v3700_v44  ;;  %v3713_v44 = vsub.f32 %v8820_v8, %v9155_v34 }
 0xa31   : > { %3913 = vadd.xlane.f32.xlu0 %v9145_v35  ;;  %3907 = vadd.xlane.f32.xlu1 %v9143_v27  ;;  %6020 = vpow2.f32 %v3791_v43  ;;  %v9166_v42 = vpop.xlane.xlu1 %3647  ;;  %v3715_v7 = vsub.f32 %v8832_v61, %v3642_v52 }
 0xa32   : > { %6022 = vpow2.f32 %v3801_v30  ;;  %v3813_v51 = vmul.f32 1.442695, %v3705_v28  ;;  %v3711_v28 = vsub.f32 %v10098_v58, %v9135_v32  ;;  %v3708_v32 = vsub.f32 %v8848_v45, %v9075_v56 }
 0xa33   : > { %6024 = vpow2.f32 %v3795_v26  ;;  %v3646_v31 = vpop.xlane.xlu0 %3645  ;;  %v3807_v26 = vmul.f32 1.442695, %v3702_v16  ;;  %v3829_v40 = vmul.f32 1.442695, %v3713_v44  ;;  %v3833_v34 = vmul.f32 1.442695, %v3715_v7 }
 0xa34   : > { %6026 = vpow2.f32 %v3805_v14  ;;  %v3819_v61 = vmul.f32 1.442695, %v3708_v32  ;;  %v3710_v45 = vsub.f32 %v8861_v48, %v9089_v6  ;;  %v3712_v48 = vsub.f32 %v8874_v10, %v9102_v54  ;;  %v10100_v54 = vld [vmem:[#allocation45_spill] sm:$0xff] }
 0xa35   : > { %3917 = vadd.xlane.f32.xlu0 %v9157_v46  ;;  %6028 = vpow2.f32 %v3809_v49  ;;  %v9182_v43 = vpop.xlane.xlu1 %3651  ;;  %v3821_v49 = vmul.f32 1.442695, %v3709_v15 }
 0xa36   : > { %6030 = vpow2.f32 %v3799_v41  ;;  %v3811_v41 = vmul.f32 1.442695, %v3704_v63  ;;  %v3827_v10 = vmul.f32 1.442695, %v3712_v48 }
 0xa37   : > { %6032 = vpow2.f32 %v3813_v51  ;;  %v9202_v3 = vpop.xlane.xlu0 %3649 }
 0xa38   : > { %v9168_v38 = vpop.eup %6014  ;;  %6034 = vpow2.f32 %v3803_v11  ;;  %v3825_v11 = vmul.f32 1.442695, %v3711_v28 }
 0xa39   : > { %3921 = vadd.xlane.f32.xlu0 %v9164_v53  ;;  %3911 = vadd.xlane.f32.xlu1 %v9168_v38  ;;  %v9176_v21 = vpop.eup %6016  ;;  %v3624_v0 = vpop.xlane.xlu1 %3623  ;;  %6036 = vpow2.f32 %v3817_v59 }
 0xa3a   : > { %v9178_v37 = vpop.eup %6018  ;;  %6038 = vpow2.f32 %v3807_v26  ;;  %v3706_v23 = vsub.f32 %v8913_v20, %v3624_v0  ;;  %v3717_v26 = vsub.f32 %v8844_v29, %v3646_v31  ;;  %v3823_v0 = vmul.f32 1.442695, %v3710_v45  ;;  %v10099_v31 = vld [vmem:[#allocation58_spill] sm:$0xff] }
 0xa3b   : > { %v9188_v57 = vpop.eup %6020  ;;  %6040 = vpow2.f32 %v3821_v49  ;;  %v3858_v20 = vpop.xlane.xlu0 %3857 }
 0xa3c   : > { %v9190_v30 = vpop.eup %6022  ;;  %6042 = vpow2.f32 %v3811_v41  ;;  %v3815_v16 = vmul.f32 1.442695, %v3706_v23  ;;  %v3837_v58 = vmul.f32 1.442695, %v3717_v26  ;;  %v3719_v41 = vsub.f32 %v10099_v31, %v9202_v3 }
 0xa3d   : > { %3915 = vadd.xlane.f32.xlu1 %v9178_v37  ;;  %3925 = vadd.xlane.f32.xlu0 %v9176_v21  ;;  %v9198_v62 = vpop.eup %6024  ;;  %6044 = vpow2.f32 %v3825_v11  ;;  %v3714_v23 = vsub.f32 %v10100_v54, %v9114_v12  ;;  %v10102_v12 = vld [vmem:[#allocation28_spill] sm:$0xff] }
 0xa3e   : > { %v9200_v14 = vpop.eup %6026  ;;  %6046 = vpow2.f32 %v3815_v16  ;;  %v3841_v3 = vmul.f32 1.442695, %v3719_v41  ;;  %v10106_v41 = vld [vmem:[#allocation44_spill] sm:$0xff] }
 0xa3f   : > { %v9209_v4 = vpop.eup %6028  ;;  %6048 = vpow2.f32 %v3829_v40  ;;  %v3831_v16 = vmul.f32 1.442695, %v3714_v23  ;;  %v3716_v40 = vsub.f32 %v10102_v12, %v9149_v18  ;;  %v10107_v23 = vld [vmem:[#allocation59_spill] sm:$0xff] }
 0xa40   : > { %v9213_v51 = vpop.eup %6030  ;;  %6050 = vpow2.f32 %v3833_v34 }
 0xa41   : > { %3919 = vadd.xlane.f32.xlu1 %v9188_v57  ;;  %3929 = vadd.xlane.f32.xlu0 %v9190_v30  ;;  %v9220_v59 = vpop.eup %6032  ;;  %6052 = vpow2.f32 %v3819_v61  ;;  %v3835_v26 = vmul.f32 1.442695, %v3716_v40 }
 0xa42   : > { %v9222_v8 = vpop.eup %6034 }
 0xa43   : > { %v9228_v52 = vpop.eup %6036 }
 0xa44   : > { %v9230_v15 = vpop.eup %6038 }
 0xa45   : > { %3923 = vadd.xlane.f32.xlu1 %v9198_v62  ;;  %3933 = vadd.xlane.f32.xlu0 %v9200_v14  ;;  %v9237_v6 = vpop.eup %6040 }
 0xa46   : > { %v9239_v49 = vpop.eup %6042 }
 0xa47   : > { %v9247_v44 = vpop.eup %6044 }
 0xa48   : > { %v3854_v56 = vpop.xlane.xlu0 %3853  ;;  %v9249_v7 = vpop.eup %6046 }
 0xa49   : > { %3927 = vadd.xlane.f32.xlu1 %v9213_v51  ;;  %3937 = vadd.xlane.f32.xlu0 %v9209_v4  ;;  %6054 = vrcp.f32 %v3854_v56  ;;  %v9251_v32 = vpop.eup %6048 }
 0xa4c   : > { %v3886_v28 = vpop.xlane.xlu0 %3885 }
 0xa4d   : > { %3931 = vadd.xlane.f32.xlu1 %v9222_v8  ;;  %3941 = vadd.xlane.f32.xlu0 %v9220_v59 }
 0xa50   : > { %v3860_v63 = vpop.xlane.xlu1 %3859 }
 0xa51   : > { %3935 = vadd.xlane.f32.xlu1 %v9230_v15  ;;  %3945 = vadd.xlane.f32.xlu0 %v9228_v52  ;;  %6056 = vrcp.f32 %v3860_v63  ;;  %v10103_v63 = vld [vmem:[#allocation39_spill] sm:$0xff] }
 0xa52   : > { %6058 = vrcp.f32 %v3858_v20  ;;  %v9255_v20 = vpop.eup %6050 }
 0xa53   : > { %10101 = vst [vmem:[#allocation50_spill] sm:$0xff] %v9255_v20  ;;  %v9259_v34 = vpop.eup %6052 }
 0xa54   : > { %v3856_v29 = vpop.xlane.xlu1 %3855  ;;  %v6055_v61 = vpop.eup %6054 }
 0xa55   : > { %6060 = vrcp.f32 %v3856_v29  ;;  %3939 = vadd.xlane.f32.xlu1 %v9239_v49  ;;  %3949 = vadd.xlane.f32.xlu0 %v9237_v6  ;;  %v10105_v29 = vld [vmem:[#allocation60_spill] sm:$0xff] }
 0xa56   : > { %6062 = vpow2.f32 %v3823_v0  ;;  %v3718_v0 = vsub.f32 %v10103_v63, %v9166_v42  ;;  %v4045_v31 = vmul.f32 %v6055_v61, %v10105_v29  ;;  %v10109_v42 = vld [vmem:[#allocation43_spill] sm:$0xff]  ;;  %v3866_v61 = vpop.xlane.xlu0 %3865 }
 0xa57   : > { %6064 = vrcp.f32 %v3886_v28  ;;  %v10104_v28 = vld [vmem:[#allocation32_spill] sm:$0xff] }
 0xa58   : > { %6066 = vpow2.f32 %v3837_v58  ;;  %v3888_v11 = vpop.xlane.xlu1 %3887  ;;  %v3839_v12 = vmul.f32 1.442695, %v3718_v0 }
 0xa59   : > { %6068 = vrcp.f32 %v3888_v11  ;;  %3943 = vadd.xlane.f32.xlu1 %v9249_v7  ;;  %3953 = vadd.xlane.f32.xlu0 %v9247_v44  ;;  %v3720_v11 = vsub.f32 %v10107_v23, %v9182_v43  ;;  %v10111_v43 = vld [vmem:[#allocation47_spill] sm:$0xff] }
 0xa5a   : > { %6070 = vpow2.f32 %v3827_v10 }
 0xa5b   : > { %v6057_v45 = vpop.eup %6056  ;;  %6072 = vpow2.f32 %v3841_v3  ;;  %v3843_v23 = vmul.f32 1.442695, %v3720_v11 }
 0xa5c   : > { %v6059_v56 = vpop.eup %6058  ;;  %6074 = vpow2.f32 %v3831_v16  ;;  %v4048_v18 = vmul.f32 %v6057_v45, %v10104_v28  ;;  %v10110_v28 = vld [vmem:[#allocation38_spill] sm:$0xff] }
 0xa5d   : > { %3947 = vadd.xlane.f32.xlu1 %v9259_v34  ;;  %3957 = vadd.xlane.f32.xlu0 %v9251_v32  ;;  %v4047_v16 = vmul.f32 %v6059_v56, %v10109_v42  ;;  %6076 = vpow2.f32 %v3835_v26 }
 0xa5e   : > { %6078 = vpow2.f32 %v3839_v12 }
 0xa5f   : > { %v6061_v48 = vpop.eup %6060  ;;  %6080 = vpow2.f32 %v3843_v23 }
 0xa60   : > { %v9265_v58 = vpop.eup %6062  ;;  %v4046_v10 = vmul.f32 %v6061_v48, %v10106_v41  ;;  %v4110_v48 = vpack.c.bf16 %v4048_v18, %v4047_v16  ;;  %v3862_v18 = vpop.xlane.xlu0 %3861 }
 0xa61   : > { %v6065_v54 = vpop.eup %6064  ;;  %3951 = vadd.xlane.f32.xlu1 %v9265_v58  ;;  %3961 = vadd.xlane.f32.xlu0 %v9255_v20 }
 0xa62   : > { %v9274_v3 = vpop.eup %6066  ;;  %v4109_v40 = vpack.c.bf16 %v4046_v10, %v4045_v31  ;;  %v9280_v29 = vmul.f32 %v6065_v54, %v10110_v28  ;;  %v10117_v28 = vld [vmem:[#allocation62_spill] sm:$0xff] }
 0xa63   : > { %10108 = vst [vmem:[#allocation18_spill] sm:$0xff] %v9274_v3  ;;  %v6069_v45 = vpop.eup %6068 }
 0xa64   : > { %v9277_v63 = vpop.eup %6070  ;;  %5374 = vmatprep.mubr.bf16.mxu1 %v4109_v40  ;;  %v9283_v41 = vmul.f32 %v6069_v45, %v10111_v43 }
 0xa65   : > { %3955 = vadd.xlane.f32.xlu1 %v9277_v63  ;;  %3965 = vadd.xlane.f32.xlu0 %v9274_v3  ;;  %v9289_v26 = vpop.eup %6072 }
 0xa66   : > { %5375 = vmatmul.mubr.bf16.vlgmr.msra.gmra.mrb[36].mxu1 %v4110_v48  ;;  %10112 = vst [vmem:[#allocation54_spill] sm:$0xff] %v9289_v26  ;;  %v9291_v0 = vpop.eup %6074  ;;  %v3874_v48 = vpop.xlane.xlu0 %3873 }
 0xa67   : > { %10113 = vst [vmem:[#allocation36_spill] sm:$0xff] %v9291_v0  ;;  %v9295_v10 = vpop.eup %6076 }
 0xa68   : > { %v3868_v31 = vpop.xlane.xlu1 %3867  ;;  %10114 = vst [vmem:[#allocation17_spill] sm:$0xff] %v9295_v10  ;;  %v9298_v11 = vpop.eup %6078 }
 0xa69   : > { %3959 = vadd.xlane.f32.xlu1 %v9291_v0  ;;  %3969 = vadd.xlane.f32.xlu0 %v9289_v26  ;;  %6082 = vrcp.f32 %v3868_v31  ;;  %10115 = vst [vmem:[#allocation25_spill] sm:$0xff] %v9298_v11  ;;  %v9301_v42 = vpop.eup %6080 }
 0xa6a   : > { %6084 = vrcp.f32 %v3862_v18  ;;  %10116 = vst [vmem:[#allocation22_spill] sm:$0xff] %v9301_v42  ;;  %v10119_v18 = vld [vmem:[#allocation21_spill] sm:$0xff] }
 0xa6b   : > { %6086 = vrcp.f32 %v3866_v61  ;;  %v10118_v61 = vld [vmem:[#allocation16_spill] sm:$0xff] }
 0xa6c   : > { %v3864_v54 = vpop.xlane.xlu1 %3863 }
 0xa6d   : > { %6088 = vrcp.f32 %v3864_v54  ;;  %3963 = vadd.xlane.f32.xlu1 %v9295_v10  ;;  %v10120_v54 = vld [vmem:[#allocation35_spill] sm:$0xff] }
 0xa71   : > { %3967 = vadd.xlane.f32.xlu1 %v9298_v11 }
 0xa73   : > { %v6083_v16 = vpop.eup %6082  ;;  %v3870_v3 = vpop.xlane.xlu0 %3869 }
 0xa74   : > { %v6085_v12 = vpop.eup %6084  ;;  %v4052_v43 = vmul.f32 %v6083_v16, %v10117_v28 }
 0xa75   : > { %3971 = vadd.xlane.f32.xlu1 %v9301_v42  ;;  %v6087_v40 = vpop.eup %6086  ;;  %v4049_v23 = vmul.f32 %v6085_v12, %v10118_v61  ;;  %v10121_v12 = vld [vmem:[#allocation19_spill] sm:$0xff] }
 0xa76   : > { %v4051_v56 = vmul.f32 %v6087_v40, %v10120_v54  ;;  %v10123_v40 = vld [vmem:[#allocation31_spill] sm:$0xff] }
 0xa77   : > { %v6089_v45 = vpop.eup %6088 }
 0xa78   : > { %v4050_v31 = vmul.f32 %v6089_v45, %v10119_v18  ;;  %v4112_v10 = vpack.c.bf16 %v4052_v43, %v4051_v56  ;;  %v10122_v45 = vld [vmem:[#allocation53_spill] sm:$0xff] }
 0xa7a   : > { %v4111_v26 = vpack.c.bf16 %v4050_v31, %v4049_v23  ;;  %v10124_v31 = vld [vmem:[#allocation55_spill] sm:$0xff] }
 0xa7b   : > { %v3876_v11 = vpop.xlane.xlu1 %3875 }
 0xa7c   : > { %5378 = vmatprep.mubr.bf16.mxu1 %v4111_v26  ;;  %6090 = vrcp.f32 %v3876_v11 }
 0xa7d   : > { %5379 = vmatmul.mubr.bf16.gmra.mrb[40].mxu1 %v4112_v10  ;;  %6092 = vrcp.f32 %v3870_v3 }
 0xa7e   : > { %6094 = vrcp.f32 %v3874_v48 }
 0xa7f   : > { %v3872_v42 = vpop.xlane.xlu1 %3871 }
 0xa80   : > { %6096 = vrcp.f32 %v3872_v42 }
 0xa86   : > { %v6091_v20 = vpop.eup %6090 }
 0xa87   : > { %v6093_v0 = vpop.eup %6092  ;;  %v4056_v61 = vmul.f32 %v6091_v20, %v10121_v12 }
 0xa88   : > { %v6095_v16 = vpop.eup %6094  ;;  %v4053_v18 = vmul.f32 %v6093_v0, %v10122_v45 }
 0xa89   : > { %v4055_v54 = vmul.f32 %v6095_v16, %v10124_v31 }
 0xa8a   : > { %v6097_v28 = vpop.eup %6096 }
 0xa8b   : > { %v4054_v23 = vmul.f32 %v6097_v28, %v10123_v40  ;;  %v4114_v26 = vpack.c.bf16 %v4056_v61, %v4055_v54  ;;  %v3882_v3 = vpop.xlane.xlu0 %3881 }
 0xa8c   : > { %6098 = vrcp.f32 %v3882_v3 }
 0xa8d   : > { %v4113_v56 = vpack.c.bf16 %v4054_v23, %v4053_v18 }
 0xa8f   : > { %5382 = vmatprep.mubr.bf16.mxu1 %v4113_v56 }
 0xa90   : > { %5383 = vmatmul.mubr.bf16.gmra.mrb[44].mxu1 %v4114_v26 }
 0xa96   : > { %v6099_v40 = vpop.eup %6098 }
 0xa9a   : > { %v3878_v10 = vpop.xlane.xlu0 %3877 }
 0xa9e   : > { %v3884_v11 = vpop.xlane.xlu1 %3883  ;;  %v3654_v42 = vpop.xlane.xlu0 %3653 }
 0xa9f   : > { %v3721_v48 = vsub.f32 %v9037_v47, %v3654_v42  ;;  %6100 = vrcp.f32 %v3884_v11 }
 0xaa0   : > { %6102 = vrcp.f32 %v3878_v10 }
 0xaa1   : > { %v3845_v43 = vmul.f32 1.442695, %v3721_v48  ;;  %v10125_v48 = vld [vmem:[#allocation61_spill] sm:$0xff] }
 0xaa2   : > { %v3880_v20 = vpop.xlane.xlu1 %3879  ;;  %v3890_v0 = vpop.xlane.xlu0 %3889 }
 0xaa3   : > { %6104 = vpow2.f32 %v3845_v43  ;;  %v4059_v43 = vmul.f32 %v6099_v40, %v10125_v48 }
 0xaa4   : > { %6106 = vrcp.f32 %v3880_v20 }
 0xaa5   : > { %6108 = vrcp.f32 %v3890_v0 }
 0xaa6   : > { %v3656_v28 = vpop.xlane.xlu1 %3655  ;;  %v3658_v16 = vpop.xlane.xlu0 %3657 }
 0xaa7   : > { %v3722_v12 = vsub.f32 %v9071_v39, %v3656_v28  ;;  %v3723_v61 = vsub.f32 %v9068_v1, %v3658_v16 }
 0xaa9   : > { %v3847_v45 = vmul.f32 1.442695, %v3722_v12  ;;  %v3849_v18 = vmul.f32 1.442695, %v3723_v61  ;;  %v6101_v31 = vpop.eup %6100 }
 0xaaa   : > { %v3892_v23 = vpop.xlane.xlu1 %3891  ;;  %v3894_v47 = vpop.xlane.xlu0 %3893  ;;  %v4060_v1 = vmul.f32 %v6101_v31, %v9039_v9 }
 0xaab   : > { %6110 = vpow2.f32 %v3847_v45  ;;  %v6103_v54 = vpop.eup %6102 }
 0xaac   : > { %6112 = vpow2.f32 %v3849_v18  ;;  %v4057_v11 = vmul.f32 %v6103_v54, %v9027_v60  ;;  %v4116_v12 = vpack.c.bf16 %v4060_v1, %v4059_v43  ;;  %v10126_v60 = vpack.c.bf16 %v9283_v41, %v9280_v29 }
 0xaad   : > { %v9315_v56 = vpop.eup %6104  ;;  %6114 = vrcp.f32 %v3892_v23 }
 0xaae   : > { %v6107_v26 = vpop.eup %6106  ;;  %v3660_v3 = vpop.xlane.xlu1 %3659  ;;  %3973 = vadd.xlane.f32.xlu0 %v9315_v56  ;;  %6116 = vrcp.f32 %v3894_v47 }
 0xaaf   : > { %v3898_v39 = vpop.xlane.xlu0 %3897  ;;  %v3724_v10 = vsub.f32 %v9096_v13, %v3660_v3  ;;  %v4058_v42 = vmul.f32 %v6107_v26, %v9055_v25  ;;  %v6109_v61 = vpop.eup %6108 }
 0xab0   : > { %v4063_v40 = vmul.f32 %v6109_v61, %v9053_v33 }
 0xab1   : > { %v3851_v20 = vmul.f32 1.442695, %v3724_v10  ;;  %v4115_v0 = vpack.c.bf16 %v4058_v42, %v4057_v11 }
 0xab2   : > { %v3896_v28 = vpop.xlane.xlu1 %3895 }
 0xab3   : > { %v3902_v16 = vpop.xlane.xlu0 %3901  ;;  %6118 = vpow2.f32 %v3851_v20  ;;  %5386 = vmatprep.mubr.bf16.mxu1 %v4115_v0 }
 0xab4   : > { %6120 = vrcp.f32 %v3896_v28  ;;  %5387 = vmatmul.mubr.bf16.gmra.mrb[48].mxu1 %v4116_v12 }
 0xab5   : > { %v9323_v9 = vpop.eup %6110  ;;  %6122 = vrcp.f32 %v3898_v39  ;;  %5390 = vmatprep.mubr.bf16.mxu1 %v10126_v60 }
 0xab6   : > { %v9328_v25 = vpop.eup %6112  ;;  %3975 = vadd.xlane.f32.xlu1 %v9323_v9  ;;  %v3900_v13 = vpop.xlane.xlu1 %3899 }
 0xab7   : > { %v3906_v45 = vpop.xlane.xlu0 %3905  ;;  %v6115_v18 = vpop.eup %6114  ;;  %6124 = vrcp.f32 %v3900_v13  ;;  %3977 = vadd.xlane.f32.xlu0 %v9328_v25 }
 0xab8   : > { %v4064_v23 = vmul.f32 %v6115_v18, %v9083_v17  ;;  %6126 = vrcp.f32 %v3902_v16  ;;  %v6117_v29 = vpop.eup %6116 }
 0xab9   : > { %v4065_v33 = vmul.f32 %v6117_v29, %v9085_v36 }
 0xaba   : > { %v3904_v47 = vpop.xlane.xlu1 %3903  ;;  %v4118_v54 = vpack.c.bf16 %v4064_v23, %v4063_v40 }
 0xabb   : > { %v3910_v31 = vpop.xlane.xlu0 %3909  ;;  %6128 = vrcp.f32 %v3904_v47 }
 0xabc   : > { %5391 = vmatmul.mubr.bf16.gmra.mrb[52].mxu1 %v4118_v54  ;;  %6130 = vrcp.f32 %v3906_v45  ;;  %v227_v45 = vld [vmem:[%s6584_s3 + $0x188] sm:$0xff]  ;;  %v10127_v54 = vmov 1  }
 0xabd   : > { %v9334_v41 = vpop.eup %6118 }
 0xabe   : > { %v6121_v26 = vpop.eup %6120  ;;  %3979 = vadd.xlane.f32.xlu1 %v9334_v41  ;;  %v3908_v3 = vpop.xlane.xlu1 %3907 }
 0xabf   : > { %v3914_v39 = vpop.xlane.xlu0 %3913  ;;  %v6123_v1 = vpop.eup %6122  ;;  %6132 = vrcp.f32 %v3908_v3  ;;  %v4066_v17 = vmul.f32 %v6121_v26, %v9108_v19 }
 0xac0   : > { %v4067_v48 = vmul.f32 %v6123_v1, %v9098_v50  ;;  %6134 = vrcp.f32 %v3910_v31 }
 0xac1   : > { %v6125_v10 = vpop.eup %6124  ;;  %v4119_v11 = vpack.c.bf16 %v4066_v17, %v4065_v33 }
 0xac2   : > { %v4068_v43 = vmul.f32 %v6125_v10, %v9122_v2  ;;  %v6127_v20 = vpop.eup %6126 }
 0xac3   : > { %v3918_v42 = vpop.xlane.xlu0 %3917  ;;  %5394 = vmatprep.mubr.bf16.mxu1 %v4119_v11  ;;  %v4069_v36 = vmul.f32 %v6127_v20, %v9110_v22 }
 0xac4   : > { %v4120_v0 = vpack.c.bf16 %v4068_v43, %v4067_v48 }
 0xac5   : > { %v6129_v28 = vpop.eup %6128 }
 0xac6   : > { %v3912_v16 = vpop.xlane.xlu1 %3911  ;;  %5395 = vmatmul.mubr.bf16.gmra.mrb[56].mxu1 %v4120_v0  ;;  %v4070_v19 = vmul.f32 %v6129_v28, %v9131_v5  ;;  %v6131_v61 = vpop.eup %6130 }
 0xac7   : > { %v3922_v12 = vpop.xlane.xlu0 %3921  ;;  %6136 = vrcp.f32 %v3912_v16  ;;  %v4071_v18 = vmul.f32 %v6131_v61, %v9120_v55 }
 0xac8   : > { %v4121_v60 = vpack.c.bf16 %v4070_v19, %v4069_v36  ;;  %6138 = vrcp.f32 %v3914_v39 }
 0xac9   : > { %v6133_v13 = vpop.eup %6132 }
 0xaca   : > { %v3916_v50 = vpop.xlane.xlu1 %3915  ;;  %5398 = vmatprep.mubr.bf16.mxu1 %v4121_v60  ;;  %v4072_v40 = vmul.f32 %v6133_v13, %v9143_v27  ;;  %v6135_v47 = vpop.eup %6134 }
 0xacb   : > { %v3926_v2 = vpop.xlane.xlu0 %3925  ;;  %6140 = vrcp.f32 %v3916_v50  ;;  %v4073_v55 = vmul.f32 %v6135_v47, %v9133_v24 }
 0xacc   : > { %v4122_v23 = vpack.c.bf16 %v4072_v40, %v4071_v18  ;;  %6142 = vrcp.f32 %v3918_v42 }
 0xacd   : > { %4710 = vperm.xlu0 %5657, %v227_v45  }
 0xace   : > { %v3920_v22 = vpop.xlane.xlu1 %3919  ;;  %5399 = vmatmul.mubr.bf16.gmra.mrb[60].mxu1 %v4122_v23 }
 0xacf   : > { %v3930_v5 = vpop.xlane.xlu0 %3929  ;;  %6144 = vrcp.f32 %v3920_v22  ;;  %4762 = vperm.xlu1 %5660, %v227_v45  }
 0xad0   : > { %6146 = vrcp.f32 %v3922_v12 }
 0xad1   : > { %v6137_v31 = vpop.eup %6136  ;;  %5661 = vset.pattern.permute.xlu0 %v10127_v54 }
 0xad2   : > { %v3924_v29 = vpop.xlane.xlu1 %3923  ;;  %v4074_v27 = vmul.f32 %v6137_v31, %v9168_v38  ;;  %v6139_v3 = vpop.eup %6138 }
 0xad3   : > { %v3934_v26 = vpop.xlane.xlu0 %3933  ;;  %6148 = vrcp.f32 %v3924_v29  ;;  %v4075_v10 = vmul.f32 %v6139_v3, %v9145_v35 }
 0xad4   : > { %v4123_v39 = vpack.c.bf16 %v4074_v27, %v4073_v55  ;;  %6150 = vrcp.f32 %v3926_v2 }
 0xad5   : > { %v6141_v1 = vpop.eup %6140 }
 0xad6   : > { %v3928_v33 = vpop.xlane.xlu1 %3927  ;;  %5402 = vmatprep.mubr.bf16.mxu1 %v4123_v39  ;;  %v4076_v11 = vmul.f32 %v6141_v1, %v9178_v37  ;;  %v6143_v42 = vpop.eup %6142 }
 0xad7   : > { %v3938_v17 = vpop.xlane.xlu0 %3937  ;;  %6152 = vrcp.f32 %v3928_v33  ;;  %v4077_v20 = vmul.f32 %v6143_v42, %v9157_v46 }
 0xad8   : > { %v4124_v48 = vpack.c.bf16 %v4076_v11, %v4075_v10  ;;  %6154 = vrcp.f32 %v3930_v5 }
 0xad9   : > { %v6145_v43 = vpop.eup %6144 }
 0xada   : > { %v3932_v24 = vpop.xlane.xlu1 %3931  ;;  %5403 = vmatmul.mubr.bf16.gmra.mrb[64].mxu1 %v4124_v48  ;;  %v4078_v0 = vmul.f32 %v6145_v43, %v9188_v57  ;;  %v6147_v28 = vpop.eup %6146 }
 0xadb   : > { %v3942_v38 = vpop.xlane.xlu0 %3941  ;;  %6156 = vrcp.f32 %v3932_v24  ;;  %v4079_v36 = vmul.f32 %v6147_v28, %v9164_v53 }
 0xadc   : > { %v4125_v16 = vpack.c.bf16 %v4078_v0, %v4077_v20  ;;  %6158 = vrcp.f32 %v3934_v26 }
 0xadd   : > { %v6149_v12 = vpop.eup %6148 }
 0xade   : > { %v3936_v35 = vpop.xlane.xlu1 %3935  ;;  %5406 = vmatprep.mubr.bf16.mxu1 %v4125_v16  ;;  %v4080_v19 = vmul.f32 %v6149_v12, %v9198_v62  ;;  %v6151_v61 = vpop.eup %6150 }
 0xadf   : > { %v3946_v37 = vpop.xlane.xlu0 %3945  ;;  %6160 = vrcp.f32 %v3936_v35  ;;  %v4081_v50 = vmul.f32 %v6151_v61, %v9176_v21 }
 0xae0   : > { %v4126_v60 = vpack.c.bf16 %v4080_v19, %v4079_v36  ;;  %6162 = vrcp.f32 %v3938_v17 }
 0xae1   : > { %v6153_v13 = vpop.eup %6152 }
 0xae2   : > { %v3940_v46 = vpop.xlane.xlu1 %3939  ;;  %5407 = vmatmul.mubr.bf16.gmra.mrb[68].mxu1 %v4126_v60  ;;  %v4082_v2 = vmul.f32 %v6153_v13, %v9213_v51  ;;  %v6155_v45 = vpop.eup %6154  ;;  %v10128_v13 = vld [vmem:[#allocation36_spill] sm:$0xff] }
 0xae3   : > { %v3950_v57 = vpop.xlane.xlu0 %3949  ;;  %6164 = vrcp.f32 %v3940_v46  ;;  %v4083_v23 = vmul.f32 %v6155_v45, %v9190_v30  ;;  %v10129_v45 = vld [vmem:[#allocation50_spill] sm:$0xff] }
 0xae4   : > { %v4127_v18 = vpack.c.bf16 %v4082_v2, %v4081_v50  ;;  %6166 = vrcp.f32 %v3942_v38 }
 0xae5   : > { %v6157_v40 = vpop.eup %6156 }
 0xae6   : > { %v3944_v53 = vpop.xlane.xlu1 %3943  ;;  %5410 = vmatprep.mubr.bf16.mxu1 %v4127_v18  ;;  %v4084_v22 = vmul.f32 %v6157_v40, %v9222_v8  ;;  %v6159_v5 = vpop.eup %6158  ;;  %v10130_v18 = vld [vmem:[#allocation17_spill] sm:$0xff] }
 0xae7   : > { %v3954_v62 = vpop.xlane.xlu0 %3953  ;;  %6168 = vrcp.f32 %v3944_v53  ;;  %v4085_v51 = vmul.f32 %v6159_v5, %v9200_v14  ;;  %v10132_v5 = vld [vmem:[#allocation25_spill] sm:$0xff] }
 0xae8   : > { %v4128_v47 = vpack.c.bf16 %v4084_v22, %v4083_v23  ;;  %6170 = vrcp.f32 %v3946_v37  ;;  %v10131_v23 = vld [vmem:[#allocation18_spill] sm:$0xff] }
 0xae9   : > { %v6161_v31 = vpop.eup %6160 }
 0xaea   : > { %v3948_v21 = vpop.xlane.xlu1 %3947  ;;  %5411 = vmatmul.mubr.bf16.gmra.mrb[72].mxu1 %v4128_v47  ;;  %v4086_v54 = vmul.f32 %v6161_v31, %v9230_v15  ;;  %v6163_v29 = vpop.eup %6162 }
 0xaeb   : > { %6172 = vrcp.f32 %v3948_v21  ;;  %v3958_v26 = vpop.xlane.xlu0 %3957  ;;  %v4087_v8 = vmul.f32 %v6163_v29, %v9209_v4  ;;  %v10134_v29 = vld [vmem:[#allocation22_spill] sm:$0xff] }
 0xaec   : > { %v4129_v55 = vpack.c.bf16 %v4086_v54, %v4085_v51  ;;  %6174 = vrcp.f32 %v3950_v57  ;;  %v10133_v51 = vld [vmem:[#allocation54_spill] sm:$0xff] }
 0xaed   : > { %v6165_v27 = vpop.eup %6164 }
 0xaee   : > { %v3952_v30 = vpop.xlane.xlu1 %3951  ;;  %5414 = vmatprep.mubr.bf16.mxu1 %v4129_v55  ;;  %v4088_v3 = vmul.f32 %v6165_v27, %v9239_v49  ;;  %v6167_v39 = vpop.eup %6166 }
 0xaef   : > { %6176 = vrcp.f32 %v3952_v30  ;;  %v3962_v14 = vpop.xlane.xlu0 %3961  ;;  %v4089_v15 = vmul.f32 %v6167_v39, %v9220_v59 }
 0xaf0   : > { %v4130_v1 = vpack.c.bf16 %v4088_v3, %v4087_v8  ;;  %6178 = vrcp.f32 %v3954_v62 }
 0xaf1   : > { %v6169_v33 = vpop.eup %6168 }
 0xaf2   : > { %v3956_v17 = vpop.xlane.xlu1 %3955  ;;  %5415 = vmatmul.mubr.bf16.gmra.mrb[76].mxu1 %v4130_v1  ;;  %v4090_v10 = vmul.f32 %v6169_v33, %v9249_v7  ;;  %v6171_v11 = vpop.eup %6170 }
 0xaf3   : > { %6180 = vrcp.f32 %v3956_v17  ;;  %v4091_v49 = vmul.f32 %v6171_v11, %v9228_v52  ;;  %v3966_v38 = vpop.xlane.xlu0 %3965 }
 0xaf4   : > { %v4131_v42 = vpack.c.bf16 %v4090_v10, %v4089_v15  ;;  %6182 = vrcp.f32 %v3958_v26 }
 0xaf5   : > { %v6173_v48 = vpop.eup %6172 }
 0xaf6   : > { %v3960_v4 = vpop.xlane.xlu1 %3959  ;;  %5418 = vmatprep.mubr.bf16.mxu1 %v4131_v42  ;;  %v4092_v43 = vmul.f32 %v6173_v48, %v9259_v34  ;;  %v6175_v24 = vpop.eup %6174 }
 0xaf7   : > { %6184 = vrcp.f32 %v3960_v4  ;;  %v4093_v7 = vmul.f32 %v6175_v24, %v9237_v6  ;;  %v3970_v52 = vpop.xlane.xlu0 %3969 }
 0xaf8   : > { %v4132_v20 = vpack.c.bf16 %v4092_v43, %v4091_v49  ;;  %6186 = vrcp.f32 %v3962_v14 }
 0xaf9   : > { %v6177_v0 = vpop.eup %6176 }
 0xafa   : > { %v3964_v59 = vpop.xlane.xlu1 %3963  ;;  %5419 = vmatmul.mubr.bf16.gmra.mrb[80].mxu1 %v4132_v20  ;;  %v4094_v28 = vmul.f32 %v6177_v0, %v9265_v58  ;;  %v6179_v16 = vpop.eup %6178 }
 0xafb   : > { %6188 = vrcp.f32 %v3964_v59  ;;  %v4095_v34 = vmul.f32 %v6179_v16, %v9247_v44 }
 0xafc   : > { %v4133_v12 = vpack.c.bf16 %v4094_v28, %v4093_v7  ;;  %6190 = vrcp.f32 %v3966_v38  ;;  %v10135_v7 = vmov 0.0  }
 0xafd   : > { %v6181_v35 = vpop.eup %6180 }
 0xafe   : > { %v3968_v37 = vpop.xlane.xlu1 %3967  ;;  %5422 = vmatprep.mubr.bf16.mxu1 %v4133_v12  ;;  %v4096_v36 = vmul.f32 %v6181_v35, %v9277_v63  ;;  %v6183_v19 = vpop.eup %6182 }
 0xaff   : > { %6192 = vrcp.f32 %v3968_v37  ;;  %v4097_v58 = vmul.f32 %v6183_v19, %v9251_v32 }
 0xb00   : > { %v4134_v61 = vpack.c.bf16 %v4096_v36, %v4095_v34  ;;  %6194 = vrcp.f32 %v3970_v52  ;;  %v10136_v36 = vld [vmem:[#allocation41_spill] sm:$0xff] }
 0xb01   : > { %v6185_v60 = vpop.eup %6184 }
 0xb02   : > { %v3972_v6 = vpop.xlane.xlu1 %3971  ;;  %5423 = vmatmul.mubr.bf16.gmra.mrb[84].mxu1 %v4134_v61  ;;  %v4098_v46 = vmul.f32 %v6185_v60, %v10128_v13  ;;  %v6187_v57 = vpop.eup %6186  ;;  %v10137_v61 = vld [vmem:[#allocation23_spill] sm:$0xff] }
 0xb03   : > { %6196 = vrcp.f32 %v3972_v6  ;;  %v4099_v44 = vmul.f32 %v6187_v57, %v10129_v45 }
 0xb04   : > { %v4135_v50 = vpack.c.bf16 %v4098_v46, %v4097_v58 }
 0xb05   : > { %v6189_v2 = vpop.eup %6188 }
 0xb06   : > { %5426 = vmatprep.mubr.bf16.mxu1 %v4135_v50  ;;  %v4100_v63 = vmul.f32 %v6189_v2, %v10130_v18  ;;  %v6191_v40 = vpop.eup %6190 }
 0xb07   : > { %v4101_v22 = vmul.f32 %v6191_v40, %v10131_v23 }
 0xb08   : > { %v4136_v53 = vpack.c.bf16 %v4100_v63, %v4099_v44 }
 0xb09   : > { %v6193_v62 = vpop.eup %6192 }
 0xb0a   : > { %5427 = vmatmul.mubr.bf16.gmra.mrb[88].mxu1 %v4136_v53  ;;  %v4102_v47 = vmul.f32 %v6193_v62, %v10132_v5  ;;  %v6195_v32 = vpop.eup %6194 }
 0xb0b   : > { %v4103_v54 = vmul.f32 %v6195_v32, %v10133_v51 }
 0xb0c   : > { %v4137_v31 = vpack.c.bf16 %v4102_v47, %v4101_v22 }
 0xb0d   : > { %v6197_v21 = vpop.eup %6196 }
 0xb0e   : > { %5430 = vmatprep.mubr.bf16.mxu1 %v4137_v31  ;;  %v4104_v26 = vmul.f32 %v6197_v21, %v10134_v29 }
 0xb10   : > { %v4138_v55 = vpack.c.bf16 %v4104_v26, %v4103_v54 }
 0xb12   : > { %5431 = vmatmul.mubr.bf16.gmra.mrb[92].mxu1 %v4138_v55 }
 0xb39   : > { %v5376_v27 = vpop.f32.mrb[36].mxu1 }
 0xb3a   : > { %v4175_v30 = vpop.f32.mrb[37].mxu1  ;;  %v4432_v19 = vmul.f32 %v5376_v27, %v10136_v36 }
 0xb3b   : > { %v5377_v8 = vpop.f32.mrb[38].mxu1  ;;  %v3974_v39 = vpop.xlane.xlu0 %3973 }
 0xb3c   : > { %v4178_v3 = vpop.f32.mrb[39].mxu1  ;;  %6198 = vrcp.f32 %v3974_v39  ;;  %v4433_v13 = vmul.f32 %v5377_v8, %v10136_v36 }
 0xb3d   : > { %v4431_v2 = vmul.f32 %v4178_v3, %v10136_v36 }
 0xb43   : > { %v3976_v1 = vpop.xlane.xlu1 %3975 }
 0xb44   : > { %6200 = vrcp.f32 %v3976_v1  ;;  %v3978_v33 = vpop.xlane.xlu0 %3977 }
 0xb45   : > { %6202 = vrcp.f32 %v3978_v33 }
 0xb46   : > { %v6199_v17 = vpop.eup %6198 }
 0xb47   : > { %v4105_v10 = vmul.f32 %v6199_v17, %v9315_v56 }
 0xb4b   : > { %v3980_v14 = vpop.xlane.xlu1 %3979 }
 0xb4c   : > { %6204 = vrcp.f32 %v3980_v14 }
 0xb4e   : > { %v6201_v15 = vpop.eup %6200 }
 0xb4f   : > { %v4106_v11 = vmul.f32 %v6201_v15, %v9323_v9  ;;  %v6203_v24 = vpop.eup %6202 }
 0xb50   : > { %v5380_v42 = vpop.f32.mrb[40].mxu1  ;;  %v4107_v20 = vmul.f32 %v6203_v24, %v9328_v25 }
 0xb51   : > { %v4191_v48 = vpop.f32.mrb[41].mxu1  ;;  %v4139_v4 = vpack.c.bf16 %v4106_v11, %v4105_v10  ;;  %v4436_v53 = vmul.f32 %v5380_v42, %v10136_v36 }
 0xb52   : > { %v5381_v49 = vpop.f32.mrb[42].mxu1  ;;  %v4434_v22 = vmul.f32 %v4191_v48, %v10136_v36 }
 0xb53   : > { %v4194_v43 = vpop.f32.mrb[43].mxu1  ;;  %5434 = vmatprep.mubr.bf16.mxu1 %v4139_v4  ;;  %v4437_v32 = vmul.f32 %v5381_v49, %v10136_v36 }
 0xb54   : > { %v4435_v54 = vmul.f32 %v4194_v43, %v10136_v36 }
 0xb56   : > { %v6205_v38 = vpop.eup %6204 }
 0xb57   : > { %v4108_v0 = vmul.f32 %v6205_v38, %v9334_v41  ;;  %v4430_v41 = vmul.f32 %v4175_v30, %v10136_v36 }
 0xb59   : > { %v4140_v59 = vpack.c.bf16 %v4108_v0, %v4107_v20 }
 0xb5b   : > { %5435 = vmatmul.mubr.bf16.gmra.mrb[96].mxu1 %v4140_v59 }
 0xb5c   : > { %5454 = vmatprep.mubr.msk.bf16.mxu1 %vm6414_vm2, %v10135_v7 }
 0xb63   : > { %v5384_v56 = vpop.f32.mrb[44].mxu1 }
 0xb64   : > { %v4207_v28 = vpop.f32.mrb[45].mxu1  ;;  %v4440_v8 = vmul.f32 %v5384_v56, %v10136_v36 }
 0xb65   : > { %v5385_v9 = vpop.f32.mrb[46].mxu1  ;;  %v4438_v1 = vmul.f32 %v4207_v28, %v10136_v36 }
 0xb66   : > { %v4210_v16 = vpop.f32.mrb[47].mxu1  ;;  %v4441_v17 = vmul.f32 %v5385_v9, %v10136_v36 }
 0xb67   : > { %v4439_v42 = vmul.f32 %v4210_v16, %v10136_v36 }
 0xb87   : > { %v5388_v12 = vpop.f32.mrb[48].mxu1 }
 0xb88   : > { %v4223_v35 = vpop.f32.mrb[49].mxu1  ;;  %v4444_v38 = vmul.f32 %v5388_v12, %v10136_v36 }
 0xb89   : > { %v5389_v52 = vpop.f32.mrb[50].mxu1  ;;  %v4442_v59 = vmul.f32 %v4223_v35, %v10136_v36 }
 0xb8a   : > { %v4226_v37 = vpop.f32.mrb[51].mxu1  ;;  %v4445_v9 = vmul.f32 %v5389_v52, %v10136_v36 }
 0xb8f   : > { %v5392_v34 = vpop.f32.mrb[52].mxu1 }
 0xb90   : > { %v4448_v25 = vmul.f32 %v5392_v34, %v10137_v61  ;;  %v4239_v60 = vpop.f32.mrb[53].mxu1 }
 0xb91   : > { %v4446_v6 = vmul.f32 %v4239_v60, %v10137_v61  ;;  %v5393_v58 = vpop.f32.mrb[54].mxu1 }
 0xb92   : > { %v4464_v46 = vadd.f32 %v4448_v25, %v4432_v19  ;;  %v4449_v57 = vmul.f32 %v5393_v58, %v10137_v61  ;;  %v4242_v50 = vpop.f32.mrb[55].mxu1  ;;  %v4443_v25 = vmul.f32 %v4226_v37, %v10136_v36 }
 0xb93   : > { %v4462_v45 = vadd.f32 %v4446_v6, %v4430_v41  ;;  %v4447_v44 = vmul.f32 %v4242_v50, %v10137_v61 }
 0xb94   : > { %v4465_v18 = vadd.f32 %v4449_v57, %v4433_v13  ;;  %v10138_v13 = vld [vmem:[#allocation37_spill] sm:$0xff] }
 0xb95   : > { %v4463_v63 = vadd.f32 %v4447_v44, %v4431_v2 }
 0xb99   : > { %v5396_v40 = vpop.f32.mrb[56].mxu1 }
 0xb9a   : > { %v4452_v62 = vmul.f32 %v5396_v40, %v10137_v61  ;;  %v4255_v23 = vpop.f32.mrb[57].mxu1 }
 0xb9b   : > { %v4450_v5 = vmul.f32 %v4255_v23, %v10137_v61  ;;  %v5397_v47 = vpop.f32.mrb[58].mxu1 }
 0xb9c   : > { %v4468_v31 = vadd.f32 %v4452_v62, %v4436_v53  ;;  %v4453_v21 = vmul.f32 %v5397_v47, %v10137_v61  ;;  %v4258_v51 = vpop.f32.mrb[59].mxu1 }
 0xb9d   : > { %v4466_v29 = vadd.f32 %v4450_v5, %v4434_v22  ;;  %v4451_v26 = vmul.f32 %v4258_v51, %v10137_v61 }
 0xb9e   : > { %v4469_v55 = vadd.f32 %v4453_v21, %v4437_v32 }
 0xb9f   : > { %v4467_v27 = vadd.f32 %v4451_v26, %v4435_v54 }
 0xba1   : > { %v5400_v30 = vpop.f32.mrb[60].mxu1 }
 0xba2   : > { %v4456_v3 = vmul.f32 %v5400_v30, %v10137_v61  ;;  %v4271_v39 = vpop.f32.mrb[61].mxu1 }
 0xba3   : > { %v4454_v33 = vmul.f32 %v4271_v39, %v10137_v61  ;;  %v5401_v14 = vpop.f32.mrb[62].mxu1 }
 0xba4   : > { %v4472_v15 = vadd.f32 %v4456_v3, %v4440_v8  ;;  %v4457_v10 = vmul.f32 %v5401_v14, %v10137_v61  ;;  %v4274_v11 = vpop.f32.mrb[63].mxu1 }
 0xba5   : > { %v4470_v48 = vadd.f32 %v4454_v33, %v4438_v1  ;;  %v4455_v4 = vmul.f32 %v4274_v11, %v10137_v61 }
 0xba6   : > { %v4473_v49 = vadd.f32 %v4457_v10, %v4441_v17 }
 0xba7   : > { %v4471_v43 = vadd.f32 %v4455_v4, %v4439_v42 }
 0xbad   : > { %v5404_v24 = vpop.f32.mrb[64].mxu1 }
 0xbae   : > { %v4460_v20 = vmul.f32 %v5404_v24, %v10137_v61  ;;  %v4287_v0 = vpop.f32.mrb[65].mxu1 }
 0xbaf   : > { %v4458_v56 = vmul.f32 %v4287_v0, %v10137_v61  ;;  %v5405_v28 = vpop.f32.mrb[66].mxu1  ;;  %v256_v0 = vld [vmem:[#allocation5 + $0x78] sm:$0xff] }
 0xbb0   : > { %v4476_v34 = vadd.f32 %v4460_v20, %v4444_v38  ;;  %v4461_v16 = vmul.f32 %v5405_v28, %v10137_v61  ;;  %v4290_v19 = vpop.f32.mrb[67].mxu1  ;;  %v255_v20 = vld [vmem:[#allocation5 + $0x70] sm:$0xff]  ;;  %v258_v28 = vld [vmem:[#allocation5 + $0x88] sm:$0xff] }
 0xbb1   : > { %v4474_v60 = vadd.f32 %v4458_v56, %v4442_v59  ;;  %v4459_v41 = vmul.f32 %v4290_v19, %v10137_v61  ;;  %v257_v59 = vld [vmem:[#allocation5 + $0x80] sm:$0xff]  ;;  %v263_v56 = vpack.c.bf16 %v256_v0, %v255_v20 }
 0xbb2   : > { %v4477_v12 = vadd.f32 %v4461_v16, %v4445_v9  ;;  %v10139_v16 = vld [vmem:[#allocation46_spill] sm:$0xff] }
 0xbb3   : > { %v4475_v6 = vadd.f32 %v4459_v41, %v4443_v25  ;;  %5459 = vmatpush3.bf16.msra.mxu0 %v263_v56  ;;  %v264_v25 = vpack.c.bf16 %v258_v28, %v257_v59  ;;  %v9460_v41 = vld [vmem:[#allocation5 + $0x59] ss:$0 sm:$0xff] }
 0xbb4   : > { %5460 = vmatprep.subr.bf16.mxu0 %v10135_v7 }
 0xbb5   : > { %v5408_v58 = vpop.f32.mrb[68].mxu1 }
 0xbb6   : > { %v4480_v57 = vmul.f32 %v5408_v58, %v10138_v13  ;;  %v4303_v35 = vpop.f32.mrb[69].mxu1 }
 0xbb7   : > { %v4478_v50 = vmul.f32 %v4303_v35, %v10138_v13  ;;  %v5409_v2 = vpop.f32.mrb[70].mxu1  ;;  %5461 = vmatpush3.bf16.msra.mxu0 %v264_v25 }
 0xbb8   : > { %v4496_v44 = vadd.f32 %v4480_v57, %v4464_v46  ;;  %v4481_v52 = vmul.f32 %v5409_v2, %v10138_v13  ;;  %v4306_v40 = vpop.f32.mrb[71].mxu1  ;;  %5462 = vmatprep.subr.bf16.mxu0 %v10135_v7 }
 0xbb9   : > { %v4494_v53 = vadd.f32 %v4478_v50, %v4462_v45  ;;  %v4479_v62 = vmul.f32 %v4306_v40, %v10138_v13 }
 0xbba   : > { %v4497_v37 = vadd.f32 %v4481_v52, %v4465_v18 }
 0xbbb   : > { %v9421_v36 = vadd.f32 %v4479_v62, %v4463_v63 }
 0xbbd   : > { %v5412_v61 = vpop.f32.mrb[72].mxu1 }
 0xbbe   : > { %v4484_v23 = vmul.f32 %v5412_v61, %v10138_v13  ;;  %v4319_v22 = vpop.f32.mrb[73].mxu1 }
 0xbbf   : > { %v4482_v5 = vmul.f32 %v4319_v22, %v10138_v13  ;;  %v5413_v47 = vpop.f32.mrb[74].mxu1 }
 0xbc0   : > { %v9425_v32 = vadd.f32 %v4484_v23, %v4468_v31  ;;  %v4485_v46 = vmul.f32 %v5413_v47, %v10138_v13  ;;  %v4322_v21 = vpop.f32.mrb[75].mxu1 }
 0xbc1   : > { %v9428_v51 = vadd.f32 %v4482_v5, %v4466_v29  ;;  %v4483_v45 = vmul.f32 %v4322_v21, %v10138_v13 }
 0xbc2   : > { %v9431_v54 = vadd.f32 %v4485_v46, %v4469_v55 }
 0xbc3   : > { %v9433_v18 = vadd.f32 %v4483_v45, %v4467_v27 }
 0xbc5   : > { %v5416_v63 = vpop.f32.mrb[76].mxu1 }
 0xbc6   : > { %v4488_v26 = vmul.f32 %v5416_v63, %v10138_v13  ;;  %v4335_v30 = vpop.f32.mrb[77].mxu1 }
 0xbc7   : > { %v4486_v8 = vmul.f32 %v4335_v30, %v10138_v13  ;;  %v5417_v3 = vpop.f32.mrb[78].mxu1 }
 0xbc8   : > { %v9437_v31 = vadd.f32 %v4488_v26, %v4472_v15  ;;  %v4489_v39 = vmul.f32 %v5417_v3, %v10138_v13  ;;  %v4338_v1 = vpop.f32.mrb[79].mxu1 }
 0xbc9   : > { %v9440_v29 = vadd.f32 %v4486_v8, %v4470_v48  ;;  %v4487_v33 = vmul.f32 %v4338_v1, %v10138_v13 }
 0xbca   : > { %v9443_v55 = vadd.f32 %v4489_v39, %v4473_v49 }
 0xbcb   : > { %v9445_v27 = vadd.f32 %v4487_v33, %v4471_v43 }
 0xbcd   : > { %v5420_v14 = vpop.f32.mrb[80].mxu1 }
 0xbce   : > { %v4492_v17 = vmul.f32 %v5420_v14, %v10138_v13  ;;  %v4351_v10 = vpop.f32.mrb[81].mxu1 }
 0xbcf   : > { %v4490_v11 = vmul.f32 %v4351_v10, %v10138_v13  ;;  %v5421_v42 = vpop.f32.mrb[82].mxu1 }
 0xbd0   : > { %v9449_v15 = vadd.f32 %v4492_v17, %v4476_v34  ;;  %v4493_v4 = vmul.f32 %v5421_v42, %v10138_v13  ;;  %v4354_v24 = vpop.f32.mrb[83].mxu1 }
 0xbd1   : > { %v9452_v48 = vadd.f32 %v4490_v11, %v4474_v60  ;;  %v4491_v38 = vmul.f32 %v4354_v24, %v10138_v13 }
 0xbd2   : > { %v9455_v49 = vadd.f32 %v4493_v4, %v4477_v12  ;;  %v259_v12 = vld [vmem:[#allocation5 + $0x90] sm:$0xff] }
 0xbd3   : > { %v9457_v43 = vadd.f32 %v4491_v38, %v4475_v6  ;;  %v260_v6 = vld [vmem:[#allocation5 + $0x98] sm:$0xff] }
 0xbd4   : > { %v265_v62 = vpack.c.bf16 %v260_v6, %v259_v12 }
 0xbd5   : > { %v5424_v9 = vpop.f32.mrb[84].mxu1 }
 0xbd6   : > { %v4512_v34 = vmul.f32 %v5424_v9, %v10139_v16  ;;  %v4367_v19 = vpop.f32.mrb[85].mxu1  ;;  %5463 = vmatpush3.bf16.msra.mxu0 %v265_v62 }
 0xbd7   : > { %v4510_v60 = vmul.f32 %v4367_v19, %v10139_v16  ;;  %v5425_v58 = vpop.f32.mrb[86].mxu1  ;;  %5464 = vmatprep.subr.bf16.mxu0 %v10135_v7 }
 0xbd8   : > { %v4528_v13 = vadd.f32 %v4512_v34, %v4496_v44  ;;  %v4513_v57 = vmul.f32 %v5425_v58, %v10139_v16  ;;  %v4370_v35 = vpop.f32.mrb[87].mxu1 }
 0xbd9   : > { %v4526_v50 = vadd.f32 %v4510_v60, %v4494_v53  ;;  %v4511_v2 = vmul.f32 %v4370_v35, %v10139_v16 }
 0xbda   : > { %v9467_v52 = vadd.f32 %v9460_v41, %v4528_v13  ;;  %v4529_v40 = vadd.f32 %v4513_v57, %v4497_v37 }
 0xbdb   : > { %v9470_v61 = vadd.f32 %v9460_v41, %v4526_v50  ;;  %v4527_v23 = vadd.f32 %v4511_v2, %v9421_v36 }
 0xbdc   : > { %v4580_v44 = vmin.f32 %v9467_v52, 0.0  ;;  %v9476_v22 = vadd.f32 %v9460_v41, %v4529_v40  ;;  %vm4564_vm8 = vcmp.gt.f32.partialorder %v9467_v52, 0.0 }
 0xbdd   : > { %v4578_v53 = vmin.f32 %v9470_v61, 0.0  ;;  %v9480_v5 = vadd.f32 %v9460_v41, %v4527_v23  ;;  %v5428_v37 = vpop.f32.mrb[88].mxu1  ;;  %vm4562_vm9 = vcmp.gt.f32.partialorder %v9470_v61, 0.0 }
 0xbde   : > { %v4598_v47 = vmul.f32 1.442695, %v4580_v44  ;;  %v4581_v46 = vmin.f32 %v9476_v22, 0.0  ;;  %v4516_v21 = vmul.f32 %v5428_v37, %v10139_v16  ;;  %v4383_v45 = vpop.f32.mrb[89].mxu1  ;;  %vm4565_vm10 = vcmp.gt.f32.partialorder %v9476_v22, 0.0 }
 0xbdf   : > { %v4594_v36 = vmul.f32 1.442695, %v4578_v53  ;;  %v4579_v63 = vmin.f32 %v9480_v5, 0.0  ;;  %v4514_v26 = vmul.f32 %v4383_v45, %v10139_v16  ;;  %v5429_v30 = vpop.f32.mrb[90].mxu1  ;;  %vm4563_vm11 = vcmp.gt.f32.partialorder %v9480_v5, 0.0 }
 0xbe0   : > { %6206 = vpow2.f32 %v4598_v47  ;;  %v4600_v8 = vmul.f32 1.442695, %v4581_v46  ;;  %v4532_v3 = vadd.f32 %v4516_v21, %v9425_v32  ;;  %v4517_v39 = vmul.f32 %v5429_v30, %v10139_v16  ;;  %v4386_v1 = vpop.f32.mrb[91].mxu1 }
 0xbe1   : > { %6208 = vpow2.f32 %v4594_v36  ;;  %v4596_v33 = vmul.f32 1.442695, %v4579_v63  ;;  %v4530_v14 = vadd.f32 %v4514_v26, %v9428_v51  ;;  %v4515_v17 = vmul.f32 %v4386_v1, %v10139_v16 }
 0xbe2   : > { %6210 = vpow2.f32 %v4600_v8  ;;  %v9492_v10 = vadd.f32 %v9460_v41, %v4532_v3  ;;  %v4533_v11 = vadd.f32 %v4517_v39, %v9431_v54 }
 0xbe3   : > { %6212 = vpow2.f32 %v4596_v33  ;;  %v9496_v42 = vadd.f32 %v9460_v41, %v4530_v14  ;;  %v4531_v32 = vadd.f32 %v4515_v17, %v9433_v18 }
 0xbe4   : > { %v4584_v4 = vmin.f32 %v9492_v10, 0.0  ;;  %v9501_v24 = vadd.f32 %v9460_v41, %v4533_v11  ;;  %vm4568_vm12 = vcmp.gt.f32.partialorder %v9492_v10, 0.0 }
 0xbe5   : > { %v4582_v51 = vmin.f32 %v9496_v42, 0.0  ;;  %v9505_v38 = vadd.f32 %v9460_v41, %v4531_v32  ;;  %v5432_v20 = vpop.f32.mrb[92].mxu1  ;;  %vm4566_vm14 = vcmp.gt.f32.partialorder %v9496_v42, 0.0 }
 0xbe6   : > { %v4606_v0 = vmul.f32 1.442695, %v4584_v4  ;;  %v4585_v54 = vmin.f32 %v9501_v24, 0.0  ;;  %v4520_v59 = vmul.f32 %v5432_v20, %v10139_v16  ;;  %v4399_v56 = vpop.f32.mrb[93].mxu1  ;;  %vm4569_vm13 = vcmp.gt.f32.partialorder %v9501_v24, 0.0 }
 0xbe7   : > { %v4602_v28 = vmul.f32 1.442695, %v4582_v51  ;;  %v4583_v18 = vmin.f32 %v9505_v38, 0.0  ;;  %v4518_v9 = vmul.f32 %v4399_v56, %v10139_v16  ;;  %v5433_v34 = vpop.f32.mrb[94].mxu1  ;;  %vm4567_vm15 = vcmp.gt.f32.partialorder %v9505_v38, 0.0 }
 0xbe8   : > { %6214 = vpow2.f32 %v4606_v0  ;;  %v4608_v19 = vmul.f32 1.442695, %v4585_v54  ;;  %v4536_v25 = vadd.f32 %v4520_v59, %v9437_v31  ;;  %v4521_v60 = vmul.f32 %v5433_v34, %v10139_v16  ;;  %v4402_v58 = vpop.f32.mrb[95].mxu1 }
 0xbe9   : > { %6216 = vpow2.f32 %v4602_v28  ;;  %v4604_v12 = vmul.f32 1.442695, %v4583_v18  ;;  %v4534_v6 = vadd.f32 %v4518_v9, %v9440_v29  ;;  %v4519_v13 = vmul.f32 %v4402_v58, %v10139_v16 }
 0xbea   : > { %v6207_v57 = vpop.eup %6206  ;;  %6218 = vpow2.f32 %v4608_v19  ;;  %v9516_v35 = vadd.f32 %v9460_v41, %v4536_v25  ;;  %v4537_v50 = vadd.f32 %v4521_v60, %v9443_v55 }
 0xbeb   : > { %v6209_v2 = vpop.eup %6208  ;;  %6220 = vpow2.f32 %v4604_v12  ;;  %v9521_v31 = vadd.f32 %v9460_v41, %v4534_v6  ;;  %v4535_v40 = vadd.f32 %v4519_v13, %v9445_v27  ;;  %v4983_v29 = vadd.f32 -1.0, %v6207_v57 }
 0xbec   : > { %v6211_v62 = vpop.eup %6210  ;;  %v4981_v23 = vadd.f32 -1.0, %v6209_v2  ;;  %v4588_v44 = vmin.f32 %v9516_v35, 0.0  ;;  %v9526_v53 = vadd.f32 %v9460_v41, %v4537_v50  ;;  %vm4572_vm0 = vcmp.gt.f32.partialorder %v9516_v35, 0.0 }
 0xbed   : > { %v6213_v37 = vpop.eup %6212  ;;  %v4984_v55 = vadd.f32 -1.0, %v6211_v62  ;;  %v4586_v47 = vmin.f32 %v9521_v31, 0.0  ;;  %v4555_v46 = vadd.f32 %v9460_v41, %v4535_v40  ;;  %v4644_v3 = vsel %vm4564_vm8, %v9467_v52, %v4983_v29 }
 0xbee   : > { %v4982_v21 = vadd.f32 -1.0, %v6213_v37  ;;  %v4614_v27 = vmul.f32 1.442695, %v4588_v44  ;;  %v4589_v45 = vmin.f32 %v9526_v53, 0.0  ;;  %v4642_v26 = vsel %vm4562_vm9, %v9470_v61, %v4981_v23 }
 0xbef   : > { %v4610_v36 = vmul.f32 1.442695, %v4586_v47  ;;  %v4587_v63 = vmin.f32 %v4555_v46, 0.0  ;;  %v4645_v33 = vsel %vm4565_vm10, %v9476_v22, %v4984_v55  ;;  %vm4573_vm1 = vcmp.gt.f32.partialorder %v9526_v53, 0.0 }
 0xbf0   : > { %6222 = vpow2.f32 %v4614_v27  ;;  %v4616_v30 = vmul.f32 1.442695, %v4589_v45  ;;  %v4643_v8 = vsel %vm4563_vm11, %v9480_v5, %v4982_v21  ;;  %v4660_v17 = vpack.c.bf16 %v4645_v33, %v4644_v3 }
 0xbf1   : > { %6224 = vpow2.f32 %v4610_v36  ;;  %v4612_v39 = vmul.f32 1.442695, %v4587_v63  ;;  %v4659_v1 = vpack.c.bf16 %v4643_v8, %v4642_v26  ;;  %vm4570_vm4 = vcmp.gt.f32.partialorder %v9521_v31, 0.0 }
 0xbf2   : > { %v6215_v14 = vpop.eup %6214  ;;  %6226 = vpow2.f32 %v4616_v30  ;;  %vm4571_vm5 = vcmp.gt.f32.partialorder %v4555_v46, 0.0 }
 0xbf3   : > { %v6217_v11 = vpop.eup %6216  ;;  %v4987_v32 = vadd.f32 -1.0, %v6215_v14  ;;  %6228 = vpow2.f32 %v4612_v39  ;;  %5439 = vmatpush3.bf16.msra.mxu1 %v4659_v1 }
 0xbf4   : > { %v6219_v61 = vpop.eup %6218  ;;  %v4985_v4 = vadd.f32 -1.0, %v6217_v11  ;;  %5440 = vmatprep.subr.bf16.mxu1 %v10135_v7 }
 0xbf5   : > { %v6221_v5 = vpop.eup %6220  ;;  %v4988_v51 = vadd.f32 -1.0, %v6219_v61  ;;  %v4648_v22 = vsel %vm4568_vm12, %v9492_v10, %v4987_v32  ;;  %v226_v61 = vld [vmem:[%s6584_s3 + $0x180] sm:$0xff] }
 0xbf6   : > { %v4986_v52 = vadd.f32 -1.0, %v6221_v5  ;;  %v4646_v0 = vsel %vm4566_vm14, %v9496_v42, %v4985_v4  ;;  %v4658_v4 = vpack.c.bf16 %v226_v61, %v226_v61  ;;  %v261_v5 = vld [vmem:[#allocation5 + $0xa0] sm:$0xff] }
 0xbf7   : > { %5441 = vmatpush3.bf16.msra.mxu1 %v4660_v17  ;;  %v4649_v20 = vsel %vm4569_vm13, %v9501_v24, %v4988_v51  ;;  %v262_v51 = vld [vmem:[#allocation5 + $0xa8] sm:$0xff] }
 0xbf8   : > { %5442 = vmatprep.subr.bf16.mxu1 %v10135_v7  ;;  %v4647_v54 = vsel %vm4567_vm15, %v9505_v38, %v4986_v52  ;;  %v4662_v59 = vpack.c.bf16 %v4649_v20, %v4648_v22  ;;  %v266_v52 = vpack.c.bf16 %v262_v51, %v261_v5 }
 0xbf9   : > { %v4661_v56 = vpack.c.bf16 %v4647_v54, %v4646_v0 }
 0xbfa   : > { %v6223_v28 = vpop.eup %6222  ;;  %5465 = vmatpush3.bf16.msra.mxu0 %v266_v52 }
 0xbfb   : > { %v6225_v18 = vpop.eup %6224  ;;  %v4991_v9 = vadd.f32 -1.0, %v6223_v28  ;;  %5443 = vmatpush3.bf16.msra.mxu1 %v4661_v56  ;;  %5470 = vmatprep.subr.bf16.mxu0 %v10135_v7  ;;  %v270_v56 = vld [vmem:[#allocation5 + $0xb8] sm:$0xff]  ;;  %v271_v28 = vld [vmem:[#allocation5 + $0xc0] sm:$0xff] }
 0xbfc   : > { %v6227_v34 = vpop.eup %6226  ;;  %v4989_v19 = vadd.f32 -1.0, %v6225_v18  ;;  %5444 = vmatprep.subr.bf16.mxu1 %v10135_v7  ;;  %v272_v18 = vpack.c.bf16 %v271_v28, %v270_v56 }
 0xbfd   : > { %v6229_v25 = vpop.eup %6228  ;;  %v4992_v10 = vadd.f32 -1.0, %v6227_v34  ;;  %v4652_v42 = vsel %vm4572_vm0, %v9516_v35, %v4991_v9  ;;  %v4997_v9 = vld [vmem:[#allocation5 + $0xb0] ss:$0 sm:$0xff]  ;;  %v4711_v34 = vpop.permute.xlu0 %4710 }
 0xbfe   : > { %v4990_v24 = vadd.f32 -1.0, %v6229_v25  ;;  %v4650_v60 = vsel %vm4570_vm4, %v9521_v31, %v4989_v19  ;;  %v4999_v19 = vld [vmem:[#allocation5 + $0xb1] ss:$0 sm:$0xff]  ;;  %v4763_v25 = vpop.permute.xlu1 %4762 }
 0xbff   : > { %5445 = vmatpush3.bf16.msra.mxu1 %v4662_v59  ;;  %v4653_v38 = vsel %vm4573_vm1, %v9526_v53, %v4992_v10  ;;  %v4717_v10 = vmul.f32 %v4997_v9, %v4711_v34 }
 0xc00   : > { %5446 = vmatprep.subr.bf16.mxu1 %v10135_v7  ;;  %v4651_v58 = vsel %vm4571_vm5, %v4555_v46, %v4990_v24  ;;  %v4664_v12 = vpack.c.bf16 %v4653_v38, %v4652_v42  ;;  %v4769_v24 = vmul.f32 %v4999_v19, %v4763_v25 }
 0xc01   : > { %v4663_v6 = vpack.c.bf16 %v4651_v58, %v4650_v60  ;;  %v5000_v58 = vld [vmem:[#allocation5 + $0xb2] ss:$0 sm:$0xff] }
 0xc03   : > { %5447 = vmatpush3.bf16.msra.mxu1 %v4663_v6 }
 0xc04   : > { %5448 = vmatprep.subr.bf16.mxu1 %v10135_v7 }
 0xc07   : > { %5449 = vmatpush3.bf16.msra.mxu1 %v4664_v12 }
 0xc08   : > { %5450 = vmatprep.subr.bf16.mxu1 %v10135_v7 }
 0xc2e   : > { %v5436_v13 = vpop.f32.mrb[96].mxu1 }
 0xc2f   : > { %v4524_v57 = vmul.f32 %v5436_v13, %v10139_v16  ;;  %v4415_v50 = vpop.f32.mrb[97].mxu1 }
 0xc30   : > { %v4522_v35 = vmul.f32 %v4415_v50, %v10139_v16  ;;  %v5437_v2 = vpop.f32.mrb[98].mxu1 }
 0xc31   : > { %v4540_v40 = vadd.f32 %v4524_v57, %v9449_v15  ;;  %v4525_v31 = vmul.f32 %v5437_v2, %v10139_v16  ;;  %v4418_v62 = vpop.f32.mrb[99].mxu1 }
 0xc32   : > { %v4538_v29 = vadd.f32 %v4522_v35, %v9452_v48  ;;  %v4523_v23 = vmul.f32 %v4418_v62, %v10139_v16  ;;  %v5001_v35 = vld [vmem:[#allocation5 + $0xc8] ss:$0 sm:$0xff] }
 0xc33   : > { %v4560_v44 = vadd.f32 %v9460_v41, %v4540_v40  ;;  %v4541_v53 = vadd.f32 %v4525_v31, %v9455_v49 }
 0xc34   : > { %v4558_v37 = vadd.f32 %v9460_v41, %v4538_v29  ;;  %v4539_v55 = vadd.f32 %v4523_v23, %v9457_v43 }
 0xc35   : > { %v4592_v47 = vmin.f32 %v4560_v44, 0.0  ;;  %v4561_v46 = vadd.f32 %v9460_v41, %v4541_v53  ;;  %vm4576_vm6 = vcmp.gt.f32.partialorder %v4560_v44, 0.0 }
 0xc36   : > { %v4590_v21 = vmin.f32 %v4558_v37, 0.0  ;;  %v4559_v15 = vadd.f32 %v9460_v41, %v4539_v55  ;;  %vm4574_vm8 = vcmp.gt.f32.partialorder %v4558_v37, 0.0 }
 0xc37   : > { %v4622_v27 = vmul.f32 1.442695, %v4592_v47  ;;  %v4593_v45 = vmin.f32 %v4561_v46, 0.0  ;;  %vm4577_vm7 = vcmp.gt.f32.partialorder %v4561_v46, 0.0 }
 0xc38   : > { %v4618_v36 = vmul.f32 1.442695, %v4590_v21  ;;  %v4591_v48 = vmin.f32 %v4559_v15, 0.0  ;;  %vm4575_vm9 = vcmp.gt.f32.partialorder %v4559_v15, 0.0 }
 0xc39   : > { %6230 = vpow2.f32 %v4622_v27  ;;  %v4624_v16 = vmul.f32 1.442695, %v4593_v45 }
 0xc3a   : > { %6232 = vpow2.f32 %v4618_v36  ;;  %v4620_v63 = vmul.f32 1.442695, %v4591_v48 }
 0xc3b   : > { %6234 = vpow2.f32 %v4624_v16 }
 0xc3c   : > { %6236 = vpow2.f32 %v4620_v63 }
 0xc43   : > { %v6231_v49 = vpop.eup %6230 }
 0xc44   : > { %v6233_v26 = vpop.eup %6232  ;;  %v4995_v30 = vadd.f32 -1.0, %v6231_v49 }
 0xc45   : > { %v6235_v43 = vpop.eup %6234  ;;  %v4993_v8 = vadd.f32 -1.0, %v6233_v26 }
 0xc46   : > { %v6237_v3 = vpop.eup %6236  ;;  %v4996_v39 = vadd.f32 -1.0, %v6235_v43  ;;  %v4656_v1 = vsel %vm4576_vm6, %v4560_v44, %v4995_v30 }
 0xc47   : > { %v4994_v41 = vadd.f32 -1.0, %v6237_v3  ;;  %v4654_v14 = vsel %vm4574_vm8, %v4558_v37, %v4993_v8 }
 0xc48   : > { %v4657_v33 = vsel %vm4577_vm7, %v4561_v46, %v4996_v39 }
 0xc49   : > { %v4655_v17 = vsel %vm4575_vm9, %v4559_v15, %v4994_v41  ;;  %v4666_v11 = vpack.c.bf16 %v4657_v33, %v4656_v1 }
 0xc4a   : > { %v4665_v32 = vpack.c.bf16 %v4655_v17, %v4654_v14 }
 0xc4c   : > { %5451 = vmatpush3.bf16.msra.mxu1 %v4665_v32 }
 0xc4d   : > { %5452 = vmatprep.subr.bf16.mxu1 %v10135_v7 }
 0xc50   : > { %5453 = vmatpush3.bf16.msra.mxu1 %v4666_v11 }
 0xc53   : > { %5455 = vmatmul.mubr.bf16.vlgmr.msra.gmra.mrb[100].mxu1 %v4658_v4 }
 0xd26   : > { %v4701_v22 = vpop.f32.mrb[100].mxu1 }
 0xd27   : > { %v4707_v20 = vpack.c.bf16 %v4701_v22, %v4701_v22  ;;  %v5456_v0 = vpop.f32.mrb[101].mxu1 }
 0xd28   : > { %v4704_v54 = vpop.f32.mrb[102].mxu1 }
 0xd29   : > { %5467 = vmatmul.mubr.msk.bf16.vlgmr.msra.gmra.mrb[100].mxu0 %vm416_vm3, %v4707_v20  ;;  %v5457_v59 = vpop.f32.mrb[103].mxu1 }
 0xd2a   : > { %5472 = vmatprep.mubr.msk.bf16.mxu0 %vm6414_vm2, %v10135_v7  ;;  %5471 = vmatpush3.bf16.msra.mxu0 %v272_v18  ;;  %vm4782_vm2 = vcmask 130048  }
 0xdfc   : > { %v4755_v42 = vpop.f32.mrb[100].mxu0 }
 0xdfd   : > { %v4756_v38 = vadd.f32 %v4755_v42, %v4717_v10  ;;  %v5468_v60 = vpop.f32.mrb[101].mxu0 }
 0xdfe   : > { %v4758_v12 = vpop.f32.mrb[102].mxu0 }
 0xdff   : > { %v4770_v6 = vadd.f32 %v4769_v24, %v4756_v38  ;;  %v5469_v13 = vpop.f32.mrb[103].mxu0 }
 0xe01   : > { %v4775_v7 = vadd.f32 %v5000_v58, %v4770_v6 }
 0xe03   : > { %v4776_v57 = vmax.f32 %v4775_v7, 0.0 }
 0xe05   : > { %v4777_v50 = vpack.c.bf16 %v4776_v57, %v4776_v57 }
 0xe07   : > { %5473 = vmatmul.mubr.msk.bf16.vlgmr.msra.gmra.mrb[104].mxu0 %vm4782_vm2, %v4777_v50 }
 0xeda   : > { %v4820_v2 = vpop.f32.mrb[104].mxu0 }
 0xedb   : > { %v4821_v40 = vadd.f32 %v5001_v35, %v4820_v2  ;;  %v5474_v31 = vpop.f32.mrb[105].mxu0 }
 0xedc   : > { %v4823_v62 = vpop.f32.mrb[106].mxu0 }
 0xedd   : > { %4826 = vst [vmem:[%s176_s4] sm:$0xff] %v4821_v40  ;;  %v5475_v29 = vpop.f32.mrb[107].mxu0 }
 0xede   : > { %6350 = shalt.err (!%p6347_p7)
}
 0xedf   : > { %s6351_s18 = scalar_lea.hbm %s9583_s27, 128  ;;  %s6355_s23 = scalar_lea.hbm %s9629_s2, 256 }
 0xee0   : > { %p6352_p9 = scmp.ne.s32.totalorder %s9583_s27, %s6351_s18  ;;  %p6356_p5 = scmp.lt.u32.totalorder %s9583_s27, %s9629_s2 }
 0xee1   : > { %p6357_p13 = scmp.lt.u32.totalorder %s6355_s23, %s6351_s18  ;;  %p6359_p4 = scmp.lt.u32.totalorder %s6351_s18, %s9583_s27 }
 0xee2   : > { %p6353_p1 = pnand %p6352_p9, %p6529_p12 }
 0xee3   : > { %p6358_p2 = por %p6357_p13, %p6356_p5 }
 0xee4   : > { %p6354_p0 = pneg %p6353_p1 }
 0xee5   : > { %p6360_p6 = por %p6359_p4, %p6358_p2 }
 0xee7   : > { %p6361_p8 = pnand %p6360_p6, %p6354_p0 }
 0xee9   : > { %6364 = shalt.err (!%p6361_p8)
}
 0xeea   : > { %5488 = dma.vmem_to_hbm [thread:$0]  (%p6529_p12), %s9585_s5, 128, %s9583_s27, %s4828_s28  }
 0xeeb PF: > { %s4853_s30 = sand.u32 1, %s6395_s9   ;;  %p10140_p10 = scmp.ne.s32.totalorder %s9798_s16, 0 }
 0xeec   : > { %p10141_p11 = scmp.ge.s32.totalorder %s6407_s12, 2  ;;  %s4854_s3 = scalar_lea.sflag [#allocation4], %s4853_s30 }
 0xeee   : > { %p5499_p3 = pnand %p10141_p11, %p10140_p10 }
 0xef0   : > { %6390 = dma.done.wait (!%p5499_p3), %s4854_s3, 128  }
 0xef1   : > { %6392 = vsyncadd (!%p5499_p3), %s4854_s3, 4294967168  ;;  %p16_p7 = scmp.ge.s32.totalorder %s6491_s21, 4   ;;  %s10142_s9 = smov %s6399_s10 }
 0xef2   : > { %s10143_s10 = smov %s6403_s11  ;;  %s10144_s11 = smov %s6525_s8 }
 0xef3   : > { %s10145_s12 = smov %s6491_s21  ;;  %18 = sbr.rel (!%p16_p7) target bundleno = 6 (0x6), region = 77 }
 0xefa   :  { %4859 = vsyncpa [#allocation3], 1 }
 0xefb   :  { %4861 = vsyncpa [#allocation3 + $0x1], 1 }
 0xefc   :  { %4862 = vsyncpa [#allocation6], 1 }
 0xefd   :  { %4863 = vsyncpa [#allocation4], 1 }
 0xefe   :  { %4865 = vsyncpa [#allocation4 + $0x1], 1 }

</bundles_post_ra>
